<compile_context>
chip_gen: v6e
topology: v6e:2x2x1
jax: 0.10.0
libtpu: 0.0.40
codegen_flags: <defaults>
</compile_context>

<pallas_src>
import jax
import jax.numpy as jnp
from jax import lax
from jax.experimental import pallas as pl
from jax.experimental.pallas import tpu as pltpu


# ----------------------------- Pallas kernel -------------------------------- #

def _make_layer_kernel(H, W):
    """Fused conv3x3(SAME) + BN + ReLU + 2x2 max-pool kernel for an HxW image.

    Input block  x_ref : ((H+4)*(W+2), Cin_p)  float32, zero-padded flat image
                         (2 zero rows top/bottom, 1 zero col left/right).
    Weights      w_ref : (9, Cin_p, Cout_p)    bfloat16 (tap-major).
    scale/shift        : (1, Cout_p)           float32 folded BN(+bias).
    sel_ref            : (Mout, K4)            float32 constant select/scatter
                         matrix (max-pool position selection + zero-padding
                         scatter for the next layer, or 1/Npool averaging row
                         for the final global-avg-pool layer).
    Output block o_ref : (Mout, Cout_p)        float32.
    """
    Wp = W + 2                 # padded row length
    Mo = H * Wp                # conv-output slab rows (incl. garbage pad cols)
    K4 = Mo - (W + 3)          # rows for which a full 2x2 window max exists
    base = 2 * Wp              # flat offset of padded row 2 (first image row)

    def kernel(x_ref, w_ref, scale_ref, shift_ref, sel_ref, o_ref):
        # ---- conv3x3 as 9 shifted matmuls, bf16 operands, f32 accumulate ----
        acc = None
        for ky in range(3):
            for kx in range(3):
                start = base + (ky - 1) * Wp + (kx - 1)          # static
                xs = x_ref[pl.ds(start, Mo), :].astype(jnp.bfloat16)
                p = jnp.dot(xs, w_ref[ky * 3 + kx],
                            preferred_element_type=jnp.float32)
                acc = p if acc is None else acc + p
        # ---- folded BatchNorm (+conv bias) and ReLU, f32 -------------------
        y = jnp.maximum(acc * scale_ref[...] + shift_ref[...], 0.0)
        # ---- 2x2 max-pool: max over the 4 corners of each window -----------
        m4 = jnp.maximum(
            jnp.maximum(y[0:K4, :], y[1:K4 + 1, :]),
            jnp.maximum(y[Wp:Wp + K4, :], y[Wp + 1:Wp + 1 + K4, :]))
        # ---- exact select (pool positions) + scatter into the next layer's
        #      padded-flat layout (or global average pool) via one matmul -----
        o_ref[...] = jnp.dot(sel_ref[...], m4,
                             preferred_element_type=jnp.float32
                             ).astype(o_ref.dtype)

    return kernel


# ------------------------------ JAX glue ------------------------------------ #

def _round_up(x, m):
    return (x + m - 1) // m * m


def _pool_scatter_matrix(H, W, final):
    """Constant matrix applied to m4 (the per-position 2x2-window maxima).

    final=False: (Mn, K4) with a single 1.0 per pooled pixel, placed at that
                 pixel's row in the next layer's padded-flat layout (padding
                 rows/cols stay all-zero -> output is already zero-padded).
    final=True : (1, K4) with 1/Npool at every pooled pixel -> global avg pool.
    """
    Wp = W + 2
    Mo = H * Wp
    K4 = Mo - (W + 3)
    Ho, Wo = H // 2, W // 2
    ii, jj = jnp.meshgrid(jnp.arange(Ho), jnp.arange(Wo), indexing="ij")
    anchors = (2 * ii * Wp + 1 + 2 * jj).reshape(-1)          # flat y-index of
    if final:                                                 # each 2x2 window
        sel = jnp.zeros((1, K4), jnp.float32)
        sel = sel.at[0, anchors].set(1.0 / (Ho * Wo))
    else:
        Wpn = Wo + 2
        Mn = (Ho + 4) * Wpn
        rows = ((ii + 2) * Wpn + 1 + jj).reshape(-1)
        sel = jnp.zeros((Mn, K4), jnp.float32)
        sel = sel.at[rows, anchors].set(1.0)
    return sel


def _fused_conv_block(x_flat, w, scale, shift, sel, H, W):
    """One fused layer on the padded-flat activation layout."""
    N, Mx, cin_p = x_flat.shape
    assert Mx == (H + 4) * (W + 2)
    cout_p = w.shape[-1]
    Mout = sel.shape[0]
    return pl.pallas_call(
        _make_layer_kernel(H, W),
        out_shape=jax.ShapeDtypeStruct((N, Mout, cout_p), jnp.float32),
        grid=(N,),
        in_specs=[
            pl.BlockSpec((None, Mx, cin_p), lambda n: (n, 0, 0)),   # one image
            pl.BlockSpec((9, cin_p, cout_p), lambda n: (0, 0, 0)),  # 9 taps
            pl.BlockSpec((1, cout_p), lambda n: (0, 0)),            # BN scale
            pl.BlockSpec((1, cout_p), lambda n: (0, 0)),            # BN shift
            pl.BlockSpec(sel.shape, lambda n: (0, 0)),              # pool sel
        ],
        out_specs=pl.BlockSpec((None, Mout, cout_p), lambda n: (n, 0, 0)),
        compiler_params=pltpu.CompilerParams(
            dimension_semantics=("parallel",)),
    )(x_flat, w, scale, shift, sel)


# --------------------------- parameter set-up ------------------------------- #

def init_params(key, input_channels=3):
    """Deterministic synthetic weights matching Conv4_512's shapes.

    Returns (kernel_params, reference_params):
      kernel_params[i]    = (w (9,Cin_p,Cout_p) bf16, scale (1,Cout_p) f32,
                             shift (1,Cout_p) f32, cout)
      reference_params[i] = (w (3,3,Cin,Cout) f32, scale (Cout,), shift (Cout,))
    """
    chans = [(input_channels, 64), (64, 64), (64, 64), (64, 512)]
    eps = 1e-5
    kparams, rparams = [], []
    for cin, cout in chans:
        key, kw, kb, kg, kbe = jax.random.split(key, 5)
        w = jax.random.normal(kw, (3, 3, cin, cout), jnp.float32) / jnp.sqrt(9.0 * cin)
        b = 0.01 * jax.random.normal(kb, (cout,), jnp.float32)
        gamma = 1.0 + 0.1 * jax.random.normal(kg, (cout,), jnp.float32)
        beta = 0.1 * jax.random.normal(kbe, (cout,), jnp.float32)
        running_mean = jnp.zeros((cout,), jnp.float32)   # PyTorch fresh-init BN
        running_var = jnp.ones((cout,), jnp.float32)
        scale = gamma / jnp.sqrt(running_var + eps)
        shift = beta + scale * (b - running_mean)        # fold conv bias + BN

        cin_p, cout_p = _round_up(cin, 128), _round_up(cout, 128)
        w_p = jnp.zeros((3, 3, cin_p, cout_p), jnp.float32)
        w_p = w_p.at[:, :, :cin, :cout].set(w).reshape(9, cin_p, cout_p)
        scale_p = jnp.zeros((1, cout_p), jnp.float32).at[0, :cout].set(scale)
        shift_p = jnp.zeros((1, cout_p), jnp.float32).at[0, :cout].set(shift)
        kparams.append((w_p.astype(jnp.bfloat16), scale_p, shift_p, cout))
        rparams.append((w, scale, shift))
    return kparams, rparams


# ------------------------------- forward ------------------------------------ #

def conv4_512_forward(x_nchw, kernel_params):
    """4x fused [conv3x3 -> BN -> ReLU -> maxpool2x2] (+ global avg pool) -> (N, 512)."""
    N, C, H, W = x_nchw.shape
    n_layers = len(kernel_params)
    assert H % (2 ** n_layers) == 0 and W % (2 ** n_layers) == 0, \
        "spatial dims must stay even at every pooling stage"
    # TODO(synk): odd/ragged spatial sizes (PyTorch floor-mode pooling) not implemented.

    cin_p0 = kernel_params[0][0].shape[1]
    x = jnp.transpose(x_nchw, (0, 2, 3, 1)).astype(jnp.float32)   # NCHW -> NHWC
    x = jnp.pad(x, ((0, 0), (2, 2), (1, 1), (0, cin_p0 - C)))     # halo + lane pad
    x = x.reshape(N, (H + 4) * (W + 2), cin_p0)                   # padded-flat layout

    h, w = H, W
    for li, (wq, scale, shift, _cout) in enumerate(kernel_params):
        final = li == n_layers - 1
        sel = _pool_scatter_matrix(h, w, final)
        x = _fused_conv_block(x, wq, scale, shift, sel, h, w)
        h, w = h // 2, w // 2

    cout_last = kernel_params[-1][3]
    return x.reshape(N, -1)[:, :cout_last]     # == x.view(N, -1) after 1x1 avg pool


# ---------------------- pure-JAX reference (for checking) ------------------- #

def reference_forward(x_nchw, reference_params):
    x = jnp.transpose(x_nchw, (0, 2, 3, 1)).astype(jnp.float32)
    for w, scale, shift in reference_params:
        y = lax.conv_general_dilated(
            x, w, window_strides=(1, 1), padding="SAME",
            dimension_numbers=("NHWC", "HWIO", "NHWC"))
        y = jnp.maximum(y * scale + shift, 0.0)
        x = lax.reduce_window(y, -jnp.inf, lax.max,
                              window_dimensions=(1, 2, 2, 1),
                              window_strides=(1, 2, 2, 1), padding="VALID")
    return jnp.mean(x, axis=(1, 2))


# --------------------------------- main -------------------------------------- #

if __name__ == "__main__":
    key = jax.random.PRNGKey(0)
    kp, kx = jax.random.split(key)
    kernel_params, reference_params = init_params(kp, input_channels=3)

    # batch=2, C=3, 16x16 spatial (16 / 2^4 = 1 -> final avg pool sees 1x1).
    x = jax.random.normal(kx, (2, 3, 16, 16), jnp.float32)

    fwd = jax.jit(lambda inp: conv4_512_forward(inp, kernel_params))
    out = jax.block_until_ready(fwd(x))
    assert out.shape == (2, 512) and out.dtype == jnp.float32

    ref = jax.block_until_ready(reference_forward(x, reference_params))
    assert bool(jnp.allclose(out, ref, rtol=5e-2, atol=5e-2)), \
        f"max abs diff vs reference: {float(jnp.max(jnp.abs(out - ref)))}"

    print("KERNEL_OK")
</pallas_src>

<mosaic_0001>
module attributes {stable_mosaic.version = 11 : i64} {
  func.func @kernel(%arg0: i32, %arg1: memref<1x360x128xf32, #tpu.memory_space<vmem>>, %arg2: memref<9x128x128xbf16, #tpu.memory_space<vmem>>, %arg3: memref<1x128xf32, #tpu.memory_space<vmem>>, %arg4: memref<1x128xf32, #tpu.memory_space<vmem>>, %arg5: memref<120x269xf32, #tpu.memory_space<vmem>>, %arg6: memref<1x120x128xf32, #tpu.memory_space<vmem>>) attributes {dimension_semantics = [#tpu.dimension_semantics<parallel>], iteration_bounds = array<i64: 2>, scalar_prefetch = 0 : i64, scratch_operands = 0 : i64, tpu.core_type = #tpu.core_type<tc>, window_params = [{transform_indices = @transform_0, window_bounds = array<i64: 1, 360, 128>}, {pipeline_mode = #tpu.pipeline_mode<synchronous>, transform_indices = @transform_1, window_bounds = array<i64: 9, 128, 128>}, {pipeline_mode = #tpu.pipeline_mode<synchronous>, transform_indices = @transform_2, window_bounds = array<i64: 1, 128>}, {pipeline_mode = #tpu.pipeline_mode<synchronous>, transform_indices = @transform_3, window_bounds = array<i64: 1, 128>}, {pipeline_mode = #tpu.pipeline_mode<synchronous>, transform_indices = @transform_4, window_bounds = array<i64: 120, 269>}, {transform_indices = @transform_5, window_bounds = array<i64: 1, 120, 128>}]} {
    %c0 = arith.constant 0 : index
    %c17 = arith.constant 17 : index
    %c0_0 = arith.constant 0 : index
    %0 = vector.load %arg1[%c0, %c17, %c0_0] : memref<1x360x128xf32, #tpu.memory_space<vmem>>, vector<1x288x128xf32>
    %1 = vector.shape_cast %0 : vector<1x288x128xf32> to vector<288x128xf32>
    %2 = arith.truncf %1 : vector<288x128xf32> to vector<288x128xbf16>
    %c0_1 = arith.constant 0 : index
    %c0_2 = arith.constant 0 : index
    %c0_3 = arith.constant 0 : index
    %3 = vector.load %arg2[%c0_1, %c0_2, %c0_3] : memref<9x128x128xbf16, #tpu.memory_space<vmem>>, vector<1x128x128xbf16>
    %4 = vector.shape_cast %3 : vector<1x128x128xbf16> to vector<128x128xbf16>
    %cst = arith.constant dense<0.000000e+00> : vector<288x128xf32>
    %5 = tpu.matmul %2, %4, %cst {dimension_numbers = #tpu.dot_dimension_numbers<[1], [0], [0], [1], [0, 0, 1, 1], [], []>} : vector<288x128xbf16>, vector<128x128xbf16>, vector<288x128xf32> -> vector<288x128xf32>
    %c0_4 = arith.constant 0 : index
    %c18 = arith.constant 18 : index
    %c0_5 = arith.constant 0 : index
    %6 = vector.load %arg1[%c0_4, %c18, %c0_5] : memref<1x360x128xf32, #tpu.memory_space<vmem>>, vector<1x288x128xf32>
    %7 = vector.shape_cast %6 : vector<1x288x128xf32> to vector<288x128xf32>
    %8 = arith.truncf %7 : vector<288x128xf32> to vector<288x128xbf16>
    %c1 = arith.constant 1 : index
    %c0_6 = arith.constant 0 : index
    %c0_7 = arith.constant 0 : index
    %9 = vector.load %arg2[%c1, %c0_6, %c0_7] : memref<9x128x128xbf16, #tpu.memory_space<vmem>>, vector<1x128x128xbf16>
    %10 = vector.shape_cast %9 : vector<1x128x128xbf16> to vector<128x128xbf16>
    %cst_8 = arith.constant dense<0.000000e+00> : vector<288x128xf32>
    %11 = tpu.matmul %8, %10, %cst_8 {dimension_numbers = #tpu.dot_dimension_numbers<[1], [0], [0], [1], [0, 0, 1, 1], [], []>} : vector<288x128xbf16>, vector<128x128xbf16>, vector<288x128xf32> -> vector<288x128xf32>
    %12 = arith.addf %5, %11 : vector<288x128xf32>
    %c0_9 = arith.constant 0 : index
    %c19 = arith.constant 19 : index
    %c0_10 = arith.constant 0 : index
    %13 = vector.load %arg1[%c0_9, %c19, %c0_10] : memref<1x360x128xf32, #tpu.memory_space<vmem>>, vector<1x288x128xf32>
    %14 = vector.shape_cast %13 : vector<1x288x128xf32> to vector<288x128xf32>
    %15 = arith.truncf %14 : vector<288x128xf32> to vector<288x128xbf16>
    %c2 = arith.constant 2 : index
    %c0_11 = arith.constant 0 : index
    %c0_12 = arith.constant 0 : index
    %16 = vector.load %arg2[%c2, %c0_11, %c0_12] : memref<9x128x128xbf16, #tpu.memory_space<vmem>>, vector<1x128x128xbf16>
    %17 = vector.shape_cast %16 : vector<1x128x128xbf16> to vector<128x128xbf16>
    %cst_13 = arith.constant dense<0.000000e+00> : vector<288x128xf32>
    %18 = tpu.matmul %15, %17, %cst_13 {dimension_numbers = #tpu.dot_dimension_numbers<[1], [0], [0], [1], [0, 0, 1, 1], [], []>} : vector<288x128xbf16>, vector<128x128xbf16>, vector<288x128xf32> -> vector<288x128xf32>
    %19 = arith.addf %12, %18 : vector<288x128xf32>
    %c0_14 = arith.constant 0 : index
    %c35 = arith.constant 35 : index
    %c0_15 = arith.constant 0 : index
    %20 = vector.load %arg1[%c0_14, %c35, %c0_15] : memref<1x360x128xf32, #tpu.memory_space<vmem>>, vector<1x288x128xf32>
    %21 = vector.shape_cast %20 : vector<1x288x128xf32> to vector<288x128xf32>
    %22 = arith.truncf %21 : vector<288x128xf32> to vector<288x128xbf16>
    %c3 = arith.constant 3 : index
    %c0_16 = arith.constant 0 : index
    %c0_17 = arith.constant 0 : index
    %23 = vector.load %arg2[%c3, %c0_16, %c0_17] : memref<9x128x128xbf16, #tpu.memory_space<vmem>>, vector<1x128x128xbf16>
    %24 = vector.shape_cast %23 : vector<1x128x128xbf16> to vector<128x128xbf16>
    %cst_18 = arith.constant dense<0.000000e+00> : vector<288x128xf32>
    %25 = tpu.matmul %22, %24, %cst_18 {dimension_numbers = #tpu.dot_dimension_numbers<[1], [0], [0], [1], [0, 0, 1, 1], [], []>} : vector<288x128xbf16>, vector<128x128xbf16>, vector<288x128xf32> -> vector<288x128xf32>
    %26 = arith.addf %19, %25 : vector<288x128xf32>
    %c0_19 = arith.constant 0 : index
    %c36 = arith.constant 36 : index
    %c0_20 = arith.constant 0 : index
    %27 = vector.load %arg1[%c0_19, %c36, %c0_20] : memref<1x360x128xf32, #tpu.memory_space<vmem>>, vector<1x288x128xf32>
    %28 = vector.shape_cast %27 : vector<1x288x128xf32> to vector<288x128xf32>
    %29 = arith.truncf %28 : vector<288x128xf32> to vector<288x128xbf16>
    %c4 = arith.constant 4 : index
    %c0_21 = arith.constant 0 : index
    %c0_22 = arith.constant 0 : index
    %30 = vector.load %arg2[%c4, %c0_21, %c0_22] : memref<9x128x128xbf16, #tpu.memory_space<vmem>>, vector<1x128x128xbf16>
    %31 = vector.shape_cast %30 : vector<1x128x128xbf16> to vector<128x128xbf16>
    %cst_23 = arith.constant dense<0.000000e+00> : vector<288x128xf32>
    %32 = tpu.matmul %29, %31, %cst_23 {dimension_numbers = #tpu.dot_dimension_numbers<[1], [0], [0], [1], [0, 0, 1, 1], [], []>} : vector<288x128xbf16>, vector<128x128xbf16>, vector<288x128xf32> -> vector<288x128xf32>
    %33 = arith.addf %26, %32 : vector<288x128xf32>
    %c0_24 = arith.constant 0 : index
    %c37 = arith.constant 37 : index
    %c0_25 = arith.constant 0 : index
    %34 = vector.load %arg1[%c0_24, %c37, %c0_25] : memref<1x360x128xf32, #tpu.memory_space<vmem>>, vector<1x288x128xf32>
    %35 = vector.shape_cast %34 : vector<1x288x128xf32> to vector<288x128xf32>
    %36 = arith.truncf %35 : vector<288x128xf32> to vector<288x128xbf16>
    %c5 = arith.constant 5 : index
    %c0_26 = arith.constant 0 : index
    %c0_27 = arith.constant 0 : index
    %37 = vector.load %arg2[%c5, %c0_26, %c0_27] : memref<9x128x128xbf16, #tpu.memory_space<vmem>>, vector<1x128x128xbf16>
    %38 = vector.shape_cast %37 : vector<1x128x128xbf16> to vector<128x128xbf16>
    %cst_28 = arith.constant dense<0.000000e+00> : vector<288x128xf32>
    %39 = tpu.matmul %36, %38, %cst_28 {dimension_numbers = #tpu.dot_dimension_numbers<[1], [0], [0], [1], [0, 0, 1, 1], [], []>} : vector<288x128xbf16>, vector<128x128xbf16>, vector<288x128xf32> -> vector<288x128xf32>
    %40 = arith.addf %33, %39 : vector<288x128xf32>
    %c0_29 = arith.constant 0 : index
    %c53 = arith.constant 53 : index
    %c0_30 = arith.constant 0 : index
    %41 = vector.load %arg1[%c0_29, %c53, %c0_30] : memref<1x360x128xf32, #tpu.memory_space<vmem>>, vector<1x288x128xf32>
    %42 = vector.shape_cast %41 : vector<1x288x128xf32> to vector<288x128xf32>
    %43 = arith.truncf %42 : vector<288x128xf32> to vector<288x128xbf16>
    %c6 = arith.constant 6 : index
    %c0_31 = arith.constant 0 : index
    %c0_32 = arith.constant 0 : index
    %44 = vector.load %arg2[%c6, %c0_31, %c0_32] : memref<9x128x128xbf16, #tpu.memory_space<vmem>>, vector<1x128x128xbf16>
    %45 = vector.shape_cast %44 : vector<1x128x128xbf16> to vector<128x128xbf16>
    %cst_33 = arith.constant dense<0.000000e+00> : vector<288x128xf32>
    %46 = tpu.matmul %43, %45, %cst_33 {dimension_numbers = #tpu.dot_dimension_numbers<[1], [0], [0], [1], [0, 0, 1, 1], [], []>} : vector<288x128xbf16>, vector<128x128xbf16>, vector<288x128xf32> -> vector<288x128xf32>
    %47 = arith.addf %40, %46 : vector<288x128xf32>
    %c0_34 = arith.constant 0 : index
    %c54 = arith.constant 54 : index
    %c0_35 = arith.constant 0 : index
    %48 = vector.load %arg1[%c0_34, %c54, %c0_35] : memref<1x360x128xf32, #tpu.memory_space<vmem>>, vector<1x288x128xf32>
    %49 = vector.shape_cast %48 : vector<1x288x128xf32> to vector<288x128xf32>
    %50 = arith.truncf %49 : vector<288x128xf32> to vector<288x128xbf16>
    %c7 = arith.constant 7 : index
    %c0_36 = arith.constant 0 : index
    %c0_37 = arith.constant 0 : index
    %51 = vector.load %arg2[%c7, %c0_36, %c0_37] : memref<9x128x128xbf16, #tpu.memory_space<vmem>>, vector<1x128x128xbf16>
    %52 = vector.shape_cast %51 : vector<1x128x128xbf16> to vector<128x128xbf16>
    %cst_38 = arith.constant dense<0.000000e+00> : vector<288x128xf32>
    %53 = tpu.matmul %50, %52, %cst_38 {dimension_numbers = #tpu.dot_dimension_numbers<[1], [0], [0], [1], [0, 0, 1, 1], [], []>} : vector<288x128xbf16>, vector<128x128xbf16>, vector<288x128xf32> -> vector<288x128xf32>
    %54 = arith.addf %47, %53 : vector<288x128xf32>
    %c0_39 = arith.constant 0 : index
    %c55 = arith.constant 55 : index
    %c0_40 = arith.constant 0 : index
    %55 = vector.load %arg1[%c0_39, %c55, %c0_40] : memref<1x360x128xf32, #tpu.memory_space<vmem>>, vector<1x288x128xf32>
    %56 = vector.shape_cast %55 : vector<1x288x128xf32> to vector<288x128xf32>
    %57 = arith.truncf %56 : vector<288x128xf32> to vector<288x128xbf16>
    %c8 = arith.constant 8 : index
    %c0_41 = arith.constant 0 : index
    %c0_42 = arith.constant 0 : index
    %58 = vector.load %arg2[%c8, %c0_41, %c0_42] : memref<9x128x128xbf16, #tpu.memory_space<vmem>>, vector<1x128x128xbf16>
    %59 = vector.shape_cast %58 : vector<1x128x128xbf16> to vector<128x128xbf16>
    %cst_43 = arith.constant dense<0.000000e+00> : vector<288x128xf32>
    %60 = tpu.matmul %57, %59, %cst_43 {dimension_numbers = #tpu.dot_dimension_numbers<[1], [0], [0], [1], [0, 0, 1, 1], [], []>} : vector<288x128xbf16>, vector<128x128xbf16>, vector<288x128xf32> -> vector<288x128xf32>
    %61 = arith.addf %54, %60 : vector<288x128xf32>
    %c0_44 = arith.constant 0 : index
    %c0_45 = arith.constant 0 : index
    %62 = vector.load %arg3[%c0_44, %c0_45] : memref<1x128xf32, #tpu.memory_space<vmem>>, vector<1x128xf32>
    %63 = vector.broadcast %62 : vector<1x128xf32> to vector<288x128xf32>
    %64 = arith.mulf %61, %63 : vector<288x128xf32>
    %c0_46 = arith.constant 0 : index
    %c0_47 = arith.constant 0 : index
    %65 = vector.load %arg4[%c0_46, %c0_47] : memref<1x128xf32, #tpu.memory_space<vmem>>, vector<1x128xf32>
    %66 = vector.broadcast %65 : vector<1x128xf32> to vector<288x128xf32>
    %67 = arith.addf %64, %66 : vector<288x128xf32>
    %cst_48 = arith.constant 0.000000e+00 : f32
    %68 = vector.broadcast %cst_48 : f32 to vector<288x128xf32>
    %69 = arith.maximumf %67, %68 : vector<288x128xf32>
    %70 = vector.extract_strided_slice %69 {offsets = [0, 0], sizes = [269, 128], strides = [1, 1]} : vector<288x128xf32> to vector<269x128xf32>
    %71 = vector.extract_strided_slice %69 {offsets = [1, 0], sizes = [269, 128], strides = [1, 1]} : vector<288x128xf32> to vector<269x128xf32>
    %72 = arith.maximumf %70, %71 : vector<269x128xf32>
    %73 = vector.extract_strided_slice %69 {offsets = [18, 0], sizes = [269, 128], strides = [1, 1]} : vector<288x128xf32> to vector<269x128xf32>
    %74 = vector.extract_strided_slice %69 {offsets = [19, 0], sizes = [269, 128], strides = [1, 1]} : vector<288x128xf32> to vector<269x128xf32>
    %75 = arith.maximumf %73, %74 : vector<269x128xf32>
    %76 = arith.maximumf %72, %75 : vector<269x128xf32>
    %c0_49 = arith.constant 0 : index
    %c0_50 = arith.constant 0 : index
    %77 = vector.load %arg5[%c0_49, %c0_50] : memref<120x269xf32, #tpu.memory_space<vmem>>, vector<120x269xf32>
    %cst_51 = arith.constant dense<0.000000e+00> : vector<120x128xf32>
    %78 = tpu.matmul %77, %76, %cst_51 {dimension_numbers = #tpu.dot_dimension_numbers<[1], [0], [0], [1], [0, 0, 1, 1], [], []>} : vector<120x269xf32>, vector<269x128xf32>, vector<120x128xf32> -> vector<120x128xf32>
    %c0_52 = arith.constant 0 : index
    %c0_53 = arith.constant 0 : index
    %c0_54 = arith.constant 0 : index
    %79 = vector.load %arg6[%c0_52, %c0_53, %c0_54] : memref<1x120x128xf32, #tpu.memory_space<vmem>>, vector<1x120x128xf32>
    %80 = vector.shape_cast %79 : vector<1x120x128xf32> to vector<120x128xf32>
    %81 = vector.shape_cast %78 : vector<120x128xf32> to vector<1x120x128xf32>
    tpu.vector_store %arg6[%c0_52, %c0_53, %c0_54], %81 {strides = array<i32>} : memref<1x120x128xf32, #tpu.memory_space<vmem>>, vector<1x120x128xf32>,
    return
  }
  func.func @transform_0(%arg0: i32) -> (i32, i32, i32) {
    %c0_i32 = arith.constant 0 : i32
    %c0_i32_0 = arith.constant 0 : i32
    %c0_i32_1 = arith.constant 0 : i32
    return %arg0, %c0_i32, %c0_i32_0 : i32, i32, i32
  }
  func.func @transform_1(%arg0: i32) -> (i32, i32, i32) {
    %c0_i32 = arith.constant 0 : i32
    %c0_i32_0 = arith.constant 0 : i32
    %c0_i32_1 = arith.constant 0 : i32
    %c0_i32_2 = arith.constant 0 : i32
    return %c0_i32, %c0_i32_0, %c0_i32_1 : i32, i32, i32
  }
  func.func @transform_2(%arg0: i32) -> (i32, i32) {
    %c0_i32 = arith.constant 0 : i32
    %c0_i32_0 = arith.constant 0 : i32
    %c0_i32_1 = arith.constant 0 : i32
    return %c0_i32, %c0_i32_0 : i32, i32
  }
  func.func @transform_3(%arg0: i32) -> (i32, i32) {
    %c0_i32 = arith.constant 0 : i32
    %c0_i32_0 = arith.constant 0 : i32
    %c0_i32_1 = arith.constant 0 : i32
    return %c0_i32, %c0_i32_0 : i32, i32
  }
  func.func @transform_4(%arg0: i32) -> (i32, i32) {
    %c0_i32 = arith.constant 0 : i32
    %c0_i32_0 = arith.constant 0 : i32
    %c0_i32_1 = arith.constant 0 : i32
    return %c0_i32, %c0_i32_0 : i32, i32
  }
  func.func @transform_5(%arg0: i32) -> (i32, i32, i32) {
    %c0_i32 = arith.constant 0 : i32
    %c0_i32_0 = arith.constant 0 : i32
    %c0_i32_1 = arith.constant 0 : i32
    return %arg0, %c0_i32, %c0_i32_0 : i32, i32, i32
  }
}

module attributes {stable_mosaic.version = 11 : i64} {
  func.func @kernel(%arg0: i32, %arg1: memref<1x120x128xf32, #tpu.memory_space<vmem>>, %arg2: memref<9x128x128xbf16, #tpu.memory_space<vmem>>, %arg3: memref<1x128xf32, #tpu.memory_space<vmem>>, %arg4: memref<1x128xf32, #tpu.memory_space<vmem>>, %arg5: memref<48x69xf32, #tpu.memory_space<vmem>>, %arg6: memref<1x48x128xf32, #tpu.memory_space<vmem>>) attributes {dimension_semantics = [#tpu.dimension_semantics<parallel>], iteration_bounds = array<i64: 2>, scalar_prefetch = 0 : i64, scratch_operands = 0 : i64, tpu.core_type = #tpu.core_type<tc>, window_params = [{transform_indices = @transform_0, window_bounds = array<i64: 1, 120, 128>}, {pipeline_mode = #tpu.pipeline_mode<synchronous>, transform_indices = @transform_1, window_bounds = array<i64: 9, 128, 128>}, {pipeline_mode = #tpu.pipeline_mode<synchronous>, transform_indices = @transform_2, window_bounds = array<i64: 1, 128>}, {pipeline_mode = #tpu.pipeline_mode<synchronous>, transform_indices = @transform_3, window_bounds = array<i64: 1, 128>}, {pipeline_mode = #tpu.pipeline_mode<synchronous>, transform_indices = @transform_4, window_bounds = array<i64: 48, 69>}, {transform_indices = @transform_5, window_bounds = array<i64: 1, 48, 128>}]} {
    %c0 = arith.constant 0 : index
    %c9 = arith.constant 9 : index
    %c0_0 = arith.constant 0 : index
    %0 = vector.load %arg1[%c0, %c9, %c0_0] : memref<1x120x128xf32, #tpu.memory_space<vmem>>, vector<1x80x128xf32>
    %1 = vector.shape_cast %0 : vector<1x80x128xf32> to vector<80x128xf32>
    %2 = arith.truncf %1 : vector<80x128xf32> to vector<80x128xbf16>
    %c0_1 = arith.constant 0 : index
    %c0_2 = arith.constant 0 : index
    %c0_3 = arith.constant 0 : index
    %3 = vector.load %arg2[%c0_1, %c0_2, %c0_3] : memref<9x128x128xbf16, #tpu.memory_space<vmem>>, vector<1x128x128xbf16>
    %4 = vector.shape_cast %3 : vector<1x128x128xbf16> to vector<128x128xbf16>
    %cst = arith.constant dense<0.000000e+00> : vector<80x128xf32>
    %5 = tpu.matmul %2, %4, %cst {dimension_numbers = #tpu.dot_dimension_numbers<[1], [0], [0], [1], [0, 0, 1, 1], [], []>} : vector<80x128xbf16>, vector<128x128xbf16>, vector<80x128xf32> -> vector<80x128xf32>
    %c0_4 = arith.constant 0 : index
    %c10 = arith.constant 10 : index
    %c0_5 = arith.constant 0 : index
    %6 = vector.load %arg1[%c0_4, %c10, %c0_5] : memref<1x120x128xf32, #tpu.memory_space<vmem>>, vector<1x80x128xf32>
    %7 = vector.shape_cast %6 : vector<1x80x128xf32> to vector<80x128xf32>
    %8 = arith.truncf %7 : vector<80x128xf32> to vector<80x128xbf16>
    %c1 = arith.constant 1 : index
    %c0_6 = arith.constant 0 : index
    %c0_7 = arith.constant 0 : index
    %9 = vector.load %arg2[%c1, %c0_6, %c0_7] : memref<9x128x128xbf16, #tpu.memory_space<vmem>>, vector<1x128x128xbf16>
    %10 = vector.shape_cast %9 : vector<1x128x128xbf16> to vector<128x128xbf16>
    %cst_8 = arith.constant dense<0.000000e+00> : vector<80x128xf32>
    %11 = tpu.matmul %8, %10, %cst_8 {dimension_numbers = #tpu.dot_dimension_numbers<[1], [0], [0], [1], [0, 0, 1, 1], [], []>} : vector<80x128xbf16>, vector<128x128xbf16>, vector<80x128xf32> -> vector<80x128xf32>
    %12 = arith.addf %5, %11 : vector<80x128xf32>
    %c0_9 = arith.constant 0 : index
    %c11 = arith.constant 11 : index
    %c0_10 = arith.constant 0 : index
    %13 = vector.load %arg1[%c0_9, %c11, %c0_10] : memref<1x120x128xf32, #tpu.memory_space<vmem>>, vector<1x80x128xf32>
    %14 = vector.shape_cast %13 : vector<1x80x128xf32> to vector<80x128xf32>
    %15 = arith.truncf %14 : vector<80x128xf32> to vector<80x128xbf16>
    %c2 = arith.constant 2 : index
    %c0_11 = arith.constant 0 : index
    %c0_12 = arith.constant 0 : index
    %16 = vector.load %arg2[%c2, %c0_11, %c0_12] : memref<9x128x128xbf16, #tpu.memory_space<vmem>>, vector<1x128x128xbf16>
    %17 = vector.shape_cast %16 : vector<1x128x128xbf16> to vector<128x128xbf16>
    %cst_13 = arith.constant dense<0.000000e+00> : vector<80x128xf32>
    %18 = tpu.matmul %15, %17, %cst_13 {dimension_numbers = #tpu.dot_dimension_numbers<[1], [0], [0], [1], [0, 0, 1, 1], [], []>} : vector<80x128xbf16>, vector<128x128xbf16>, vector<80x128xf32> -> vector<80x128xf32>
    %19 = arith.addf %12, %18 : vector<80x128xf32>
    %c0_14 = arith.constant 0 : index
    %c19 = arith.constant 19 : index
    %c0_15 = arith.constant 0 : index
    %20 = vector.load %arg1[%c0_14, %c19, %c0_15] : memref<1x120x128xf32, #tpu.memory_space<vmem>>, vector<1x80x128xf32>
    %21 = vector.shape_cast %20 : vector<1x80x128xf32> to vector<80x128xf32>
    %22 = arith.truncf %21 : vector<80x128xf32> to vector<80x128xbf16>
    %c3 = arith.constant 3 : index
    %c0_16 = arith.constant 0 : index
    %c0_17 = arith.constant 0 : index
    %23 = vector.load %arg2[%c3, %c0_16, %c0_17] : memref<9x128x128xbf16, #tpu.memory_space<vmem>>, vector<1x128x128xbf16>
    %24 = vector.shape_cast %23 : vector<1x128x128xbf16> to vector<128x128xbf16>
    %cst_18 = arith.constant dense<0.000000e+00> : vector<80x128xf32>
    %25 = tpu.matmul %22, %24, %cst_18 {dimension_numbers = #tpu.dot_dimension_numbers<[1], [0], [0], [1], [0, 0, 1, 1], [], []>} : vector<80x128xbf16>, vector<128x128xbf16>, vector<80x128xf32> -> vector<80x128xf32>
    %26 = arith.addf %19, %25 : vector<80x128xf32>
    %c0_19 = arith.constant 0 : index
    %c20 = arith.constant 20 : index
    %c0_20 = arith.constant 0 : index
    %27 = vector.load %arg1[%c0_19, %c20, %c0_20] : memref<1x120x128xf32, #tpu.memory_space<vmem>>, vector<1x80x128xf32>
    %28 = vector.shape_cast %27 : vector<1x80x128xf32> to vector<80x128xf32>
    %29 = arith.truncf %28 : vector<80x128xf32> to vector<80x128xbf16>
    %c4 = arith.constant 4 : index
    %c0_21 = arith.constant 0 : index
    %c0_22 = arith.constant 0 : index
    %30 = vector.load %arg2[%c4, %c0_21, %c0_22] : memref<9x128x128xbf16, #tpu.memory_space<vmem>>, vector<1x128x128xbf16>
    %31 = vector.shape_cast %30 : vector<1x128x128xbf16> to vector<128x128xbf16>
    %cst_23 = arith.constant dense<0.000000e+00> : vector<80x128xf32>
    %32 = tpu.matmul %29, %31, %cst_23 {dimension_numbers = #tpu.dot_dimension_numbers<[1], [0], [0], [1], [0, 0, 1, 1], [], []>} : vector<80x128xbf16>, vector<128x128xbf16>, vector<80x128xf32> -> vector<80x128xf32>
    %33 = arith.addf %26, %32 : vector<80x128xf32>
    %c0_24 = arith.constant 0 : index
    %c21 = arith.constant 21 : index
    %c0_25 = arith.constant 0 : index
    %34 = vector.load %arg1[%c0_24, %c21, %c0_25] : memref<1x120x128xf32, #tpu.memory_space<vmem>>, vector<1x80x128xf32>
    %35 = vector.shape_cast %34 : vector<1x80x128xf32> to vector<80x128xf32>
    %36 = arith.truncf %35 : vector<80x128xf32> to vector<80x128xbf16>
    %c5 = arith.constant 5 : index
    %c0_26 = arith.constant 0 : index
    %c0_27 = arith.constant 0 : index
    %37 = vector.load %arg2[%c5, %c0_26, %c0_27] : memref<9x128x128xbf16, #tpu.memory_space<vmem>>, vector<1x128x128xbf16>
    %38 = vector.shape_cast %37 : vector<1x128x128xbf16> to vector<128x128xbf16>
    %cst_28 = arith.constant dense<0.000000e+00> : vector<80x128xf32>
    %39 = tpu.matmul %36, %38, %cst_28 {dimension_numbers = #tpu.dot_dimension_numbers<[1], [0], [0], [1], [0, 0, 1, 1], [], []>} : vector<80x128xbf16>, vector<128x128xbf16>, vector<80x128xf32> -> vector<80x128xf32>
    %40 = arith.addf %33, %39 : vector<80x128xf32>
    %c0_29 = arith.constant 0 : index
    %c29 = arith.constant 29 : index
    %c0_30 = arith.constant 0 : index
    %41 = vector.load %arg1[%c0_29, %c29, %c0_30] : memref<1x120x128xf32, #tpu.memory_space<vmem>>, vector<1x80x128xf32>
    %42 = vector.shape_cast %41 : vector<1x80x128xf32> to vector<80x128xf32>
    %43 = arith.truncf %42 : vector<80x128xf32> to vector<80x128xbf16>
    %c6 = arith.constant 6 : index
    %c0_31 = arith.constant 0 : index
    %c0_32 = arith.constant 0 : index
    %44 = vector.load %arg2[%c6, %c0_31, %c0_32] : memref<9x128x128xbf16, #tpu.memory_space<vmem>>, vector<1x128x128xbf16>
    %45 = vector.shape_cast %44 : vector<1x128x128xbf16> to vector<128x128xbf16>
    %cst_33 = arith.constant dense<0.000000e+00> : vector<80x128xf32>
    %46 = tpu.matmul %43, %45, %cst_33 {dimension_numbers = #tpu.dot_dimension_numbers<[1], [0], [0], [1], [0, 0, 1, 1], [], []>} : vector<80x128xbf16>, vector<128x128xbf16>, vector<80x128xf32> -> vector<80x128xf32>
    %47 = arith.addf %40, %46 : vector<80x128xf32>
    %c0_34 = arith.constant 0 : index
    %c30 = arith.constant 30 : index
    %c0_35 = arith.constant 0 : index
    %48 = vector.load %arg1[%c0_34, %c30, %c0_35] : memref<1x120x128xf32, #tpu.memory_space<vmem>>, vector<1x80x128xf32>
    %49 = vector.shape_cast %48 : vector<1x80x128xf32> to vector<80x128xf32>
    %50 = arith.truncf %49 : vector<80x128xf32> to vector<80x128xbf16>
    %c7 = arith.constant 7 : index
    %c0_36 = arith.constant 0 : index
    %c0_37 = arith.constant 0 : index
    %51 = vector.load %arg2[%c7, %c0_36, %c0_37] : memref<9x128x128xbf16, #tpu.memory_space<vmem>>, vector<1x128x128xbf16>
    %52 = vector.shape_cast %51 : vector<1x128x128xbf16> to vector<128x128xbf16>
    %cst_38 = arith.constant dense<0.000000e+00> : vector<80x128xf32>
    %53 = tpu.matmul %50, %52, %cst_38 {dimension_numbers = #tpu.dot_dimension_numbers<[1], [0], [0], [1], [0, 0, 1, 1], [], []>} : vector<80x128xbf16>, vector<128x128xbf16>, vector<80x128xf32> -> vector<80x128xf32>
    %54 = arith.addf %47, %53 : vector<80x128xf32>
    %c0_39 = arith.constant 0 : index
    %c31 = arith.constant 31 : index
    %c0_40 = arith.constant 0 : index
    %55 = vector.load %arg1[%c0_39, %c31, %c0_40] : memref<1x120x128xf32, #tpu.memory_space<vmem>>, vector<1x80x128xf32>
    %56 = vector.shape_cast %55 : vector<1x80x128xf32> to vector<80x128xf32>
    %57 = arith.truncf %56 : vector<80x128xf32> to vector<80x128xbf16>
    %c8 = arith.constant 8 : index
    %c0_41 = arith.constant 0 : index
    %c0_42 = arith.constant 0 : index
    %58 = vector.load %arg2[%c8, %c0_41, %c0_42] : memref<9x128x128xbf16, #tpu.memory_space<vmem>>, vector<1x128x128xbf16>
    %59 = vector.shape_cast %58 : vector<1x128x128xbf16> to vector<128x128xbf16>
    %cst_43 = arith.constant dense<0.000000e+00> : vector<80x128xf32>
    %60 = tpu.matmul %57, %59, %cst_43 {dimension_numbers = #tpu.dot_dimension_numbers<[1], [0], [0], [1], [0, 0, 1, 1], [], []>} : vector<80x128xbf16>, vector<128x128xbf16>, vector<80x128xf32> -> vector<80x128xf32>
    %61 = arith.addf %54, %60 : vector<80x128xf32>
    %c0_44 = arith.constant 0 : index
    %c0_45 = arith.constant 0 : index
    %62 = vector.load %arg3[%c0_44, %c0_45] : memref<1x128xf32, #tpu.memory_space<vmem>>, vector<1x128xf32>
    %63 = vector.broadcast %62 : vector<1x128xf32> to vector<80x128xf32>
    %64 = arith.mulf %61, %63 : vector<80x128xf32>
    %c0_46 = arith.constant 0 : index
    %c0_47 = arith.constant 0 : index
    %65 = vector.load %arg4[%c0_46, %c0_47] : memref<1x128xf32, #tpu.memory_space<vmem>>, vector<1x128xf32>
    %66 = vector.broadcast %65 : vector<1x128xf32> to vector<80x128xf32>
    %67 = arith.addf %64, %66 : vector<80x128xf32>
    %cst_48 = arith.constant 0.000000e+00 : f32
    %68 = vector.broadcast %cst_48 : f32 to vector<80x128xf32>
    %69 = arith.maximumf %67, %68 : vector<80x128xf32>
    %70 = vector.extract_strided_slice %69 {offsets = [0, 0], sizes = [69, 128], strides = [1, 1]} : vector<80x128xf32> to vector<69x128xf32>
    %71 = vector.extract_strided_slice %69 {offsets = [1, 0], sizes = [69, 128], strides = [1, 1]} : vector<80x128xf32> to vector<69x128xf32>
    %72 = arith.maximumf %70, %71 : vector<69x128xf32>
    %73 = vector.extract_strided_slice %69 {offsets = [10, 0], sizes = [69, 128], strides = [1, 1]} : vector<80x128xf32> to vector<69x128xf32>
    %74 = vector.extract_strided_slice %69 {offsets = [11, 0], sizes = [69, 128], strides = [1, 1]} : vector<80x128xf32> to vector<69x128xf32>
    %75 = arith.maximumf %73, %74 : vector<69x128xf32>
    %76 = arith.maximumf %72, %75 : vector<69x128xf32>
    %c0_49 = arith.constant 0 : index
    %c0_50 = arith.constant 0 : index
    %77 = vector.load %arg5[%c0_49, %c0_50] : memref<48x69xf32, #tpu.memory_space<vmem>>, vector<48x69xf32>
    %cst_51 = arith.constant dense<0.000000e+00> : vector<48x128xf32>
    %78 = tpu.matmul %77, %76, %cst_51 {dimension_numbers = #tpu.dot_dimension_numbers<[1], [0], [0], [1], [0, 0, 1, 1], [], []>} : vector<48x69xf32>, vector<69x128xf32>, vector<48x128xf32> -> vector<48x128xf32>
    %c0_52 = arith.constant 0 : index
    %c0_53 = arith.constant 0 : index
    %c0_54 = arith.constant 0 : index
    %79 = vector.load %arg6[%c0_52, %c0_53, %c0_54] : memref<1x48x128xf32, #tpu.memory_space<vmem>>, vector<1x48x128xf32>
    %80 = vector.shape_cast %79 : vector<1x48x128xf32> to vector<48x128xf32>
    %81 = vector.shape_cast %78 : vector<48x128xf32> to vector<1x48x128xf32>
    tpu.vector_store %arg6[%c0_52, %c0_53, %c0_54], %81 {strides = array<i32>} : memref<1x48x128xf32, #tpu.memory_space<vmem>>, vector<1x48x128xf32>,
    return
  }
  func.func @transform_0(%arg0: i32) -> (i32, i32, i32) {
    %c0_i32 = arith.constant 0 : i32
    %c0_i32_0 = arith.constant 0 : i32
    %c0_i32_1 = arith.constant 0 : i32
    return %arg0, %c0_i32, %c0_i32_0 : i32, i32, i32
  }
  func.func @transform_1(%arg0: i32) -> (i32, i32, i32) {
    %c0_i32 = arith.constant 0 : i32
    %c0_i32_0 = arith.constant 0 : i32
    %c0_i32_1 = arith.constant 0 : i32
    %c0_i32_2 = arith.constant 0 : i32
    return %c0_i32, %c0_i32_0, %c0_i32_1 : i32, i32, i32
  }
  func.func @transform_2(%arg0: i32) -> (i32, i32) {
    %c0_i32 = arith.constant 0 : i32
    %c0_i32_0 = arith.constant 0 : i32
    %c0_i32_1 = arith.constant 0 : i32
    return %c0_i32, %c0_i32_0 : i32, i32
  }
  func.func @transform_3(%arg0: i32) -> (i32, i32) {
    %c0_i32 = arith.constant 0 : i32
    %c0_i32_0 = arith.constant 0 : i32
    %c0_i32_1 = arith.constant 0 : i32
    return %c0_i32, %c0_i32_0 : i32, i32
  }
  func.func @transform_4(%arg0: i32) -> (i32, i32) {
    %c0_i32 = arith.constant 0 : i32
    %c0_i32_0 = arith.constant 0 : i32
    %c0_i32_1 = arith.constant 0 : i32
    return %c0_i32, %c0_i32_0 : i32, i32
  }
  func.func @transform_5(%arg0: i32) -> (i32, i32, i32) {
    %c0_i32 = arith.constant 0 : i32
    %c0_i32_0 = arith.constant 0 : i32
    %c0_i32_1 = arith.constant 0 : i32
    return %arg0, %c0_i32, %c0_i32_0 : i32, i32, i32
  }
}

module attributes {stable_mosaic.version = 11 : i64} {
  func.func @kernel(%arg0: i32, %arg1: memref<1x48x128xf32, #tpu.memory_space<vmem>>, %arg2: memref<9x128x128xbf16, #tpu.memory_space<vmem>>, %arg3: memref<1x128xf32, #tpu.memory_space<vmem>>, %arg4: memref<1x128xf32, #tpu.memory_space<vmem>>, %arg5: memref<24x17xf32, #tpu.memory_space<vmem>>, %arg6: memref<1x24x128xf32, #tpu.memory_space<vmem>>) attributes {dimension_semantics = [#tpu.dimension_semantics<parallel>], iteration_bounds = array<i64: 2>, scalar_prefetch = 0 : i64, scratch_operands = 0 : i64, tpu.core_type = #tpu.core_type<tc>, window_params = [{transform_indices = @transform_0, window_bounds = array<i64: 1, 48, 128>}, {pipeline_mode = #tpu.pipeline_mode<synchronous>, transform_indices = @transform_1, window_bounds = array<i64: 9, 128, 128>}, {pipeline_mode = #tpu.pipeline_mode<synchronous>, transform_indices = @transform_2, window_bounds = array<i64: 1, 128>}, {pipeline_mode = #tpu.pipeline_mode<synchronous>, transform_indices = @transform_3, window_bounds = array<i64: 1, 128>}, {pipeline_mode = #tpu.pipeline_mode<synchronous>, transform_indices = @transform_4, window_bounds = array<i64: 24, 17>}, {transform_indices = @transform_5, window_bounds = array<i64: 1, 24, 128>}]} {
    %c0 = arith.constant 0 : index
    %c5 = arith.constant 5 : index
    %c0_0 = arith.constant 0 : index
    %0 = vector.load %arg1[%c0, %c5, %c0_0] : memref<1x48x128xf32, #tpu.memory_space<vmem>>, vector<1x24x128xf32>
    %1 = vector.shape_cast %0 : vector<1x24x128xf32> to vector<24x128xf32>
    %2 = arith.truncf %1 : vector<24x128xf32> to vector<24x128xbf16>
    %c0_1 = arith.constant 0 : index
    %c0_2 = arith.constant 0 : index
    %c0_3 = arith.constant 0 : index
    %3 = vector.load %arg2[%c0_1, %c0_2, %c0_3] : memref<9x128x128xbf16, #tpu.memory_space<vmem>>, vector<1x128x128xbf16>
    %4 = vector.shape_cast %3 : vector<1x128x128xbf16> to vector<128x128xbf16>
    %cst = arith.constant dense<0.000000e+00> : vector<24x128xf32>
    %5 = tpu.matmul %2, %4, %cst {dimension_numbers = #tpu.dot_dimension_numbers<[1], [0], [0], [1], [0, 0, 1, 1], [], []>} : vector<24x128xbf16>, vector<128x128xbf16>, vector<24x128xf32> -> vector<24x128xf32>
    %c0_4 = arith.constant 0 : index
    %c6 = arith.constant 6 : index
    %c0_5 = arith.constant 0 : index
    %6 = vector.load %arg1[%c0_4, %c6, %c0_5] : memref<1x48x128xf32, #tpu.memory_space<vmem>>, vector<1x24x128xf32>
    %7 = vector.shape_cast %6 : vector<1x24x128xf32> to vector<24x128xf32>
    %8 = arith.truncf %7 : vector<24x128xf32> to vector<24x128xbf16>
    %c1 = arith.constant 1 : index
    %c0_6 = arith.constant 0 : index
    %c0_7 = arith.constant 0 : index
    %9 = vector.load %arg2[%c1, %c0_6, %c0_7] : memref<9x128x128xbf16, #tpu.memory_space<vmem>>, vector<1x128x128xbf16>
    %10 = vector.shape_cast %9 : vector<1x128x128xbf16> to vector<128x128xbf16>
    %cst_8 = arith.constant dense<0.000000e+00> : vector<24x128xf32>
    %11 = tpu.matmul %8, %10, %cst_8 {dimension_numbers = #tpu.dot_dimension_numbers<[1], [0], [0], [1], [0, 0, 1, 1], [], []>} : vector<24x128xbf16>, vector<128x128xbf16>, vector<24x128xf32> -> vector<24x128xf32>
    %12 = arith.addf %5, %11 : vector<24x128xf32>
    %c0_9 = arith.constant 0 : index
    %c7 = arith.constant 7 : index
    %c0_10 = arith.constant 0 : index
    %13 = vector.load %arg1[%c0_9, %c7, %c0_10] : memref<1x48x128xf32, #tpu.memory_space<vmem>>, vector<1x24x128xf32>
    %14 = vector.shape_cast %13 : vector<1x24x128xf32> to vector<24x128xf32>
    %15 = arith.truncf %14 : vector<24x128xf32> to vector<24x128xbf16>
    %c2 = arith.constant 2 : index
    %c0_11 = arith.constant 0 : index
    %c0_12 = arith.constant 0 : index
    %16 = vector.load %arg2[%c2, %c0_11, %c0_12] : memref<9x128x128xbf16, #tpu.memory_space<vmem>>, vector<1x128x128xbf16>
    %17 = vector.shape_cast %16 : vector<1x128x128xbf16> to vector<128x128xbf16>
    %cst_13 = arith.constant dense<0.000000e+00> : vector<24x128xf32>
    %18 = tpu.matmul %15, %17, %cst_13 {dimension_numbers = #tpu.dot_dimension_numbers<[1], [0], [0], [1], [0, 0, 1, 1], [], []>} : vector<24x128xbf16>, vector<128x128xbf16>, vector<24x128xf32> -> vector<24x128xf32>
    %19 = arith.addf %12, %18 : vector<24x128xf32>
    %c0_14 = arith.constant 0 : index
    %c11 = arith.constant 11 : index
    %c0_15 = arith.constant 0 : index
    %20 = vector.load %arg1[%c0_14, %c11, %c0_15] : memref<1x48x128xf32, #tpu.memory_space<vmem>>, vector<1x24x128xf32>
    %21 = vector.shape_cast %20 : vector<1x24x128xf32> to vector<24x128xf32>
    %22 = arith.truncf %21 : vector<24x128xf32> to vector<24x128xbf16>
    %c3 = arith.constant 3 : index
    %c0_16 = arith.constant 0 : index
    %c0_17 = arith.constant 0 : index
    %23 = vector.load %arg2[%c3, %c0_16, %c0_17] : memref<9x128x128xbf16, #tpu.memory_space<vmem>>, vector<1x128x128xbf16>
    %24 = vector.shape_cast %23 : vector<1x128x128xbf16> to vector<128x128xbf16>
    %cst_18 = arith.constant dense<0.000000e+00> : vector<24x128xf32>
    %25 = tpu.matmul %22, %24, %cst_18 {dimension_numbers = #tpu.dot_dimension_numbers<[1], [0], [0], [1], [0, 0, 1, 1], [], []>} : vector<24x128xbf16>, vector<128x128xbf16>, vector<24x128xf32> -> vector<24x128xf32>
    %26 = arith.addf %19, %25 : vector<24x128xf32>
    %c0_19 = arith.constant 0 : index
    %c12 = arith.constant 12 : index
    %c0_20 = arith.constant 0 : index
    %27 = vector.load %arg1[%c0_19, %c12, %c0_20] : memref<1x48x128xf32, #tpu.memory_space<vmem>>, vector<1x24x128xf32>
    %28 = vector.shape_cast %27 : vector<1x24x128xf32> to vector<24x128xf32>
    %29 = arith.truncf %28 : vector<24x128xf32> to vector<24x128xbf16>
    %c4 = arith.constant 4 : index
    %c0_21 = arith.constant 0 : index
    %c0_22 = arith.constant 0 : index
    %30 = vector.load %arg2[%c4, %c0_21, %c0_22] : memref<9x128x128xbf16, #tpu.memory_space<vmem>>, vector<1x128x128xbf16>
    %31 = vector.shape_cast %30 : vector<1x128x128xbf16> to vector<128x128xbf16>
    %cst_23 = arith.constant dense<0.000000e+00> : vector<24x128xf32>
    %32 = tpu.matmul %29, %31, %cst_23 {dimension_numbers = #tpu.dot_dimension_numbers<[1], [0], [0], [1], [0, 0, 1, 1], [], []>} : vector<24x128xbf16>, vector<128x128xbf16>, vector<24x128xf32> -> vector<24x128xf32>
    %33 = arith.addf %26, %32 : vector<24x128xf32>
    %c0_24 = arith.constant 0 : index
    %c13 = arith.constant 13 : index
    %c0_25 = arith.constant 0 : index
    %34 = vector.load %arg1[%c0_24, %c13, %c0_25] : memref<1x48x128xf32, #tpu.memory_space<vmem>>, vector<1x24x128xf32>
    %35 = vector.shape_cast %34 : vector<1x24x128xf32> to vector<24x128xf32>
    %36 = arith.truncf %35 : vector<24x128xf32> to vector<24x128xbf16>
    %c5_26 = arith.constant 5 : index
    %c0_27 = arith.constant 0 : index
    %c0_28 = arith.constant 0 : index
    %37 = vector.load %arg2[%c5_26, %c0_27, %c0_28] : memref<9x128x128xbf16, #tpu.memory_space<vmem>>, vector<1x128x128xbf16>
    %38 = vector.shape_cast %37 : vector<1x128x128xbf16> to vector<128x128xbf16>
    %cst_29 = arith.constant dense<0.000000e+00> : vector<24x128xf32>
    %39 = tpu.matmul %36, %38, %cst_29 {dimension_numbers = #tpu.dot_dimension_numbers<[1], [0], [0], [1], [0, 0, 1, 1], [], []>} : vector<24x128xbf16>, vector<128x128xbf16>, vector<24x128xf32> -> vector<24x128xf32>
    %40 = arith.addf %33, %39 : vector<24x128xf32>
    %c0_30 = arith.constant 0 : index
    %c17 = arith.constant 17 : index
    %c0_31 = arith.constant 0 : index
    %41 = vector.load %arg1[%c0_30, %c17, %c0_31] : memref<1x48x128xf32, #tpu.memory_space<vmem>>, vector<1x24x128xf32>
    %42 = vector.shape_cast %41 : vector<1x24x128xf32> to vector<24x128xf32>
    %43 = arith.truncf %42 : vector<24x128xf32> to vector<24x128xbf16>
    %c6_32 = arith.constant 6 : index
    %c0_33 = arith.constant 0 : index
    %c0_34 = arith.constant 0 : index
    %44 = vector.load %arg2[%c6_32, %c0_33, %c0_34] : memref<9x128x128xbf16, #tpu.memory_space<vmem>>, vector<1x128x128xbf16>
    %45 = vector.shape_cast %44 : vector<1x128x128xbf16> to vector<128x128xbf16>
    %cst_35 = arith.constant dense<0.000000e+00> : vector<24x128xf32>
    %46 = tpu.matmul %43, %45, %cst_35 {dimension_numbers = #tpu.dot_dimension_numbers<[1], [0], [0], [1], [0, 0, 1, 1], [], []>} : vector<24x128xbf16>, vector<128x128xbf16>, vector<24x128xf32> -> vector<24x128xf32>
    %47 = arith.addf %40, %46 : vector<24x128xf32>
    %c0_36 = arith.constant 0 : index
    %c18 = arith.constant 18 : index
    %c0_37 = arith.constant 0 : index
    %48 = vector.load %arg1[%c0_36, %c18, %c0_37] : memref<1x48x128xf32, #tpu.memory_space<vmem>>, vector<1x24x128xf32>
    %49 = vector.shape_cast %48 : vector<1x24x128xf32> to vector<24x128xf32>
    %50 = arith.truncf %49 : vector<24x128xf32> to vector<24x128xbf16>
    %c7_38 = arith.constant 7 : index
    %c0_39 = arith.constant 0 : index
    %c0_40 = arith.constant 0 : index
    %51 = vector.load %arg2[%c7_38, %c0_39, %c0_40] : memref<9x128x128xbf16, #tpu.memory_space<vmem>>, vector<1x128x128xbf16>
    %52 = vector.shape_cast %51 : vector<1x128x128xbf16> to vector<128x128xbf16>
    %cst_41 = arith.constant dense<0.000000e+00> : vector<24x128xf32>
    %53 = tpu.matmul %50, %52, %cst_41 {dimension_numbers = #tpu.dot_dimension_numbers<[1], [0], [0], [1], [0, 0, 1, 1], [], []>} : vector<24x128xbf16>, vector<128x128xbf16>, vector<24x128xf32> -> vector<24x128xf32>
    %54 = arith.addf %47, %53 : vector<24x128xf32>
    %c0_42 = arith.constant 0 : index
    %c19 = arith.constant 19 : index
    %c0_43 = arith.constant 0 : index
    %55 = vector.load %arg1[%c0_42, %c19, %c0_43] : memref<1x48x128xf32, #tpu.memory_space<vmem>>, vector<1x24x128xf32>
    %56 = vector.shape_cast %55 : vector<1x24x128xf32> to vector<24x128xf32>
    %57 = arith.truncf %56 : vector<24x128xf32> to vector<24x128xbf16>
    %c8 = arith.constant 8 : index
    %c0_44 = arith.constant 0 : index
    %c0_45 = arith.constant 0 : index
    %58 = vector.load %arg2[%c8, %c0_44, %c0_45] : memref<9x128x128xbf16, #tpu.memory_space<vmem>>, vector<1x128x128xbf16>
    %59 = vector.shape_cast %58 : vector<1x128x128xbf16> to vector<128x128xbf16>
    %cst_46 = arith.constant dense<0.000000e+00> : vector<24x128xf32>
    %60 = tpu.matmul %57, %59, %cst_46 {dimension_numbers = #tpu.dot_dimension_numbers<[1], [0], [0], [1], [0, 0, 1, 1], [], []>} : vector<24x128xbf16>, vector<128x128xbf16>, vector<24x128xf32> -> vector<24x128xf32>
    %61 = arith.addf %54, %60 : vector<24x128xf32>
    %c0_47 = arith.constant 0 : index
    %c0_48 = arith.constant 0 : index
    %62 = vector.load %arg3[%c0_47, %c0_48] : memref<1x128xf32, #tpu.memory_space<vmem>>, vector<1x128xf32>
    %63 = vector.broadcast %62 : vector<1x128xf32> to vector<24x128xf32>
    %64 = arith.mulf %61, %63 : vector<24x128xf32>
    %c0_49 = arith.constant 0 : index
    %c0_50 = arith.constant 0 : index
    %65 = vector.load %arg4[%c0_49, %c0_50] : memref<1x128xf32, #tpu.memory_space<vmem>>, vector<1x128xf32>
    %66 = vector.broadcast %65 : vector<1x128xf32> to vector<24x128xf32>
    %67 = arith.addf %64, %66 : vector<24x128xf32>
    %cst_51 = arith.constant 0.000000e+00 : f32
    %68 = vector.broadcast %cst_51 : f32 to vector<24x128xf32>
    %69 = arith.maximumf %67, %68 : vector<24x128xf32>
    %70 = vector.extract_strided_slice %69 {offsets = [0, 0], sizes = [17, 128], strides = [1, 1]} : vector<24x128xf32> to vector<17x128xf32>
    %71 = vector.extract_strided_slice %69 {offsets = [1, 0], sizes = [17, 128], strides = [1, 1]} : vector<24x128xf32> to vector<17x128xf32>
    %72 = arith.maximumf %70, %71 : vector<17x128xf32>
    %73 = vector.extract_strided_slice %69 {offsets = [6, 0], sizes = [17, 128], strides = [1, 1]} : vector<24x128xf32> to vector<17x128xf32>
    %74 = vector.extract_strided_slice %69 {offsets = [7, 0], sizes = [17, 128], strides = [1, 1]} : vector<24x128xf32> to vector<17x128xf32>
    %75 = arith.maximumf %73, %74 : vector<17x128xf32>
    %76 = arith.maximumf %72, %75 : vector<17x128xf32>
    %c0_52 = arith.constant 0 : index
    %c0_53 = arith.constant 0 : index
    %77 = vector.load %arg5[%c0_52, %c0_53] : memref<24x17xf32, #tpu.memory_space<vmem>>, vector<24x17xf32>
    %cst_54 = arith.constant dense<0.000000e+00> : vector<24x128xf32>
    %78 = tpu.matmul %77, %76, %cst_54 {dimension_numbers = #tpu.dot_dimension_numbers<[1], [0], [0], [1], [0, 0, 1, 1], [], []>} : vector<24x17xf32>, vector<17x128xf32>, vector<24x128xf32> -> vector<24x128xf32>
    %c0_55 = arith.constant 0 : index
    %c0_56 = arith.constant 0 : index
    %c0_57 = arith.constant 0 : index
    %79 = vector.load %arg6[%c0_55, %c0_56, %c0_57] : memref<1x24x128xf32, #tpu.memory_space<vmem>>, vector<1x24x128xf32>
    %80 = vector.shape_cast %79 : vector<1x24x128xf32> to vector<24x128xf32>
    %81 = vector.shape_cast %78 : vector<24x128xf32> to vector<1x24x128xf32>
    tpu.vector_store %arg6[%c0_55, %c0_56, %c0_57], %81 {strides = array<i32>} : memref<1x24x128xf32, #tpu.memory_space<vmem>>, vector<1x24x128xf32>,
    return
  }
  func.func @transform_0(%arg0: i32) -> (i32, i32, i32) {
    %c0_i32 = arith.constant 0 : i32
    %c0_i32_0 = arith.constant 0 : i32
    %c0_i32_1 = arith.constant 0 : i32
    return %arg0, %c0_i32, %c0_i32_0 : i32, i32, i32
  }
  func.func @transform_1(%arg0: i32) -> (i32, i32, i32) {
    %c0_i32 = arith.constant 0 : i32
    %c0_i32_0 = arith.constant 0 : i32
    %c0_i32_1 = arith.constant 0 : i32
    %c0_i32_2 = arith.constant 0 : i32
    return %c0_i32, %c0_i32_0, %c0_i32_1 : i32, i32, i32
  }
  func.func @transform_2(%arg0: i32) -> (i32, i32) {
    %c0_i32 = arith.constant 0 : i32
    %c0_i32_0 = arith.constant 0 : i32
    %c0_i32_1 = arith.constant 0 : i32
    return %c0_i32, %c0_i32_0 : i32, i32
  }
  func.func @transform_3(%arg0: i32) -> (i32, i32) {
    %c0_i32 = arith.constant 0 : i32
    %c0_i32_0 = arith.constant 0 : i32
    %c0_i32_1 = arith.constant 0 : i32
    return %c0_i32, %c0_i32_0 : i32, i32
  }
  func.func @transform_4(%arg0: i32) -> (i32, i32) {
    %c0_i32 = arith.constant 0 : i32
    %c0_i32_0 = arith.constant 0 : i32
    %c0_i32_1 = arith.constant 0 : i32
    return %c0_i32, %c0_i32_0 : i32, i32
  }
  func.func @transform_5(%arg0: i32) -> (i32, i32, i32) {
    %c0_i32 = arith.constant 0 : i32
    %c0_i32_0 = arith.constant 0 : i32
    %c0_i32_1 = arith.constant 0 : i32
    return %arg0, %c0_i32, %c0_i32_0 : i32, i32, i32
  }
}

module attributes {stable_mosaic.version = 11 : i64} {
  func.func @kernel(%arg0: i32, %arg1: memref<1x24x128xf32, #tpu.memory_space<vmem>>, %arg2: memref<9x128x512xbf16, #tpu.memory_space<vmem>>, %arg3: memref<1x512xf32, #tpu.memory_space<vmem>>, %arg4: memref<1x512xf32, #tpu.memory_space<vmem>>, %arg5: memref<1x3xf32, #tpu.memory_space<vmem>>, %arg6: memref<1x1x512xf32, #tpu.memory_space<vmem>>) attributes {dimension_semantics = [#tpu.dimension_semantics<parallel>], iteration_bounds = array<i64: 2>, scalar_prefetch = 0 : i64, scratch_operands = 0 : i64, tpu.core_type = #tpu.core_type<tc>, window_params = [{transform_indices = @transform_0, window_bounds = array<i64: 1, 24, 128>}, {pipeline_mode = #tpu.pipeline_mode<synchronous>, transform_indices = @transform_1, window_bounds = array<i64: 9, 128, 512>}, {pipeline_mode = #tpu.pipeline_mode<synchronous>, transform_indices = @transform_2, window_bounds = array<i64: 1, 512>}, {pipeline_mode = #tpu.pipeline_mode<synchronous>, transform_indices = @transform_3, window_bounds = array<i64: 1, 512>}, {pipeline_mode = #tpu.pipeline_mode<synchronous>, transform_indices = @transform_4, window_bounds = array<i64: 1, 3>}, {transform_indices = @transform_5, window_bounds = array<i64: 1, 1, 512>}]} {
    %c0 = arith.constant 0 : index
    %c3 = arith.constant 3 : index
    %c0_0 = arith.constant 0 : index
    %0 = vector.load %arg1[%c0, %c3, %c0_0] : memref<1x24x128xf32, #tpu.memory_space<vmem>>, vector<1x8x128xf32>
    %1 = vector.shape_cast %0 : vector<1x8x128xf32> to vector<8x128xf32>
    %2 = arith.truncf %1 : vector<8x128xf32> to vector<8x128xbf16>
    %c0_1 = arith.constant 0 : index
    %c0_2 = arith.constant 0 : index
    %c0_3 = arith.constant 0 : index
    %3 = vector.load %arg2[%c0_1, %c0_2, %c0_3] : memref<9x128x512xbf16, #tpu.memory_space<vmem>>, vector<1x128x512xbf16>
    %4 = vector.shape_cast %3 : vector<1x128x512xbf16> to vector<128x512xbf16>
    %cst = arith.constant dense<0.000000e+00> : vector<8x512xf32>
    %5 = tpu.matmul %2, %4, %cst {dimension_numbers = #tpu.dot_dimension_numbers<[1], [0], [0], [1], [0, 0, 1, 1], [], []>} : vector<8x128xbf16>, vector<128x512xbf16>, vector<8x512xf32> -> vector<8x512xf32>
    %c0_4 = arith.constant 0 : index
    %c4 = arith.constant 4 : index
    %c0_5 = arith.constant 0 : index
    %6 = vector.load %arg1[%c0_4, %c4, %c0_5] : memref<1x24x128xf32, #tpu.memory_space<vmem>>, vector<1x8x128xf32>
    %7 = vector.shape_cast %6 : vector<1x8x128xf32> to vector<8x128xf32>
    %8 = arith.truncf %7 : vector<8x128xf32> to vector<8x128xbf16>
    %c1 = arith.constant 1 : index
    %c0_6 = arith.constant 0 : index
    %c0_7 = arith.constant 0 : index
    %9 = vector.load %arg2[%c1, %c0_6, %c0_7] : memref<9x128x512xbf16, #tpu.memory_space<vmem>>, vector<1x128x512xbf16>
    %10 = vector.shape_cast %9 : vector<1x128x512xbf16> to vector<128x512xbf16>
    %cst_8 = arith.constant dense<0.000000e+00> : vector<8x512xf32>
    %11 = tpu.matmul %8, %10, %cst_8 {dimension_numbers = #tpu.dot_dimension_numbers<[1], [0], [0], [1], [0, 0, 1, 1], [], []>} : vector<8x128xbf16>, vector<128x512xbf16>, vector<8x512xf32> -> vector<8x512xf32>
    %12 = arith.addf %5, %11 : vector<8x512xf32>
    %c0_9 = arith.constant 0 : index
    %c5 = arith.constant 5 : index
    %c0_10 = arith.constant 0 : index
    %13 = vector.load %arg1[%c0_9, %c5, %c0_10] : memref<1x24x128xf32, #tpu.memory_space<vmem>>, vector<1x8x128xf32>
    %14 = vector.shape_cast %13 : vector<1x8x128xf32> to vector<8x128xf32>
    %15 = arith.truncf %14 : vector<8x128xf32> to vector<8x128xbf16>
    %c2 = arith.constant 2 : index
    %c0_11 = arith.constant 0 : index
    %c0_12 = arith.constant 0 : index
    %16 = vector.load %arg2[%c2, %c0_11, %c0_12] : memref<9x128x512xbf16, #tpu.memory_space<vmem>>, vector<1x128x512xbf16>
    %17 = vector.shape_cast %16 : vector<1x128x512xbf16> to vector<128x512xbf16>
    %cst_13 = arith.constant dense<0.000000e+00> : vector<8x512xf32>
    %18 = tpu.matmul %15, %17, %cst_13 {dimension_numbers = #tpu.dot_dimension_numbers<[1], [0], [0], [1], [0, 0, 1, 1], [], []>} : vector<8x128xbf16>, vector<128x512xbf16>, vector<8x512xf32> -> vector<8x512xf32>
    %19 = arith.addf %12, %18 : vector<8x512xf32>
    %c0_14 = arith.constant 0 : index
    %c7 = arith.constant 7 : index
    %c0_15 = arith.constant 0 : index
    %20 = vector.load %arg1[%c0_14, %c7, %c0_15] : memref<1x24x128xf32, #tpu.memory_space<vmem>>, vector<1x8x128xf32>
    %21 = vector.shape_cast %20 : vector<1x8x128xf32> to vector<8x128xf32>
    %22 = arith.truncf %21 : vector<8x128xf32> to vector<8x128xbf16>
    %c3_16 = arith.constant 3 : index
    %c0_17 = arith.constant 0 : index
    %c0_18 = arith.constant 0 : index
    %23 = vector.load %arg2[%c3_16, %c0_17, %c0_18] : memref<9x128x512xbf16, #tpu.memory_space<vmem>>, vector<1x128x512xbf16>
    %24 = vector.shape_cast %23 : vector<1x128x512xbf16> to vector<128x512xbf16>
    %cst_19 = arith.constant dense<0.000000e+00> : vector<8x512xf32>
    %25 = tpu.matmul %22, %24, %cst_19 {dimension_numbers = #tpu.dot_dimension_numbers<[1], [0], [0], [1], [0, 0, 1, 1], [], []>} : vector<8x128xbf16>, vector<128x512xbf16>, vector<8x512xf32> -> vector<8x512xf32>
    %26 = arith.addf %19, %25 : vector<8x512xf32>
    %c0_20 = arith.constant 0 : index
    %c8 = arith.constant 8 : index
    %c0_21 = arith.constant 0 : index
    %27 = vector.load %arg1[%c0_20, %c8, %c0_21] : memref<1x24x128xf32, #tpu.memory_space<vmem>>, vector<1x8x128xf32>
    %28 = vector.shape_cast %27 : vector<1x8x128xf32> to vector<8x128xf32>
    %29 = arith.truncf %28 : vector<8x128xf32> to vector<8x128xbf16>
    %c4_22 = arith.constant 4 : index
    %c0_23 = arith.constant 0 : index
    %c0_24 = arith.constant 0 : index
    %30 = vector.load %arg2[%c4_22, %c0_23, %c0_24] : memref<9x128x512xbf16, #tpu.memory_space<vmem>>, vector<1x128x512xbf16>
    %31 = vector.shape_cast %30 : vector<1x128x512xbf16> to vector<128x512xbf16>
    %cst_25 = arith.constant dense<0.000000e+00> : vector<8x512xf32>
    %32 = tpu.matmul %29, %31, %cst_25 {dimension_numbers = #tpu.dot_dimension_numbers<[1], [0], [0], [1], [0, 0, 1, 1], [], []>} : vector<8x128xbf16>, vector<128x512xbf16>, vector<8x512xf32> -> vector<8x512xf32>
    %33 = arith.addf %26, %32 : vector<8x512xf32>
    %c0_26 = arith.constant 0 : index
    %c9 = arith.constant 9 : index
    %c0_27 = arith.constant 0 : index
    %34 = vector.load %arg1[%c0_26, %c9, %c0_27] : memref<1x24x128xf32, #tpu.memory_space<vmem>>, vector<1x8x128xf32>
    %35 = vector.shape_cast %34 : vector<1x8x128xf32> to vector<8x128xf32>
    %36 = arith.truncf %35 : vector<8x128xf32> to vector<8x128xbf16>
    %c5_28 = arith.constant 5 : index
    %c0_29 = arith.constant 0 : index
    %c0_30 = arith.constant 0 : index
    %37 = vector.load %arg2[%c5_28, %c0_29, %c0_30] : memref<9x128x512xbf16, #tpu.memory_space<vmem>>, vector<1x128x512xbf16>
    %38 = vector.shape_cast %37 : vector<1x128x512xbf16> to vector<128x512xbf16>
    %cst_31 = arith.constant dense<0.000000e+00> : vector<8x512xf32>
    %39 = tpu.matmul %36, %38, %cst_31 {dimension_numbers = #tpu.dot_dimension_numbers<[1], [0], [0], [1], [0, 0, 1, 1], [], []>} : vector<8x128xbf16>, vector<128x512xbf16>, vector<8x512xf32> -> vector<8x512xf32>
    %40 = arith.addf %33, %39 : vector<8x512xf32>
    %c0_32 = arith.constant 0 : index
    %c11 = arith.constant 11 : index
    %c0_33 = arith.constant 0 : index
    %41 = vector.load %arg1[%c0_32, %c11, %c0_33] : memref<1x24x128xf32, #tpu.memory_space<vmem>>, vector<1x8x128xf32>
    %42 = vector.shape_cast %41 : vector<1x8x128xf32> to vector<8x128xf32>
    %43 = arith.truncf %42 : vector<8x128xf32> to vector<8x128xbf16>
    %c6 = arith.constant 6 : index
    %c0_34 = arith.constant 0 : index
    %c0_35 = arith.constant 0 : index
    %44 = vector.load %arg2[%c6, %c0_34, %c0_35] : memref<9x128x512xbf16, #tpu.memory_space<vmem>>, vector<1x128x512xbf16>
    %45 = vector.shape_cast %44 : vector<1x128x512xbf16> to vector<128x512xbf16>
    %cst_36 = arith.constant dense<0.000000e+00> : vector<8x512xf32>
    %46 = tpu.matmul %43, %45, %cst_36 {dimension_numbers = #tpu.dot_dimension_numbers<[1], [0], [0], [1], [0, 0, 1, 1], [], []>} : vector<8x128xbf16>, vector<128x512xbf16>, vector<8x512xf32> -> vector<8x512xf32>
    %47 = arith.addf %40, %46 : vector<8x512xf32>
    %c0_37 = arith.constant 0 : index
    %c12 = arith.constant 12 : index
    %c0_38 = arith.constant 0 : index
    %48 = vector.load %arg1[%c0_37, %c12, %c0_38] : memref<1x24x128xf32, #tpu.memory_space<vmem>>, vector<1x8x128xf32>
    %49 = vector.shape_cast %48 : vector<1x8x128xf32> to vector<8x128xf32>
    %50 = arith.truncf %49 : vector<8x128xf32> to vector<8x128xbf16>
    %c7_39 = arith.constant 7 : index
    %c0_40 = arith.constant 0 : index
    %c0_41 = arith.constant 0 : index
    %51 = vector.load %arg2[%c7_39, %c0_40, %c0_41] : memref<9x128x512xbf16, #tpu.memory_space<vmem>>, vector<1x128x512xbf16>
    %52 = vector.shape_cast %51 : vector<1x128x512xbf16> to vector<128x512xbf16>
    %cst_42 = arith.constant dense<0.000000e+00> : vector<8x512xf32>
    %53 = tpu.matmul %50, %52, %cst_42 {dimension_numbers = #tpu.dot_dimension_numbers<[1], [0], [0], [1], [0, 0, 1, 1], [], []>} : vector<8x128xbf16>, vector<128x512xbf16>, vector<8x512xf32> -> vector<8x512xf32>
    %54 = arith.addf %47, %53 : vector<8x512xf32>
    %c0_43 = arith.constant 0 : index
    %c13 = arith.constant 13 : index
    %c0_44 = arith.constant 0 : index
    %55 = vector.load %arg1[%c0_43, %c13, %c0_44] : memref<1x24x128xf32, #tpu.memory_space<vmem>>, vector<1x8x128xf32>
    %56 = vector.shape_cast %55 : vector<1x8x128xf32> to vector<8x128xf32>
    %57 = arith.truncf %56 : vector<8x128xf32> to vector<8x128xbf16>
    %c8_45 = arith.constant 8 : index
    %c0_46 = arith.constant 0 : index
    %c0_47 = arith.constant 0 : index
    %58 = vector.load %arg2[%c8_45, %c0_46, %c0_47] : memref<9x128x512xbf16, #tpu.memory_space<vmem>>, vector<1x128x512xbf16>
    %59 = vector.shape_cast %58 : vector<1x128x512xbf16> to vector<128x512xbf16>
    %cst_48 = arith.constant dense<0.000000e+00> : vector<8x512xf32>
    %60 = tpu.matmul %57, %59, %cst_48 {dimension_numbers = #tpu.dot_dimension_numbers<[1], [0], [0], [1], [0, 0, 1, 1], [], []>} : vector<8x128xbf16>, vector<128x512xbf16>, vector<8x512xf32> -> vector<8x512xf32>
    %61 = arith.addf %54, %60 : vector<8x512xf32>
    %c0_49 = arith.constant 0 : index
    %c0_50 = arith.constant 0 : index
    %62 = vector.load %arg3[%c0_49, %c0_50] : memref<1x512xf32, #tpu.memory_space<vmem>>, vector<1x512xf32>
    %63 = vector.broadcast %62 : vector<1x512xf32> to vector<8x512xf32>
    %64 = arith.mulf %61, %63 : vector<8x512xf32>
    %c0_51 = arith.constant 0 : index
    %c0_52 = arith.constant 0 : index
    %65 = vector.load %arg4[%c0_51, %c0_52] : memref<1x512xf32, #tpu.memory_space<vmem>>, vector<1x512xf32>
    %66 = vector.broadcast %65 : vector<1x512xf32> to vector<8x512xf32>
    %67 = arith.addf %64, %66 : vector<8x512xf32>
    %cst_53 = arith.constant 0.000000e+00 : f32
    %68 = vector.broadcast %cst_53 : f32 to vector<8x512xf32>
    %69 = arith.maximumf %67, %68 : vector<8x512xf32>
    %70 = vector.extract_strided_slice %69 {offsets = [0, 0], sizes = [3, 512], strides = [1, 1]} : vector<8x512xf32> to vector<3x512xf32>
    %71 = vector.extract_strided_slice %69 {offsets = [1, 0], sizes = [3, 512], strides = [1, 1]} : vector<8x512xf32> to vector<3x512xf32>
    %72 = arith.maximumf %70, %71 : vector<3x512xf32>
    %73 = vector.extract_strided_slice %69 {offsets = [4, 0], sizes = [3, 512], strides = [1, 1]} : vector<8x512xf32> to vector<3x512xf32>
    %74 = vector.extract_strided_slice %69 {offsets = [5, 0], sizes = [3, 512], strides = [1, 1]} : vector<8x512xf32> to vector<3x512xf32>
    %75 = arith.maximumf %73, %74 : vector<3x512xf32>
    %76 = arith.maximumf %72, %75 : vector<3x512xf32>
    %c0_54 = arith.constant 0 : index
    %c0_55 = arith.constant 0 : index
    %77 = vector.load %arg5[%c0_54, %c0_55] : memref<1x3xf32, #tpu.memory_space<vmem>>, vector<1x3xf32>
    %cst_56 = arith.constant dense<0.000000e+00> : vector<1x512xf32>
    %78 = tpu.matmul %77, %76, %cst_56 {dimension_numbers = #tpu.dot_dimension_numbers<[1], [0], [0], [1], [0, 0, 1, 1], [], []>} : vector<1x3xf32>, vector<3x512xf32>, vector<1x512xf32> -> vector<1x512xf32>
    %c0_57 = arith.constant 0 : index
    %c0_58 = arith.constant 0 : index
    %c0_59 = arith.constant 0 : index
    %79 = vector.load %arg6[%c0_57, %c0_58, %c0_59] : memref<1x1x512xf32, #tpu.memory_space<vmem>>, vector<1x1x512xf32>
    %80 = vector.shape_cast %79 : vector<1x1x512xf32> to vector<1x512xf32>
    %81 = vector.shape_cast %78 : vector<1x512xf32> to vector<1x1x512xf32>
    tpu.vector_store %arg6[%c0_57, %c0_58, %c0_59], %81 {strides = array<i32>} : memref<1x1x512xf32, #tpu.memory_space<vmem>>, vector<1x1x512xf32>,
    return
  }
  func.func @transform_0(%arg0: i32) -> (i32, i32, i32) {
    %c0_i32 = arith.constant 0 : i32
    %c0_i32_0 = arith.constant 0 : i32
    %c0_i32_1 = arith.constant 0 : i32
    return %arg0, %c0_i32, %c0_i32_0 : i32, i32, i32
  }
  func.func @transform_1(%arg0: i32) -> (i32, i32, i32) {
    %c0_i32 = arith.constant 0 : i32
    %c0_i32_0 = arith.constant 0 : i32
    %c0_i32_1 = arith.constant 0 : i32
    %c0_i32_2 = arith.constant 0 : i32
    return %c0_i32, %c0_i32_0, %c0_i32_1 : i32, i32, i32
  }
  func.func @transform_2(%arg0: i32) -> (i32, i32) {
    %c0_i32 = arith.constant 0 : i32
    %c0_i32_0 = arith.constant 0 : i32
    %c0_i32_1 = arith.constant 0 : i32
    return %c0_i32, %c0_i32_0 : i32, i32
  }
  func.func @transform_3(%arg0: i32) -> (i32, i32) {
    %c0_i32 = arith.constant 0 : i32
    %c0_i32_0 = arith.constant 0 : i32
    %c0_i32_1 = arith.constant 0 : i32
    return %c0_i32, %c0_i32_0 : i32, i32
  }
  func.func @transform_4(%arg0: i32) -> (i32, i32) {
    %c0_i32 = arith.constant 0 : i32
    %c0_i32_0 = arith.constant 0 : i32
    %c0_i32_1 = arith.constant 0 : i32
    return %c0_i32, %c0_i32_0 : i32, i32
  }
  func.func @transform_5(%arg0: i32) -> (i32, i32, i32) {
    %c0_i32 = arith.constant 0 : i32
    %c0_i32_0 = arith.constant 0 : i32
    %c0_i32_1 = arith.constant 0 : i32
    return %arg0, %c0_i32, %c0_i32_0 : i32, i32, i32
  }
}

</mosaic_0001>

<bundles_post_ra>
// kernel: _lambda_.5
= control target key start
LH: loop header
LB: loop body
LE: loop exit
PB: predicated region body
PF: predicated region fallthrough
CT: control target
= control target key end

     0   :  { %s2823_s18 = smov 0   ;;  %s3441_s0 = inlined_call_operand.vmem [shape: f32[2,120,128], index: 0, kind: input, shape index: {}]   ;;  %s3442_s1 = inlined_call_operand.vmem [shape: bf16[9,128,128], index: 1, kind: input, shape index: {}]   ;;  %s3443_s2 = inlined_call_operand.vmem [shape: f32[1,128], index: 2, kind: input, shape index: {}]   ;;  %s3444_s3 = inlined_call_operand.vmem [shape: f32[1,128], index: 3, kind: input, shape index: {}]   ;;  %s3445_s4 = inlined_call_operand.vmem [shape: f32[48,69], index: 4, kind: input, shape index: {}]   ;;  %s3446_s5 = inlined_call_operand.vmem [shape: f32[2,48,128], index: 5, kind: output, shape index: {}]  }
   0x1 LB: > { %s1998_s19 = sadd.s32 4294967295, %s2789_s18   ;;  %p2002_p0 = scmp.ge.s32.totalorder %s2789_s18, 1  ;;  %s2789_s18 = sphi %s2823_s18, %s15_s18  }
   0x2   : > { %p187_p1 = scmp.lt.s32.totalorder %s2789_s18, 3 }
   0x4   : > { %p188_p2 = pnand %p2002_p0, %p187_p1 }
   0x5   : > { %p215_p3 = scmp.lt.s32.totalorder (!%p188_p2), %s1998_s19, 1 }
   0x6   : > { %191 = sbr.rel (%p188_p2) target bundleno = 671 (0x29f), region = 40 }
   0xb   : > { %v2711_v0 = vld [vmem:[%s3442_s1 + $0x78] sm:$0xff]   ;;  %v2791_v1 = vmov 0.0   ;;  %v2713_v3 = vld [vmem:[%s3442_s1 + $0x70] sm:$0xff]   ;;  %vm2792_vm0 = vmmov 0   ;;  %v2715_v5 = vld [vmem:[%s3442_s1 + $0x68] sm:$0xff]   ;;  %s3448_s19 = smov (!%p215_p3, %s1998_s19), 1 }
   0xc   : > { %2348 = vmatprep.subr.bf16.mxu0 %v2791_v1  ;;  %2384 = vmatprep.subr.bf16.mxu1 %v2791_v1  ;;  %v2712_v2 = vld [vmem:[%s3442_s1 + $0x38] sm:$0xff]   ;;  %v2714_v4 = vld [vmem:[%s3442_s1 + $0x30] sm:$0xff]   ;;  %v2716_v6 = vld [vmem:[%s3442_s1 + $0x28] sm:$0xff]   ;;  %s2699_s15 = smul.u32 120, %s3448_s19  ;;  %vm1819_vm1 = vcmask 564224   ;;  %vm1725_vm2 = vcmask 1046528  }
   0xd   : > { %2349 = vmatpush3.bf16.msra.mxu0 %v2711_v0  ;;  %2364 = vmatprep.mubr.msk.bf16.mxu0 %vm2792_vm0, %v2791_v1  ;;  %v2717_v7 = vld [vmem:[%s3442_s1 + $0x60] sm:$0xff]   ;;  %v2719_v9 = vld [vmem:[%s3442_s1 + $0x58] sm:$0xff]   ;;  %v2721_v11 = vld [vmem:[%s3442_s1 + $0x50] sm:$0xff]   ;;  %vm1777_vm3 = vcmask 1045504   ;;  %vm1838_vm4 = vcmask 1044480   ;;  %s2700_s28 = smul.u32 48, %s3448_s19 }
   0xe   : > { %2385 = vmatpush3.bf16.msra.mxu1 %v2712_v2  ;;  %2350 = vmatprep.subr.bf16.mxu0 %v2791_v1  ;;  %v2718_v8 = vld [vmem:[%s3442_s1 + $0x20] sm:$0xff]   ;;  %v2720_v10 = vld [vmem:[%s3442_s1 + $0x18] sm:$0xff]   ;;  %v2722_v12 = vld [vmem:[%s3442_s1 + $0x10] sm:$0xff]   ;;  %s2893_s24 = scalar_lea.vmem %s3441_s0, %s2699_s15 }
   0xf   : > { %2386 = vmatprep.subr.bf16.mxu1 %v2791_v1  ;;  %2400 = vmatprep.mubr.msk.bf16.mxu1 %vm2792_vm0, %v2791_v1  ;;  %v2723_v13 = vld [vmem:[%s3442_s1 + $0x48] sm:$0xff]   ;;  %v2725_v15 = vld [vmem:[%s3442_s1 + $0x40] sm:$0xff]   ;;  %v258_v18 = vld [vmem:[%s2893_s24 + $0x12] sm:$0xff]  ;;  %s224_s6 = scalar_lea.vmem %s3446_s5, %s2700_s28 }
  0x10   : > { %v2724_v14 = vld [vmem:[%s3442_s1 + $0x8] sm:$0xff]   ;;  %v2726_v17 = vld [vmem:[%s3442_s1] sm:$0xff]   ;;  %v227_v20 = vld [vmem:[%s2893_s24 + $0x11] sm:$0xff] }
  0x11   : > { %2351 = vmatpush3.bf16.msra.mxu0 %v2713_v3  ;;  %v257_v16 = vld [vmem:[%s2893_s24 + $0xa] sm:$0xff]  ;;  %v2727_v23 = vld [vmem:[%s3442_s1 + $0xb8] sm:$0xff]   ;;  %v260_v26 = vld [vmem:[%s2893_s24 + $0x22] sm:$0xff] }
  0x12   : > { %2387 = vmatpush3.bf16.msra.mxu1 %v2714_v4  ;;  %2352 = vmatprep.subr.bf16.mxu0 %v2791_v1  ;;  %v226_v19 = vld [vmem:[%s2893_s24 + $0x9] sm:$0xff]  ;;  %v267_v21 = vpack.c.bf16 %v258_v18, %v257_v16  ;;  %v2728_v24 = vld [vmem:[%s3442_s1 + $0xf8] sm:$0xff]   ;;  %v229_v28 = vld [vmem:[%s2893_s24 + $0x21] sm:$0xff] }
  0x13   : > { %2388 = vmatprep.subr.bf16.mxu1 %v2791_v1  ;;  %v236_v22 = vpack.c.bf16 %v227_v20, %v226_v19  ;;  %v259_v25 = vld [vmem:[%s2893_s24 + $0x1a] sm:$0xff]  ;;  %v2729_v29 = vld [vmem:[%s3442_s1 + $0xb0] sm:$0xff]   ;;  %v2731_v33 = vld [vmem:[%s3442_s1 + $0xa8] sm:$0xff]  }
  0x14   : > { %v228_v27 = vld [vmem:[%s2893_s24 + $0x19] sm:$0xff]  ;;  %v2730_v30 = vld [vmem:[%s3442_s1 + $0xf0] sm:$0xff]   ;;  %v268_v31 = vpack.c.bf16 %v260_v26, %v259_v25  ;;  %v2732_v36 = vld [vmem:[%s3442_s1 + $0xe8] sm:$0xff]  }
  0x15   : > { %2353 = vmatpush3.bf16.msra.mxu0 %v2715_v5  ;;  %v237_v32 = vpack.c.bf16 %v229_v28, %v228_v27  ;;  %v261_v34 = vld [vmem:[%s2893_s24 + $0x2a] sm:$0xff]  ;;  %v262_v35 = vld [vmem:[%s2893_s24 + $0x32] sm:$0xff]  ;;  %v2733_v39 = vld [vmem:[%s3442_s1 + $0xa0] sm:$0xff]  }
  0x16   : > { %2389 = vmatpush3.bf16.msra.mxu1 %v2716_v6  ;;  %2354 = vmatprep.subr.bf16.mxu0 %v2791_v1  ;;  %v230_v37 = vld [vmem:[%s2893_s24 + $0x29] sm:$0xff]  ;;  %v231_v38 = vld [vmem:[%s2893_s24 + $0x31] sm:$0xff]  ;;  %v2734_v40 = vld [vmem:[%s3442_s1 + $0xe0] sm:$0xff]   ;;  %v269_v41 = vpack.c.bf16 %v262_v35, %v261_v34 }
  0x17   : > { %2390 = vmatprep.subr.bf16.mxu1 %v2791_v1  ;;  %v238_v42 = vpack.c.bf16 %v231_v38, %v230_v37  ;;  %v2735_v43 = vld [vmem:[%s3442_s1 + $0x98] sm:$0xff]   ;;  %v264_v46 = vld [vmem:[%s2893_s24 + $0x42] sm:$0xff]  ;;  %v2737_v49 = vld [vmem:[%s3442_s1 + $0x90] sm:$0xff]  }
  0x18   : > { %v263_v44 = vld [vmem:[%s2893_s24 + $0x3a] sm:$0xff]  ;;  %v2738_v50 = vld [vmem:[%s3442_s1 + $0xd0] sm:$0xff]   ;;  %v2739_v53 = vld [vmem:[%s3442_s1 + $0x88] sm:$0xff]  }
  0x19   : > { %2355 = vmatpush3.bf16.msra.mxu0 %v2717_v7  ;;  %v2736_v45 = vld [vmem:[%s3442_s1 + $0xd8] sm:$0xff]   ;;  %v233_v48 = vld [vmem:[%s2893_s24 + $0x41] sm:$0xff]  ;;  %v270_v51 = vpack.c.bf16 %v264_v46, %v263_v44  ;;  %v265_v55 = vld [vmem:[%s2893_s24 + $0x4a] sm:$0xff] }
  0x1a   : > { %2391 = vmatpush3.bf16.msra.mxu1 %v2718_v8  ;;  %2356 = vmatprep.subr.bf16.mxu0 %v2791_v1  ;;  %v232_v47 = vld [vmem:[%s2893_s24 + $0x39] sm:$0xff]  ;;  %v2740_v54 = vld [vmem:[%s3442_s1 + $0xc8] sm:$0xff]   ;;  %v235_v58 = vld [vmem:[%s2893_s24 + $0x51] sm:$0xff] }
  0x1b   : > { %2392 = vmatprep.subr.bf16.mxu1 %v2791_v1  ;;  %v239_v52 = vpack.c.bf16 %v233_v48, %v232_v47  ;;  %v266_v56 = vld [vmem:[%s2893_s24 + $0x52] sm:$0xff]  ;;  %v234_v57 = vld [vmem:[%s2893_s24 + $0x49] sm:$0xff]  ;;  %v2741_v59 = vld [vmem:[%s3442_s1 + $0x80] sm:$0xff]  }
  0x1c   : > { %v2742_v60 = vld [vmem:[%s3442_s1 + $0xc0] sm:$0xff]   ;;  %v271_v61 = vpack.c.bf16 %v266_v56, %v265_v55  ;;  %v240_v62 = vpack.c.bf16 %v235_v58, %v234_v57  ;;  %v531_v63 = vld [vmem:[%s2893_s24 + $0xb] sm:$0xff]  ;;  %v532_v0 = vld [vmem:[%s2893_s24 + $0x13] sm:$0xff] }
  0x1d   : > { %2357 = vmatpush3.bf16.msra.mxu0 %v2719_v9  ;;  %v695_v2 = vld [vmem:[%s2893_s24 + $0x1b] sm:$0xff]  ;;  %v541_v3 = vpack.c.bf16 %v532_v0, %v531_v63  ;;  %v534_v7 = vld [vmem:[%s2893_s24 + $0x23] sm:$0xff]  ;;  %v697_v8 = vld [vmem:[%s2893_s24 + $0x2b] sm:$0xff] }
  0x1e   : > { %2393 = vmatpush3.bf16.msra.mxu1 %v2720_v10  ;;  %2358 = vmatprep.subr.bf16.mxu0 %v2791_v1  ;;  %v704_v4 = vpack.c.bf16 %v695_v2, %v532_v0  ;;  %v2743_v5 = vld [vmem:[%s3442_s1 + $0x138] sm:$0xff]   ;;  %v2745_v9 = vld [vmem:[%s3442_s1 + $0x130] sm:$0xff]   ;;  %v2750_v18 = vld [vmem:[%s3442_s1 + $0x160] sm:$0xff]  }
  0x1f   : > { %2394 = vmatprep.subr.bf16.mxu1 %v2791_v1  ;;  %v2744_v6 = vld [vmem:[%s3442_s1 + $0x178] sm:$0xff]   ;;  %v2746_v10 = vld [vmem:[%s3442_s1 + $0x170] sm:$0xff]   ;;  %v2758_v34 = vld [vmem:[%s3442_s1 + $0x140] sm:$0xff]  }
  0x20   : > { %v699_v16 = vld [vmem:[%s2893_s24 + $0x3b] sm:$0xff]  ;;  %v2753_v25 = vld [vmem:[%s3442_s1 + $0x110] sm:$0xff]   ;;  %v3132_v47 = vld [vmem:[%s2893_s24 + $0x25] sm:$0xff] }
  0x21   : > { %2359 = vmatpush3.bf16.msra.mxu0 %v2721_v11  ;;  %v542_v11 = vpack.c.bf16 %v534_v7, %v695_v2  ;;  %v2754_v26 = vld [vmem:[%s3442_s1 + $0x150] sm:$0xff]   ;;  %v858_v38 = vld [vmem:[%s2893_s24 + $0x1c] sm:$0xff]  ;;  %v863_v2 = vld [vmem:[%s2893_s24 + $0x44] sm:$0xff] }
  0x22   : > { %2395 = vmatpush3.bf16.msra.mxu1 %v2722_v12  ;;  %2360 = vmatprep.subr.bf16.mxu0 %v2791_v1  ;;  %v705_v12 = vpack.c.bf16 %v697_v8, %v534_v7  ;;  %v857_v37 = vld [vmem:[%s2893_s24 + $0x14] sm:$0xff]  ;;  %v860_v46 = vld [vmem:[%s2893_s24 + $0x2c] sm:$0xff]  ;;  %v862_v56 = vld [vmem:[%s2893_s24 + $0x3c] sm:$0xff] }
  0x23   : > { %2396 = vmatprep.subr.bf16.mxu1 %v2791_v1  ;;  %v2760_v44 = vld [vmem:[%s3442_s1 + $0x1f8] sm:$0xff]   ;;  %v3135_v48 = vld [vmem:[%s2893_s24 + $0x2d] sm:$0xff] }
  0x24   : > { %v861_v55 = vld [vmem:[%s2893_s24 + $0x34] sm:$0xff]  ;;  %v3165_v58 = vld [vmem:[%s2893_s24 + $0x3d] sm:$0xff] }
  0x25   : > { %2361 = vmatpush3.bf16.msra.mxu0 %v2723_v13  ;;  %v2747_v13 = vld [vmem:[%s3442_s1 + $0x128] sm:$0xff]   ;;  %v3162_v57 = vld [vmem:[%s2893_s24 + $0x35] sm:$0xff] }
  0x26   : > { %2397 = vmatpush3.bf16.msra.mxu1 %v2724_v14  ;;  %2362 = vmatprep.subr.bf16.mxu0 %v2791_v1  ;;  %v2748_v14 = vld [vmem:[%s3442_s1 + $0x168] sm:$0xff]   ;;  %v2767_v63 = vld [vmem:[%s3442_s1 + $0x198] sm:$0xff]   ;;  %v2770_v7 = vld [vmem:[%s3442_s1 + $0x1d0] sm:$0xff]  }
  0x27   : > { %2398 = vmatprep.subr.bf16.mxu1 %v2791_v1  ;;  %v2768_v0 = vld [vmem:[%s3442_s1 + $0x1d8] sm:$0xff]  }
  0x29   : > { %2363 = vmatpush3.bf16.msra.mxu0 %v2725_v15  ;;  %v536_v15 = vld [vmem:[%s2893_s24 + $0x33] sm:$0xff] }
  0x2a   : > { %2399 = vmatpush3.bf16.msra.mxu1 %v2726_v17  ;;  %2420 = vmatprep.subr.bf16.mxu0 %v2791_v1  ;;  %v2749_v17 = vld [vmem:[%s3442_s1 + $0x120] sm:$0xff]   ;;  %v543_v19 = vpack.c.bf16 %v536_v15, %v697_v8  ;;  %v706_v20 = vpack.c.bf16 %v699_v16, %v536_v15 }
  0x2b   : > { %2456 = vmatprep.subr.bf16.mxu1 %v2791_v1  ;;  %v3225_v15 = vld [vmem:[%s2893_s24 + $0x5d] sm:$0xff] }
  0x2c   : > { %2365 = vmatmul.mubr.bf16.vlgmr.msra.gmra.mxu0 %v267_v21  ;;  %v2751_v21 = vld [vmem:[%s3442_s1 + $0x118] sm:$0xff]  }
  0x2d   : > { %2401 = vmatmul.mubr.bf16.vlgmr.msra.gmra.mxu1 %v236_v22  ;;  %2368 = vmatprep.mubr.msk.bf16.mxu0 %vm2792_vm0, %v2791_v1  ;;  %v2752_v22 = vld [vmem:[%s3442_s1 + $0x158] sm:$0xff]  }
  0x2e   : > { %2404 = vmatprep.mubr.msk.bf16.mxu1 %vm2792_vm0, %v2791_v1  ;;  %2421 = vmatpush3.bf16.msra.mxu0 %v2727_v23  ;;  %v538_v23 = vld [vmem:[%s2893_s24 + $0x43] sm:$0xff] }
  0x2f   : > { %2457 = vmatpush3.bf16.msra.mxu1 %v2728_v24  ;;  %2422 = vmatprep.subr.bf16.mxu0 %v2791_v1  ;;  %v701_v24 = vld [vmem:[%s2893_s24 + $0x4b] sm:$0xff]  ;;  %v544_v27 = vpack.c.bf16 %v538_v23, %v699_v16  ;;  %v2773_v16 = vld [vmem:[%s3442_s1 + $0x180] sm:$0xff]  }
  0x30   : > { %2458 = vmatprep.subr.bf16.mxu1 %v2791_v1  ;;  %v707_v28 = vpack.c.bf16 %v701_v24, %v538_v23 }
  0x32   : > { %2423 = vmatpush3.bf16.msra.mxu0 %v2729_v29  ;;  %v2755_v29 = vld [vmem:[%s3442_s1 + $0x108] sm:$0xff]  }
  0x33   : > { %2459 = vmatpush3.bf16.msra.mxu1 %v2730_v30  ;;  %2424 = vmatprep.subr.bf16.mxu0 %v2791_v1  ;;  %v2756_v30 = vld [vmem:[%s3442_s1 + $0x148] sm:$0xff]  }
  0x34   : > { %2369 = vmatmul.mubr.bf16.gmra.mxu0 %v268_v31  ;;  %2460 = vmatprep.subr.bf16.mxu1 %v2791_v1  ;;  %v540_v31 = vld [vmem:[%s2893_s24 + $0x53] sm:$0xff] }
  0x35   : > { %2405 = vmatmul.mubr.bf16.gmra.mxu1 %v237_v32  ;;  %2372 = vmatprep.mubr.msk.bf16.mxu0 %vm2792_vm0, %v2791_v1  ;;  %v703_v32 = vld [vmem:[%s2893_s24 + $0x5b] sm:$0xff]  ;;  %v545_v35 = vpack.c.bf16 %v540_v31, %v701_v24 }
  0x36   : > { %2408 = vmatprep.mubr.msk.bf16.mxu1 %vm2792_vm0, %v2791_v1  ;;  %2425 = vmatpush3.bf16.msra.mxu0 %v2731_v33  ;;  %v2757_v33 = vld [vmem:[%s3442_s1 + $0x100] sm:$0xff]   ;;  %v2775_v24 = vld [vmem:[%s3442_s1 + $0x238] sm:$0xff]  }
  0x37   : > { %2461 = vmatpush3.bf16.msra.mxu1 %v2732_v36  ;;  %2426 = vmatprep.subr.bf16.mxu0 %v2791_v1  ;;  %v708_v36 = vpack.c.bf16 %v703_v32, %v540_v31  ;;  %v1350_v31 = vld [vmem:[%s2893_s24 + $0x3e] sm:$0xff]  ;;  %v1351_v32 = vld [vmem:[%s2893_s24 + $0x46] sm:$0xff] }
  0x38   : > { %2462 = vmatprep.subr.bf16.mxu1 %v2791_v1 }
  0x3a   : > { %2427 = vmatpush3.bf16.msra.mxu0 %v2733_v39  ;;  %v1020_v39 = vld [vmem:[%s2893_s24 + $0x15] sm:$0xff] }
  0x3b   : > { %2463 = vmatpush3.bf16.msra.mxu1 %v2734_v40  ;;  %2428 = vmatprep.subr.bf16.mxu0 %v2791_v1  ;;  %v3116_v40 = vld [vmem:[%s2893_s24 + $0x1d] sm:$0xff] }
  0x3c   : > { %2373 = vmatmul.mubr.bf16.gmra.mxu0 %v269_v41  ;;  %2464 = vmatprep.subr.bf16.mxu1 %v2791_v1  ;;  %v867_v41 = vpack.c.bf16 %v858_v38, %v857_v37  ;;  %v1352_v37 = vld [vmem:[%s2893_s24 + $0x4e] sm:$0xff]  ;;  %v1353_v38 = vld [vmem:[%s2893_s24 + $0x56] sm:$0xff] }
  0x3d   : > { %2409 = vmatmul.mubr.bf16.gmra.mxu1 %v238_v42  ;;  %2376 = vmatprep.mubr.msk.bf16.mxu0 %vm2792_vm0, %v2791_v1  ;;  %v1030_v42 = vpack.c.bf16 %v3116_v40, %v1020_v39  ;;  %v2780_v39 = vld [vmem:[%s3442_s1 + $0x210] sm:$0xff]  }
  0x3e   : > { %2412 = vmatprep.mubr.msk.bf16.mxu1 %vm2792_vm0, %v2791_v1  ;;  %2429 = vmatpush3.bf16.msra.mxu0 %v2735_v43  ;;  %v2759_v43 = vld [vmem:[%s3442_s1 + $0x1b8] sm:$0xff]  }
  0x3f   : > { %2465 = vmatpush3.bf16.msra.mxu1 %v2736_v45  ;;  %2430 = vmatprep.subr.bf16.mxu0 %v2791_v1  ;;  %v859_v45 = vld [vmem:[%s2893_s24 + $0x24] sm:$0xff] }
  0x40   : > { %2466 = vmatprep.subr.bf16.mxu1 %v2791_v1 }
  0x42   : > { %2431 = vmatpush3.bf16.msra.mxu0 %v2737_v49  ;;  %v2761_v49 = vld [vmem:[%s3442_s1 + $0x1b0] sm:$0xff]  }
  0x43   : > { %2467 = vmatpush3.bf16.msra.mxu1 %v2738_v50  ;;  %2432 = vmatprep.subr.bf16.mxu0 %v2791_v1  ;;  %v2762_v50 = vld [vmem:[%s3442_s1 + $0x1f0] sm:$0xff]  }
  0x44   : > { %2377 = vmatmul.mubr.bf16.gmra.mxu0 %v270_v51  ;;  %2468 = vmatprep.subr.bf16.mxu1 %v2791_v1  ;;  %v868_v51 = vpack.c.bf16 %v860_v46, %v859_v45  ;;  %v1355_v45 = vld [vmem:[%s2893_s24 + $0x66] sm:$0xff] }
  0x45   : > { %2413 = vmatmul.mubr.bf16.gmra.mxu1 %v239_v52  ;;  %2380 = vmatprep.mubr.msk.bf16.mxu0 %vm2792_vm0, %v2791_v1  ;;  %v1031_v52 = vpack.c.bf16 %v3135_v48, %v3132_v47  ;;  %v2782_v46 = vld [vmem:[%s3442_s1 + $0x200] sm:$0xff]  }
  0x46   : > { %2416 = vmatprep.mubr.msk.bf16.mxu1 %vm2792_vm0, %v2791_v1  ;;  %2433 = vmatpush3.bf16.msra.mxu0 %v2739_v53  ;;  %v2763_v53 = vld [vmem:[%s3442_s1 + $0x1a8] sm:$0xff]  }
  0x47   : > { %2469 = vmatpush3.bf16.msra.mxu1 %v2740_v54  ;;  %2434 = vmatprep.subr.bf16.mxu0 %v2791_v1  ;;  %v2764_v54 = vld [vmem:[%s3442_s1 + $0x1e8] sm:$0xff]  }
  0x48   : > { %2470 = vmatprep.subr.bf16.mxu1 %v2791_v1 }
  0x4a   : > { %2435 = vmatpush3.bf16.msra.mxu0 %v2741_v59  ;;  %v2765_v59 = vld [vmem:[%s3442_s1 + $0x1a0] sm:$0xff]  }
  0x4b   : > { %2471 = vmatpush3.bf16.msra.mxu1 %v2742_v60  ;;  %2492 = vmatprep.subr.bf16.mxu0 %v2791_v1  ;;  %v2766_v60 = vld [vmem:[%s3442_s1 + $0x1e0] sm:$0xff]  }
  0x4c   : > { %2381 = vmatmul.mubr.bf16.gmra.mxu0 %v271_v61  ;;  %2528 = vmatprep.subr.bf16.mxu1 %v2791_v1  ;;  %v869_v61 = vpack.c.bf16 %v862_v56, %v861_v55  ;;  %v1513_v55 = vld [vmem:[%s2893_s24 + $0x3f] sm:$0xff]  ;;  %v1514_v56 = vld [vmem:[%s2893_s24 + $0x47] sm:$0xff] }
  0x4d   : > { %2417 = vmatmul.mubr.bf16.gmra.mxu1 %v240_v62  ;;  %2436 = vmatprep.mubr.msk.bf16.mxu0 %vm2792_vm0, %v2791_v1  ;;  %v1032_v62 = vpack.c.bf16 %v3165_v58, %v3162_v57 }
  0x4e   : > { %2472 = vmatprep.mubr.msk.bf16.mxu1 %vm2792_vm0, %v2791_v1 }
  0x54   : > { %2437 = vmatmul.mubr.bf16.vlgmr.msra.gmra.mxu0 %v541_v3  ;;  %v864_v3 = vld [vmem:[%s2893_s24 + $0x4c] sm:$0xff] }
  0x55   : > { %2473 = vmatmul.mubr.bf16.vlgmr.msra.gmra.mxu1 %v704_v4  ;;  %2440 = vmatprep.mubr.msk.bf16.mxu0 %vm2792_vm0, %v2791_v1  ;;  %v3192_v4 = vld [vmem:[%s2893_s24 + $0x45] sm:$0xff]  ;;  %v870_v8 = vpack.c.bf16 %v864_v3, %v863_v2 }
  0x56   : > { %2476 = vmatprep.mubr.msk.bf16.mxu1 %vm2792_vm0, %v2791_v1  ;;  %2493 = vmatpush3.bf16.msra.mxu0 %v2743_v5  ;;  %v3195_v5 = vld [vmem:[%s2893_s24 + $0x4d] sm:$0xff] }
  0x57   : > { %2529 = vmatpush3.bf16.msra.mxu1 %v2744_v6  ;;  %2494 = vmatprep.subr.bf16.mxu0 %v2791_v1  ;;  %v2769_v6 = vld [vmem:[%s3442_s1 + $0x190] sm:$0xff]  }
  0x58   : > { %2530 = vmatprep.subr.bf16.mxu1 %v2791_v1 }
  0x5a   : > { %2495 = vmatpush3.bf16.msra.mxu0 %v2745_v9  ;;  %v1033_v9 = vpack.c.bf16 %v3195_v5, %v3192_v4 }
  0x5b   : > { %2531 = vmatpush3.bf16.msra.mxu1 %v2746_v10  ;;  %2496 = vmatprep.subr.bf16.mxu0 %v2791_v1  ;;  %v2771_v10 = vld [vmem:[%s3442_s1 + $0x188] sm:$0xff]  }
  0x5c   : > { %2441 = vmatmul.mubr.bf16.gmra.mxu0 %v542_v11  ;;  %2532 = vmatprep.subr.bf16.mxu1 %v2791_v1  ;;  %v2772_v11 = vld [vmem:[%s3442_s1 + $0x1c8] sm:$0xff]  }
  0x5d   : > { %2477 = vmatmul.mubr.bf16.gmra.mxu1 %v705_v12  ;;  %2444 = vmatprep.mubr.msk.bf16.mxu0 %vm2792_vm0, %v2791_v1  ;;  %v865_v12 = vld [vmem:[%s2893_s24 + $0x54] sm:$0xff] }
  0x5e   : > { %2480 = vmatprep.mubr.msk.bf16.mxu1 %vm2792_vm0, %v2791_v1  ;;  %2497 = vmatpush3.bf16.msra.mxu0 %v2747_v13  ;;  %v866_v13 = vld [vmem:[%s2893_s24 + $0x5c] sm:$0xff] }
  0x5f   : > { %2533 = vmatpush3.bf16.msra.mxu1 %v2748_v14  ;;  %2498 = vmatprep.subr.bf16.mxu0 %v2791_v1  ;;  %v3222_v14 = vld [vmem:[%s2893_s24 + $0x55] sm:$0xff] }
  0x60   : > { %2534 = vmatprep.subr.bf16.mxu1 %v2791_v1 }
  0x62   : > { %2499 = vmatpush3.bf16.msra.mxu0 %v2749_v17  ;;  %v2774_v17 = vld [vmem:[%s3442_s1 + $0x1c0] sm:$0xff]  }
  0x63   : > { %2535 = vmatpush3.bf16.msra.mxu1 %v2750_v18  ;;  %2500 = vmatprep.subr.bf16.mxu0 %v2791_v1  ;;  %v871_v18 = vpack.c.bf16 %v866_v13, %v865_v12 }
  0x64   : > { %2445 = vmatmul.mubr.bf16.gmra.mxu0 %v543_v19  ;;  %2536 = vmatprep.subr.bf16.mxu1 %v2791_v1  ;;  %v1034_v19 = vpack.c.bf16 %v3225_v15, %v3222_v14 }
  0x65   : > { %2481 = vmatmul.mubr.bf16.gmra.mxu1 %v706_v20  ;;  %2448 = vmatprep.mubr.msk.bf16.mxu0 %vm2792_vm0, %v2791_v1  ;;  %v1346_v20 = vld [vmem:[%s2893_s24 + $0x1e] sm:$0xff] }
  0x66   : > { %2484 = vmatprep.mubr.msk.bf16.mxu1 %vm2792_vm0, %v2791_v1  ;;  %2501 = vmatpush3.bf16.msra.mxu0 %v2751_v21  ;;  %v1347_v21 = vld [vmem:[%s2893_s24 + $0x26] sm:$0xff] }
  0x67   : > { %2537 = vmatpush3.bf16.msra.mxu1 %v2752_v22  ;;  %2502 = vmatprep.subr.bf16.mxu0 %v2791_v1  ;;  %v1193_v22 = vpack.c.bf16 %v3132_v47, %v3116_v40  ;;  %v1356_v23 = vpack.c.bf16 %v1347_v21, %v1346_v20  ;;  %v1196_v40 = vpack.c.bf16 %v3222_v14, %v3195_v5 }
  0x68   : > { %2538 = vmatprep.subr.bf16.mxu1 %v2791_v1 }
  0x6a   : > { %2503 = vmatpush3.bf16.msra.mxu0 %v2753_v25  ;;  %v1348_v25 = vld [vmem:[%s2893_s24 + $0x2e] sm:$0xff] }
  0x6b   : > { %2539 = vmatpush3.bf16.msra.mxu1 %v2754_v26  ;;  %2504 = vmatprep.subr.bf16.mxu0 %v2791_v1  ;;  %v1349_v26 = vld [vmem:[%s2893_s24 + $0x36] sm:$0xff] }
  0x6c   : > { %2449 = vmatmul.mubr.bf16.gmra.mxu0 %v544_v27  ;;  %2540 = vmatprep.subr.bf16.mxu1 %v2791_v1  ;;  %v2776_v27 = vld [vmem:[%s3442_s1 + $0x230] sm:$0xff]  }
  0x6d   : > { %2485 = vmatmul.mubr.bf16.gmra.mxu1 %v707_v28  ;;  %2452 = vmatprep.mubr.msk.bf16.mxu0 %vm2792_vm0, %v2791_v1  ;;  %v1194_v28 = vpack.c.bf16 %v3162_v57, %v3135_v48  ;;  %v1521_v57 = vpack.c.bf16 %v1514_v56, %v1513_v55 }
  0x6e   : > { %2488 = vmatprep.mubr.msk.bf16.mxu1 %vm2792_vm0, %v2791_v1  ;;  %2505 = vmatpush3.bf16.msra.mxu0 %v2755_v29  ;;  %v1357_v29 = vpack.c.bf16 %v1349_v26, %v1348_v25 }
  0x6f   : > { %2541 = vmatpush3.bf16.msra.mxu1 %v2756_v30  ;;  %2506 = vmatprep.subr.bf16.mxu0 %v2791_v1  ;;  %v2777_v30 = vld [vmem:[%s3442_s1 + $0x228] sm:$0xff]  }
  0x70   : > { %2542 = vmatprep.subr.bf16.mxu1 %v2791_v1 }
  0x72   : > { %2507 = vmatpush3.bf16.msra.mxu0 %v2757_v33  ;;  %v2778_v33 = vld [vmem:[%s3442_s1 + $0x220] sm:$0xff]  }
  0x73   : > { %2543 = vmatpush3.bf16.msra.mxu1 %v2758_v34  ;;  %2564 = vmatprep.subr.bf16.mxu0 %v2791_v1  ;;  %v1195_v34 = vpack.c.bf16 %v3192_v4, %v3165_v58  ;;  %v1515_v58 = vld [vmem:[%s2893_s24 + $0x4f] sm:$0xff] }
  0x74   : > { %2453 = vmatmul.mubr.bf16.gmra.mxu0 %v545_v35  ;;  %2600 = vmatprep.subr.bf16.mxu1 %v2791_v1  ;;  %v1358_v35 = vpack.c.bf16 %v1351_v32, %v1350_v31 }
  0x75   : > { %2489 = vmatmul.mubr.bf16.gmra.mxu1 %v708_v36  ;;  %2508 = vmatprep.mubr.msk.bf16.mxu0 %vm2792_vm0, %v2791_v1  ;;  %v2779_v36 = vld [vmem:[%s3442_s1 + $0x218] sm:$0xff]  }
  0x76   : > { %2544 = vmatprep.mubr.msk.bf16.mxu1 %vm2792_vm0, %v2791_v1 }
  0x7c   : > { %2509 = vmatmul.mubr.bf16.vlgmr.msra.gmra.mxu0 %v867_v41  ;;  %v1359_v41 = vpack.c.bf16 %v1353_v38, %v1352_v37 }
  0x7d   : > { %2545 = vmatmul.mubr.bf16.vlgmr.msra.gmra.mxu1 %v1030_v42  ;;  %2512 = vmatprep.mubr.msk.bf16.mxu0 %vm2792_vm0, %v2791_v1  ;;  %v2781_v42 = vld [vmem:[%s3442_s1 + $0x208] sm:$0xff]  }
  0x7e   : > { %2548 = vmatprep.mubr.msk.bf16.mxu1 %vm2792_vm0, %v2791_v1  ;;  %2565 = vmatpush3.bf16.msra.mxu0 %v2759_v43  ;;  %v1192_v43 = vld [vmem:[%s2893_s24 + $0x65] sm:$0xff] }
  0x7f   : > { %2601 = vmatpush3.bf16.msra.mxu1 %v2760_v44  ;;  %2566 = vmatprep.subr.bf16.mxu0 %v2791_v1  ;;  %v1354_v44 = vld [vmem:[%s2893_s24 + $0x5e] sm:$0xff]  ;;  %v1197_v47 = vpack.c.bf16 %v1192_v43, %v3225_v15 }
  0x80   : > { %2602 = vmatprep.subr.bf16.mxu1 %v2791_v1  ;;  %v1360_v48 = vpack.c.bf16 %v1355_v45, %v1354_v44 }
  0x82   : > { %2567 = vmatpush3.bf16.msra.mxu0 %v2761_v49  ;;  %v1509_v49 = vld [vmem:[%s2893_s24 + $0x1f] sm:$0xff] }
  0x83   : > { %2603 = vmatpush3.bf16.msra.mxu1 %v2762_v50  ;;  %2568 = vmatprep.subr.bf16.mxu0 %v2791_v1  ;;  %v1510_v50 = vld [vmem:[%s2893_s24 + $0x27] sm:$0xff] }
  0x84   : > { %2513 = vmatmul.mubr.bf16.gmra.mxu0 %v868_v51  ;;  %2604 = vmatprep.subr.bf16.mxu1 %v2791_v1  ;;  %v1519_v51 = vpack.c.bf16 %v1510_v50, %v1509_v49 }
  0x85   : > { %2549 = vmatmul.mubr.bf16.gmra.mxu1 %v1031_v52  ;;  %2516 = vmatprep.mubr.msk.bf16.mxu0 %vm2792_vm0, %v2791_v1  ;;  %v1511_v52 = vld [vmem:[%s2893_s24 + $0x2f] sm:$0xff] }
  0x86   : > { %2552 = vmatprep.mubr.msk.bf16.mxu1 %vm2792_vm0, %v2791_v1  ;;  %2569 = vmatpush3.bf16.msra.mxu0 %v2763_v53  ;;  %v1512_v53 = vld [vmem:[%s2893_s24 + $0x37] sm:$0xff] }
  0x87   : > { %2605 = vmatpush3.bf16.msra.mxu1 %v2764_v54  ;;  %2570 = vmatprep.subr.bf16.mxu0 %v2791_v1  ;;  %v1520_v54 = vpack.c.bf16 %v1512_v53, %v1511_v52 }
  0x88   : > { %2606 = vmatprep.subr.bf16.mxu1 %v2791_v1 }
  0x8a   : > { %2571 = vmatpush3.bf16.msra.mxu0 %v2765_v59  ;;  %v1516_v59 = vld [vmem:[%s2893_s24 + $0x57] sm:$0xff] }
  0x8b   : > { %2607 = vmatpush3.bf16.msra.mxu1 %v2766_v60  ;;  %2572 = vmatprep.subr.bf16.mxu0 %v2791_v1  ;;  %v1522_v60 = vpack.c.bf16 %v1516_v59, %v1515_v58 }
  0x8c   : > { %2517 = vmatmul.mubr.bf16.gmra.mxu0 %v869_v61  ;;  %2608 = vmatprep.subr.bf16.mxu1 %v2791_v1  ;;  %v1517_v61 = vld [vmem:[%s2893_s24 + $0x5f] sm:$0xff] }
  0x8d   : > { %2553 = vmatmul.mubr.bf16.gmra.mxu1 %v1032_v62  ;;  %2520 = vmatprep.mubr.msk.bf16.mxu0 %vm2792_vm0, %v2791_v1  ;;  %v1518_v62 = vld [vmem:[%s2893_s24 + $0x67] sm:$0xff] }
  0x8e   : > { %2556 = vmatprep.mubr.msk.bf16.mxu1 %vm2792_vm0, %v2791_v1  ;;  %2573 = vmatpush3.bf16.msra.mxu0 %v2767_v63  ;;  %v1523_v63 = vpack.c.bf16 %v1518_v62, %v1517_v61 }
  0x8f   : > { %2609 = vmatpush3.bf16.msra.mxu1 %v2768_v0  ;;  %2574 = vmatprep.subr.bf16.mxu0 %v2791_v1 }
  0x90   : > { %2610 = vmatprep.subr.bf16.mxu1 %v2791_v1 }
  0x92   : > { %2575 = vmatpush3.bf16.msra.mxu0 %v2769_v6 }
  0x93   : > { %2611 = vmatpush3.bf16.msra.mxu1 %v2770_v7  ;;  %2576 = vmatprep.subr.bf16.mxu0 %v2791_v1 }
  0x94   : > { %2521 = vmatmul.mubr.bf16.gmra.mxu0 %v870_v8  ;;  %2612 = vmatprep.subr.bf16.mxu1 %v2791_v1 }
  0x95   : > { %2557 = vmatmul.mubr.bf16.gmra.mxu1 %v1033_v9  ;;  %2524 = vmatprep.mubr.msk.bf16.mxu0 %vm2792_vm0, %v2791_v1 }
  0x96   : > { %2560 = vmatprep.mubr.msk.bf16.mxu1 %vm2792_vm0, %v2791_v1  ;;  %2577 = vmatpush3.bf16.msra.mxu0 %v2771_v10 }
  0x97   : > { %2613 = vmatpush3.bf16.msra.mxu1 %v2772_v11  ;;  %2578 = vmatprep.subr.bf16.mxu0 %v2791_v1 }
  0x98   : > { %2614 = vmatprep.subr.bf16.mxu1 %v2791_v1 }
  0x9a   : > { %2579 = vmatpush3.bf16.msra.mxu0 %v2773_v16 }
  0x9b   : > { %2615 = vmatpush3.bf16.msra.mxu1 %v2774_v17  ;;  %2636 = vmatprep.subr.bf16.mxu0 %v2791_v1 }
  0x9c   : > { %2525 = vmatmul.mubr.bf16.gmra.mxu0 %v871_v18 }
  0x9d   : > { %2561 = vmatmul.mubr.bf16.gmra.mxu1 %v1034_v19  ;;  %2580 = vmatprep.mubr.msk.bf16.mxu0 %vm2792_vm0, %v2791_v1 }
  0x9e   : > { %2616 = vmatprep.mubr.msk.bf16.mxu1 %vm2792_vm0, %v2791_v1 }
  0xa4   : > { %2581 = vmatmul.mubr.bf16.vlgmr.msra.gmra.mxu0 %v1193_v22 }
  0xa5   : > { %2617 = vmatmul.mubr.bf16.vlgmr.msra.gmra.mxu1 %v1356_v23  ;;  %2584 = vmatprep.mubr.msk.bf16.mxu0 %vm2792_vm0, %v2791_v1 }
  0xa6   : > { %2620 = vmatprep.mubr.msk.bf16.mxu1 %vm2792_vm0, %v2791_v1  ;;  %2637 = vmatpush3.bf16.msra.mxu0 %v2775_v24 }
  0xa7   : > { %2638 = vmatprep.subr.bf16.mxu0 %v2791_v1 }
  0xaa   : > { %2639 = vmatpush3.bf16.msra.mxu0 %v2776_v27 }
  0xab   : > { %2640 = vmatprep.subr.bf16.mxu0 %v2791_v1 }
  0xac   : > { %2585 = vmatmul.mubr.bf16.gmra.mxu0 %v1194_v28 }
  0xad   : > { %2621 = vmatmul.mubr.bf16.gmra.mxu1 %v1357_v29  ;;  %2588 = vmatprep.mubr.msk.bf16.mxu0 %vm2792_vm0, %v2791_v1 }
  0xae   : > { %2624 = vmatprep.mubr.msk.bf16.mxu1 %vm2792_vm0, %v2791_v1  ;;  %2641 = vmatpush3.bf16.msra.mxu0 %v2777_v30 }
  0xaf   : > { %2642 = vmatprep.subr.bf16.mxu0 %v2791_v1 }
  0xb2   : > { %2643 = vmatpush3.bf16.msra.mxu0 %v2778_v33 }
  0xb3   : > { %2644 = vmatprep.subr.bf16.mxu0 %v2791_v1 }
  0xb4   : > { %2589 = vmatmul.mubr.bf16.gmra.mxu0 %v1195_v34 }
  0xb5   : > { %2625 = vmatmul.mubr.bf16.gmra.mxu1 %v1358_v35  ;;  %2592 = vmatprep.mubr.msk.bf16.mxu0 %vm2792_vm0, %v2791_v1 }
  0xb6   : > { %2628 = vmatprep.mubr.msk.bf16.mxu1 %vm2792_vm0, %v2791_v1  ;;  %2645 = vmatpush3.bf16.msra.mxu0 %v2779_v36 }
  0xb7   : > { %2646 = vmatprep.subr.bf16.mxu0 %v2791_v1 }
  0xba   : > { %2647 = vmatpush3.bf16.msra.mxu0 %v2780_v39 }
  0xbb   : > { %2648 = vmatprep.subr.bf16.mxu0 %v2791_v1 }
  0xbc   : > { %2593 = vmatmul.mubr.bf16.gmra.mxu0 %v1196_v40 }
  0xbd   : > { %2629 = vmatmul.mubr.bf16.gmra.mxu1 %v1359_v41  ;;  %2596 = vmatprep.mubr.msk.bf16.mxu0 %vm2792_vm0, %v2791_v1 }
  0xbe   : > { %2632 = vmatprep.mubr.msk.bf16.mxu1 %vm2792_vm0, %v2791_v1  ;;  %2649 = vmatpush3.bf16.msra.mxu0 %v2781_v42 }
  0xbf   : > { %2650 = vmatprep.subr.bf16.mxu0 %v2791_v1 }
  0xc2   : > { %2651 = vmatpush3.bf16.msra.mxu0 %v2782_v46 }
  0xc4   : > { %2597 = vmatmul.mubr.bf16.gmra.mxu0 %v1197_v47 }
  0xc5   : > { %2633 = vmatmul.mubr.bf16.gmra.mxu1 %v1360_v48  ;;  %2652 = vmatprep.mubr.msk.bf16.mxu0 %vm2792_vm0, %v2791_v1 }
  0xcc   : > { %2653 = vmatmul.mubr.bf16.vlgmr.msra.gmra.mxu0 %v1519_v51 }
  0xcd   : > { %2656 = vmatprep.mubr.msk.bf16.mxu0 %vm2792_vm0, %v2791_v1 }
  0xd4   : > { %2657 = vmatmul.mubr.bf16.gmra.mxu0 %v1520_v54 }
  0xd5   : > { %2660 = vmatprep.mubr.msk.bf16.mxu0 %vm2792_vm0, %v2791_v1 }
  0xdc   : > { %2661 = vmatmul.mubr.bf16.gmra.mxu0 %v1521_v57 }
  0xdd   : > { %2664 = vmatprep.mubr.msk.bf16.mxu0 %vm2792_vm0, %v2791_v1 }
  0xe4   : > { %2665 = vmatmul.mubr.bf16.gmra.mxu0 %v1522_v60 }
  0xe5   : > { %2668 = vmatprep.mubr.msk.bf16.mxu0 %vm2792_vm0, %v2791_v1 }
  0xec   : > { %v371_v0 = vpop.f32.mrf.mxu0  ;;  %2669 = vmatmul.mubr.bf16.gmra.mxu0 %v1523_v63 }
  0xed   : > { %v492_v2 = vpop.f32.mrf.mxu1 }
  0xee   : > { %v493_v3 = vadd.f32 %v492_v2, %v371_v0  ;;  %v2366_v4 = vpop.f32.mrf.mxu0 }
  0xef   : > { %v2402_v5 = vpop.f32.mrf.mxu1 }
  0xf0   : > { %v374_v6 = vpop.f32.mrf.mxu0 }
  0xf1   : > { %v495_v7 = vpop.f32.mrf.mxu1 }
  0xf2   : > { %v496_v8 = vadd.f32 %v495_v7, %v374_v6  ;;  %v2367_v9 = vpop.f32.mrf.mxu0 }
  0xf3   : > { %v2403_v10 = vpop.f32.mrf.mxu1 }
  0xf4   : > { %v379_v11 = vpop.f32.mrf.mxu0 }
  0xf5   : > { %v500_v12 = vpop.f32.mrf.mxu1 }
  0xf6   : > { %v501_v13 = vadd.f32 %v500_v12, %v379_v11  ;;  %v2370_v14 = vpop.f32.mrf.mxu0 }
  0xf7   : > { %v2406_v15 = vpop.f32.mrf.mxu1 }
  0xf8   : > { %v382_v1 = vpop.f32.mrf.mxu0 }
  0xf9   : > { %v503_v16 = vpop.f32.mrf.mxu1 }
  0xfa   : > { %v504_v17 = vadd.f32 %v503_v16, %v382_v1  ;;  %v2371_v18 = vpop.f32.mrf.mxu0 }
  0xfb   : > { %v2407_v19 = vpop.f32.mrf.mxu1 }
  0xfc   : > { %v387_v20 = vpop.f32.mrf.mxu0 }
  0xfd   : > { %v508_v21 = vpop.f32.mrf.mxu1 }
  0xfe   : > { %v509_v22 = vadd.f32 %v508_v21, %v387_v20  ;;  %v2374_v23 = vpop.f32.mrf.mxu0 }
  0xff   : > { %v2410_v24 = vpop.f32.mrf.mxu1 }
 0x100   : > { %v390_v25 = vpop.f32.mrf.mxu0 }
 0x101   : > { %v511_v26 = vpop.f32.mrf.mxu1 }
 0x102   : > { %v512_v27 = vadd.f32 %v511_v26, %v390_v25  ;;  %v2375_v28 = vpop.f32.mrf.mxu0 }
 0x103   : > { %v2411_v29 = vpop.f32.mrf.mxu1 }
 0x104   : > { %v395_v30 = vpop.f32.mrf.mxu0 }
 0x105   : > { %v516_v31 = vpop.f32.mrf.mxu1 }
 0x106   : > { %v517_v32 = vadd.f32 %v516_v31, %v395_v30  ;;  %v2378_v33 = vpop.f32.mrf.mxu0 }
 0x107   : > { %v2414_v34 = vpop.f32.mrf.mxu1 }
 0x108   : > { %v398_v35 = vpop.f32.mrf.mxu0 }
 0x109   : > { %v519_v36 = vpop.f32.mrf.mxu1 }
 0x10a   : > { %v520_v37 = vadd.f32 %v519_v36, %v398_v35  ;;  %v2379_v38 = vpop.f32.mrf.mxu0 }
 0x10b   : > { %v2415_v39 = vpop.f32.mrf.mxu1 }
 0x10c   : > { %v403_v40 = vpop.f32.mrf.mxu0 }
 0x10d   : > { %v524_v41 = vpop.f32.mrf.mxu1 }
 0x10e   : > { %v525_v42 = vadd.f32 %v524_v41, %v403_v40  ;;  %v2382_v43 = vpop.f32.mrf.mxu0 }
 0x10f   : > { %v2418_v44 = vpop.f32.mrf.mxu1 }
 0x110   : > { %v406_v45 = vpop.f32.mrf.mxu0 }
 0x111   : > { %v527_v46 = vpop.f32.mrf.mxu1 }
 0x112   : > { %v528_v47 = vadd.f32 %v527_v46, %v406_v45  ;;  %v2383_v48 = vpop.f32.mrf.mxu0 }
 0x113   : > { %v2419_v49 = vpop.f32.mrf.mxu1 }
 0x114   : > { %v645_v50 = vpop.f32.mrf.mxu0 }
 0x115   : > { %v684_v51 = vadd.f32 %v645_v50, %v493_v3  ;;  %v808_v52 = vpop.f32.mrf.mxu1 }
 0x116   : > { %v2438_v53 = vpop.f32.mrf.mxu0 }
 0x117   : > { %v847_v54 = vadd.f32 %v808_v52, %v684_v51  ;;  %v2474_v55 = vpop.f32.mrf.mxu1 }
 0x118   : > { %v648_v56 = vpop.f32.mrf.mxu0 }
 0x119   : > { %v685_v57 = vadd.f32 %v648_v56, %v496_v8  ;;  %v811_v58 = vpop.f32.mrf.mxu1 }
 0x11a   : > { %v2439_v59 = vpop.f32.mrf.mxu0 }
 0x11b   : > { %v848_v60 = vadd.f32 %v811_v58, %v685_v57  ;;  %v2475_v61 = vpop.f32.mrf.mxu1 }
 0x11c   : > { %v653_v62 = vpop.f32.mrf.mxu0 }
 0x11d   : > { %v686_v63 = vadd.f32 %v653_v62, %v501_v13  ;;  %v816_v0 = vpop.f32.mrf.mxu1 }
 0x11e   : > { %v2442_v2 = vpop.f32.mrf.mxu0 }
 0x11f   : > { %v849_v4 = vadd.f32 %v816_v0, %v686_v63  ;;  %v2478_v5 = vpop.f32.mrf.mxu1 }
 0x120   : > { %v656_v6 = vpop.f32.mrf.mxu0 }
 0x121   : > { %v687_v7 = vadd.f32 %v656_v6, %v504_v17  ;;  %v819_v9 = vpop.f32.mrf.mxu1 }
 0x122   : > { %v2443_v3 = vpop.f32.mrf.mxu0 }
 0x123   : > { %v850_v10 = vadd.f32 %v819_v9, %v687_v7  ;;  %v2479_v11 = vpop.f32.mrf.mxu1 }
 0x124   : > { %v661_v12 = vpop.f32.mrf.mxu0 }
 0x125   : > { %v688_v14 = vadd.f32 %v661_v12, %v509_v22  ;;  %v824_v15 = vpop.f32.mrf.mxu1 }
 0x126   : > { %v2446_v8 = vpop.f32.mrf.mxu0 }
 0x127   : > { %v851_v1 = vadd.f32 %v824_v15, %v688_v14  ;;  %v2482_v16 = vpop.f32.mrf.mxu1 }
 0x128   : > { %v664_v18 = vpop.f32.mrf.mxu0 }
 0x129   : > { %v689_v19 = vadd.f32 %v664_v18, %v512_v27  ;;  %v827_v20 = vpop.f32.mrf.mxu1 }
 0x12a   : > { %v2447_v13 = vpop.f32.mrf.mxu0 }
 0x12b   : > { %v852_v21 = vadd.f32 %v827_v20, %v689_v19  ;;  %v2483_v23 = vpop.f32.mrf.mxu1  ;;  %v1813_v20 = vld [vmem:[%s3445_s4] sm:$0xff] }
 0x12c   : > { %v669_v24 = vpop.f32.mrf.mxu0  ;;  %2690 = vmatprep.mubr.msk.f32.mxu1 %vm1819_vm1, %v1813_v20 }
 0x12d   : > { %v690_v25 = vadd.f32 %v669_v24, %v517_v32  ;;  %v832_v26 = vpop.f32.mrf.mxu1 }
 0x12e   : > { %v2450_v17 = vpop.f32.mrf.mxu0 }
 0x12f   : > { %v853_v28 = vadd.f32 %v832_v26, %v690_v25  ;;  %v2486_v29 = vpop.f32.mrf.mxu1 }
 0x130   : > { %v672_v30 = vpop.f32.mrf.mxu0 }
 0x131   : > { %v691_v31 = vadd.f32 %v672_v30, %v520_v37  ;;  %v835_v33 = vpop.f32.mrf.mxu1 }
 0x132   : > { %v2451_v22 = vpop.f32.mrf.mxu0 }
 0x133   : > { %v854_v34 = vadd.f32 %v835_v33, %v691_v31  ;;  %v2487_v35 = vpop.f32.mrf.mxu1 }
 0x134   : > { %v677_v36 = vpop.f32.mrf.mxu0 }
 0x135   : > { %v692_v38 = vadd.f32 %v677_v36, %v525_v42  ;;  %v840_v39 = vpop.f32.mrf.mxu1 }
 0x136   : > { %v2454_v27 = vpop.f32.mrf.mxu0 }
 0x137   : > { %v855_v40 = vadd.f32 %v840_v39, %v692_v38  ;;  %v2490_v41 = vpop.f32.mrf.mxu1 }
 0x138   : > { %v680_v43 = vpop.f32.mrf.mxu0 }
 0x139   : > { %v693_v44 = vadd.f32 %v680_v43, %v528_v47  ;;  %v843_v45 = vpop.f32.mrf.mxu1 }
 0x13a   : > { %v2455_v32 = vpop.f32.mrf.mxu0 }
 0x13b   : > { %v856_v46 = vadd.f32 %v843_v45, %v693_v44  ;;  %v2491_v48 = vpop.f32.mrf.mxu1 }
 0x13c   : > { %v971_v49 = vpop.f32.mrf.mxu0 }
 0x13d   : > { %v1010_v50 = vadd.f32 %v971_v49, %v847_v54  ;;  %v1134_v51 = vpop.f32.mrf.mxu1 }
 0x13e   : > { %v2510_v37 = vpop.f32.mrf.mxu0 }
 0x13f   : > { %v1173_v52 = vadd.f32 %v1134_v51, %v1010_v50  ;;  %v2546_v53 = vpop.f32.mrf.mxu1 }
 0x140   : > { %v974_v55 = vpop.f32.mrf.mxu0 }
 0x141   : > { %v1011_v56 = vadd.f32 %v974_v55, %v848_v60  ;;  %v1137_v57 = vpop.f32.mrf.mxu1 }
 0x142   : > { %v2511_v42 = vpop.f32.mrf.mxu0 }
 0x143   : > { %v1174_v58 = vadd.f32 %v1137_v57, %v1011_v56  ;;  %v2547_v59 = vpop.f32.mrf.mxu1 }
 0x144   : > { %v979_v61 = vpop.f32.mrf.mxu0 }
 0x145   : > { %v1012_v62 = vadd.f32 %v979_v61, %v849_v4  ;;  %v1142_v63 = vpop.f32.mrf.mxu1 }
 0x146   : > { %v2514_v47 = vpop.f32.mrf.mxu0 }
 0x147   : > { %v1175_v0 = vadd.f32 %v1142_v63, %v1012_v62  ;;  %v2550_v2 = vpop.f32.mrf.mxu1 }
 0x148   : > { %v982_v5 = vpop.f32.mrf.mxu0 }
 0x149   : > { %v1013_v6 = vadd.f32 %v982_v5, %v850_v10  ;;  %v1145_v7 = vpop.f32.mrf.mxu1 }
 0x14a   : > { %v2515_v54 = vpop.f32.mrf.mxu0 }
 0x14b   : > { %v1176_v9 = vadd.f32 %v1145_v7, %v1013_v6  ;;  %v2551_v3 = vpop.f32.mrf.mxu1 }
 0x14c   : > { %v987_v11 = vpop.f32.mrf.mxu0 }
 0x14d   : > { %v1014_v12 = vadd.f32 %v987_v11, %v851_v1  ;;  %v1150_v14 = vpop.f32.mrf.mxu1 }
 0x14e   : > { %v2518_v60 = vpop.f32.mrf.mxu0 }
 0x14f   : > { %v1177_v15 = vadd.f32 %v1150_v14, %v1014_v12  ;;  %v2554_v8 = vpop.f32.mrf.mxu1 }
 0x150   : > { %v990_v16 = vpop.f32.mrf.mxu0 }
 0x151   : > { %v1015_v18 = vadd.f32 %v990_v16, %v852_v21  ;;  %v1153_v19 = vpop.f32.mrf.mxu1 }
 0x152   : > { %v2519_v4 = vpop.f32.mrf.mxu0 }
 0x153   : > { %v3332_v10 = vadd.f32 %v1153_v19, %v1015_v18  ;;  %v2555_v13 = vpop.f32.mrf.mxu1 }
 0x154   : > { %v995_v23 = vpop.f32.mrf.mxu0 }
 0x155   : > { %v1016_v1 = vadd.f32 %v995_v23, %v853_v28  ;;  %v1158_v24 = vpop.f32.mrf.mxu1 }
 0x156   : > { %v2522_v25 = vpop.f32.mrf.mxu0 }
 0x157   : > { %v3335_v26 = vadd.f32 %v1158_v24, %v1016_v1  ;;  %v2558_v17 = vpop.f32.mrf.mxu1 }
 0x158   : > { %v998_v21 = vpop.f32.mrf.mxu0 }
 0x159   : > { %v1017_v29 = vadd.f32 %v998_v21, %v854_v34  ;;  %v1161_v30 = vpop.f32.mrf.mxu1 }
 0x15a   : > { %v2523_v31 = vpop.f32.mrf.mxu0 }
 0x15b   : > { %v3337_v33 = vadd.f32 %v1161_v30, %v1017_v29  ;;  %v2559_v22 = vpop.f32.mrf.mxu1 }
 0x15c   : > { %v1003_v35 = vpop.f32.mrf.mxu0 }
 0x15d   : > { %v1018_v36 = vadd.f32 %v1003_v35, %v855_v40  ;;  %v1166_v38 = vpop.f32.mrf.mxu1 }
 0x15e   : > { %v2526_v39 = vpop.f32.mrf.mxu0 }
 0x15f   : > { %v3339_v27 = vadd.f32 %v1166_v38, %v1018_v36  ;;  %v2562_v41 = vpop.f32.mrf.mxu1  ;;  %v3356_v38 = vld [vmem:[%s3443_s2] ss:$0 sm:$0xff] }
 0x160   : > { %v1006_v28 = vpop.f32.mrf.mxu0  ;;  %v3361_v41 = vld [vmem:[%s3444_s3] ss:$0 sm:$0xff] }
 0x161   : > { %v1019_v43 = vadd.f32 %v1006_v28, %v856_v46  ;;  %v1169_v44 = vpop.f32.mrf.mxu1 }
 0x162   : > { %v2527_v45 = vpop.f32.mrf.mxu0 }
 0x163   : > { %v3341_v32 = vadd.f32 %v1169_v44, %v1019_v43  ;;  %v2563_v48 = vpop.f32.mrf.mxu1 }
 0x164   : > { %v1297_v34 = vpop.f32.mrf.mxu0 }
 0x165   : > { %v1336_v49 = vadd.f32 %v1297_v34, %v1173_v52  ;;  %v1460_v50 = vpop.f32.mrf.mxu1 }
 0x166   : > { %v2582_v51 = vpop.f32.mrf.mxu0 }
 0x167   : > { %v1499_v37 = vadd.f32 %v1460_v50, %v1336_v49  ;;  %v2618_v53 = vpop.f32.mrf.mxu1 }
 0x168   : > { %v1300_v55 = vpop.f32.mrf.mxu0 }
 0x169   : > { %v1337_v40 = vadd.f32 %v1300_v55, %v1174_v58  ;;  %v1463_v56 = vpop.f32.mrf.mxu1 }
 0x16a   : > { %v2583_v57 = vpop.f32.mrf.mxu0 }
 0x16b   : > { %v1500_v42 = vadd.f32 %v1463_v56, %v1337_v40  ;;  %v2619_v59 = vpop.f32.mrf.mxu1 }
 0x16c   : > { %v1305_v61 = vpop.f32.mrf.mxu0 }
 0x16d   : > { %v1338_v62 = vadd.f32 %v1305_v61, %v1175_v0  ;;  %v1468_v46 = vpop.f32.mrf.mxu1 }
 0x16e   : > { %v2586_v63 = vpop.f32.mrf.mxu0 }
 0x16f   : > { %v1501_v47 = vadd.f32 %v1468_v46, %v1338_v62  ;;  %v2622_v2 = vpop.f32.mrf.mxu1 }
 0x170   : > { %v1308_v5 = vpop.f32.mrf.mxu0 }
 0x171   : > { %v1339_v6 = vadd.f32 %v1308_v5, %v1176_v9  ;;  %v1471_v7 = vpop.f32.mrf.mxu1 }
 0x172   : > { %v2587_v52 = vpop.f32.mrf.mxu0 }
 0x173   : > { %v1502_v54 = vadd.f32 %v1471_v7, %v1339_v6  ;;  %v2623_v3 = vpop.f32.mrf.mxu1 }
 0x174   : > { %v1313_v11 = vpop.f32.mrf.mxu0 }
 0x175   : > { %v1340_v12 = vadd.f32 %v1313_v11, %v1177_v15  ;;  %v1476_v14 = vpop.f32.mrf.mxu1 }
 0x176   : > { %v2590_v58 = vpop.f32.mrf.mxu0 }
 0x177   : > { %v1503_v60 = vadd.f32 %v1476_v14, %v1340_v12  ;;  %v2626_v8 = vpop.f32.mrf.mxu1 }
 0x178   : > { %v1316_v16 = vpop.f32.mrf.mxu0 }
 0x179   : > { %v1479_v18 = vpop.f32.mrf.mxu1  ;;  %v1341_v63 = vadd.f32 %v1316_v16, %v3332_v10 }
 0x17a   : > { %v2591_v19 = vpop.f32.mrf.mxu0 }
 0x17b   : > { %v2627_v0 = vpop.f32.mrf.mxu1  ;;  %v1504_v58 = vadd.f32 %v1479_v18, %v1341_v63 }
 0x17c   : > { %v1321_v4 = vpop.f32.mrf.mxu0 }
 0x17d   : > { %v1484_v20 = vpop.f32.mrf.mxu1  ;;  %v1342_v12 = vadd.f32 %v1321_v4, %v3335_v26 }
 0x17e   : > { %v2594_v13 = vpop.f32.mrf.mxu0 }
 0x17f   : > { %v2630_v23 = vpop.f32.mrf.mxu1 }
 0x180   : > { %v1324_v1 = vpop.f32.mrf.mxu0 }
 0x181   : > { %v3343_v9 = vpop.f32.mrf.mxu1 }
 0x182   : > { %v2595_v24 = vpop.f32.mrf.mxu0 }
 0x183   : > { %v2631_v25 = vpop.f32.mrf.mxu1  ;;  %v1505_v24 = vadd.f32 %v1484_v20, %v1342_v12 }
 0x184   : > { %v3345_v17 = vpop.f32.mrf.mxu0 }
 0x185   : > { %v3347_v15 = vpop.f32.mrf.mxu1 }
 0x186   : > { %v2598_v21 = vpop.f32.mrf.mxu0 }
 0x187   : > { %v2634_v29 = vpop.f32.mrf.mxu1  ;;  %v1343_v21 = vadd.f32 %v1324_v1, %v3337_v33 }
 0x188   : > { %v3349_v30 = vpop.f32.mrf.mxu0 }
 0x189   : > { %v3351_v31 = vpop.f32.mrf.mxu1  ;;  %v1506_v33 = vadd.f32 %v3343_v9, %v1343_v21  ;;  %v1345_v9 = vadd.f32 %v3349_v30, %v3341_v32 }
 0x18a   : > { %v2599_v22 = vpop.f32.mrf.mxu0 }
 0x18b   : > { %v2635_v35 = vpop.f32.mrf.mxu1 }
 0x18c   : > { %v1623_v36 = vpop.f32.mrf.mxu0 }
 0x18d   : > { %v1662_v39 = vadd.f32 %v1623_v36, %v1499_v37 }
 0x18e   : > { %v2654_v28 = vpop.f32.mrf.mxu0 }
 0x18f   : > { %v1679_v43 = vmul.f32 %v3356_v38, %v1662_v39  ;;  %v1344_v39 = vadd.f32 %v3345_v17, %v3339_v27 }
 0x190   : > { %v1626_v44 = vpop.f32.mrf.mxu0 }
 0x191   : > { %v1696_v45 = vadd.f32 %v3361_v41, %v1679_v43  ;;  %v1663_v48 = vadd.f32 %v1626_v44, %v1500_v42  ;;  %v1507_v27 = vadd.f32 %v3347_v15, %v1344_v39 }
 0x192   : > { %v2655_v34 = vpop.f32.mrf.mxu0 }
 0x193   : > { %v1680_v49 = vmul.f32 %v3356_v38, %v1663_v48  ;;  %v1706_v51 = vmax.f32 %v1696_v45, 0.0 }
 0x194   : > { %v1631_v50 = vpop.f32.mrf.mxu0 }
 0x195   : > { %v1697_v53 = vadd.f32 %v3361_v41, %v1680_v49  ;;  %v1664_v37 = vadd.f32 %v1631_v50, %v1501_v47  ;;  %v1726_v59 = vrot.slane %v1706_v51, 1 }
 0x196   : > { %v2658_v55 = vpop.f32.mrf.mxu0 }
 0x197   : > { %v1707_v40 = vmax.f32 %v1697_v53, 0.0  ;;  %v1681_v56 = vmul.f32 %v3356_v38, %v1664_v37 }
 0x198   : > { %v1634_v57 = vpop.f32.mrf.mxu0 }
 0x199   : > { %v1727_v61 = vrot.slane %v1707_v40, 1  ;;  %v1698_v62 = vadd.f32 %v3361_v41, %v1681_v56  ;;  %v1665_v46 = vadd.f32 %v1634_v57, %v1502_v54 }
 0x19a   : > { %v2659_v42 = vpop.f32.mrf.mxu0 }
 0x19b   : > { %v1708_v2 = vmax.f32 %v1698_v62, 0.0  ;;  %v1682_v5 = vmul.f32 %v3356_v38, %v1665_v46  ;;  %v1728_v6 = vsel %vm1725_vm2, %v1726_v59, %v1727_v61 }
 0x19c   : > { %v1639_v47 = vpop.f32.mrf.mxu0  ;;  %v1752_v7 = vmax.f32 %v1706_v51, %v1728_v6  ;;  %v1508_v6 = vadd.f32 %v3351_v31, %v1345_v9 }
 0x19d   : > { %v1729_v52 = vrot.slane %v1708_v2, 1  ;;  %v1699_v3 = vadd.f32 %v3361_v41, %v1682_v5  ;;  %v1666_v11 = vadd.f32 %v1639_v47, %v1503_v60 }
 0x19e   : > { %v2662_v14 = vpop.f32.mrf.mxu0 }
 0x19f   : > { %v1709_v8 = vmax.f32 %v1699_v3, 0.0  ;;  %v1683_v54 = vmul.f32 %v3356_v38, %v1666_v11  ;;  %v1730_v10 = vsel %vm1725_vm2, %v1727_v61, %v1729_v52 }
 0x1a0   : > { %v1642_v16 = vpop.f32.mrf.mxu0  ;;  %v1753_v19 = vmax.f32 %v1707_v40, %v1730_v10 }
 0x1a1   : > { %v1731_v0 = vrot.slane %v1709_v8, 1  ;;  %v1700_v13 = vadd.f32 %v3361_v41, %v1683_v54  ;;  %v1667_v23 = vadd.f32 %v1642_v16, %v1504_v58 }
 0x1a2   : > { %v2663_v25 = vpop.f32.mrf.mxu0  ;;  %v1778_v43 = vrot.slane %v1753_v19, 2 }
 0x1a3   : > { %v1710_v60 = vmax.f32 %v1700_v13, 0.0  ;;  %v1684_v26 = vmul.f32 %v3356_v38, %v1667_v23  ;;  %v1732_v18 = vsel %vm1725_vm2, %v1729_v52, %v1731_v0 }
 0x1a4   : > { %v1647_v4 = vpop.f32.mrf.mxu0  ;;  %v1754_v29 = vmax.f32 %v1708_v2, %v1732_v18 }
 0x1a5   : > { %v1733_v22 = vrot.slane %v1710_v60, 1  ;;  %v1701_v35 = vadd.f32 %v3361_v41, %v1684_v26  ;;  %v1668_v36 = vadd.f32 %v1647_v4, %v1505_v24 }
 0x1a6   : > { %v2666_v28 = vpop.f32.mrf.mxu0  ;;  %v1779_v20 = vrot.slane %v1754_v29, 2 }
 0x1a7   : > { %v1711_v1 = vmax.f32 %v1701_v35, 0.0  ;;  %v1685_v44 = vmul.f32 %v3356_v38, %v1668_v36  ;;  %v1734_v45 = vsel %vm1725_vm2, %v1731_v0, %v1733_v22 }
 0x1a8   : > { %v1650_v48 = vpop.f32.mrf.mxu0  ;;  %v1755_v34 = vmax.f32 %v1709_v8, %v1734_v45  ;;  %v1780_v49 = vsel %vm1777_vm3, %v1778_v43, %v1779_v20 }
 0x1a9   : > { %v1735_v50 = vrot.slane %v1711_v1, 1  ;;  %v1702_v51 = vadd.f32 %v3361_v41, %v1685_v44  ;;  %v1669_v53 = vadd.f32 %v1650_v48, %v1506_v33  ;;  %v3388_v37 = vmax.f32 %v1752_v7, %v1780_v49  ;;  %v1815_v49 = vld [vmem:[%s3445_s4 + $0x10] sm:$0xff] }
 0x1aa   : > { %v2667_v17 = vpop.f32.mrf.mxu0  ;;  %v1781_v55 = vrot.slane %v1755_v34, 2 }
 0x1ab   : > { %v1712_v40 = vmax.f32 %v1702_v51, 0.0  ;;  %v1686_v56 = vmul.f32 %v3356_v38, %v1669_v53  ;;  %v1736_v57 = vsel %vm1725_vm2, %v1733_v22, %v1735_v50  ;;  %v1817_v51 = vld [vmem:[%s3445_s4 + $0x20] sm:$0xff]  ;;  %v1818_v53 = vld [vmem:[%s3445_s4 + $0x28] sm:$0xff] }
 0x1ac   : > { %v1655_v59 = vpop.f32.mrf.mxu0  ;;  %v1756_v61 = vmax.f32 %v1710_v60, %v1736_v57  ;;  %v1782_v62 = vsel %vm1777_vm3, %v1779_v20, %v1781_v55 }
 0x1ad   : > { %v1737_v46 = vrot.slane %v1712_v40, 1  ;;  %v1703_v42 = vadd.f32 %v3361_v41, %v1686_v56  ;;  %v1670_v63 = vadd.f32 %v1655_v59, %v1507_v27  ;;  %v1805_v2 = vmax.f32 %v1753_v19, %v1782_v62 }
 0x1ae   : > { %v2670_v15 = vpop.f32.mrf.mxu0  ;;  %v1783_v5 = vrot.slane %v1756_v61, 2 }
 0x1af   : > { %v1713_v47 = vmax.f32 %v1703_v42, 0.0  ;;  %v1687_v32 = vmul.f32 %v3356_v38, %v1670_v63  ;;  %v1738_v30 = vsel %vm1725_vm2, %v1735_v50, %v1737_v46  ;;  %v1816_v50 = vld [vmem:[%s3445_s4 + $0x18] sm:$0xff] }
 0x1b0   : > { %v1658_v7 = vpop.f32.mrf.mxu0  ;;  %v1757_v52 = vmax.f32 %v1711_v1, %v1738_v30  ;;  %v1784_v3 = vsel %vm1777_vm3, %v1781_v55, %v1783_v5 }
 0x1b1   : > { %v1739_v11 = vrot.slane %v1713_v47, 1  ;;  %v1704_v12 = vadd.f32 %v3361_v41, %v1687_v32  ;;  %v1671_v14 = vadd.f32 %v1658_v7, %v1508_v6  ;;  %v1806_v58 = vmax.f32 %v1754_v29, %v1784_v3 }
 0x1b2   : > { %v2671_v8 = vpop.f32.mrf.mxu0  ;;  %v1785_v54 = vrot.slane %v1757_v52, 2 }
 0x1b3   : > { %v1714_v10 = vmax.f32 %v1704_v12, 0.0  ;;  %v1688_v16 = vmul.f32 %v3356_v38, %v1671_v14  ;;  %v1740_v31 = vsel %vm1725_vm2, %v1737_v46, %v1739_v11 }
 0x1b4   : > { %v1758_v19 = vmax.f32 %v1712_v40, %v1740_v31  ;;  %v1786_v0 = vsel %vm1777_vm3, %v1783_v5, %v1785_v54 }
 0x1b5   : > { %v1741_v13 = vrot.slane %v1714_v10, 1  ;;  %v1705_v23 = vadd.f32 %v3361_v41, %v1688_v16  ;;  %v1807_v24 = vmax.f32 %v1755_v34, %v1786_v0  ;;  %v1814_v34 = vld [vmem:[%s3445_s4 + $0x8] sm:$0xff] }
 0x1b6   : > { %v1787_v25 = vrot.slane %v1758_v19, 2 }
 0x1b7   : > { %v1715_v21 = vmax.f32 %v1705_v23, 0.0  ;;  %v1742_v60 = vsel %vm1725_vm2, %v1739_v11, %v1741_v13  ;;  %v1760_v20 = vmax.f32 %v1714_v10, %v1741_v13 }
 0x1b8   : > { %v1759_v26 = vmax.f32 %v1713_v47, %v1742_v60  ;;  %v1788_v18 = vsel %vm1777_vm3, %v1785_v54, %v1787_v25 }
 0x1b9   : > { %v1762_v4 = vrot.slane %v1715_v21, 1  ;;  %v1808_v29 = vmax.f32 %v1756_v61, %v1788_v18 }
 0x1ba   : > { %v1789_v22 = vrot.slane %v1759_v26, 2 }
 0x1bb   : > { %v1767_v38 = vmax.f32 %v1715_v21, %v1762_v4  ;;  %v1763_v35 = vsel %vm1725_vm2, %v1741_v13, %v1762_v4 }
 0x1bc   : > { %v1766_v36 = vmax.f32 %v1714_v10, %v1763_v35  ;;  %v1790_v39 = vsel %vm1777_vm3, %v1787_v25, %v1789_v22 }
 0x1bd   : > { %v1793_v28 = vrot.slane %v1767_v38, 2  ;;  %v1809_v41 = vmax.f32 %v1757_v52, %v1790_v39 }
 0x1be   : > { %v1791_v43 = vrot.slane %v1766_v36, 2 }
 0x1bf   : > { %v1812_v33 = vmax.f32 %v1760_v20, %v1793_v28 }
 0x1c0   : > { %v1794_v1 = vsel %vm1777_vm3, %v1791_v43, %v1793_v28  ;;  %v1792_v44 = vsel %vm1777_vm3, %v1789_v22, %v1791_v43 }
 0x1c1   : > { %2672 = vmatprep.subr.msk.mxu1 %vm1838_vm4, %v1812_v33  ;;  %v1811_v45 = vmax.f32 %v1759_v26, %v1794_v1  ;;  %v1810_v48 = vmax.f32 %v1758_v19, %v1792_v44 }
 0x1c2   : > { %2673 = vmatpush3.msk.msra.mxu1 %vm1838_vm4, %v1812_v33 }
 0x1c3   : > { %2674 = vmatprep.subr.mxu1 %v1811_v45 }
 0x1c4   : > { %2675 = vmatpush3.msra.mxu1 %v1811_v45 }
 0x1c5   : > { %2676 = vmatprep.subr.mxu1 %v1810_v48 }
 0x1c6   : > { %2677 = vmatpush3.msra.mxu1 %v1810_v48 }
 0x1c7   : > { %2678 = vmatprep.subr.mxu1 %v1809_v41 }
 0x1c8   : > { %2679 = vmatpush3.msra.mxu1 %v1809_v41 }
 0x1c9   : > { %2680 = vmatprep.subr.mxu1 %v1808_v29 }
 0x1ca   : > { %2681 = vmatpush3.msra.mxu1 %v1808_v29 }
 0x1cb   : > { %2682 = vmatprep.subr.mxu1 %v1807_v24 }
 0x1cc   : > { %2683 = vmatpush3.msra.mxu1 %v1807_v24 }
 0x1cd   : > { %2684 = vmatprep.subr.mxu1 %v1806_v58 }
 0x1ce   : > { %2685 = vmatpush3.msra.mxu1 %v1806_v58 }
 0x1cf   : > { %2686 = vmatprep.subr.mxu1 %v1805_v2 }
 0x1d0   : > { %2687 = vmatpush3.msra.mxu1 %v1805_v2 }
 0x1d1   : > { %2688 = vmatprep.subr.mxu1 %v3388_v37 }
 0x1d2   : > { %2689 = vmatpush3.msra.mxu1 %v3388_v37 }
 0x1d3   : > { %2691 = vmatmul.mubr.msk.f32.vlgmr.msra.gmra.mxu1 %vm1819_vm1, %v1814_v34 }
 0x1d4   : > { %2693 = vmatprep.mubr.msk.f32.mxu1 %vm1819_vm1, %v1815_v49 }
 0x1d7   : > { %2694 = vmatmul.mubr.msk.f32.gmra.mxu1 %vm1819_vm1, %v1816_v50 }
 0x1d8   : > { %2696 = vmatprep.mubr.msk.f32.mxu1 %vm1819_vm1, %v1817_v51 }
 0x1db   : > { %2697 = vmatmul.mubr.msk.f32.gmra.mxu1 %vm1819_vm1, %v1818_v53 }
 0x293   : > { %v2692_v37 = vpop.f32.mrf.mxu1 }
 0x294   : > { %1938 = vst [vmem:[%s224_s6 + $0x8] sm:$0xff] %v2692_v37 }
 0x295   : > { %v1908_v27 = vpop.f32.mrf.mxu1 }
 0x296   : > { %1937 = vst [vmem:[%s224_s6] sm:$0xff] %v1908_v27 }
 0x297   : > { %v2695_v17 = vpop.f32.mrf.mxu1 }
 0x298   : > { %1940 = vst [vmem:[%s224_s6 + $0x18] sm:$0xff] %v2695_v17 }
 0x299   : > { %v1918_v55 = vpop.f32.mrf.mxu1 }
 0x29a   : > { %1939 = vst [vmem:[%s224_s6 + $0x10] sm:$0xff] %v1918_v55 }
 0x29b   : > { %v2698_v9 = vpop.f32.mrf.mxu1 }
 0x29c   : > { %1942 = vst [vmem:[%s224_s6 + $0x28] sm:$0xff] %v2698_v9 }
 0x29d   : > { %v1928_v40 = vpop.f32.mrf.mxu1 }
 0x29e   : > { %1941 = vst [vmem:[%s224_s6 + $0x20] sm:$0xff] %v1928_v40 }
 0x29f PF: > { %s15_s18 = sadd.s32 1, %s2789_s18  }
 0x2a0   : > { %p12_p4 = scmp.ge.s32.totalorder %s15_s18, 4  }
 0x2a2   :  { %14 = sbr.rel (!%p12_p4) target bundleno = 1 (0x1), region = 78 }

// kernel: _lambda_.4
= control target key start
LH: loop header
LB: loop body
LE: loop exit
PB: predicated region body
PF: predicated region fallthrough
CT: control target
= control target key end

     0   :  { %s5288_s18 = smov 0   ;;  %s7220_s0 = inlined_call_operand.vmem [shape: f32[2,360,128], index: 0, kind: input, shape index: {}]   ;;  %s7221_s1 = inlined_call_operand.vmem [shape: bf16[9,128,128], index: 1, kind: input, shape index: {}]   ;;  %s7222_s2 = inlined_call_operand.vmem [shape: f32[1,128], index: 2, kind: input, shape index: {}]   ;;  %s7223_s3 = inlined_call_operand.vmem [shape: f32[1,128], index: 3, kind: input, shape index: {}]   ;;  %s7224_s4 = inlined_call_operand.vmem [shape: f32[120,269], index: 4, kind: input, shape index: {}]   ;;  %s7225_s5 = inlined_call_operand.vmem [shape: f32[2,120,128], index: 5, kind: output, shape index: {}]  }
   0x1 LB: > { %s4060_s19 = sadd.s32 4294967295, %s5254_s18   ;;  %p4064_p0 = scmp.ge.s32.totalorder %s5254_s18, 1  ;;  %s5254_s18 = sphi %s5288_s18, %s15_s18  }
   0x2   : > { %p187_p1 = scmp.lt.s32.totalorder %s5254_s18, 3 }
   0x4   : > { %p188_p2 = pnand %p4064_p0, %p187_p1 }
   0x6   : > { %191 = sbr.rel (%p188_p2) target bundleno = 936 (0x3a8), region = 40 }
   0xb   : > { %v5176_v0 = vld [vmem:[%s7221_s1 + $0x78] sm:$0xff]   ;;  %p215_p3 = scmp.lt.s32.totalorder %s4060_s19, 1  ;;  %v5178_v2 = vld [vmem:[%s7221_s1 + $0x70] sm:$0xff]   ;;  %v5180_v4 = vld [vmem:[%s7221_s1 + $0x68] sm:$0xff]   ;;  %vm3297_vm0 = vcmask 1046528   ;;  %vm3479_vm1 = vcmask 1045504  }
   0xc   : > { %v5177_v1 = vld [vmem:[%s7221_s1 + $0x38] sm:$0xff]   ;;  %4615 = vmatprep.subr.bf16.mxu0 %v5176_v0  ;;  %v5179_v3 = vld [vmem:[%s7221_s1 + $0x30] sm:$0xff]   ;;  %v5181_v5 = vld [vmem:[%s7221_s1 + $0x28] sm:$0xff]   ;;  %vm3706_vm2 = vcmask 1044480   ;;  %vm5257_vm3 = vmmov 0   ;;  %vm3660_vm4 = vcmask 105472  }
   0xd   : > { %4667 = vmatprep.subr.bf16.mxu1 %v5177_v1  ;;  %4616 = vmatpush3.bf16.msra.mxu0 %v5176_v0  ;;  %s7308_s19 = smov (!%p215_p3, %s4060_s19), 1  ;;  %v5182_v6 = vld [vmem:[%s7221_s1 + $0x60] sm:$0xff]   ;;  %v5184_v8 = vld [vmem:[%s7221_s1 + $0x58] sm:$0xff]   ;;  %v5186_v10 = vld [vmem:[%s7221_s1 + $0x50] sm:$0xff]  }
   0xe   : > { %4668 = vmatpush3.bf16.msra.mxu1 %v5177_v1  ;;  %4617 = vmatprep.subr.bf16.mxu0 %v5178_v2  ;;  %v5183_v7 = vld [vmem:[%s7221_s1 + $0x20] sm:$0xff]   ;;  %s5164_s11 = smul.u32 360, %s7308_s19  ;;  %v5185_v9 = vld [vmem:[%s7221_s1 + $0x18] sm:$0xff]   ;;  %v5187_v14 = vld [vmem:[%s7221_s1 + $0x10] sm:$0xff]  }
   0xf   : > { %4669 = vmatprep.subr.bf16.mxu1 %v5179_v3  ;;  %v5188_v18 = vld [vmem:[%s7221_s1 + $0x48] sm:$0xff]   ;;  %v5190_v20 = vld [vmem:[%s7221_s1 + $0x40] sm:$0xff]   ;;  %v5192_v34 = vld [vmem:[%s7221_s1 + $0xb8] sm:$0xff]  }
  0x10   : > { %s5332_s20 = scalar_lea.vmem %s7220_s0, %s5164_s11  ;;  %v5189_v19 = vld [vmem:[%s7221_s1 + $0x8] sm:$0xff]   ;;  %v5191_v21 = vld [vmem:[%s7221_s1] sm:$0xff]   ;;  %v5193_v37 = vld [vmem:[%s7221_s1 + $0xf8] sm:$0xff]   ;;  %s5165_s11 = smul.u32 120, %s7308_s19 }
  0x11   : > { %4618 = vmatpush3.bf16.msra.mxu0 %v5178_v2  ;;  %v296_v11 = vld [vmem:[%s5332_s20 + $0x12] sm:$0xff]  ;;  %v297_v12 = vld [vmem:[%s5332_s20 + $0x1a] sm:$0xff]  ;;  %v298_v22 = vld [vmem:[%s5332_s20 + $0x22] sm:$0xff] }
  0x12   : > { %4670 = vmatpush3.bf16.msra.mxu1 %v5179_v3  ;;  %4619 = vmatprep.subr.bf16.mxu0 %v5180_v4  ;;  %v226_v13 = vld [vmem:[%s5332_s20 + $0x11] sm:$0xff]  ;;  %v332_v15 = vpack.c.bf16 %v297_v12, %v296_v11  ;;  %v227_v16 = vld [vmem:[%s5332_s20 + $0x19] sm:$0xff]  ;;  %v228_v24 = vld [vmem:[%s5332_s20 + $0x21] sm:$0xff]  ;;  %s7184_s14 = scalar_lea.vmem %s7225_s5, %s5165_s11 }
  0x13   : > { %4671 = vmatprep.subr.bf16.mxu1 %v5181_v5  ;;  %v262_v17 = vpack.c.bf16 %v227_v16, %v226_v13  ;;  %v299_v23 = vld [vmem:[%s5332_s20 + $0x2a] sm:$0xff]  ;;  %v300_v26 = vld [vmem:[%s5332_s20 + $0x32] sm:$0xff]  ;;  %v301_v27 = vld [vmem:[%s5332_s20 + $0x3a] sm:$0xff] }
  0x14   : > { %4631 = vmatprep.mubr.bf16.mxu0 %v332_v15  ;;  %v229_v25 = vld [vmem:[%s5332_s20 + $0x29] sm:$0xff]  ;;  %v230_v28 = vld [vmem:[%s5332_s20 + $0x31] sm:$0xff]  ;;  %v231_v29 = vld [vmem:[%s5332_s20 + $0x39] sm:$0xff]  ;;  %v333_v30 = vpack.c.bf16 %v299_v23, %v298_v22  ;;  %v334_v32 = vpack.c.bf16 %v301_v27, %v300_v26 }
  0x15   : > { %4620 = vmatpush3.bf16.msra.mxu0 %v5180_v4  ;;  %4683 = vmatprep.mubr.bf16.mxu1 %v262_v17  ;;  %v263_v31 = vpack.c.bf16 %v229_v25, %v228_v24  ;;  %v264_v33 = vpack.c.bf16 %v231_v29, %v230_v28  ;;  %v302_v35 = vld [vmem:[%s5332_s20 + $0x42] sm:$0xff]  ;;  %v303_v36 = vld [vmem:[%s5332_s20 + $0x4a] sm:$0xff]  ;;  %v304_v42 = vld [vmem:[%s5332_s20 + $0x52] sm:$0xff] }
  0x16   : > { %4672 = vmatpush3.bf16.msra.mxu1 %v5181_v5  ;;  %4621 = vmatprep.subr.bf16.mxu0 %v5182_v6  ;;  %v232_v38 = vld [vmem:[%s5332_s20 + $0x41] sm:$0xff]  ;;  %v5194_v39 = vld [vmem:[%s7221_s1 + $0xb0] sm:$0xff]   ;;  %v235_v45 = vld [vmem:[%s5332_s20 + $0x59] sm:$0xff]  ;;  %v335_v46 = vpack.c.bf16 %v303_v36, %v302_v35 }
  0x17   : > { %4673 = vmatprep.subr.bf16.mxu1 %v5183_v7  ;;  %v5195_v40 = vld [vmem:[%s7221_s1 + $0xf0] sm:$0xff]   ;;  %v305_v43 = vld [vmem:[%s5332_s20 + $0x5a] sm:$0xff]  ;;  %v5196_v49 = vld [vmem:[%s7221_s1 + $0xa8] sm:$0xff]  }
  0x18   : > { %v233_v41 = vld [vmem:[%s5332_s20 + $0x49] sm:$0xff]  ;;  %v234_v44 = vld [vmem:[%s5332_s20 + $0x51] sm:$0xff]  ;;  %v336_v48 = vpack.c.bf16 %v305_v43, %v304_v42  ;;  %v5198_v52 = vld [vmem:[%s7221_s1 + $0xa0] sm:$0xff]  }
  0x19   : > { %4622 = vmatpush3.bf16.msra.mxu0 %v5182_v6  ;;  %v265_v47 = vpack.c.bf16 %v233_v41, %v232_v38  ;;  %v266_v50 = vpack.c.bf16 %v235_v45, %v234_v44  ;;  %v5197_v51 = vld [vmem:[%s7221_s1 + $0xe8] sm:$0xff]   ;;  %v5199_v57 = vld [vmem:[%s7221_s1 + $0xe0] sm:$0xff]   ;;  %v308_v58 = vld [vmem:[%s5332_s20 + $0x72] sm:$0xff] }
  0x1a   : > { %4674 = vmatpush3.bf16.msra.mxu1 %v5183_v7  ;;  %4623 = vmatprep.subr.bf16.mxu0 %v5184_v8  ;;  %v306_v53 = vld [vmem:[%s5332_s20 + $0x62] sm:$0xff]  ;;  %v307_v54 = vld [vmem:[%s5332_s20 + $0x6a] sm:$0xff]  ;;  %v309_v59 = vld [vmem:[%s5332_s20 + $0x7a] sm:$0xff] }
  0x1b   : > { %4675 = vmatprep.subr.bf16.mxu1 %v5185_v9  ;;  %v236_v55 = vld [vmem:[%s5332_s20 + $0x61] sm:$0xff]  ;;  %v237_v56 = vld [vmem:[%s5332_s20 + $0x69] sm:$0xff]  ;;  %v238_v60 = vld [vmem:[%s5332_s20 + $0x71] sm:$0xff]  ;;  %v337_v62 = vpack.c.bf16 %v307_v54, %v306_v53  ;;  %v338_v1 = vpack.c.bf16 %v309_v59, %v308_v58 }
  0x1c   : > { %v239_v61 = vld [vmem:[%s5332_s20 + $0x79] sm:$0xff]  ;;  %v267_v0 = vpack.c.bf16 %v237_v56, %v236_v55  ;;  %v310_v3 = vld [vmem:[%s5332_s20 + $0x82] sm:$0xff]  ;;  %v311_v4 = vld [vmem:[%s5332_s20 + $0x8a] sm:$0xff] }
  0x1d   : > { %4624 = vmatpush3.bf16.msra.mxu0 %v5184_v8  ;;  %v5200_v63 = vld [vmem:[%s7221_s1 + $0x98] sm:$0xff]   ;;  %v268_v2 = vpack.c.bf16 %v239_v61, %v238_v60  ;;  %v5202_v6 = vld [vmem:[%s7221_s1 + $0x90] sm:$0xff]   ;;  %v240_v7 = vld [vmem:[%s5332_s20 + $0x81] sm:$0xff]  ;;  %v339_v15 = vpack.c.bf16 %v311_v4, %v310_v3 }
  0x1e   : > { %4676 = vmatpush3.bf16.msra.mxu1 %v5185_v9  ;;  %4625 = vmatprep.subr.bf16.mxu0 %v5186_v10  ;;  %v5201_v5 = vld [vmem:[%s7221_s1 + $0xd8] sm:$0xff]   ;;  %v241_v8 = vld [vmem:[%s5332_s20 + $0x89] sm:$0xff]  ;;  %v244_v23 = vld [vmem:[%s5332_s20 + $0xa1] sm:$0xff] }
  0x1f   : > { %4677 = vmatprep.subr.bf16.mxu1 %v5187_v14  ;;  %v312_v9 = vld [vmem:[%s5332_s20 + $0x92] sm:$0xff]  ;;  %v269_v16 = vpack.c.bf16 %v241_v8, %v240_v7  ;;  %v315_v22 = vld [vmem:[%s5332_s20 + $0xaa] sm:$0xff]  ;;  %v5207_v24 = vld [vmem:[%s7221_s1 + $0xc0] sm:$0xff]  }
  0x20   : > { %v242_v11 = vld [vmem:[%s5332_s20 + $0x91] sm:$0xff]  ;;  %v243_v13 = vld [vmem:[%s5332_s20 + $0x99] sm:$0xff]  ;;  %v245_v25 = vld [vmem:[%s5332_s20 + $0xa9] sm:$0xff] }
  0x21   : > { %4626 = vmatpush3.bf16.msra.mxu0 %v5186_v10  ;;  %v313_v10 = vld [vmem:[%s5332_s20 + $0x9a] sm:$0xff]  ;;  %v5203_v12 = vld [vmem:[%s7221_s1 + $0xd0] sm:$0xff]   ;;  %v318_v35 = vld [vmem:[%s5332_s20 + $0xc2] sm:$0xff] }
  0x22   : > { %4678 = vmatpush3.bf16.msra.mxu1 %v5187_v14  ;;  %4627 = vmatprep.subr.bf16.mxu0 %v5188_v18  ;;  %v5204_v14 = vld [vmem:[%s7221_s1 + $0x88] sm:$0xff]   ;;  %v340_v17 = vpack.c.bf16 %v313_v10, %v312_v9  ;;  %v316_v26 = vld [vmem:[%s5332_s20 + $0xb2] sm:$0xff]  ;;  %v317_v27 = vld [vmem:[%s5332_s20 + $0xba] sm:$0xff] }
  0x23   : > { %4679 = vmatprep.subr.bf16.mxu1 %v5189_v19  ;;  %v246_v28 = vld [vmem:[%s5332_s20 + $0xb1] sm:$0xff]  ;;  %v247_v29 = vld [vmem:[%s5332_s20 + $0xb9] sm:$0xff]  ;;  %v249_v38 = vld [vmem:[%s5332_s20 + $0xc9] sm:$0xff] }
  0x24   : > { %v319_v36 = vld [vmem:[%s5332_s20 + $0xca] sm:$0xff]  ;;  %v321_v41 = vld [vmem:[%s5332_s20 + $0xda] sm:$0xff]  ;;  %v326_v60 = vld [vmem:[%s5332_s20 + $0x102] sm:$0xff] }
  0x25   : > { %4628 = vmatpush3.bf16.msra.mxu0 %v5188_v18  ;;  %v270_v18 = vpack.c.bf16 %v243_v13, %v242_v11  ;;  %v250_v42 = vld [vmem:[%s5332_s20 + $0xd1] sm:$0xff]  ;;  %v251_v43 = vld [vmem:[%s5332_s20 + $0xd9] sm:$0xff]  ;;  %v343_v44 = vpack.c.bf16 %v319_v36, %v318_v35  ;;  %v330_v8 = vld [vmem:[%s5332_s20 + $0x122] sm:$0xff] }
  0x26   : > { %4680 = vmatpush3.bf16.msra.mxu1 %v5189_v19  ;;  %4629 = vmatprep.subr.bf16.mxu0 %v5190_v20  ;;  %v5205_v19 = vld [vmem:[%s7221_s1 + $0xc8] sm:$0xff]   ;;  %v325_v53 = vld [vmem:[%s5332_s20 + $0xfa] sm:$0xff]  ;;  %v254_v54 = vld [vmem:[%s5332_s20 + $0xf1] sm:$0xff] }
  0x27   : > { %4681 = vmatprep.subr.bf16.mxu1 %v5191_v21  ;;  %v255_v55 = vld [vmem:[%s5332_s20 + $0xf9] sm:$0xff]  ;;  %v327_v61 = vld [vmem:[%s5332_s20 + $0x10a] sm:$0xff]  ;;  %v260_v10 = vld [vmem:[%s5332_s20 + $0x121] sm:$0xff] }
  0x28   : > { %v276_v59 = vpack.c.bf16 %v255_v55, %v254_v54  ;;  %v259_v3 = vld [vmem:[%s5332_s20 + $0x119] sm:$0xff]  ;;  %v347_v4 = vpack.c.bf16 %v327_v61, %v326_v60  ;;  %v331_v9 = vld [vmem:[%s5332_s20 + $0x12a] sm:$0xff] }
  0x29   : > { %4630 = vmatpush3.bf16.msra.mxu0 %v5190_v20  ;;  %v5206_v20 = vld [vmem:[%s7221_s1 + $0x80] sm:$0xff]   ;;  %v261_v11 = vld [vmem:[%s5332_s20 + $0x129] sm:$0xff] }
  0x2a   : > { %4682 = vmatpush3.bf16.msra.mxu1 %v5191_v21  ;;  %4719 = vmatprep.subr.bf16.mxu0 %v5192_v34  ;;  %v314_v21 = vld [vmem:[%s5332_s20 + $0xa2] sm:$0xff]  ;;  %v840_v61 = vld [vmem:[%s5332_s20 + $0xcb] sm:$0xff] }
  0x2b   : > { %4771 = vmatprep.subr.bf16.mxu1 %v5193_v37  ;;  %v818_v13 = vld [vmem:[%s5332_s20 + $0x1b] sm:$0xff]  ;;  %v839_v60 = vld [vmem:[%s5332_s20 + $0xc3] sm:$0xff] }
  0x2c   : > { %4632 = vmatmul.mubr.bf16.vlgmr.msra.gmra.mxu0 %v333_v30  ;;  %v341_v30 = vpack.c.bf16 %v315_v22, %v314_v21  ;;  %v1152_v21 = vld [vmem:[%s5332_s20 + $0x3b] sm:$0xff]  ;;  %v823_v22 = vld [vmem:[%s5332_s20 + $0x43] sm:$0xff] }
  0x2d   : > { %4684 = vmatmul.mubr.bf16.vlgmr.msra.gmra.mxu1 %v263_v31  ;;  %4635 = vmatprep.mubr.bf16.mxu0 %v334_v32  ;;  %v271_v31 = vpack.c.bf16 %v245_v25, %v244_v23  ;;  %v342_v32 = vpack.c.bf16 %v317_v27, %v316_v26  ;;  %v824_v23 = vld [vmem:[%s5332_s20 + $0x4b] sm:$0xff] }
  0x2e   : > { %4687 = vmatprep.mubr.bf16.mxu1 %v264_v33  ;;  %4720 = vmatpush3.bf16.msra.mxu0 %v5192_v34  ;;  %v272_v33 = vpack.c.bf16 %v247_v29, %v246_v28  ;;  %v5447_v34 = vld [vmem:[%s7221_s1 + $0x138] sm:$0xff]   ;;  %v856_v25 = vpack.c.bf16 %v824_v23, %v823_v22  ;;  %v5210_v26 = vld [vmem:[%s7221_s1 + $0x130] sm:$0xff]   ;;  %v1481_v22 = vld [vmem:[%s5332_s20 + $0x24] sm:$0xff] }
  0x2f   : > { %4721 = vmatprep.subr.bf16.mxu0 %v5194_v39  ;;  %4772 = vmatpush3.bf16.msra.mxu1 %v5193_v37  ;;  %v248_v37 = vld [vmem:[%s5332_s20 + $0xc1] sm:$0xff]  ;;  %v5211_v27 = vld [vmem:[%s7221_s1 + $0x170] sm:$0xff]  }
  0x30   : > { %4773 = vmatprep.subr.bf16.mxu1 %v5195_v40  ;;  %v273_v45 = vpack.c.bf16 %v249_v38, %v248_v37  ;;  %v1155_v28 = vld [vmem:[%s5332_s20 + $0x53] sm:$0xff]  ;;  %v1156_v29 = vld [vmem:[%s5332_s20 + $0x5b] sm:$0xff] }
  0x31   : > { %v1188_v35 = vpack.c.bf16 %v1156_v29, %v1155_v28  ;;  %v1159_v37 = vld [vmem:[%s5332_s20 + $0x73] sm:$0xff]  ;;  %v1160_v38 = vld [vmem:[%s5332_s20 + $0x7b] sm:$0xff] }
  0x32   : > { %4722 = vmatpush3.bf16.msra.mxu0 %v5194_v39  ;;  %v5456_v39 = vld [vmem:[%s7221_s1 + $0x178] sm:$0xff]   ;;  %v1482_v23 = vld [vmem:[%s5332_s20 + $0x2c] sm:$0xff] }
  0x33   : > { %4723 = vmatprep.subr.bf16.mxu0 %v5196_v49  ;;  %4774 = vmatpush3.bf16.msra.mxu1 %v5195_v40  ;;  %v320_v40 = vld [vmem:[%s5332_s20 + $0xd2] sm:$0xff] }
  0x34   : > { %4636 = vmatmul.mubr.bf16.gmra.mxu0 %v335_v46  ;;  %4775 = vmatprep.subr.bf16.mxu1 %v5197_v51  ;;  %v344_v46 = vpack.c.bf16 %v321_v41, %v320_v40  ;;  %v831_v40 = vld [vmem:[%s5332_s20 + $0x83] sm:$0xff]  ;;  %v832_v41 = vld [vmem:[%s5332_s20 + $0x8b] sm:$0xff]  ;;  %v1483_v29 = vld [vmem:[%s5332_s20 + $0x34] sm:$0xff] }
  0x35   : > { %4688 = vmatmul.mubr.bf16.gmra.mxu1 %v265_v47  ;;  %4639 = vmatprep.mubr.bf16.mxu0 %v336_v48  ;;  %v274_v47 = vpack.c.bf16 %v251_v43, %v250_v42  ;;  %v322_v48 = vld [vmem:[%s5332_s20 + $0xe2] sm:$0xff]  ;;  %v5216_v42 = vld [vmem:[%s7221_s1 + $0x118] sm:$0xff]  }
  0x36   : > { %4691 = vmatprep.mubr.bf16.mxu1 %v266_v50  ;;  %4724 = vmatpush3.bf16.msra.mxu0 %v5196_v49  ;;  %v323_v49 = vld [vmem:[%s5332_s20 + $0xea] sm:$0xff]  ;;  %v252_v50 = vld [vmem:[%s5332_s20 + $0xe1] sm:$0xff]  ;;  %v5217_v43 = vld [vmem:[%s7221_s1 + $0x158] sm:$0xff]  }
  0x37   : > { %4725 = vmatprep.subr.bf16.mxu0 %v5198_v52  ;;  %4776 = vmatpush3.bf16.msra.mxu1 %v5197_v51  ;;  %v253_v51 = vld [vmem:[%s5332_s20 + $0xe9] sm:$0xff]  ;;  %v345_v56 = vpack.c.bf16 %v323_v49, %v322_v48  ;;  %v1163_v48 = vld [vmem:[%s5332_s20 + $0x93] sm:$0xff]  ;;  %v1164_v49 = vld [vmem:[%s5332_s20 + $0x9b] sm:$0xff] }
  0x38   : > { %4777 = vmatprep.subr.bf16.mxu1 %v5199_v57  ;;  %v1192_v54 = vpack.c.bf16 %v1164_v49, %v1163_v48  ;;  %v1490_v48 = vld [vmem:[%s5332_s20 + $0x6c] sm:$0xff] }
  0x39   : > { %v1821_v49 = vld [vmem:[%s5332_s20 + $0x65] sm:$0xff] }
  0x3a   : > { %4726 = vmatpush3.bf16.msra.mxu0 %v5198_v52  ;;  %v324_v52 = vld [vmem:[%s5332_s20 + $0xf2] sm:$0xff] }
  0x3b   : > { %4727 = vmatprep.subr.bf16.mxu0 %v5200_v63  ;;  %4778 = vmatpush3.bf16.msra.mxu1 %v5199_v57  ;;  %v275_v57 = vpack.c.bf16 %v253_v51, %v252_v50  ;;  %v346_v58 = vpack.c.bf16 %v325_v53, %v324_v52  ;;  %v835_v50 = vld [vmem:[%s5332_s20 + $0xa3] sm:$0xff]  ;;  %v836_v51 = vld [vmem:[%s5332_s20 + $0xab] sm:$0xff] }
  0x3c   : > { %4640 = vmatmul.mubr.bf16.gmra.mxu0 %v337_v62  ;;  %4779 = vmatprep.subr.bf16.mxu1 %v5201_v5  ;;  %v256_v62 = vld [vmem:[%s5332_s20 + $0x101] sm:$0xff]  ;;  %v862_v55 = vpack.c.bf16 %v836_v51, %v835_v50  ;;  %v1822_v50 = vld [vmem:[%s5332_s20 + $0x6d] sm:$0xff] }
  0x3d   : > { %4692 = vmatmul.mubr.bf16.gmra.mxu1 %v267_v0  ;;  %4643 = vmatprep.mubr.bf16.mxu0 %v338_v1  ;;  %v328_v0 = vld [vmem:[%s5332_s20 + $0x112] sm:$0xff]  ;;  %v329_v1 = vld [vmem:[%s5332_s20 + $0x11a] sm:$0xff]  ;;  %v5220_v52 = vld [vmem:[%s7221_s1 + $0x108] sm:$0xff]  }
  0x3e   : > { %4695 = vmatprep.mubr.bf16.mxu1 %v268_v2  ;;  %4728 = vmatpush3.bf16.msra.mxu0 %v5200_v63  ;;  %v257_v63 = vld [vmem:[%s5332_s20 + $0x109] sm:$0xff]  ;;  %v258_v2 = vld [vmem:[%s5332_s20 + $0x111] sm:$0xff] }
  0x3f   : > { %4729 = vmatprep.subr.bf16.mxu0 %v5202_v6  ;;  %4780 = vmatpush3.bf16.msra.mxu1 %v5201_v5  ;;  %v277_v5 = vpack.c.bf16 %v257_v63, %v256_v62  ;;  %v278_v7 = vpack.c.bf16 %v259_v3, %v258_v2  ;;  %v5221_v53 = vld [vmem:[%s7221_s1 + $0x148] sm:$0xff]   ;;  %v5555_v62 = vld [vmem:[%s7221_s1 + $0x1b8] sm:$0xff]  }
  0x40   : > { %4781 = vmatprep.subr.bf16.mxu1 %v5203_v12  ;;  %v5560_v63 = vld [vmem:[%s7221_s1 + $0x1f8] sm:$0xff]   ;;  %v5228_v51 = vld [vmem:[%s7221_s1 + $0x1a8] sm:$0xff]  }
  0x41   : > { %v1171_v2 = vld [vmem:[%s5332_s20 + $0xd3] sm:$0xff]  ;;  %v1172_v3 = vld [vmem:[%s5332_s20 + $0xdb] sm:$0xff] }
  0x42   : > { %4730 = vmatpush3.bf16.msra.mxu0 %v5202_v6  ;;  %v348_v6 = vpack.c.bf16 %v329_v1, %v328_v0  ;;  %v864_v1 = vpack.c.bf16 %v840_v61, %v839_v60  ;;  %v1492_v60 = vld [vmem:[%s5332_s20 + $0x7c] sm:$0xff] }
  0x43   : > { %4731 = vmatprep.subr.bf16.mxu0 %v5204_v14  ;;  %4782 = vmatpush3.bf16.msra.mxu1 %v5203_v12  ;;  %v817_v12 = vld [vmem:[%s5332_s20 + $0x13] sm:$0xff] }
  0x44   : > { %4644 = vmatmul.mubr.bf16.gmra.mxu0 %v339_v15  ;;  %4783 = vmatprep.subr.bf16.mxu1 %v5205_v19  ;;  %v820_v15 = vld [vmem:[%s5332_s20 + $0x2b] sm:$0xff]  ;;  %v1823_v61 = vld [vmem:[%s5332_s20 + $0x75] sm:$0xff] }
  0x45   : > { %4696 = vmatmul.mubr.bf16.gmra.mxu1 %v269_v16  ;;  %4647 = vmatprep.mubr.bf16.mxu0 %v340_v17  ;;  %v349_v16 = vpack.c.bf16 %v331_v9, %v330_v8  ;;  %v279_v17 = vpack.c.bf16 %v261_v11, %v260_v10  ;;  %v1175_v8 = vld [vmem:[%s5332_s20 + $0xf3] sm:$0xff]  ;;  %v1176_v9 = vld [vmem:[%s5332_s20 + $0xfb] sm:$0xff]  ;;  %v847_v10 = vld [vmem:[%s5332_s20 + $0x103] sm:$0xff] }
  0x46   : > { %4699 = vmatprep.mubr.bf16.mxu1 %v270_v18  ;;  %4732 = vmatpush3.bf16.msra.mxu0 %v5204_v14  ;;  %v819_v14 = vld [vmem:[%s5332_s20 + $0x23] sm:$0xff]  ;;  %v853_v18 = vpack.c.bf16 %v818_v13, %v817_v12  ;;  %v848_v11 = vld [vmem:[%s5332_s20 + $0x10b] sm:$0xff]  ;;  %v1198_v12 = vpack.c.bf16 %v1176_v9, %v1175_v8 }
  0x47   : > { %4733 = vmatprep.subr.bf16.mxu0 %v5206_v20  ;;  %4784 = vmatpush3.bf16.msra.mxu1 %v5205_v19  ;;  %v854_v19 = vpack.c.bf16 %v820_v15, %v819_v14  ;;  %v868_v13 = vpack.c.bf16 %v848_v11, %v847_v10  ;;  %v1179_v14 = vld [vmem:[%s5332_s20 + $0x113] sm:$0xff]  ;;  %v1180_v15 = vld [vmem:[%s5332_s20 + $0x11b] sm:$0xff] }
  0x48   : > { %4785 = vmatprep.subr.bf16.mxu1 %v5207_v24  ;;  %v5234_v9 = vld [vmem:[%s7221_s1 + $0x190] sm:$0xff]  }
  0x49   : > { %v5235_v10 = vld [vmem:[%s7221_s1 + $0x1d0] sm:$0xff]  }
  0x4a   : > { %4734 = vmatpush3.bf16.msra.mxu0 %v5206_v20  ;;  %v1151_v20 = vld [vmem:[%s5332_s20 + $0x33] sm:$0xff] }
  0x4b   : > { %4786 = vmatpush3.bf16.msra.mxu1 %v5207_v24  ;;  %4823 = vmatprep.subr.bf16.mxu0 %v5447_v34  ;;  %v1186_v24 = vpack.c.bf16 %v1152_v21, %v1151_v20  ;;  %v1183_v20 = vld [vmem:[%s5332_s20 + $0x133] sm:$0xff]  ;;  %v1184_v21 = vld [vmem:[%s5332_s20 + $0x13b] sm:$0xff] }
  0x4c   : > { %4648 = vmatmul.mubr.bf16.gmra.mxu0 %v341_v30  ;;  %4875 = vmatprep.subr.bf16.mxu1 %v5456_v39  ;;  %v827_v30 = vld [vmem:[%s5332_s20 + $0x63] sm:$0xff]  ;;  %v1495_v11 = vld [vmem:[%s5332_s20 + $0x94] sm:$0xff] }
  0x4d   : > { %4700 = vmatmul.mubr.bf16.gmra.mxu1 %v271_v31  ;;  %4651 = vmatprep.mubr.bf16.mxu0 %v342_v32  ;;  %v828_v31 = vld [vmem:[%s5332_s20 + $0x6b] sm:$0xff] }
  0x4e   : > { %4703 = vmatprep.mubr.bf16.mxu1 %v272_v33  ;;  %v5212_v32 = vld [vmem:[%s7221_s1 + $0x128] sm:$0xff]   ;;  %v858_v36 = vpack.c.bf16 %v828_v31, %v827_v30  ;;  %v1484_v30 = vld [vmem:[%s5332_s20 + $0x3c] sm:$0xff] }
  0x4f   : > { %v5213_v33 = vld [vmem:[%s7221_s1 + $0x168] sm:$0xff]   ;;  %v1815_v31 = vld [vmem:[%s5332_s20 + $0x35] sm:$0xff] }
  0x54   : > { %4652 = vmatmul.mubr.bf16.gmra.mxu0 %v343_v44  ;;  %v1190_v44 = vpack.c.bf16 %v1160_v38, %v1159_v37  ;;  %v1518_v37 = vpack.c.bf16 %v1484_v30, %v1483_v29  ;;  %v1831_v29 = vld [vmem:[%s5332_s20 + $0xb5] sm:$0xff]  ;;  %v1832_v30 = vld [vmem:[%s5332_s20 + $0xbd] sm:$0xff] }
  0x55   : > { %4704 = vmatmul.mubr.bf16.gmra.mxu1 %v273_v45  ;;  %4655 = vmatprep.mubr.bf16.mxu0 %v344_v46  ;;  %v860_v45 = vpack.c.bf16 %v832_v41, %v831_v40  ;;  %v5218_v46 = vld [vmem:[%s7221_s1 + $0x110] sm:$0xff]  }
  0x56   : > { %4707 = vmatprep.mubr.bf16.mxu1 %v274_v47  ;;  %v5219_v47 = vld [vmem:[%s7221_s1 + $0x150] sm:$0xff]  }
  0x57   : > { %v5226_v41 = vld [vmem:[%s7221_s1 + $0x1b0] sm:$0xff]  }
  0x5c   : > { %4656 = vmatmul.mubr.bf16.gmra.mxu0 %v345_v56  ;;  %v5222_v56 = vld [vmem:[%s7221_s1 + $0x100] sm:$0xff]  }
  0x5d   : > { %4708 = vmatmul.mubr.bf16.gmra.mxu1 %v275_v57  ;;  %4659 = vmatprep.mubr.bf16.mxu0 %v346_v58  ;;  %v1167_v57 = vld [vmem:[%s5332_s20 + $0xb3] sm:$0xff]  ;;  %v5223_v58 = vld [vmem:[%s7221_s1 + $0x140] sm:$0xff]  }
  0x5e   : > { %4711 = vmatprep.mubr.bf16.mxu1 %v276_v59  ;;  %v1168_v59 = vld [vmem:[%s5332_s20 + $0xbb] sm:$0xff] }
  0x5f   : > { %v1194_v0 = vpack.c.bf16 %v1168_v59, %v1167_v57  ;;  %v5230_v57 = vld [vmem:[%s7221_s1 + $0x1a0] sm:$0xff]   ;;  %v1491_v59 = vld [vmem:[%s5332_s20 + $0x74] sm:$0xff] }
  0x64   : > { %4660 = vmatmul.mubr.bf16.gmra.mxu0 %v347_v4  ;;  %v843_v4 = vld [vmem:[%s5332_s20 + $0xe3] sm:$0xff] }
  0x65   : > { %4712 = vmatmul.mubr.bf16.gmra.mxu1 %v277_v5  ;;  %4663 = vmatprep.mubr.bf16.mxu0 %v348_v6  ;;  %v844_v5 = vld [vmem:[%s5332_s20 + $0xeb] sm:$0xff]  ;;  %v1196_v6 = vpack.c.bf16 %v1172_v3, %v1171_v2  ;;  %v5232_v3 = vld [vmem:[%s7221_s1 + $0x198] sm:$0xff]  }
  0x66   : > { %4715 = vmatprep.mubr.bf16.mxu1 %v278_v7  ;;  %v866_v7 = vpack.c.bf16 %v844_v5, %v843_v4  ;;  %v1826_v2 = vld [vmem:[%s5332_s20 + $0x8d] sm:$0xff]  ;;  %v1522_v4 = vpack.c.bf16 %v1492_v60, %v1491_v59  ;;  %v5233_v5 = vld [vmem:[%s7221_s1 + $0x1d8] sm:$0xff]   ;;  %v1509_v60 = vld [vmem:[%s5332_s20 + $0x104] sm:$0xff] }
  0x67   : > { %v1840_v59 = vld [vmem:[%s5332_s20 + $0xfd] sm:$0xff] }
  0x6c   : > { %4664 = vmatmul.mubr.bf16.gmra.mxu0 %v349_v16  ;;  %v851_v16 = vld [vmem:[%s5332_s20 + $0x123] sm:$0xff] }
  0x6d   : > { %4716 = vmatmul.mubr.bf16.gmra.mxu1 %v279_v17  ;;  %4735 = vmatprep.mubr.bf16.mxu0 %v853_v18  ;;  %v852_v17 = vld [vmem:[%s5332_s20 + $0x12b] sm:$0xff]  ;;  %v1200_v18 = vpack.c.bf16 %v1180_v15, %v1179_v14  ;;  %v1828_v14 = vld [vmem:[%s5332_s20 + $0x9d] sm:$0xff] }
  0x6e   : > { %4787 = vmatprep.mubr.bf16.mxu1 %v854_v19  ;;  %v1497_v15 = vld [vmem:[%s5332_s20 + $0xa4] sm:$0xff] }
  0x74   : > { %4736 = vmatmul.mubr.bf16.vlgmr.msra.gmra.mxu0 %v854_v19  ;;  %v870_v19 = vpack.c.bf16 %v852_v17, %v851_v16  ;;  %v1498_v16 = vld [vmem:[%s5332_s20 + $0xac] sm:$0xff] }
  0x75   : > { %4788 = vmatmul.mubr.bf16.vlgmr.msra.gmra.mxu1 %v1186_v24  ;;  %4739 = vmatprep.mubr.bf16.mxu0 %v1186_v24  ;;  %v1813_v24 = vld [vmem:[%s5332_s20 + $0x25] sm:$0xff] }
  0x76   : > { %4791 = vmatprep.mubr.bf16.mxu1 %v856_v25  ;;  %4824 = vmatpush3.bf16.msra.mxu0 %v5447_v34  ;;  %v5214_v34 = vld [vmem:[%s7221_s1 + $0x120] sm:$0xff]  }
  0x77   : > { %4876 = vmatpush3.bf16.msra.mxu1 %v5456_v39  ;;  %4825 = vmatprep.subr.bf16.mxu0 %v5210_v26  ;;  %v5215_v39 = vld [vmem:[%s7221_s1 + $0x160] sm:$0xff]  }
  0x78   : > { %4877 = vmatprep.subr.bf16.mxu1 %v5211_v27  ;;  %v1829_v17 = vld [vmem:[%s5332_s20 + $0xa5] sm:$0xff] }
  0x7a   : > { %4826 = vmatpush3.bf16.msra.mxu0 %v5210_v26  ;;  %v1202_v26 = vpack.c.bf16 %v1184_v21, %v1183_v20  ;;  %v5237_v21 = vld [vmem:[%s7221_s1 + $0x1c8] sm:$0xff]  }
  0x7b   : > { %4878 = vmatpush3.bf16.msra.mxu1 %v5211_v27  ;;  %4827 = vmatprep.subr.bf16.mxu0 %v5212_v32  ;;  %v1517_v27 = vpack.c.bf16 %v1482_v23, %v1481_v22  ;;  %v1525_v23 = vpack.c.bf16 %v1498_v16, %v1497_v15  ;;  %v1514_v15 = vld [vmem:[%s5332_s20 + $0x12c] sm:$0xff] }
  0x7c   : > { %4740 = vmatmul.mubr.bf16.gmra.mxu0 %v856_v25  ;;  %4879 = vmatprep.subr.bf16.mxu1 %v5213_v33  ;;  %v1814_v25 = vld [vmem:[%s5332_s20 + $0x2d] sm:$0xff] }
  0x7d   : > { %4792 = vmatmul.mubr.bf16.gmra.mxu1 %v1188_v35  ;;  %4743 = vmatprep.mubr.bf16.mxu0 %v1188_v35  ;;  %v1849_v28 = vpack.c.bf16 %v1814_v25, %v1813_v24  ;;  %v1486_v35 = vld [vmem:[%s5332_s20 + $0x4c] sm:$0xff]  ;;  %v5238_v25 = vld [vmem:[%s7221_s1 + $0x180] sm:$0xff]  }
  0x7e   : > { %4795 = vmatprep.mubr.bf16.mxu1 %v858_v36  ;;  %4828 = vmatpush3.bf16.msra.mxu0 %v5212_v32  ;;  %v1816_v32 = vld [vmem:[%s5332_s20 + $0x3d] sm:$0xff] }
  0x7f   : > { %4880 = vmatpush3.bf16.msra.mxu1 %v5213_v33  ;;  %4829 = vmatprep.subr.bf16.mxu0 %v5214_v34  ;;  %v1485_v33 = vld [vmem:[%s5332_s20 + $0x44] sm:$0xff]  ;;  %v5590_v38 = vpack.c.bf16 %v1816_v32, %v1815_v31  ;;  %v1502_v32 = vld [vmem:[%s5332_s20 + $0xcc] sm:$0xff] }
  0x80   : > { %4881 = vmatprep.subr.bf16.mxu1 %v5215_v39  ;;  %v1501_v31 = vld [vmem:[%s5332_s20 + $0xc4] sm:$0xff] }
  0x82   : > { %4830 = vmatpush3.bf16.msra.mxu0 %v5214_v34  ;;  %v1818_v34 = vld [vmem:[%s5332_s20 + $0x4d] sm:$0xff] }
  0x83   : > { %4882 = vmatpush3.bf16.msra.mxu1 %v5215_v39  ;;  %4831 = vmatprep.subr.bf16.mxu0 %v5216_v42  ;;  %v1519_v39 = vpack.c.bf16 %v1486_v35, %v1485_v33  ;;  %v1833_v33 = vld [vmem:[%s5332_s20 + $0xc5] sm:$0xff]  ;;  %v1834_v35 = vld [vmem:[%s5332_s20 + $0xcd] sm:$0xff] }
  0x84   : > { %4744 = vmatmul.mubr.bf16.gmra.mxu0 %v858_v36  ;;  %4883 = vmatprep.subr.bf16.mxu1 %v5217_v43  ;;  %v1817_v36 = vld [vmem:[%s5332_s20 + $0x45] sm:$0xff] }
  0x85   : > { %4796 = vmatmul.mubr.bf16.gmra.mxu1 %v1190_v44  ;;  %4747 = vmatprep.mubr.bf16.mxu0 %v1190_v44  ;;  %v5592_v40 = vpack.c.bf16 %v1818_v34, %v1817_v36  ;;  %v1488_v44 = vld [vmem:[%s5332_s20 + $0x5c] sm:$0xff] }
  0x86   : > { %4799 = vmatprep.mubr.bf16.mxu1 %v860_v45  ;;  %4832 = vmatpush3.bf16.msra.mxu0 %v5216_v42  ;;  %v5227_v42 = vld [vmem:[%s7221_s1 + $0x1f0] sm:$0xff]   ;;  %v5693_v36 = vld [vmem:[%s7221_s1 + $0x238] sm:$0xff]  }
  0x87   : > { %4884 = vmatpush3.bf16.msra.mxu1 %v5217_v43  ;;  %4833 = vmatprep.subr.bf16.mxu0 %v5218_v46  ;;  %v1487_v43 = vld [vmem:[%s5332_s20 + $0x54] sm:$0xff] }
  0x88   : > { %4885 = vmatprep.subr.bf16.mxu1 %v5219_v47 }
  0x8a   : > { %4834 = vmatpush3.bf16.msra.mxu0 %v5218_v46  ;;  %v1820_v46 = vld [vmem:[%s5332_s20 + $0x5d] sm:$0xff] }
  0x8b   : > { %4886 = vmatpush3.bf16.msra.mxu1 %v5219_v47  ;;  %4835 = vmatprep.subr.bf16.mxu0 %v5220_v52  ;;  %v1489_v47 = vld [vmem:[%s5332_s20 + $0x64] sm:$0xff] }
  0x8c   : > { %4748 = vmatmul.mubr.bf16.gmra.mxu0 %v860_v45  ;;  %4887 = vmatprep.subr.bf16.mxu1 %v5221_v53  ;;  %v1819_v45 = vld [vmem:[%s5332_s20 + $0x55] sm:$0xff] }
  0x8d   : > { %4800 = vmatmul.mubr.bf16.gmra.mxu1 %v1192_v54  ;;  %4751 = vmatprep.mubr.bf16.mxu0 %v1192_v54  ;;  %v5618_v54 = vpack.c.bf16 %v1820_v46, %v1819_v45  ;;  %v1836_v45 = vld [vmem:[%s5332_s20 + $0xdd] sm:$0xff] }
  0x8e   : > { %4803 = vmatprep.mubr.bf16.mxu1 %v862_v55  ;;  %4836 = vmatpush3.bf16.msra.mxu0 %v5220_v52  ;;  %v1520_v52 = vpack.c.bf16 %v1488_v44, %v1487_v43  ;;  %v1504_v43 = vld [vmem:[%s5332_s20 + $0xdc] sm:$0xff]  ;;  %v1505_v46 = vld [vmem:[%s5332_s20 + $0xe4] sm:$0xff] }
  0x8f   : > { %4888 = vmatpush3.bf16.msra.mxu1 %v5221_v53  ;;  %4837 = vmatprep.subr.bf16.mxu0 %v5222_v56  ;;  %v5229_v53 = vld [vmem:[%s7221_s1 + $0x1e8] sm:$0xff]   ;;  %v1835_v44 = vld [vmem:[%s5332_s20 + $0xd5] sm:$0xff] }
  0x90   : > { %4889 = vmatprep.subr.bf16.mxu1 %v5223_v58 }
  0x92   : > { %4838 = vmatpush3.bf16.msra.mxu0 %v5222_v56  ;;  %v5620_v56 = vpack.c.bf16 %v1822_v50, %v1821_v49  ;;  %v1838_v49 = vld [vmem:[%s5332_s20 + $0xed] sm:$0xff] }
  0x93   : > { %4890 = vmatpush3.bf16.msra.mxu1 %v5223_v58  ;;  %4927 = vmatprep.subr.bf16.mxu0 %v5555_v62  ;;  %v5231_v58 = vld [vmem:[%s7221_s1 + $0x1e0] sm:$0xff]  }
  0x94   : > { %4752 = vmatmul.mubr.bf16.gmra.mxu0 %v862_v55  ;;  %4979 = vmatprep.subr.bf16.mxu1 %v5560_v63  ;;  %v1521_v55 = vpack.c.bf16 %v1490_v48, %v1489_v47  ;;  %v1506_v47 = vld [vmem:[%s5332_s20 + $0xec] sm:$0xff] }
  0x95   : > { %4804 = vmatmul.mubr.bf16.gmra.mxu1 %v1194_v0  ;;  %4755 = vmatprep.mubr.bf16.mxu0 %v1194_v0  ;;  %v1494_v0 = vld [vmem:[%s5332_s20 + $0x8c] sm:$0xff] }
  0x96   : > { %4807 = vmatprep.mubr.bf16.mxu1 %v864_v1  ;;  %v1837_v48 = vld [vmem:[%s5332_s20 + $0xe5] sm:$0xff] }
  0x9c   : > { %4756 = vmatmul.mubr.bf16.gmra.mxu0 %v864_v1  ;;  %v1825_v1 = vld [vmem:[%s5332_s20 + $0x85] sm:$0xff] }
  0x9d   : > { %4808 = vmatmul.mubr.bf16.gmra.mxu1 %v1196_v6  ;;  %4759 = vmatprep.mubr.bf16.mxu0 %v1196_v6  ;;  %v5646_v8 = vpack.c.bf16 %v1826_v2, %v1825_v1 }
  0x9e   : > { %4811 = vmatprep.mubr.bf16.mxu1 %v866_v7 }
  0xa4   : > { %4760 = vmatmul.mubr.bf16.gmra.mxu0 %v866_v7 }
  0xa5   : > { %4812 = vmatmul.mubr.bf16.gmra.mxu1 %v1198_v12  ;;  %4763 = vmatprep.mubr.bf16.mxu0 %v1198_v12  ;;  %v1496_v12 = vld [vmem:[%s5332_s20 + $0x9c] sm:$0xff] }
  0xa6   : > { %4815 = vmatprep.mubr.bf16.mxu1 %v868_v13  ;;  %v1524_v20 = vpack.c.bf16 %v1496_v12, %v1495_v11 }
  0xac   : > { %4764 = vmatmul.mubr.bf16.gmra.mxu0 %v868_v13  ;;  %v1827_v13 = vld [vmem:[%s5332_s20 + $0x95] sm:$0xff] }
  0xad   : > { %4816 = vmatmul.mubr.bf16.gmra.mxu1 %v1200_v18  ;;  %4767 = vmatprep.mubr.bf16.mxu0 %v1200_v18  ;;  %v1830_v18 = vld [vmem:[%s5332_s20 + $0xad] sm:$0xff]  ;;  %v5670_v22 = vpack.c.bf16 %v1828_v14, %v1827_v13  ;;  %v1844_v13 = vld [vmem:[%s5332_s20 + $0x11d] sm:$0xff] }
  0xae   : > { %4819 = vmatprep.mubr.bf16.mxu1 %v870_v19  ;;  %v5672_v24 = vpack.c.bf16 %v1830_v18, %v1829_v17  ;;  %v1513_v14 = vld [vmem:[%s5332_s20 + $0x124] sm:$0xff]  ;;  %v1846_v18 = vld [vmem:[%s5332_s20 + $0x12d] sm:$0xff] }
  0xaf   : > { %v1845_v17 = vld [vmem:[%s5332_s20 + $0x125] sm:$0xff] }
  0xb4   : > { %4768 = vmatmul.mubr.bf16.gmra.mxu0 %v870_v19  ;;  %v5236_v19 = vld [vmem:[%s7221_s1 + $0x188] sm:$0xff]  }
  0xb5   : > { %4820 = vmatmul.mubr.bf16.gmra.mxu1 %v1202_v26  ;;  %4839 = vmatprep.mubr.bf16.mxu0 %v1517_v27  ;;  %v5239_v26 = vld [vmem:[%s7221_s1 + $0x1c0] sm:$0xff]   ;;  %v1499_v27 = vld [vmem:[%s5332_s20 + $0xb4] sm:$0xff] }
  0xb6   : > { %4891 = vmatprep.mubr.bf16.mxu1 %v1849_v28  ;;  %v1500_v28 = vld [vmem:[%s5332_s20 + $0xbc] sm:$0xff] }
  0xb7   : > { %v1526_v34 = vpack.c.bf16 %v1500_v28, %v1499_v27 }
  0xbc   : > { %4840 = vmatmul.mubr.bf16.vlgmr.msra.gmra.mxu0 %v1518_v37  ;;  %v5695_v37 = vpack.c.bf16 %v1832_v30, %v1831_v29  ;;  %v5746_v29 = vpack.c.bf16 %v1846_v18, %v1845_v17 }
  0xbd   : > { %4892 = vmatmul.mubr.bf16.vlgmr.msra.gmra.mxu1 %v5590_v38  ;;  %4843 = vmatprep.mubr.bf16.mxu0 %v1519_v39  ;;  %v1527_v39 = vpack.c.bf16 %v1502_v32, %v1501_v31 }
  0xbe   : > { %4895 = vmatprep.mubr.bf16.mxu1 %v5592_v40  ;;  %4928 = vmatpush3.bf16.msra.mxu0 %v5555_v62  ;;  %v1824_v62 = vld [vmem:[%s5332_s20 + $0x7d] sm:$0xff] }
  0xbf   : > { %4980 = vmatpush3.bf16.msra.mxu1 %v5560_v63  ;;  %4929 = vmatprep.subr.bf16.mxu0 %v5226_v41  ;;  %v1493_v63 = vld [vmem:[%s5332_s20 + $0x84] sm:$0xff]  ;;  %v5644_v6 = vpack.c.bf16 %v1824_v62, %v1823_v61  ;;  %v1510_v61 = vld [vmem:[%s5332_s20 + $0x10c] sm:$0xff] }
  0xc0   : > { %4981 = vmatprep.subr.bf16.mxu1 %v5227_v42  ;;  %v1523_v7 = vpack.c.bf16 %v1494_v0, %v1493_v63  ;;  %v1841_v62 = vld [vmem:[%s5332_s20 + $0x105] sm:$0xff]  ;;  %v1842_v63 = vld [vmem:[%s5332_s20 + $0x10d] sm:$0xff]  ;;  %v1531_v2 = vpack.c.bf16 %v1510_v61, %v1509_v60 }
  0xc2   : > { %4930 = vmatpush3.bf16.msra.mxu0 %v5226_v41  ;;  %v5697_v41 = vpack.c.bf16 %v1834_v35, %v1833_v33  ;;  %v1515_v35 = vld [vmem:[%s5332_s20 + $0x134] sm:$0xff] }
  0xc3   : > { %4982 = vmatpush3.bf16.msra.mxu1 %v5227_v42  ;;  %4931 = vmatprep.subr.bf16.mxu0 %v5228_v51  ;;  %v1503_v42 = vld [vmem:[%s5332_s20 + $0xd4] sm:$0xff] }
  0xc4   : > { %4844 = vmatmul.mubr.bf16.gmra.mxu0 %v1520_v52  ;;  %4983 = vmatprep.subr.bf16.mxu1 %v5229_v53  ;;  %v1528_v50 = vpack.c.bf16 %v1504_v43, %v1503_v42  ;;  %v1529_v52 = vpack.c.bf16 %v1506_v47, %v1505_v46  ;;  %v1847_v43 = vld [vmem:[%s5332_s20 + $0x135] sm:$0xff]  ;;  %v2478_v47 = vld [vmem:[%s5332_s20 + $0x3e] sm:$0xff] }
  0xc5   : > { %4896 = vmatmul.mubr.bf16.gmra.mxu1 %v5618_v54  ;;  %4847 = vmatprep.mubr.bf16.mxu0 %v1521_v55  ;;  %v1507_v55 = vld [vmem:[%s5332_s20 + $0xf4] sm:$0xff] }
  0xc6   : > { %4899 = vmatprep.mubr.bf16.mxu1 %v5620_v56  ;;  %4932 = vmatpush3.bf16.msra.mxu0 %v5228_v51  ;;  %v5710_v51 = vpack.c.bf16 %v1836_v45, %v1835_v44  ;;  %v1848_v44 = vld [vmem:[%s5332_s20 + $0x13d] sm:$0xff] }
  0xc7   : > { %4984 = vmatpush3.bf16.msra.mxu1 %v5229_v53  ;;  %4933 = vmatprep.subr.bf16.mxu0 %v5230_v57  ;;  %v5712_v53 = vpack.c.bf16 %v1838_v49, %v1837_v48  ;;  %v2477_v46 = vld [vmem:[%s5332_s20 + $0x36] sm:$0xff] }
  0xc8   : > { %4985 = vmatprep.subr.bf16.mxu1 %v5231_v58 }
  0xca   : > { %4934 = vmatpush3.bf16.msra.mxu0 %v5230_v57  ;;  %v1508_v57 = vld [vmem:[%s5332_s20 + $0xfc] sm:$0xff] }
  0xcb   : > { %4986 = vmatpush3.bf16.msra.mxu1 %v5231_v58  ;;  %4935 = vmatprep.subr.bf16.mxu0 %v5232_v3  ;;  %v1839_v58 = vld [vmem:[%s5332_s20 + $0xf5] sm:$0xff]  ;;  %v1530_v0 = vpack.c.bf16 %v1508_v57, %v1507_v55  ;;  %v5762_v55 = vpack.c.bf16 %v1848_v44, %v1847_v43 }
  0xcc   : > { %4848 = vmatmul.mubr.bf16.gmra.mxu0 %v1522_v4  ;;  %4987 = vmatprep.subr.bf16.mxu1 %v5233_v5  ;;  %v5724_v1 = vpack.c.bf16 %v1840_v59, %v1839_v58  ;;  %v2513_v59 = vpack.c.bf16 %v2478_v47, %v2477_v46 }
  0xcd   : > { %4900 = vmatmul.mubr.bf16.gmra.mxu1 %v5644_v6  ;;  %4851 = vmatprep.mubr.bf16.mxu0 %v1523_v7  ;;  %v1511_v7 = vld [vmem:[%s5332_s20 + $0x114] sm:$0xff] }
  0xce   : > { %4903 = vmatprep.mubr.bf16.mxu1 %v5646_v8  ;;  %4936 = vmatpush3.bf16.msra.mxu0 %v5232_v3  ;;  %v5726_v3 = vpack.c.bf16 %v1842_v63, %v1841_v62 }
  0xcf   : > { %4988 = vmatpush3.bf16.msra.mxu1 %v5233_v5  ;;  %4937 = vmatprep.subr.bf16.mxu0 %v5234_v9 }
  0xd0   : > { %4989 = vmatprep.subr.bf16.mxu1 %v5235_v10 }
  0xd2   : > { %4938 = vmatpush3.bf16.msra.mxu0 %v5234_v9  ;;  %v1512_v9 = vld [vmem:[%s5332_s20 + $0x11c] sm:$0xff] }
  0xd3   : > { %4990 = vmatpush3.bf16.msra.mxu1 %v5235_v10  ;;  %4939 = vmatprep.subr.bf16.mxu0 %v5236_v19  ;;  %v1843_v10 = vld [vmem:[%s5332_s20 + $0x115] sm:$0xff] }
  0xd4   : > { %4852 = vmatmul.mubr.bf16.gmra.mxu0 %v1524_v20  ;;  %4991 = vmatprep.subr.bf16.mxu1 %v5237_v21 }
  0xd5   : > { %4904 = vmatmul.mubr.bf16.gmra.mxu1 %v5670_v22  ;;  %4855 = vmatprep.mubr.bf16.mxu0 %v1525_v23 }
  0xd6   : > { %4907 = vmatprep.mubr.bf16.mxu1 %v5672_v24  ;;  %4940 = vmatpush3.bf16.msra.mxu0 %v5236_v19 }
  0xd7   : > { %4992 = vmatpush3.bf16.msra.mxu1 %v5237_v21  ;;  %4941 = vmatprep.subr.bf16.mxu0 %v5238_v25  ;;  %v1532_v21 = vpack.c.bf16 %v1512_v9, %v1511_v7  ;;  %v2481_v9 = vld [vmem:[%s5332_s20 + $0x56] sm:$0xff] }
  0xd8   : > { %4993 = vmatprep.subr.bf16.mxu1 %v5239_v26 }
  0xda   : > { %4942 = vmatpush3.bf16.msra.mxu0 %v5238_v25  ;;  %v5742_v25 = vpack.c.bf16 %v1844_v13, %v1843_v10  ;;  %v2482_v10 = vld [vmem:[%s5332_s20 + $0x5e] sm:$0xff] }
  0xdb   : > { %4994 = vmatpush3.bf16.msra.mxu1 %v5239_v26  ;;  %5031 = vmatprep.subr.bf16.mxu0 %v5693_v36  ;;  %v1533_v26 = vpack.c.bf16 %v1514_v15, %v1513_v14 }
  0xdc   : > { %4856 = vmatmul.mubr.bf16.gmra.mxu0 %v1526_v34  ;;  %v1516_v34 = vld [vmem:[%s5332_s20 + $0x13c] sm:$0xff] }
  0xdd   : > { %4908 = vmatmul.mubr.bf16.gmra.mxu1 %v5695_v37  ;;  %4859 = vmatprep.mubr.bf16.mxu0 %v1527_v39 }
  0xde   : > { %4911 = vmatprep.mubr.bf16.mxu1 %v5697_v41 }
  0xe4   : > { %4860 = vmatmul.mubr.bf16.gmra.mxu0 %v1528_v50  ;;  %v1534_v50 = vpack.c.bf16 %v1516_v34, %v1515_v35  ;;  %v2485_v34 = vld [vmem:[%s5332_s20 + $0x76] sm:$0xff] }
  0xe5   : > { %4912 = vmatmul.mubr.bf16.gmra.mxu1 %v5710_v51  ;;  %4863 = vmatprep.mubr.bf16.mxu0 %v1529_v52 }
  0xe6   : > { %4915 = vmatprep.mubr.bf16.mxu1 %v5712_v53 }
  0xec   : > { %v4633_v4 = vpop.f32.mrf.mxu0  ;;  %4864 = vmatmul.mubr.bf16.gmra.mxu0 %v1530_v0 }
  0xed   : > { %v4685_v5 = vpop.f32.mrf.mxu1  ;;  %4916 = vmatmul.mubr.bf16.gmra.mxu1 %v5724_v1  ;;  %4867 = vmatprep.mubr.bf16.mxu0 %v1531_v2 }
  0xee   : > { %v5732_v11 = vadd.f32 %v4685_v5, %v4633_v4  ;;  %v449_v12 = vpop.f32.mrf.mxu0  ;;  %4919 = vmatprep.mubr.bf16.mxu1 %v5726_v3  ;;  %v2479_v4 = vld [vmem:[%s5332_s20 + $0x46] sm:$0xff]  ;;  %v2480_v5 = vld [vmem:[%s5332_s20 + $0x4e] sm:$0xff] }
  0xef   : > { %v674_v16 = vpop.f32.mrf.mxu1  ;;  %v2514_v15 = vpack.c.bf16 %v2480_v5, %v2479_v4  ;;  %v2489_v5 = vld [vmem:[%s5332_s20 + $0x96] sm:$0xff] }
  0xf0   : > { %v5740_v19 = vadd.f32 %v674_v16, %v449_v12  ;;  %v4634_v20 = vpop.f32.mrf.mxu0 }
  0xf1   : > { %v4686_v23 = vpop.f32.mrf.mxu1 }
  0xf2   : > { %v5744_v27 = vadd.f32 %v4686_v23, %v4634_v20  ;;  %v452_v28 = vpop.f32.mrf.mxu0  ;;  %v5241_v20 = vld [vmem:[%s7221_s1 + $0x230] sm:$0xff]  }
  0xf3   : > { %v677_v30 = vpop.f32.mrf.mxu1 }
  0xf4   : > { %v5748_v31 = vadd.f32 %v677_v30, %v452_v28  ;;  %v4637_v32 = vpop.f32.mrf.mxu0  ;;  %4868 = vmatmul.mubr.bf16.gmra.mxu0 %v1532_v21 }
  0xf5   : > { %v4689_v33 = vpop.f32.mrf.mxu1  ;;  %4920 = vmatmul.mubr.bf16.gmra.mxu1 %v5742_v25  ;;  %4871 = vmatprep.mubr.bf16.mxu0 %v1533_v26 }
  0xf6   : > { %v5753_v39 = vadd.f32 %v4689_v33, %v4637_v32  ;;  %v465_v42 = vpop.f32.mrf.mxu0  ;;  %4923 = vmatprep.mubr.bf16.mxu1 %v5746_v29  ;;  %v2483_v32 = vld [vmem:[%s5332_s20 + $0x66] sm:$0xff]  ;;  %v2484_v33 = vld [vmem:[%s5332_s20 + $0x6e] sm:$0xff] }
  0xf7   : > { %v690_v45 = vpop.f32.mrf.mxu1 }
  0xf8   : > { %v5760_v48 = vadd.f32 %v690_v45, %v465_v42  ;;  %v4638_v49 = vpop.f32.mrf.mxu0  ;;  %v2486_v42 = vld [vmem:[%s5332_s20 + $0x7e] sm:$0xff]  ;;  %v2516_v45 = vpack.c.bf16 %v2484_v33, %v2483_v32  ;;  %v2491_v33 = vld [vmem:[%s5332_s20 + $0xa6] sm:$0xff] }
  0xf9   : > { %v4690_v52 = vpop.f32.mrf.mxu1 }
  0xfa   : > { %v5764_v57 = vadd.f32 %v4690_v52, %v4638_v49  ;;  %v468_v58 = vpop.f32.mrf.mxu0  ;;  %v2517_v49 = vpack.c.bf16 %v2486_v42, %v2485_v34  ;;  %v2493_v42 = vld [vmem:[%s5332_s20 + $0xb6] sm:$0xff] }
  0xfb   : > { %v693_v60 = vpop.f32.mrf.mxu1 }
  0xfc   : > { %v5766_v61 = vadd.f32 %v693_v60, %v468_v58  ;;  %v4641_v62 = vpop.f32.mrf.mxu0  ;;  %4872 = vmatmul.mubr.bf16.gmra.mxu0 %v1534_v50  ;;  %v5243_v50 = vld [vmem:[%s7221_s1 + $0x220] sm:$0xff]  }
  0xfd   : > { %v4693_v63 = vpop.f32.mrf.mxu1  ;;  %4924 = vmatmul.mubr.bf16.gmra.mxu1 %v5762_v55  ;;  %4943 = vmatprep.mubr.bf16.mxu0 %v5590_v38  ;;  %v2515_v38 = vpack.c.bf16 %v2482_v10, %v2481_v9  ;;  %v5244_v9 = vld [vmem:[%s7221_s1 + $0x218] sm:$0xff]  }
  0xfe   : > { %v5770_v0 = vadd.f32 %v4693_v63, %v4641_v62  ;;  %v481_v2 = vpop.f32.mrf.mxu0  ;;  %4995 = vmatprep.mubr.bf16.mxu1 %v2513_v59  ;;  %v2487_v63 = vld [vmem:[%s5332_s20 + $0x86] sm:$0xff] }
  0xff   : > { %v706_v7 = vpop.f32.mrf.mxu1 }
 0x100   : > { %v5776_v12 = vadd.f32 %v706_v7, %v481_v2  ;;  %v4642_v13 = vpop.f32.mrf.mxu0  ;;  %v2488_v2 = vld [vmem:[%s5332_s20 + $0x8e] sm:$0xff]  ;;  %v2490_v7 = vld [vmem:[%s5332_s20 + $0x9e] sm:$0xff] }
 0x101   : > { %v4694_v14 = vpop.f32.mrf.mxu1 }
 0x102   : > { %v5778_v16 = vadd.f32 %v4694_v14, %v4642_v13  ;;  %v484_v17 = vpop.f32.mrf.mxu0 }
 0x103   : > { %v709_v18 = vpop.f32.mrf.mxu1 }
 0x104   : > { %v5783_v21 = vadd.f32 %v709_v18, %v484_v17  ;;  %v4645_v23 = vpop.f32.mrf.mxu0  ;;  %4944 = vmatmul.mubr.bf16.vlgmr.msra.gmra.mxu0 %v5592_v40  ;;  %v5242_v40 = vld [vmem:[%s7221_s1 + $0x228] sm:$0xff]   ;;  %v2519_v17 = vpack.c.bf16 %v2490_v7, %v2489_v5  ;;  %v5245_v18 = vld [vmem:[%s7221_s1 + $0x210] sm:$0xff]  }
 0x105   : > { %v4697_v26 = vpop.f32.mrf.mxu1  ;;  %4996 = vmatmul.mubr.bf16.vlgmr.msra.gmra.mxu1 %v2514_v15  ;;  %4947 = vmatprep.mubr.bf16.mxu0 %v5618_v54  ;;  %v2495_v5 = vld [vmem:[%s5332_s20 + $0xc6] sm:$0xff]  ;;  %v2496_v7 = vld [vmem:[%s5332_s20 + $0xce] sm:$0xff] }
 0x106   : > { %v5787_v28 = vadd.f32 %v4697_v26, %v4645_v23  ;;  %v497_v30 = vpop.f32.mrf.mxu0  ;;  %4999 = vmatprep.mubr.bf16.mxu1 %v2515_v38  ;;  %5032 = vmatpush3.bf16.msra.mxu0 %v5693_v36 }
 0x107   : > { %v722_v35 = vpop.f32.mrf.mxu1  ;;  %5033 = vmatprep.subr.bf16.mxu0 %v5241_v20 }
 0x108   : > { %v5797_v43 = vadd.f32 %v722_v35, %v497_v30  ;;  %v4646_v44 = vpop.f32.mrf.mxu0  ;;  %v2492_v35 = vld [vmem:[%s5332_s20 + $0xae] sm:$0xff] }
 0x109   : > { %v4698_v54 = vpop.f32.mrf.mxu1 }
 0x10a   : > { %v5799_v46 = vadd.f32 %v4698_v54, %v4646_v44  ;;  %v500_v47 = vpop.f32.mrf.mxu0  ;;  %5034 = vmatpush3.bf16.msra.mxu0 %v5241_v20  ;;  %v5246_v44 = vld [vmem:[%s7221_s1 + $0x208] sm:$0xff]  }
 0x10b   : > { %v725_v36 = vpop.f32.mrf.mxu1  ;;  %5035 = vmatprep.subr.bf16.mxu0 %v5242_v40 }
 0x10c   : > { %v5804_v52 = vadd.f32 %v725_v36, %v500_v47  ;;  %v4649_v58 = vpop.f32.mrf.mxu0  ;;  %4948 = vmatmul.mubr.bf16.gmra.mxu0 %v5620_v56 }
 0x10d   : > { %v4701_v59 = vpop.f32.mrf.mxu1  ;;  %5000 = vmatmul.mubr.bf16.gmra.mxu1 %v2516_v45  ;;  %4951 = vmatprep.mubr.bf16.mxu0 %v5644_v6  ;;  %v2518_v6 = vpack.c.bf16 %v2488_v2, %v2487_v63 }
 0x10e   : > { %v5808_v60 = vadd.f32 %v4701_v59, %v4649_v58  ;;  %v513_v62 = vpop.f32.mrf.mxu0  ;;  %5003 = vmatprep.mubr.bf16.mxu1 %v2517_v49  ;;  %5036 = vmatpush3.bf16.msra.mxu0 %v5242_v40  ;;  %v2494_v40 = vld [vmem:[%s5332_s20 + $0xbe] sm:$0xff] }
 0x10f   : > { %v738_v4 = vpop.f32.mrf.mxu1  ;;  %5037 = vmatprep.subr.bf16.mxu0 %v5243_v50  ;;  %v2521_v36 = vpack.c.bf16 %v2494_v40, %v2493_v42  ;;  %v5247_v58 = vld [vmem:[%s7221_s1 + $0x200] sm:$0xff]   ;;  %v2500_v40 = vld [vmem:[%s5332_s20 + $0xee] sm:$0xff] }
 0x110   : > { %v5817_v56 = vadd.f32 %v738_v4, %v513_v62  ;;  %v4650_v10 = vpop.f32.mrf.mxu0  ;;  %v2499_v42 = vld [vmem:[%s5332_s20 + $0xe6] sm:$0xff] }
 0x111   : > { %v4702_v13 = vpop.f32.mrf.mxu1 }
 0x112   : > { %v5819_v14 = vadd.f32 %v4702_v13, %v4650_v10  ;;  %v516_v15 = vpop.f32.mrf.mxu0  ;;  %5038 = vmatpush3.bf16.msra.mxu0 %v5243_v50  ;;  %v2497_v10 = vld [vmem:[%s5332_s20 + $0xd6] sm:$0xff]  ;;  %v2498_v13 = vld [vmem:[%s5332_s20 + $0xde] sm:$0xff] }
 0x113   : > { %v741_v38 = vpop.f32.mrf.mxu1  ;;  %5039 = vmatprep.subr.bf16.mxu0 %v5244_v9 }
 0x114   : > { %v5824_v20 = vadd.f32 %v741_v38, %v516_v15  ;;  %v4653_v23 = vpop.f32.mrf.mxu0  ;;  %4952 = vmatmul.mubr.bf16.gmra.mxu0 %v5646_v8 }
 0x115   : > { %v4705_v26 = vpop.f32.mrf.mxu1  ;;  %5004 = vmatmul.mubr.bf16.gmra.mxu1 %v2518_v6  ;;  %4955 = vmatprep.mubr.bf16.mxu0 %v5670_v22  ;;  %v2520_v22 = vpack.c.bf16 %v2492_v35, %v2491_v33 }
 0x116   : > { %v5828_v30 = vadd.f32 %v4705_v26, %v4653_v23  ;;  %v529_v32 = vpop.f32.mrf.mxu0  ;;  %5007 = vmatprep.mubr.bf16.mxu1 %v2519_v17  ;;  %5040 = vmatpush3.bf16.msra.mxu0 %v5244_v9 }
 0x117   : > { %v754_v34 = vpop.f32.mrf.mxu1  ;;  %5041 = vmatprep.subr.bf16.mxu0 %v5245_v18 }
 0x118   : > { %v5837_v8 = vadd.f32 %v754_v34, %v529_v32  ;;  %v4654_v54 = vpop.f32.mrf.mxu0 }
 0x119   : > { %v4706_v45 = vpop.f32.mrf.mxu1 }
 0x11a   : > { %v5839_v47 = vadd.f32 %v4706_v45, %v4654_v54  ;;  %v532_v49 = vpop.f32.mrf.mxu0  ;;  %5042 = vmatpush3.bf16.msra.mxu0 %v5245_v18  ;;  %v2523_v18 = vpack.c.bf16 %v2498_v13, %v2497_v10  ;;  %v2501_v54 = vld [vmem:[%s5332_s20 + $0xf6] sm:$0xff]  ;;  %v2502_v45 = vld [vmem:[%s5332_s20 + $0xfe] sm:$0xff]  ;;  %v2503_v10 = vld [vmem:[%s5332_s20 + $0x106] sm:$0xff] }
 0x11b   : > { %v757_v50 = vpop.f32.mrf.mxu1  ;;  %5043 = vmatprep.subr.bf16.mxu0 %v5246_v44  ;;  %v2504_v13 = vld [vmem:[%s5332_s20 + $0x10e] sm:$0xff] }
 0x11c   : > { %v5844_v59 = vadd.f32 %v757_v50, %v532_v49  ;;  %v4657_v62 = vpop.f32.mrf.mxu0  ;;  %4956 = vmatmul.mubr.bf16.gmra.mxu0 %v5672_v24  ;;  %v2522_v24 = vpack.c.bf16 %v2496_v7, %v2495_v5 }
 0x11d   : > { %v4709_v63 = vpop.f32.mrf.mxu1  ;;  %5008 = vmatmul.mubr.bf16.gmra.mxu1 %v2520_v22  ;;  %4959 = vmatprep.mubr.bf16.mxu0 %v5695_v37 }
 0x11e   : > { %v5848_v2 = vadd.f32 %v4709_v63, %v4657_v62  ;;  %v545_v4 = vpop.f32.mrf.mxu0  ;;  %5011 = vmatprep.mubr.bf16.mxu1 %v2521_v36  ;;  %5044 = vmatpush3.bf16.msra.mxu0 %v5246_v44 }
 0x11f   : > { %v770_v9 = vpop.f32.mrf.mxu1  ;;  %5045 = vmatprep.subr.bf16.mxu0 %v5247_v58 }
 0x120   : > { %v5854_v6 = vadd.f32 %v770_v9, %v545_v4  ;;  %v4658_v15 = vpop.f32.mrf.mxu0 }
 0x121   : > { %v4710_v17 = vpop.f32.mrf.mxu1 }
 0x122   : > { %v5856_v38 = vadd.f32 %v4710_v17, %v4658_v15  ;;  %v548_v37 = vpop.f32.mrf.mxu0  ;;  %5046 = vmatpush3.bf16.msra.mxu0 %v5247_v58  ;;  %v2525_v58 = vpack.c.bf16 %v2502_v45, %v2501_v54  ;;  %v2505_v17 = vld [vmem:[%s5332_s20 + $0x116] sm:$0xff]  ;;  %v2507_v54 = vld [vmem:[%s5332_s20 + $0x126] sm:$0xff]  ;;  %v2508_v45 = vld [vmem:[%s5332_s20 + $0x12e] sm:$0xff] }
 0x123   : > { %v773_v23 = vpop.f32.mrf.mxu1 }
 0x124   : > { %v5858_v26 = vadd.f32 %v773_v23, %v548_v37  ;;  %v4661_v32 = vpop.f32.mrf.mxu0  ;;  %4960 = vmatmul.mubr.bf16.gmra.mxu0 %v5697_v41  ;;  %v2524_v41 = vpack.c.bf16 %v2500_v40, %v2499_v42 }
 0x125   : > { %v4713_v33 = vpop.f32.mrf.mxu1  ;;  %5012 = vmatmul.mubr.bf16.gmra.mxu1 %v2522_v24  ;;  %4963 = vmatprep.mubr.bf16.mxu0 %v5710_v51  ;;  %v2506_v24 = vld [vmem:[%s5332_s20 + $0x11e] sm:$0xff] }
 0x126   : > { %v5862_v35 = vadd.f32 %v4713_v33, %v4661_v32  ;;  %v561_v34 = vpop.f32.mrf.mxu0  ;;  %5015 = vmatprep.mubr.bf16.mxu1 %v2523_v18 }
 0x127   : > { %v786_v44 = vpop.f32.mrf.mxu1 }
 0x128   : > { %v5868_v22 = vadd.f32 %v786_v44, %v561_v34  ;;  %v4662_v49 = vpop.f32.mrf.mxu0 }
 0x129   : > { %v4714_v36 = vpop.f32.mrf.mxu1 }
 0x12a   : > { %v5870_v50 = vadd.f32 %v4714_v36, %v4662_v49  ;;  %v564_v51 = vpop.f32.mrf.mxu0 }
 0x12b   : > { %v789_v62 = vpop.f32.mrf.mxu1 }
 0x12c   : > { %v5872_v63 = vadd.f32 %v789_v62, %v564_v51  ;;  %v4665_v4 = vpop.f32.mrf.mxu0  ;;  %4964 = vmatmul.mubr.bf16.gmra.mxu0 %v5712_v53  ;;  %v2526_v53 = vpack.c.bf16 %v2504_v13, %v2503_v10  ;;  %v2509_v51 = vld [vmem:[%s5332_s20 + $0x136] sm:$0xff]  ;;  %v2528_v62 = vpack.c.bf16 %v2508_v45, %v2507_v54 }
 0x12d   : > { %v4717_v5 = vpop.f32.mrf.mxu1  ;;  %5016 = vmatmul.mubr.bf16.gmra.mxu1 %v2524_v41  ;;  %4967 = vmatprep.mubr.bf16.mxu0 %v5724_v1  ;;  %v2527_v1 = vpack.c.bf16 %v2506_v24, %v2505_v17 }
 0x12e   : > { %v5876_v7 = vadd.f32 %v4717_v5, %v4665_v4  ;;  %v5878_v9 = vpop.f32.mrf.mxu0  ;;  %5019 = vmatprep.mubr.bf16.mxu1 %v2525_v58  ;;  %v2510_v58 = vld [vmem:[%s5332_s20 + $0x13e] sm:$0xff] }
 0x12f   : > { %v5882_v15 = vpop.f32.mrf.mxu1  ;;  %v2529_v5 = vpack.c.bf16 %v2510_v58, %v2509_v51 }
 0x130   : > { %v4666_v37 = vpop.f32.mrf.mxu0 }
 0x131   : > { %v4718_v18 = vpop.f32.mrf.mxu1 }
 0x132   : > { %v5886_v23 = vadd.f32 %v4718_v18, %v4666_v37  ;;  %v5888_v32 = vpop.f32.mrf.mxu0  ;;  %v2179_v37 = vld [vmem:[%s5332_s20 + $0x145] sm:$0xff]  ;;  %v2180_v18 = vld [vmem:[%s5332_s20 + $0x14d] sm:$0xff] }
 0x133   : > { %v5890_v33 = vpop.f32.mrf.mxu1  ;;  %v2198_v54 = vpack.c.bf16 %v2180_v18, %v2179_v37  ;;  %v2814_v37 = vld [vmem:[%s5332_s20 + $0x5f] sm:$0xff] }
 0x134   : > { %v4737_v34 = vpop.f32.mrf.mxu0  ;;  %4968 = vmatmul.mubr.bf16.gmra.mxu0 %v5726_v3 }
 0x135   : > { %v1115_v42 = vadd.f32 %v4737_v34, %v5732_v11  ;;  %v4789_v40 = vpop.f32.mrf.mxu1  ;;  %5020 = vmatmul.mubr.bf16.gmra.mxu1 %v2526_v53  ;;  %4971 = vmatprep.mubr.bf16.mxu0 %v5742_v25  ;;  %v2511_v53 = vld [vmem:[%s5332_s20 + $0x146] sm:$0xff]  ;;  %v2809_v34 = vld [vmem:[%s5332_s20 + $0x37] sm:$0xff] }
 0x136   : > { %v970_v44 = vpop.f32.mrf.mxu0  ;;  %5023 = vmatprep.mubr.bf16.mxu1 %v2527_v1 }
 0x137   : > { %v5898_v49 = vadd.f32 %v970_v44, %v5740_v19  ;;  %v5900_v36 = vadd.f32 %v4789_v40, %v1115_v42  ;;  %v5902_v41 = vpop.f32.mrf.mxu1  ;;  %v2810_v42 = vld [vmem:[%s5332_s20 + $0x3f] sm:$0xff] }
 0x138   : > { %7238 = vst [vmem:[#allocation3_spill] sm:$0xff] %v5902_v41  ;;  %v4738_v3 = vpop.f32.mrf.mxu0  ;;  %v2845_v58 = vpack.c.bf16 %v2810_v42, %v2809_v34 }
 0x139   : > { %7237 = vst [vmem:[#allocation2_spill] sm:$0xff] %v5898_v49  ;;  %v1116_v11 = vadd.f32 %v4738_v3, %v5744_v27  ;;  %v4790_v25 = vpop.f32.mrf.mxu1  ;;  %v2839_v49 = vld [vmem:[%s5332_s20 + $0x127] sm:$0xff] }
 0x13a   : > { %v973_v4 = vpop.f32.mrf.mxu0 }
 0x13b   : > { %v5908_v19 = vadd.f32 %v973_v4, %v5748_v31  ;;  %v5910_v10 = vadd.f32 %v4790_v25, %v1116_v11  ;;  %v5912_v13 = vpop.f32.mrf.mxu1  ;;  %v2512_v31 = vld [vmem:[%s5332_s20 + $0x14e] sm:$0xff] }
 0x13c   : > { %7240 = vst [vmem:[#allocation5_spill] sm:$0xff] %v5912_v13  ;;  %v4741_v17 = vpop.f32.mrf.mxu0  ;;  %4972 = vmatmul.mubr.bf16.gmra.mxu0 %v5746_v29  ;;  %v2530_v51 = vpack.c.bf16 %v2512_v31, %v2511_v53 }
 0x13d   : > { %7239 = vst [vmem:[#allocation4_spill] sm:$0xff] %v5908_v19  ;;  %v1119_v27 = vadd.f32 %v4741_v17, %v5753_v39  ;;  %v4793_v24 = vpop.f32.mrf.mxu1  ;;  %5024 = vmatmul.mubr.bf16.gmra.mxu1 %v2528_v62  ;;  %4975 = vmatprep.mubr.bf16.mxu0 %v5762_v55  ;;  %v2812_v17 = vld [vmem:[%s5332_s20 + $0x4f] sm:$0xff] }
 0x13e   : > { %v986_v1 = vpop.f32.mrf.mxu0  ;;  %5027 = vmatprep.mubr.bf16.mxu1 %v2529_v5 }
 0x13f   : > { %v5924_v40 = vadd.f32 %v986_v1, %v5760_v48  ;;  %v5926_v44 = vadd.f32 %v4793_v24, %v1119_v27  ;;  %v5928_v29 = vpop.f32.mrf.mxu1  ;;  %v2813_v24 = vld [vmem:[%s5332_s20 + $0x57] sm:$0xff] }
 0x140   : > { %7242 = vst [vmem:[#allocation7_spill] sm:$0xff] %v5928_v29  ;;  %v4742_v39 = vpop.f32.mrf.mxu0  ;;  %v2847_v42 = vpack.c.bf16 %v2814_v37, %v2813_v24 }
 0x141   : > { %7241 = vst [vmem:[#allocation6_spill] sm:$0xff] %v5924_v40  ;;  %v1120_v55 = vadd.f32 %v4742_v39, %v5764_v57  ;;  %v4794_v45 = vpop.f32.mrf.mxu1  ;;  %v2811_v57 = vld [vmem:[%s5332_s20 + $0x47] sm:$0xff]  ;;  %v2834_v40 = vld [vmem:[%s5332_s20 + $0xff] sm:$0xff] }
 0x142   : > { %v989_v3 = vpop.f32.mrf.mxu0  ;;  %v2846_v31 = vpack.c.bf16 %v2812_v17, %v2811_v57 }
 0x143   : > { %v5932_v11 = vadd.f32 %v989_v3, %v5766_v61  ;;  %v5934_v48 = vadd.f32 %v4794_v45, %v1120_v55  ;;  %v5936_v25 = vpop.f32.mrf.mxu1  ;;  %v2815_v3 = vld [vmem:[%s5332_s20 + $0x67] sm:$0xff] }
 0x144   : > { %7244 = vst [vmem:[#allocation9_spill] sm:$0xff] %v5936_v25  ;;  %v4745_v62 = vpop.f32.mrf.mxu0  ;;  %4976 = vmatmul.mubr.bf16.gmra.mxu0 %v2198_v54 }
 0x145   : > { %7243 = vst [vmem:[#allocation8_spill] sm:$0xff] %v5932_v11  ;;  %v1123_v4 = vadd.f32 %v4745_v62, %v5770_v0  ;;  %v4797_v5 = vpop.f32.mrf.mxu1  ;;  %5028 = vmatmul.mubr.bf16.gmra.mxu1 %v2530_v51  ;;  %5047 = vmatprep.mubr.bf16.mxu0 %v2845_v58  ;;  %v2816_v62 = vld [vmem:[%s5332_s20 + $0x6f] sm:$0xff]  ;;  %v2830_v11 = vld [vmem:[%s5332_s20 + $0xdf] sm:$0xff] }
 0x146   : > { %v1002_v27 = vpop.f32.mrf.mxu0  ;;  %v2848_v24 = vpack.c.bf16 %v2816_v62, %v2815_v3  ;;  %v2821_v3 = vld [vmem:[%s5332_s20 + $0x97] sm:$0xff]  ;;  %v2822_v62 = vld [vmem:[%s5332_s20 + $0x9f] sm:$0xff] }
 0x147   : > { %v5944_v18 = vadd.f32 %v1002_v27, %v5776_v12  ;;  %v5946_v61 = vadd.f32 %v4797_v5, %v1123_v4  ;;  %v5948_v53 = vpop.f32.mrf.mxu1  ;;  %v2817_v4 = vld [vmem:[%s5332_s20 + $0x77] sm:$0xff]  ;;  %v2818_v5 = vld [vmem:[%s5332_s20 + $0x7f] sm:$0xff] }
 0x148   : > { %v4746_v1 = vpop.f32.mrf.mxu0 }
 0x149   : > { %v1124_v0 = vadd.f32 %v4746_v1, %v5778_v16  ;;  %v4798_v34 = vpop.f32.mrf.mxu1  ;;  %v2849_v1 = vpack.c.bf16 %v2818_v5, %v2817_v4 }
 0x14a   : > { %v1005_v39 = vpop.f32.mrf.mxu0 }
 0x14b   : > { %v5952_v54 = vadd.f32 %v1005_v39, %v5783_v21  ;;  %v5954_v12 = vadd.f32 %v4798_v34, %v1124_v0  ;;  %v5956_v55 = vpop.f32.mrf.mxu1 }
 0x14c   : > { %v4749_v45 = vpop.f32.mrf.mxu0  ;;  %5048 = vmatmul.mubr.bf16.vlgmr.msra.gmra.mxu0 %v2846_v31 }
 0x14d   : > { %v1127_v51 = vadd.f32 %v4749_v45, %v5787_v28  ;;  %v4801_v58 = vpop.f32.mrf.mxu1  ;;  %5051 = vmatprep.mubr.bf16.mxu0 %v2847_v42 }
 0x14e   : > { %v1018_v16 = vpop.f32.mrf.mxu0 }
 0x14f   : > { %v5964_v57 = vadd.f32 %v1018_v16, %v5797_v43  ;;  %v5966_v21 = vadd.f32 %v4801_v58, %v1127_v51  ;;  %v5968_v17 = vpop.f32.mrf.mxu1  ;;  %v2819_v51 = vld [vmem:[%s5332_s20 + $0x87] sm:$0xff]  ;;  %v2820_v58 = vld [vmem:[%s5332_s20 + $0x8f] sm:$0xff] }
 0x150   : > { %v4750_v27 = vpop.f32.mrf.mxu0 }
 0x151   : > { %v1128_v28 = vadd.f32 %v4750_v27, %v5799_v46  ;;  %v4802_v37 = vpop.f32.mrf.mxu1  ;;  %v2850_v27 = vpack.c.bf16 %v2820_v58, %v2819_v51  ;;  %v2823_v51 = vld [vmem:[%s5332_s20 + $0xa7] sm:$0xff]  ;;  %v2824_v58 = vld [vmem:[%s5332_s20 + $0xaf] sm:$0xff] }
 0x152   : > { %v1021_v31 = vpop.f32.mrf.mxu0 }
 0x153   : > { %v5972_v0 = vadd.f32 %v1021_v31, %v5804_v52  ;;  %v5974_v43 = vadd.f32 %v4802_v37, %v1128_v28  ;;  %v5976_v34 = vpop.f32.mrf.mxu1  ;;  %v2851_v28 = vpack.c.bf16 %v2822_v62, %v2821_v3 }
 0x154   : > { %v4753_v42 = vpop.f32.mrf.mxu0  ;;  %5052 = vmatmul.mubr.bf16.gmra.mxu0 %v2848_v24 }
 0x155   : > { %v1131_v39 = vadd.f32 %v4753_v42, %v5808_v60  ;;  %v4805_v45 = vpop.f32.mrf.mxu1  ;;  %5055 = vmatprep.mubr.bf16.mxu0 %v2849_v1 }
 0x156   : > { %v1034_v46 = vpop.f32.mrf.mxu0 }
 0x157   : > { %v5984_v16 = vadd.f32 %v1034_v46, %v5817_v56  ;;  %v5986_v52 = vadd.f32 %v4805_v45, %v1131_v39  ;;  %v5988_v4 = vpop.f32.mrf.mxu1  ;;  %v2825_v46 = vld [vmem:[%s5332_s20 + $0xb7] sm:$0xff] }
 0x158   : > { %v4754_v5 = vpop.f32.mrf.mxu0 }
 0x159   : > { %v1132_v60 = vadd.f32 %v4754_v5, %v5819_v14  ;;  %v4806_v24 = vpop.f32.mrf.mxu1  ;;  %v2826_v5 = vld [vmem:[%s5332_s20 + $0xbf] sm:$0xff] }
 0x15a   : > { %v1037_v37 = vpop.f32.mrf.mxu0 }
 0x15b   : > { %v5992_v1 = vadd.f32 %v1037_v37, %v5824_v20  ;;  %v5994_v56 = vadd.f32 %v4806_v24, %v1132_v60  ;;  %v5996_v31 = vpop.f32.mrf.mxu1 }
 0x15c   : > { %v4757_v42 = vpop.f32.mrf.mxu0  ;;  %5056 = vmatmul.mubr.bf16.gmra.mxu0 %v2850_v27  ;;  %v2852_v27 = vpack.c.bf16 %v2824_v58, %v2823_v51  ;;  %v2827_v51 = vld [vmem:[%s5332_s20 + $0xc7] sm:$0xff]  ;;  %v2828_v58 = vld [vmem:[%s5332_s20 + $0xcf] sm:$0xff] }
 0x15d   : > { %v1135_v39 = vadd.f32 %v4757_v42, %v5828_v30  ;;  %v4809_v45 = vpop.f32.mrf.mxu1  ;;  %5059 = vmatprep.mubr.bf16.mxu0 %v2851_v28  ;;  %v2853_v28 = vpack.c.bf16 %v2826_v5, %v2825_v46 }
 0x15e   : > { %v1050_v14 = vpop.f32.mrf.mxu0 }
 0x15f   : > { %v6004_v3 = vadd.f32 %v1050_v14, %v5837_v8  ;;  %v6006_v20 = vadd.f32 %v4809_v45, %v1135_v39  ;;  %v6008_v62 = vpop.f32.mrf.mxu1 }
 0x160   : > { %v4758_v60 = vpop.f32.mrf.mxu0 }
 0x161   : > { %v1136_v30 = vadd.f32 %v4758_v60, %v5839_v47  ;;  %v4810_v24 = vpop.f32.mrf.mxu1  ;;  %v2829_v60 = vld [vmem:[%s5332_s20 + $0xd7] sm:$0xff] }
 0x162   : > { %v1053_v37 = vpop.f32.mrf.mxu0 }
 0x163   : > { %v6012_v42 = vadd.f32 %v1053_v37, %v5844_v59  ;;  %v6014_v8 = vadd.f32 %v4810_v24, %v1136_v30  ;;  %v6016_v39 = vpop.f32.mrf.mxu1 }
 0x164   : > { %v4761_v45 = vpop.f32.mrf.mxu0  ;;  %5060 = vmatmul.mubr.bf16.gmra.mxu0 %v2852_v27  ;;  %v2854_v27 = vpack.c.bf16 %v2828_v58, %v2827_v51  ;;  %v2831_v51 = vld [vmem:[%s5332_s20 + $0xe7] sm:$0xff]  ;;  %v2832_v58 = vld [vmem:[%s5332_s20 + $0xef] sm:$0xff] }
 0x165   : > { %v1139_v14 = vadd.f32 %v4761_v45, %v5848_v2  ;;  %v4813_v25 = vpop.f32.mrf.mxu1  ;;  %5063 = vmatprep.mubr.bf16.mxu0 %v2853_v28  ;;  %v2855_v28 = vpack.c.bf16 %v2830_v11, %v2829_v60 }
 0x166   : > { %v1066_v47 = vpop.f32.mrf.mxu0 }
 0x167   : > { %v6024_v46 = vadd.f32 %v1066_v47, %v5854_v6  ;;  %v6026_v59 = vadd.f32 %v4813_v25, %v1139_v14  ;;  %v6028_v5 = vpop.f32.mrf.mxu1 }
 0x168   : > { %v4762_v30 = vpop.f32.mrf.mxu0 }
 0x169   : > { %v1140_v2 = vadd.f32 %v4762_v30, %v5856_v38  ;;  %v4814_v24 = vpop.f32.mrf.mxu1  ;;  %v2833_v30 = vld [vmem:[%s5332_s20 + $0xf7] sm:$0xff] }
 0x16a   : > { %v1069_v37 = vpop.f32.mrf.mxu0 }
 0x16b   : > { %v6032_v45 = vadd.f32 %v1069_v37, %v5858_v26  ;;  %v6034_v6 = vadd.f32 %v4814_v24, %v1140_v2  ;;  %v6036_v25 = vpop.f32.mrf.mxu1 }
 0x16c   : > { %v4765_v14 = vpop.f32.mrf.mxu0  ;;  %5064 = vmatmul.mubr.bf16.gmra.mxu0 %v2854_v27  ;;  %v2856_v27 = vpack.c.bf16 %v2832_v58, %v2831_v51  ;;  %v2835_v51 = vld [vmem:[%s5332_s20 + $0x107] sm:$0xff]  ;;  %v2836_v58 = vld [vmem:[%s5332_s20 + $0x10f] sm:$0xff] }
 0x16d   : > { %v1143_v47 = vadd.f32 %v4765_v14, %v5862_v35  ;;  %v4817_v29 = vpop.f32.mrf.mxu1  ;;  %5067 = vmatprep.mubr.bf16.mxu0 %v2855_v28  ;;  %v2857_v28 = vpack.c.bf16 %v2834_v40, %v2833_v30  ;;  %v2838_v40 = vld [vmem:[%s5332_s20 + $0x11f] sm:$0xff] }
 0x16e   : > { %v1082_v38 = vpop.f32.mrf.mxu0 }
 0x16f   : > { %v6044_v11 = vadd.f32 %v1082_v38, %v5868_v22  ;;  %v6046_v26 = vadd.f32 %v4817_v29, %v1143_v47  ;;  %v6048_v60 = vpop.f32.mrf.mxu1 }
 0x170   : > { %v4766_v2 = vpop.f32.mrf.mxu0 }
 0x171   : > { %v1144_v35 = vadd.f32 %v4766_v2, %v5870_v50  ;;  %v4818_v24 = vpop.f32.mrf.mxu1  ;;  %v2837_v2 = vld [vmem:[%s5332_s20 + $0x117] sm:$0xff] }
 0x172   : > { %v1085_v37 = vpop.f32.mrf.mxu0 }
 0x173   : > { %v6052_v14 = vadd.f32 %v1085_v37, %v5872_v63  ;;  %v6054_v22 = vadd.f32 %v4818_v24, %v1144_v35  ;;  %v6056_v29 = vpop.f32.mrf.mxu1  ;;  %v2858_v24 = vpack.c.bf16 %v2836_v58, %v2835_v51  ;;  %v2841_v58 = vld [vmem:[%s5332_s20 + $0x137] sm:$0xff] }
 0x174   : > { %v4769_v47 = vpop.f32.mrf.mxu0  ;;  %5068 = vmatmul.mubr.bf16.gmra.mxu0 %v2856_v27 }
 0x175   : > { %v1147_v38 = vadd.f32 %v4769_v47, %v5876_v7  ;;  %v4821_v13 = vpop.f32.mrf.mxu1  ;;  %5071 = vmatprep.mubr.bf16.mxu0 %v2857_v28  ;;  %v2859_v28 = vpack.c.bf16 %v2838_v40, %v2837_v2 }
 0x176   : > { %v6061_v50 = vpop.f32.mrf.mxu0 }
 0x177   : > { %v6065_v30 = vadd.f32 %v4821_v13, %v1147_v38  ;;  %v6067_v63 = vpop.f32.mrf.mxu1 }
 0x178   : > { %v4770_v35 = vpop.f32.mrf.mxu0 }
 0x179   : > { %7245 = vst [vmem:[#allocation10_spill] sm:$0xff] %v6065_v30  ;;  %v1148_v7 = vadd.f32 %v4770_v35, %v5886_v23  ;;  %v4822_v27 = vpop.f32.mrf.mxu1  ;;  %v2840_v30 = vld [vmem:[%s5332_s20 + $0x12f] sm:$0xff]  ;;  %v2842_v23 = vld [vmem:[%s5332_s20 + $0x13f] sm:$0xff] }
 0x17a   : > { %v6070_v37 = vpop.f32.mrf.mxu0 }
 0x17b   : > { %v6072_v47 = vadd.f32 %v4822_v27, %v1148_v7  ;;  %v6074_v19 = vpop.f32.mrf.mxu1  ;;  %v2860_v7 = vpack.c.bf16 %v2840_v30, %v2839_v49 }
 0x17c   : > { %7247 = vst [vmem:[#allocation12_spill] sm:$0xff] %v6074_v19  ;;  %v4841_v41 = vpop.f32.mrf.mxu0  ;;  %5072 = vmatmul.mubr.bf16.gmra.mxu0 %v2858_v24 }
 0x17d   : > { %7246 = vst [vmem:[#allocation11_spill] sm:$0xff] %v6072_v47  ;;  %v1779_v13 = vadd.f32 %v4841_v41, %v5900_v36  ;;  %v4893_v38 = vpop.f32.mrf.mxu1  ;;  %5075 = vmatprep.mubr.bf16.mxu0 %v2859_v28  ;;  %v2861_v36 = vpack.c.bf16 %v2842_v23, %v2841_v58 }
 0x17e   : > { %v6079_v51 = vpop.f32.mrf.mxu0 }
 0x17f   : > { %7248 = vst [vmem:[#allocation13_spill] sm:$0xff] %v6079_v51  ;;  %v6083_v2 = vadd.f32 %v4893_v38, %v1779_v13  ;;  %v6085_v40 = vpop.f32.mrf.mxu1 }
 0x180   : > { %7250 = vst [vmem:[#allocation15_spill] sm:$0xff] %v6085_v40  ;;  %v4842_v35 = vpop.f32.mrf.mxu0  ;;  %v2844_v40 = vld [vmem:[%s5332_s20 + $0x14f] sm:$0xff] }
 0x181   : > { %7249 = vst [vmem:[#allocation14_spill] sm:$0xff] %v6083_v2  ;;  %v1780_v24 = vadd.f32 %v4842_v35, %v5910_v10  ;;  %v4894_v27 = vpop.f32.mrf.mxu1  ;;  %v2843_v2 = vld [vmem:[%s5332_s20 + $0x147] sm:$0xff] }
 0x182   : > { %v6088_v41 = vpop.f32.mrf.mxu0  ;;  %v2862_v58 = vpack.c.bf16 %v2844_v40, %v2843_v2 }
 0x183   : > { %v6090_v28 = vadd.f32 %v4894_v27, %v1780_v24  ;;  %v6092_v47 = vpop.f32.mrf.mxu1  ;;  %v1453_v27 = vadd.f32 %v5948_v53, %v5944_v18 }
 0x184   : > { %v4845_v51 = vpop.f32.mrf.mxu0  ;;  %5076 = vmatmul.mubr.bf16.gmra.mxu0 %v2860_v7 }
 0x185   : > { %v1783_v13 = vadd.f32 %v4845_v51, %v5926_v44  ;;  %v4897_v38 = vpop.f32.mrf.mxu1  ;;  %5079 = vmatprep.mubr.bf16.mxu0 %v2861_v36 }
 0x186   : > { %v6097_v19 = vpop.f32.mrf.mxu0 }
 0x187   : > { %v6099_v49 = vadd.f32 %v4897_v38, %v1783_v13  ;;  %v6101_v10 = vpop.f32.mrf.mxu1 }
 0x188   : > { %v4846_v30 = vpop.f32.mrf.mxu0 }
 0x189   : > { %7251 = vst [vmem:[#allocation16_spill] sm:$0xff] %v6099_v49  ;;  %v1784_v23 = vadd.f32 %v4846_v30, %v5934_v48  ;;  %v4898_v35 = vpop.f32.mrf.mxu1  ;;  %v1454_v30 = vadd.f32 %v5956_v55, %v5952_v54 }
 0x18a   : > { %v6104_v24 = vpop.f32.mrf.mxu0 }
 0x18b   : > { %v6106_v7 = vadd.f32 %v4898_v35, %v1784_v23  ;;  %v6108_v44 = vpop.f32.mrf.mxu1 }
 0x18c   : > { %7253 = vst [vmem:[#allocation18_spill] sm:$0xff] %v6108_v44  ;;  %v4849_v51 = vpop.f32.mrf.mxu0  ;;  %5080 = vmatmul.mubr.bf16.gmra.mxu0 %v2862_v58 }
 0x18d   : > { %7252 = vst [vmem:[#allocation17_spill] sm:$0xff] %v6106_v7  ;;  %v1787_v36 = vadd.f32 %v4849_v51, %v5946_v61  ;;  %v4901_v13 = vpop.f32.mrf.mxu1  ;;  %v1457_v51 = vadd.f32 %v5968_v17, %v5964_v57 }
 0x18e   : > { %v1666_v38 = vpop.f32.mrf.mxu0 }
 0x18f   : > { %v1785_v49 = vadd.f32 %v1666_v38, %v1453_v27  ;;  %v6113_v2 = vadd.f32 %v4901_v13, %v1787_v36  ;;  %v1998_v48 = vpop.f32.mrf.mxu1 }
 0x190   : > { %v4850_v40 = vpop.f32.mrf.mxu0 }
 0x191   : > { %v1788_v23 = vadd.f32 %v4850_v40, %v5954_v12  ;;  %v6118_v35 = vadd.f32 %v1998_v48, %v1785_v49  ;;  %v4902_v58 = vpop.f32.mrf.mxu1 }
 0x192   : > { %v1669_v7 = vpop.f32.mrf.mxu0 }
 0x193   : > { %v1786_v44 = vadd.f32 %v1669_v7, %v1454_v30  ;;  %v6120_v18 = vadd.f32 %v4902_v58, %v1788_v23  ;;  %v2001_v61 = vpop.f32.mrf.mxu1  ;;  %v1458_v7 = vadd.f32 %v5976_v34, %v5972_v0  ;;  %v1461_v58 = vadd.f32 %v5988_v4, %v5984_v16 }
 0x194   : > { %v4853_v53 = vpop.f32.mrf.mxu0 }
 0x195   : > { %v1791_v27 = vadd.f32 %v4853_v53, %v5966_v21  ;;  %v6125_v36 = vadd.f32 %v2001_v61, %v1786_v44  ;;  %v4905_v13 = vpop.f32.mrf.mxu1 }
 0x196   : > { %v1682_v54 = vpop.f32.mrf.mxu0 }
 0x197   : > { %v1789_v55 = vadd.f32 %v1682_v54, %v1457_v51  ;;  %v6127_v12 = vadd.f32 %v4905_v13, %v1791_v27  ;;  %v2014_v49 = vpop.f32.mrf.mxu1  ;;  %v1462_v54 = vadd.f32 %v5996_v31, %v5992_v1 }
 0x198   : > { %v4854_v38 = vpop.f32.mrf.mxu0 }
 0x199   : > { %v1792_v48 = vadd.f32 %v4854_v38, %v5974_v43  ;;  %v6132_v40 = vadd.f32 %v2014_v49, %v1789_v55  ;;  %v4906_v30 = vpop.f32.mrf.mxu1 }
 0x19a   : > { %v1685_v57 = vpop.f32.mrf.mxu0 }
 0x19b   : > { %v1790_v17 = vadd.f32 %v1685_v57, %v1458_v7  ;;  %v6134_v21 = vadd.f32 %v4906_v30, %v1792_v48  ;;  %v2017_v44 = vpop.f32.mrf.mxu1  ;;  %v1465_v30 = vadd.f32 %v6008_v62, %v6004_v3 }
 0x19c   : > { %v4857_v23 = vpop.f32.mrf.mxu0 }
 0x19d   : > { %v1795_v61 = vadd.f32 %v4857_v23, %v5986_v52  ;;  %v6139_v53 = vadd.f32 %v2017_v44, %v1790_v17  ;;  %v4909_v51 = vpop.f32.mrf.mxu1 }
 0x19e   : > { %v1698_v0 = vpop.f32.mrf.mxu0 }
 0x19f   : > { %v1793_v34 = vadd.f32 %v1698_v0, %v1461_v58  ;;  %v6141_v43 = vadd.f32 %v4909_v51, %v1795_v61  ;;  %v2030_v27 = vpop.f32.mrf.mxu1  ;;  %v1466_v61 = vadd.f32 %v6016_v39, %v6012_v42 }
 0x1a0   : > { %v4858_v13 = vpop.f32.mrf.mxu0 }
 0x1a1   : > { %v1796_v55 = vadd.f32 %v4858_v13, %v5994_v56  ;;  %v6146_v49 = vadd.f32 %v2030_v27, %v1793_v34  ;;  %v4910_v38 = vpop.f32.mrf.mxu1 }
 0x1a2   : > { %v1701_v16 = vpop.f32.mrf.mxu0 }
 0x1a3   : > { %v1794_v4 = vadd.f32 %v1701_v16, %v1462_v54  ;;  %v6148_v52 = vadd.f32 %v4910_v38, %v1796_v55  ;;  %v2033_v7 = vpop.f32.mrf.mxu1  ;;  %v1469_v54 = vadd.f32 %v6028_v5, %v6024_v46 }
 0x1a4   : > { %v4861_v48 = vpop.f32.mrf.mxu0 }
 0x1a5   : > { %v1799_v57 = vadd.f32 %v4861_v48, %v6006_v20  ;;  %v6153_v17 = vadd.f32 %v2033_v7, %v1794_v4  ;;  %v4913_v44 = vpop.f32.mrf.mxu1  ;;  %v1470_v48 = vadd.f32 %v6036_v25, %v6032_v45 }
 0x1a6   : > { %v1714_v1 = vpop.f32.mrf.mxu0 }
 0x1a7   : > { %v1797_v31 = vadd.f32 %v1714_v1, %v1465_v30  ;;  %v6155_v56 = vadd.f32 %v4913_v44, %v1799_v57  ;;  %v2046_v23 = vpop.f32.mrf.mxu1 }
 0x1a8   : > { %v4862_v58 = vpop.f32.mrf.mxu0 }
 0x1a9   : > { %v1800_v51 = vadd.f32 %v4862_v58, %v6014_v8  ;;  %v6160_v0 = vadd.f32 %v2046_v23, %v1797_v31  ;;  %v4914_v34 = vpop.f32.mrf.mxu1  ;;  %v1473_v23 = vadd.f32 %v6048_v60, %v6044_v11 }
 0x1aa   : > { %v1717_v3 = vpop.f32.mrf.mxu0 }
 0x1ab   : > { %v1798_v62 = vadd.f32 %v1717_v3, %v1466_v61  ;;  %v6162_v20 = vadd.f32 %v4914_v34, %v1800_v51  ;;  %v2049_v27 = vpop.f32.mrf.mxu1 }
 0x1ac   : > { %v4865_v13 = vpop.f32.mrf.mxu0 }
 0x1ad   : > { %v1803_v55 = vadd.f32 %v4865_v13, %v6026_v59  ;;  %v6167_v38 = vadd.f32 %v2049_v27, %v1798_v62  ;;  %v4917_v16 = vpop.f32.mrf.mxu1  ;;  %v1474_v27 = vadd.f32 %v6056_v29, %v6052_v14  ;;  %v7254_v29 = vld [vmem:[#allocation10_spill] sm:$0xff] }
 0x1ae   : > { %v1730_v42 = vpop.f32.mrf.mxu0 }
 0x1af   : > { %v1801_v39 = vadd.f32 %v1730_v42, %v1469_v54  ;;  %v6169_v8 = vadd.f32 %v4917_v16, %v1803_v55  ;;  %v2062_v4 = vpop.f32.mrf.mxu1  ;;  %v806_v55 = vadd.f32 %v5890_v33, %v5888_v32 }
 0x1b0   : > { %v4866_v7 = vpop.f32.mrf.mxu0 }
 0x1b1   : > { %v1804_v30 = vadd.f32 %v4866_v7, %v6034_v6  ;;  %v6174_v57 = vadd.f32 %v2062_v4, %v1801_v39  ;;  %v4918_v44 = vpop.f32.mrf.mxu1  ;;  %v803_v6 = vadd.f32 %v5882_v15, %v5878_v9  ;;  %v1146_v14 = vadd.f32 %v6070_v37, %v806_v55 }
 0x1b2   : > { %v1733_v46 = vpop.f32.mrf.mxu0 }
 0x1b3   : > { %v1802_v5 = vadd.f32 %v1733_v46, %v1470_v48  ;;  %v6176_v59 = vadd.f32 %v4918_v44, %v1804_v30  ;;  %v2065_v1 = vpop.f32.mrf.mxu1  ;;  %v1145_v13 = vadd.f32 %v6061_v50, %v803_v6  ;;  %v7255_v48 = vld [vmem:[#allocation2_spill] sm:$0xff]  ;;  %v7256_v30 = vld [vmem:[#allocation3_spill] sm:$0xff] }
 0x1b4   : > { %v4869_v31 = vpop.f32.mrf.mxu0  ;;  %v1445_v44 = vadd.f32 %v7256_v30, %v7255_v48 }
 0x1b5   : > { %v1807_v58 = vadd.f32 %v4869_v31, %v6046_v26  ;;  %v6181_v61 = vadd.f32 %v2065_v1, %v1802_v5  ;;  %v4921_v51 = vpop.f32.mrf.mxu1  ;;  %v1477_v39 = vadd.f32 %v6067_v63, %v1145_v13  ;;  %v7257_v1 = vld [vmem:[#allocation12_spill] sm:$0xff] }
 0x1b6   : > { %v1746_v45 = vpop.f32.mrf.mxu0  ;;  %v1478_v31 = vadd.f32 %v7257_v1, %v1146_v14 }
 0x1b7   : > { %v1805_v25 = vadd.f32 %v1746_v45, %v1473_v23  ;;  %v6185_v34 = vadd.f32 %v4921_v51, %v1807_v58  ;;  %v2078_v3 = vpop.f32.mrf.mxu1  ;;  %v7258_v23 = vld [vmem:[#allocation13_spill] sm:$0xff]  ;;  %v7259_v58 = vld [vmem:[#allocation11_spill] sm:$0xff] }
 0x1b8   : > { %v4870_v62 = vpop.f32.mrf.mxu0  ;;  %v1777_v63 = vadd.f32 %v7258_v23, %v1445_v44 }
 0x1b9   : > { %v1808_v11 = vadd.f32 %v4870_v62, %v6054_v22  ;;  %v6191_v26 = vadd.f32 %v2078_v3, %v1805_v25  ;;  %v4922_v60 = vpop.f32.mrf.mxu1  ;;  %v7260_v25 = vld [vmem:[#allocation4_spill] sm:$0xff]  ;;  %v7261_v3 = vld [vmem:[#allocation5_spill] sm:$0xff] }
 0x1ba   : > { %v1749_v54 = vpop.f32.mrf.mxu0  ;;  %v1446_v62 = vadd.f32 %v7261_v3, %v7260_v25 }
 0x1bb   : > { %v1806_v9 = vadd.f32 %v1749_v54, %v1474_v27  ;;  %v6195_v15 = vadd.f32 %v4922_v60, %v1808_v11  ;;  %v2081_v16 = vpop.f32.mrf.mxu1  ;;  %v7262_v54 = vld [vmem:[#allocation15_spill] sm:$0xff] }
 0x1bc   : > { %v4873_v42 = vpop.f32.mrf.mxu0  ;;  %v2109_v55 = vadd.f32 %v7262_v54, %v1777_v63  ;;  %v7266_v63 = vld [vmem:[#allocation8_spill] sm:$0xff] }
 0x1bd   : > { %v1811_v50 = vadd.f32 %v4873_v42, %v7254_v29  ;;  %v6200_v4 = vadd.f32 %v2081_v16, %v1806_v9  ;;  %v4925_v22 = vpop.f32.mrf.mxu1  ;;  %v1778_v9 = vadd.f32 %v6088_v41, %v1446_v62  ;;  %v7263_v42 = vld [vmem:[#allocation14_spill] sm:$0xff] }
 0x1be   : > { %v1762_v7 = vpop.f32.mrf.mxu0 }
 0x1bf   : > { %v1809_v46 = vadd.f32 %v1762_v7, %v1477_v39  ;;  %v6204_v32 = vadd.f32 %v4925_v22, %v1811_v50  ;;  %v2094_v33 = vpop.f32.mrf.mxu1  ;;  %v7264_v50 = vld [vmem:[#allocation6_spill] sm:$0xff]  ;;  %v7265_v22 = vld [vmem:[#allocation7_spill] sm:$0xff] }
 0x1c0   : > { %v4874_v5 = vpop.f32.mrf.mxu0  ;;  %v1449_v7 = vadd.f32 %v7265_v22, %v7264_v50 }
 0x1c1   : > { %v1812_v37 = vadd.f32 %v4874_v5, %v7259_v58  ;;  %v6209_v51 = vadd.f32 %v2094_v33, %v1809_v46  ;;  %v4926_v45 = vpop.f32.mrf.mxu1  ;;  %v2110_v33 = vadd.f32 %v6092_v47, %v1778_v9  ;;  %v7267_v58 = vld [vmem:[#allocation9_spill] sm:$0xff] }
 0x1c2   : > { %v1765_v6 = vpop.f32.mrf.mxu0  ;;  %v1781_v5 = vadd.f32 %v6097_v19, %v1449_v7 }
 0x1c3   : > { %v1810_v27 = vadd.f32 %v1765_v6, %v1478_v31  ;;  %v6213_v13 = vadd.f32 %v4926_v45, %v1812_v37  ;;  %v2097_v11 = vpop.f32.mrf.mxu1  ;;  %v1450_v37 = vadd.f32 %v7267_v58, %v7266_v63 }
 0x1c4   : > { %v4945_v60 = vpop.f32.mrf.mxu0  ;;  %v2113_v62 = vadd.f32 %v6101_v10, %v1781_v5 }
 0x1c5   : > { %v6217_v16 = vadd.f32 %v2097_v11, %v1810_v27  ;;  %v2443_v39 = vadd.f32 %v4945_v60, %v7263_v42  ;;  %v4997_v14 = vpop.f32.mrf.mxu1  ;;  %v1782_v47 = vadd.f32 %v6104_v24, %v1450_v37  ;;  %v7268_v27 = vld [vmem:[#allocation16_spill] sm:$0xff] }
 0x1c6   : > { %v2298_v29 = vpop.f32.mrf.mxu0 }
 0x1c7   : > { %v2441_v48 = vadd.f32 %v2298_v29, %v2109_v55  ;;  %v6222_v30 = vadd.f32 %v4997_v14, %v2443_v39  ;;  %v2630_v44 = vpop.f32.mrf.mxu1  ;;  %v7269_v39 = vld [vmem:[#allocation18_spill] sm:$0xff]  ;;  %v7270_v29 = vld [vmem:[#allocation17_spill] sm:$0xff] }
 0x1c8   : > { %v4946_v46 = vpop.f32.mrf.mxu0  ;;  %v2114_v14 = vadd.f32 %v7269_v39, %v1782_v47 }
 0x1c9   : > { %v2444_v41 = vadd.f32 %v4946_v46, %v6090_v28  ;;  %v6227_v1 = vadd.f32 %v2630_v44, %v2441_v48  ;;  %v4998_v31 = vpop.f32.mrf.mxu1 }
 0x1ca   : > { %v2301_v23 = vpop.f32.mrf.mxu0 }
 0x1cb   : > { %v2442_v45 = vadd.f32 %v2301_v23, %v2110_v33  ;;  %v6231_v6 = vadd.f32 %v4998_v31, %v2444_v41  ;;  %v2633_v25 = vpop.f32.mrf.mxu1 }
 0x1cc   : > { %v4949_v3 = vpop.f32.mrf.mxu0 }
 0x1cd   : > { %v2447_v19 = vadd.f32 %v4949_v3, %v7268_v27  ;;  %v6236_v11 = vadd.f32 %v2633_v25, %v2442_v45  ;;  %v5001_v28 = vpop.f32.mrf.mxu1 }
 0x1ce   : > { %v2314_v60 = vpop.f32.mrf.mxu0 }
 0x1cf   : > { %v2445_v54 = vadd.f32 %v2314_v60, %v2113_v62  ;;  %v6238_v55 = vadd.f32 %v5001_v28, %v2447_v19  ;;  %v2646_v9 = vpop.f32.mrf.mxu1 }
 0x1d0   : > { %v4950_v42 = vpop.f32.mrf.mxu0 }
 0x1d1   : > { %v2448_v50 = vadd.f32 %v4950_v42, %v7270_v29  ;;  %v6242_v22 = vadd.f32 %v2646_v9, %v2445_v54  ;;  %v5002_v10 = vpop.f32.mrf.mxu1 }
 0x1d2   : > { %v2317_v7 = vpop.f32.mrf.mxu0 }
 0x1d3   : > { %v2446_v24 = vadd.f32 %v2317_v7, %v2114_v14  ;;  %v6244_v48 = vadd.f32 %v5002_v10, %v2448_v50  ;;  %v2649_v44 = vpop.f32.mrf.mxu1 }
 0x1d4   : > { %v4953_v46 = vpop.f32.mrf.mxu0 }
 0x1d5   : > { %v2451_v33 = vadd.f32 %v4953_v46, %v6113_v2  ;;  %v6247_v5 = vadd.f32 %v2649_v44, %v2446_v24  ;;  %v5005_v41 = vpop.f32.mrf.mxu1 }
 0x1d6   : > { %v2330_v31 = vpop.f32.mrf.mxu0 }
 0x1d7   : > { %v2449_v23 = vadd.f32 %v2330_v31, %v6118_v35  ;;  %v6250_v63 = vadd.f32 %v5005_v41, %v2451_v33  ;;  %v2662_v58 = vpop.f32.mrf.mxu1 }
 0x1d8   : > { %v4954_v37 = vpop.f32.mrf.mxu0 }
 0x1d9   : > { %v6253_v45 = vadd.f32 %v4954_v37, %v6120_v18  ;;  %v6255_v25 = vadd.f32 %v2662_v58, %v2449_v23  ;;  %v6257_v3 = vpop.f32.mrf.mxu1 }
 0x1da   : > { %v2333_v62 = vpop.f32.mrf.mxu0 }
 0x1db   : > { %v2450_v2 = vadd.f32 %v2333_v62, %v6125_v36  ;;  %v2665_v47 = vpop.f32.mrf.mxu1 }
 0x1dc   : > { %v4957_v27 = vpop.f32.mrf.mxu0 }
 0x1dd   : > { %v6261_v19 = vadd.f32 %v4957_v27, %v6127_v12  ;;  %v6263_v35 = vadd.f32 %v2665_v47, %v2450_v2  ;;  %v6265_v28 = vpop.f32.mrf.mxu1 }
 0x1de   : > { %v2346_v60 = vpop.f32.mrf.mxu0 }
 0x1df   : > { %v6268_v18 = vadd.f32 %v2346_v60, %v6132_v40  ;;  %v6270_v54 = vpop.f32.mrf.mxu1 }
 0x1e0   : > { %v4958_v9 = vpop.f32.mrf.mxu0 }
 0x1e1   : > { %v6273_v42 = vadd.f32 %v4958_v9, %v6134_v21  ;;  %v6275_v36 = vpop.f32.mrf.mxu1 }
 0x1e2   : > { %v2349_v39 = vpop.f32.mrf.mxu0 }
 0x1e3   : > { %v6278_v12 = vadd.f32 %v2349_v39, %v6139_v53  ;;  %v6280_v14 = vpop.f32.mrf.mxu1 }
 0x1e4   : > { %v4961_v29 = vpop.f32.mrf.mxu0 }
 0x1e5   : > { %v6283_v50 = vadd.f32 %v4961_v29, %v6141_v43  ;;  %v6285_v40 = vpop.f32.mrf.mxu1 }
 0x1e6   : > { %v2362_v10 = vpop.f32.mrf.mxu0 }
 0x1e7   : > { %v6288_v7 = vadd.f32 %v2362_v10, %v6146_v49  ;;  %v6290_v21 = vpop.f32.mrf.mxu1 }
 0x1e8   : > { %v4962_v24 = vpop.f32.mrf.mxu0 }
 0x1e9   : > { %v6293_v44 = vadd.f32 %v4962_v24, %v6148_v52  ;;  %v6295_v53 = vpop.f32.mrf.mxu1 }
 0x1ea   : > { %v2365_v46 = vpop.f32.mrf.mxu0 }
 0x1eb   : > { %v6298_v33 = vadd.f32 %v2365_v46, %v6153_v17  ;;  %v6300_v43 = vpop.f32.mrf.mxu1 }
 0x1ec   : > { %v4965_v41 = vpop.f32.mrf.mxu0 }
 0x1ed   : > { %v6303_v31 = vadd.f32 %v4965_v41, %v6155_v56  ;;  %v6305_v49 = vpop.f32.mrf.mxu1 }
 0x1ee   : > { %v2378_v23 = vpop.f32.mrf.mxu0 }
 0x1ef   : > { %v6308_v58 = vadd.f32 %v2378_v23, %v6160_v0  ;;  %v6310_v52 = vpop.f32.mrf.mxu1 }
 0x1f0   : > { %v4966_v37 = vpop.f32.mrf.mxu0 }
 0x1f1   : > { %v6313_v62 = vadd.f32 %v4966_v37, %v6162_v20  ;;  %v6315_v17 = vpop.f32.mrf.mxu1 }
 0x1f2   : > { %v2381_v2 = vpop.f32.mrf.mxu0 }
 0x1f3   : > { %v6318_v47 = vadd.f32 %v2381_v2, %v6167_v38  ;;  %v6323_v60 = vpop.f32.mrf.mxu1 }
 0x1f4   : > { %v4969_v56 = vpop.f32.mrf.mxu0 }
 0x1f5   : > { %v6321_v27 = vadd.f32 %v4969_v56, %v6169_v8  ;;  %v6328_v29 = vpop.f32.mrf.mxu1 }
 0x1f6   : > { %v2394_v0 = vpop.f32.mrf.mxu0 }
 0x1f7   : > { %v6326_v9 = vadd.f32 %v2394_v0, %v6174_v57  ;;  %v6336_v46 = vpop.f32.mrf.mxu1  ;;  %v3634_v0 = vld [vmem:[%s7224_s4 + $0x98] sm:$0xff] }
 0x1f8   : > { %v4970_v39 = vpop.f32.mrf.mxu0  ;;  %3804 = vmatprep.mubr.f32.mxu1 %v3634_v0 }
 0x1f9   : > { %v6331_v20 = vadd.f32 %v4970_v39, %v6176_v59  ;;  %v5022_v37 = vpop.f32.mrf.mxu1 }
 0x1fa   : > { %v2397_v10 = vpop.f32.mrf.mxu0 }
 0x1fb   : > { %v6334_v38 = vadd.f32 %v2397_v10, %v6181_v61 }
 0x1fc   : > { %v4973_v24 = vpop.f32.mrf.mxu0 }
 0x1fd   : > { %v6339_v8 = vadd.f32 %v4973_v24, %v6185_v34  ;;  %v2729_v34 = vpop.f32.mrf.mxu1 }
 0x1fe   : > { %v2410_v41 = vpop.f32.mrf.mxu0 }
 0x1ff   : > { %v6342_v57 = vadd.f32 %v2410_v41, %v6191_v26  ;;  %v5025_v24 = vpop.f32.mrf.mxu1 }
 0x200   : > { %v4974_v23 = vpop.f32.mrf.mxu0 }
 0x201   : > { %v6345_v2 = vadd.f32 %v4974_v23, %v6195_v15 }
 0x202   : > { %v2413_v59 = vpop.f32.mrf.mxu0 }
 0x203   : > { %v6348_v56 = vadd.f32 %v2413_v59, %v6200_v4 }
 0x204   : > { %v4977_v61 = vpop.f32.mrf.mxu0 }
 0x205   : > { %v6354_v39 = vadd.f32 %v4977_v61, %v6204_v32  ;;  %v6368_v32 = vld [vmem:[%s7222_s2] ss:$0 sm:$0xff]  ;;  %v2742_v61 = vpop.f32.mrf.mxu1 }
 0x206   : > { %v2426_v26 = vpop.f32.mrf.mxu0 }
 0x207   : > { %v6357_v10 = vadd.f32 %v2426_v26, %v6209_v51 }
 0x208   : > { %v4978_v15 = vpop.f32.mrf.mxu0 }
 0x209   : > { %v6360_v41 = vadd.f32 %v4978_v15, %v6213_v13  ;;  %v6375_v13 = vld [vmem:[%s7223_s3] ss:$0 sm:$0xff] }
 0x20a   : > { %v2429_v4 = vpop.f32.mrf.mxu0 }
 0x20b   : > { %7271 = vst [vmem:[#allocation10_spill] sm:$0xff] %v6360_v41  ;;  %v6363_v23 = vadd.f32 %v2429_v4, %v6217_v16  ;;  %v6380_v4 = vadd.f32 %v6257_v3, %v6253_v45 }
 0x20c   : > { %v5049_v59 = vpop.f32.mrf.mxu0 }
 0x20d   : > { %7272 = vst [vmem:[#allocation2_spill] sm:$0xff] %v6363_v23  ;;  %v3107_v0 = vadd.f32 %v5049_v59, %v6222_v30  ;;  %v5026_v23 = vpop.f32.mrf.mxu1  ;;  %v6386_v59 = vadd.f32 %v6265_v28, %v6261_v19 }
 0x20e   : > { %v2962_v51 = vpop.f32.mrf.mxu0 }
 0x20f   : > { %v3150_v26 = vmul.f32 %v6368_v32, %v3107_v0  ;;  %v3105_v16 = vadd.f32 %v2962_v51, %v6227_v1  ;;  %v6390_v0 = vadd.f32 %v6270_v54, %v6268_v18  ;;  %v6394_v1 = vadd.f32 %v6275_v36, %v6273_v42 }
 0x210   : > { %v5050_v15 = vpop.f32.mrf.mxu0  ;;  %v6399_v51 = vadd.f32 %v6280_v14, %v6278_v12  ;;  %v6409_v18 = vadd.f32 %v6290_v21, %v6288_v7  ;;  %v6413_v54 = vadd.f32 %v6295_v53, %v6293_v44  ;;  %v6417_v42 = vadd.f32 %v6300_v43, %v6298_v33 }
 0x211   : > { %v3148_v41 = vmul.f32 %v6368_v32, %v3105_v16  ;;  %v3108_v30 = vadd.f32 %v5050_v15, %v6231_v6  ;;  %v3193_v45 = vadd.f32 %v6375_v13, %v3150_v26  ;;  %v6403_v6 = vadd.f32 %v6285_v40, %v6283_v50  ;;  %v2745_v50 = vpop.f32.mrf.mxu1 }
 0x212   : > { %v2965_v3 = vpop.f32.mrf.mxu0  ;;  %v6424_v14 = vadd.f32 %v6305_v49, %v6303_v31  ;;  %v6436_v21 = vadd.f32 %v6315_v17, %v6313_v62  ;;  %v6440_v44 = vadd.f32 %v6323_v60, %v6318_v47  ;;  %v6445_v31 = vadd.f32 %v6328_v29, %v6321_v27 }
 0x213   : > { %v3151_v19 = vmul.f32 %v6368_v32, %v3108_v30  ;;  %v3106_v28 = vadd.f32 %v2965_v3, %v6236_v11  ;;  %v6420_v36 = vadd.f32 %v6375_v13, %v3148_v41  ;;  %v6428_v11 = vadd.f32 %v6310_v52, %v6308_v58  ;;  %v5029_v27 = vpop.f32.mrf.mxu1 }
 0x214   : > { %v5053_v12 = vpop.f32.mrf.mxu0  ;;  %v3229_v53 = vmax.f32 %v3193_v45, 0.0  ;;  %v6452_v62 = vadd.f32 %v6336_v46, %v6326_v9  ;;  %v6455_v17 = vadd.f32 %v5022_v37, %v6331_v20  ;;  %v6464_v9 = vadd.f32 %v2729_v34, %v6334_v38 }
 0x215   : > { %v6431_v40 = vadd.f32 %v6375_v13, %v3151_v19  ;;  %v3149_v7 = vmul.f32 %v6368_v32, %v3106_v28  ;;  %v3111_v33 = vadd.f32 %v5053_v12, %v6238_v55  ;;  %v3227_v55 = vmax.f32 %v6420_v36, 0.0  ;;  %v2758_v19 = vpop.f32.mrf.mxu1 }
 0x216   : > { %v2978_v43 = vpop.f32.mrf.mxu0  ;;  %v6467_v20 = vadd.f32 %v5025_v24, %v6339_v8  ;;  %v3301_v46 = vrot.slane %v3229_v53, 1  ;;  %v6479_v38 = vadd.f32 %v5026_v23, %v6345_v2 }
 0x217   : > { %v3230_v49 = vmax.f32 %v6431_v40, 0.0  ;;  %v3192_v58 = vadd.f32 %v6375_v13, %v3149_v7  ;;  %v3109_v52 = vadd.f32 %v2978_v43, %v6242_v22  ;;  %v3154_v47 = vmul.f32 %v6368_v32, %v3111_v33 }
 0x218   : > { %v5054_v60 = vpop.f32.mrf.mxu0  ;;  %v3298_v8 = vrot.slane %v3227_v55, 1 }
 0x219   : > { %v3303_v29 = vrot.slane %v3230_v49, 1  ;;  %v3228_v41 = vmax.f32 %v3192_v58, 0.0  ;;  %v3152_v26 = vmul.f32 %v6368_v32, %v3109_v52  ;;  %v3112_v22 = vadd.f32 %v5054_v60, %v6244_v48 }
 0x21a   : > { %v3197_v37 = vadd.f32 %v6375_v13, %v3154_v47  ;;  %v2981_v16 = vpop.f32.mrf.mxu0  ;;  %v6476_v48 = vadd.f32 %v2742_v61, %v6342_v57  ;;  %v6499_v47 = vadd.f32 %v2745_v50, %v6348_v56  ;;  %v6502_v60 = vadd.f32 %v5029_v27, %v6354_v39 }
 0x21b   : > { %v3299_v15 = vrot.slane %v3228_v41, 1  ;;  %v6471_v30 = vadd.f32 %v6375_v13, %v3152_v26  ;;  %v3155_v45 = vmul.f32 %v6368_v32, %v3112_v22  ;;  %v3110_v3 = vadd.f32 %v2981_v16, %v6247_v5  ;;  %v5030_v26 = vpop.f32.mrf.mxu1 }
 0x21c   : > { %v5057_v34 = vpop.f32.mrf.mxu0  ;;  %v3304_v24 = vsel %vm3297_vm0, %v3301_v46, %v3303_v29  ;;  %v3233_v57 = vmax.f32 %v3197_v37, 0.0 }
 0x21d   : > { %v3302_v28 = vsel %vm3297_vm0, %v3299_v15, %v3301_v46  ;;  %v3231_v36 = vmax.f32 %v6471_v30, 0.0  ;;  %v6485_v12 = vadd.f32 %v6375_v13, %v3155_v45  ;;  %v3153_v5 = vmul.f32 %v6368_v32, %v3110_v3 }
 0x21e   : > { %v6488_v7 = vmax.f32 %v3228_v41, %v3302_v28  ;;  %v3115_v2 = vadd.f32 %v5057_v34, %v6250_v63  ;;  %v2994_v23 = vpop.f32.mrf.mxu0  ;;  %v6491_v61 = vmax.f32 %v3229_v53, %v3304_v24  ;;  %v3300_v53 = vsel %vm3297_vm0, %v3298_v8, %v3299_v15 }
 0x21f   : > { %v3305_v33 = vrot.slane %v3231_v36, 1  ;;  %v3234_v43 = vmax.f32 %v6485_v12, 0.0  ;;  %v3196_v58 = vadd.f32 %v6375_v13, %v3153_v5  ;;  %v3113_v52 = vadd.f32 %v2994_v23, %v6255_v25 }
 0x220   : > { %v3158_v63 = vmul.f32 %v6368_v32, %v3115_v2  ;;  %v5058_v41 = vpop.f32.mrf.mxu0  ;;  %v3309_v16 = vrot.slane %v3233_v57, 1  ;;  %v6512_v27 = vmax.f32 %v3227_v55, %v3300_v53  ;;  %v6520_v34 = vadd.f32 %v2758_v19, %v6357_v10  ;;  %v2761_v55 = vpop.f32.mrf.mxu1  ;;  %v7274_v10 = vld [vmem:[#allocation10_spill] sm:$0xff] }
 0x221   : > { %v3311_v22 = vrot.slane %v3234_v43, 1  ;;  %v3232_v46 = vmax.f32 %v3196_v58, 0.0  ;;  %v3156_v37 = vmul.f32 %v6368_v32, %v3113_v52  ;;  %v3116_v25 = vadd.f32 %v5058_v41, %v6380_v4 }
 0x222   : > { %v3201_v56 = vadd.f32 %v6375_v13, %v3158_v63  ;;  %v2997_v50 = vpop.f32.mrf.mxu0  ;;  %v3306_v39 = vsel %vm3297_vm0, %v3303_v29, %v3305_v33  ;;  %7273 = vst [vmem:[#allocation3_spill] sm:$0xff] %v6512_v27  ;;  %v6534_v19 = vadd.f32 %v5030_v26, %v7274_v10 }
 0x223   : > { %v3307_v45 = vrot.slane %v3232_v46, 1  ;;  %v6515_v15 = vadd.f32 %v6375_v13, %v3156_v37  ;;  %v3159_v3 = vmul.f32 %v6368_v32, %v3116_v25  ;;  %v3114_v8 = vadd.f32 %v2997_v50, %v6263_v35  ;;  %v7275_v25 = vld [vmem:[#allocation2_spill] sm:$0xff] }
 0x224   : > { %v3237_v4 = vmax.f32 %v3201_v56, 0.0  ;;  %v5061_v24 = vpop.f32.mrf.mxu0  ;;  %v3312_v28 = vsel %vm3297_vm0, %v3309_v16, %v3311_v22  ;;  %v6525_v29 = vmax.f32 %v3230_v49, %v3306_v39 }
 0x225   : > { %v3310_v5 = vsel %vm3297_vm0, %v3307_v45, %v3309_v16  ;;  %v3235_v2 = vmax.f32 %v6515_v15, 0.0  ;;  %v6530_v23 = vadd.f32 %v6375_v13, %v3159_v3  ;;  %v3157_v35 = vmul.f32 %v6368_v32, %v3114_v8 }
 0x226   : > { %v6536_v58 = vmax.f32 %v3232_v46, %v3310_v5  ;;  %v3119_v52 = vadd.f32 %v5061_v24, %v6386_v59  ;;  %v3010_v40 = vpop.f32.mrf.mxu0  ;;  %v6539_v49 = vmax.f32 %v3233_v57, %v3312_v28  ;;  %v6545_v16 = vadd.f32 %v2761_v55, %v7275_v25 }
 0x227   : > { %v3313_v63 = vrot.slane %v3235_v2, 1  ;;  %v3238_v41 = vmax.f32 %v6530_v23, 0.0  ;;  %v3200_v53 = vadd.f32 %v6375_v13, %v3157_v35  ;;  %v3117_v37 = vadd.f32 %v3010_v40, %v6390_v0 }
 0x228   : > { %v3317_v56 = vrot.slane %v3237_v4, 1  ;;  %v3162_v26 = vmul.f32 %v6368_v32, %v3119_v52  ;;  %v5062_v46 = vpop.f32.mrf.mxu0  ;;  %v3308_v50 = vsel %vm3297_vm0, %v3305_v33, %v3307_v45 }
 0x229   : > { %v3319_v59 = vrot.slane %v3238_v41, 1  ;;  %v3236_v39 = vmax.f32 %v3200_v53, 0.0  ;;  %v3160_v57 = vmul.f32 %v6368_v32, %v3117_v37  ;;  %v3120_v15 = vadd.f32 %v5062_v46, %v6394_v1 }
 0x22a   : > { %v3205_v8 = vadd.f32 %v6375_v13, %v3162_v26  ;;  %v3013_v0 = vpop.f32.mrf.mxu0  ;;  %v3314_v24 = vsel %vm3297_vm0, %v3311_v22, %v3313_v63  ;;  %v6556_v28 = vmax.f32 %v3231_v36, %v3308_v50 }
 0x22b   : > { %v3315_v55 = vrot.slane %v3236_v39, 1  ;;  %v6559_v33 = vadd.f32 %v6375_v13, %v3160_v57  ;;  %v3163_v45 = vmul.f32 %v6368_v32, %v3120_v15  ;;  %v3118_v5 = vadd.f32 %v3013_v0, %v6399_v51 }
 0x22c   : > { %v3241_v1 = vmax.f32 %v3205_v8, 0.0  ;;  %v5065_v23 = vpop.f32.mrf.mxu0  ;;  %v3320_v35 = vsel %vm3297_vm0, %v3317_v56, %v3319_v59  ;;  %v6566_v10 = vmax.f32 %v3234_v43, %v3314_v24 }
 0x22d   : > { %v3318_v36 = vsel %vm3297_vm0, %v3315_v55, %v3317_v56  ;;  %v3239_v22 = vmax.f32 %v6559_v33, 0.0  ;;  %v6572_v52 = vadd.f32 %v6375_v13, %v3163_v45  ;;  %v3161_v40 = vmul.f32 %v6368_v32, %v3118_v5 }
 0x22e   : > { %v6575_v51 = vmax.f32 %v3236_v39, %v3318_v36  ;;  %v3325_v53 = vrot.slane %v3241_v1, 1  ;;  %v3123_v37 = vadd.f32 %v5065_v23, %v6403_v6  ;;  %v3026_v25 = vpop.f32.mrf.mxu0  ;;  %v6578_v12 = vmax.f32 %v3237_v4, %v3320_v35 }
 0x22f   : > { %v3321_v43 = vrot.slane %v3239_v22, 1  ;;  %v3242_v26 = vmax.f32 %v6572_v52, 0.0  ;;  %v3204_v56 = vadd.f32 %v6375_v13, %v3161_v40  ;;  %v3121_v46 = vadd.f32 %v3026_v25, %v6409_v18 }
 0x230   : > { %v3166_v57 = vmul.f32 %v6368_v32, %v3123_v37  ;;  %v5066_v15 = vpop.f32.mrf.mxu0  ;;  %v3316_v8 = vsel %vm3297_vm0, %v3313_v63, %v3315_v55 }
 0x231   : > { %v3327_v6 = vrot.slane %v3242_v26, 1  ;;  %v3240_v0 = vmax.f32 %v3204_v56, 0.0  ;;  %v3164_v4 = vmul.f32 %v6368_v32, %v3121_v46  ;;  %v3124_v24 = vadd.f32 %v5066_v15, %v6413_v54 }
 0x232   : > { %v3209_v33 = vadd.f32 %v6375_v13, %v3166_v57  ;;  %v3029_v45 = vpop.f32.mrf.mxu0  ;;  %v3322_v18 = vsel %vm3297_vm0, %v3319_v59, %v3321_v43  ;;  %v6591_v5 = vmax.f32 %v3235_v2, %v3316_v8 }
 0x233   : > { %v3323_v35 = vrot.slane %v3240_v0, 1  ;;  %v3207_v36 = vadd.f32 %v6375_v13, %v3164_v4  ;;  %v3167_v63 = vmul.f32 %v6368_v32, %v3124_v24  ;;  %v3122_v55 = vadd.f32 %v3029_v45, %v6417_v42 }
 0x234   : > { %v3245_v52 = vmax.f32 %v3209_v33, 0.0  ;;  %v5069_v40 = vpop.f32.mrf.mxu0  ;;  %v3328_v54 = vsel %vm3297_vm0, %v3325_v53, %v3327_v6  ;;  %v6598_v37 = vmax.f32 %v3238_v41, %v3322_v18 }
 0x235   : > { %v3326_v2 = vsel %vm3297_vm0, %v3323_v35, %v3325_v53  ;;  %v3243_v59 = vmax.f32 %v3207_v36, 0.0  ;;  %v6603_v56 = vadd.f32 %v6375_v13, %v3167_v63  ;;  %v3165_v46 = vmul.f32 %v6368_v32, %v3122_v55 }
 0x236   : > { %v6606_v57 = vmax.f32 %v3240_v0, %v3326_v2  ;;  %v3333_v15 = vrot.slane %v3245_v52, 1  ;;  %v3127_v42 = vadd.f32 %v5069_v40, %v6424_v14  ;;  %v3042_v8 = vpop.f32.mrf.mxu0  ;;  %v6609_v4 = vmax.f32 %v3241_v1, %v3328_v54 }
 0x237   : > { %v3329_v41 = vrot.slane %v3243_v59, 1  ;;  %v7226_v24 = vmax.f32 %v6603_v56, 0.0  ;;  %v3208_v33 = vadd.f32 %v6375_v13, %v3165_v46  ;;  %v3125_v53 = vadd.f32 %v3042_v8, %v6428_v11 }
 0x238   : > { %v3501_v45 = vrot.slane %v6606_v57, 2  ;;  %v3170_v18 = vmul.f32 %v6368_v32, %v3127_v42  ;;  %v5070_v36 = vpop.f32.mrf.mxu0  ;;  %v3503_v0 = vrot.slane %v6609_v4, 2  ;;  %v3324_v63 = vsel %vm3297_vm0, %v3321_v43, %v3323_v35 }
 0x239   : > { %v6620_v14 = vrot.slane %v7226_v24, 1  ;;  %v3244_v1 = vmax.f32 %v3208_v33, 0.0  ;;  %v3168_v55 = vmul.f32 %v6368_v32, %v3125_v53  ;;  %v3128_v40 = vadd.f32 %v5070_v36, %v6436_v21 }
 0x23a   : > { %v6625_v11 = vadd.f32 %v6375_v13, %v3170_v18  ;;  %v3045_v54 = vpop.f32.mrf.mxu0  ;;  %v3330_v2 = vsel %vm3297_vm0, %v3327_v6, %v3329_v41  ;;  %v6628_v46 = vmax.f32 %v3239_v22, %v3324_v63  ;;  %v7232_v43 = vrot.slane %v6598_v37, 2 }
 0x23b   : > { %v3336_v35 = vsel %vm3297_vm0, %v3333_v15, %v6620_v14  ;;  %v3331_v42 = vrot.slane %v3244_v1, 1  ;;  %v6634_v8 = vadd.f32 %v6375_v13, %v3168_v55  ;;  %v3171_v21 = vmul.f32 %v6368_v32, %v3128_v40 }
 0x23c   : > { %v6637_v33 = vmax.f32 %v3245_v52, %v3336_v35  ;;  %v7229_v53 = vmax.f32 %v6625_v11, 0.0  ;;  %v3126_v18 = vadd.f32 %v3045_v54, %v6440_v44  ;;  %v5073_v6 = vpop.f32.mrf.mxu0  ;;  %v3414_v22 = vmax.f32 %v3242_v26, %v3330_v2 }
 0x23d   : > { %v3332_v36 = vsel %vm3297_vm0, %v3329_v41, %v3331_v42  ;;  %v3334_v63 = vsel %vm3297_vm0, %v3331_v42, %v3333_v15  ;;  %v7227_v3 = vmax.f32 %v6634_v8, 0.0  ;;  %v6645_v24 = vadd.f32 %v6375_v13, %v3171_v21 }
 0x23e   : > { %v6647_v55 = vmax.f32 %v3243_v59, %v3332_v36  ;;  %v6649_v40 = vmax.f32 %v3244_v1, %v3334_v63  ;;  %v6653_v52 = vrot.slane %v7229_v53, 1  ;;  %v3169_v44 = vmul.f32 %v6368_v32, %v3126_v18  ;;  %v3058_v26 = vpop.f32.mrf.mxu0 }
 0x23f   : > { %v6658_v41 = vrot.slane %v7227_v3, 1  ;;  %v7231_v15 = vmax.f32 %v6645_v24, 0.0  ;;  %v3131_v54 = vadd.f32 %v5073_v6, %v6445_v31  ;;  %v3129_v59 = vadd.f32 %v3058_v26, %v6452_v62 }
 0x240   : > { %7276 = vst [vmem:[#allocation12_spill] sm:$0xff] %v6647_v55  ;;  %v3509_v1 = vrot.slane %v6649_v40, 2  ;;  %v6665_v2 = vadd.f32 %v6375_v13, %v3169_v44  ;;  %v5074_v35 = vpop.f32.mrf.mxu0  ;;  %v3505_v42 = vrot.slane %v3414_v22, 2  ;;  %v7228_v21 = vrot.slane %v6637_v33, 2 }
 0x241   : > { %v6670_v18 = vrot.slane %v7231_v15, 1  ;;  %v3174_v36 = vmul.f32 %v6368_v32, %v3131_v54  ;;  %v3172_v63 = vmul.f32 %v6368_v32, %v3129_v59  ;;  %v3132_v31 = vadd.f32 %v5074_v35, %v6455_v17 }
 0x242   : > { %v7230_v62 = vmax.f32 %v6665_v2, 0.0  ;;  %v3061_v6 = vpop.f32.mrf.mxu0  ;;  %v3512_v44 = vsel %vm3479_vm1, %v3509_v1, %v7228_v21  ;;  %v3507_v26 = vrot.slane %v6647_v55, 2  ;;  %v3499_v30 = vrot.slane %v6628_v46, 2 }
 0x243   : > { %v3217_v3 = vadd.f32 %v6375_v13, %v3174_v36  ;;  %v6683_v23 = vadd.f32 %v6375_v13, %v3172_v63  ;;  %v3175_v54 = vmul.f32 %v6368_v32, %v3132_v31  ;;  %v3130_v17 = vadd.f32 %v3061_v6, %v6464_v9 }
 0x244   : > { %v6689_v59 = vrot.slane %v7230_v62, 1  ;;  %v5077_v35 = vpop.f32.mrf.mxu0  ;;  %v6691_v25 = vmax.f32 %v3414_v22, %v3512_v44  ;;  %v3510_v21 = vsel %vm3479_vm1, %v3507_v26, %v3509_v1  ;;  %v3508_v53 = vsel %vm3479_vm1, %v3505_v42, %v3507_v26 }
 0x245   : > { %v3253_v50 = vmax.f32 %v3217_v3, 0.0  ;;  %v7233_v36 = vmax.f32 %v6683_v23, 0.0  ;;  %v6697_v63 = vadd.f32 %v6375_v13, %v3175_v54  ;;  %v3173_v31 = vmul.f32 %v6368_v32, %v3130_v17 }
 0x246   : > { %v3135_v9 = vadd.f32 %v5077_v35, %v6467_v20  ;;  %v3074_v6 = vpop.f32.mrf.mxu0  ;;  %v6702_v62 = vmax.f32 %v6609_v4, %v3510_v21  ;;  %v6705_v22 = vmax.f32 %v6606_v57, %v3508_v53  ;;  %v3506_v3 = vsel %vm3479_vm1, %v3503_v0, %v3505_v42 }
 0x247   : > { %v3349_v1 = vrot.slane %v3253_v50, 1  ;;  %v6712_v44 = vrot.slane %v7233_v36, 1  ;;  %v3254_v26 = vmax.f32 %v6697_v63, 0.0  ;;  %v3216_v20 = vadd.f32 %v6375_v13, %v3173_v31 }
 0x248   : > { %v3178_v54 = vmul.f32 %v6368_v32, %v3135_v9  ;;  %v3133_v21 = vadd.f32 %v3074_v6, %v6476_v48  ;;  %v5078_v17 = vpop.f32.mrf.mxu0  ;;  %v6719_v53 = vmax.f32 %v6628_v46, %v3506_v3  ;;  %v3504_v42 = vsel %vm3479_vm1, %v3501_v45, %v3503_v0 }
 0x249   : > { %v3351_v35 = vrot.slane %v3254_v26, 1  ;;  %v3252_v15 = vmax.f32 %v3216_v20, 0.0  ;;  %v3136_v63 = vadd.f32 %v5078_v17, %v6479_v38  ;;  %v6728_v31 = vmax.f32 %v6598_v37, %v3504_v42  ;;  %v3616_v38 = vld [vmem:[%s7224_s4 + $0x8] sm:$0xff] }
 0x24a   : > { %v3221_v9 = vadd.f32 %v6375_v13, %v3178_v54  ;;  %v3176_v48 = vmul.f32 %v6368_v32, %v3133_v21  ;;  %v3077_v6 = vpop.f32.mrf.mxu0  ;;  %v3502_v4 = vsel %vm3479_vm1, %v3499_v30, %v3501_v45  ;;  %v3500_v0 = vsel %vm3479_vm1, %v7232_v43, %v3499_v30  ;;  %3774 = vmatprep.mubr.f32.mxu0 %v3616_v38 }
 0x24b   : > { %v3347_v46 = vrot.slane %v3252_v15, 1  ;;  %v3179_v3 = vmul.f32 %v6368_v32, %v3136_v63  ;;  %v3134_v20 = vadd.f32 %v3077_v6, %v6499_v47  ;;  %v3352_v54 = vsel %vm3297_vm0, %v3349_v1, %v3351_v35 }
 0x24c   : > { %v3257_v21 = vmax.f32 %v3221_v9, 0.0  ;;  %v3219_v57 = vadd.f32 %v6375_v13, %v3176_v48  ;;  %v5081_v45 = vpop.f32.mrf.mxu0  ;;  %v6745_v17 = vmax.f32 %v3253_v50, %v3352_v54  ;;  %v6748_v30 = vmax.f32 %v6578_v12, %v3502_v4 }
 0x24d   : > { %v3222_v42 = vadd.f32 %v6375_v13, %v3179_v3  ;;  %v3177_v39 = vmul.f32 %v6368_v32, %v3134_v20  ;;  %v3139_v63 = vadd.f32 %v5081_v45, %v6502_v60  ;;  %v3350_v47 = vsel %vm3297_vm0, %v3347_v46, %v3349_v1 }
 0x24e   : > { %7277 = vst [vmem:[#allocation13_spill] sm:$0xff] %v6748_v30  ;;  %v3357_v6 = vrot.slane %v3257_v21, 1  ;;  %v3255_v43 = vmax.f32 %v3219_v57, 0.0  ;;  %v3090_v38 = vpop.f32.mrf.mxu0  ;;  %v3527_v9 = vrot.slane %v6745_v17, 2  ;;  %v6755_v48 = vmax.f32 %v3252_v15, %v3350_v47 }
 0x24f   : > { %v3258_v50 = vmax.f32 %v3222_v42, 0.0  ;;  %v3220_v54 = vadd.f32 %v6375_v13, %v3177_v39  ;;  %v3182_v4 = vmul.f32 %v6368_v32, %v3139_v63  ;;  %v3137_v3 = vadd.f32 %v3090_v38, %v6520_v34 }
 0x250   : > { %v3353_v36 = vrot.slane %v3255_v43, 1  ;;  %v5082_v20 = vpop.f32.mrf.mxu0  ;;  %v6762_v1 = vmax.f32 %v6575_v51, %v3500_v0  ;;  %v3348_v57 = vsel %vm3297_vm0, %v6712_v44, %v3347_v46  ;;  %v7279_v38 = vmax.f32 %v6683_v23, 0.0 }
 0x251   : > { %v3359_v45 = vrot.slane %v3258_v50, 1  ;;  %v3256_v15 = vmax.f32 %v3220_v54, 0.0  ;;  %v3225_v42 = vadd.f32 %v6375_v13, %v3182_v4  ;;  %v3180_v39 = vmul.f32 %v6368_v32, %v3137_v3 }
 0x252   : > { %7278 = vst [vmem:[#allocation11_spill] sm:$0xff] %v6762_v1  ;;  %v3140_v63 = vadd.f32 %v5082_v20, %v6534_v19  ;;  %v3093_v47 = vpop.f32.mrf.mxu0  ;;  %v3354_v34 = vsel %vm3297_vm0, %v3351_v35, %v3353_v36  ;;  %v6772_v60 = vmax.f32 %v7279_v38, %v3348_v57  ;;  %v7280_v0 = vrot.slane %v6598_v37, 2 }
 0x253   : > { %v7281_v1 = vrot.slane %v6578_v12, 2  ;;  %v3355_v54 = vrot.slane %v3256_v15, 1  ;;  %v3261_v30 = vmax.f32 %v3225_v42, 0.0  ;;  %v3223_v4 = vadd.f32 %v6375_v13, %v3180_v39 }
 0x254   : > { %v3138_v3 = vadd.f32 %v3093_v47, %v6545_v16  ;;  %v3183_v19 = vmul.f32 %v6368_v32, %v3140_v63  ;;  %v3360_v35 = vsel %vm3297_vm0, %v3357_v6, %v3359_v45  ;;  %v3426_v20 = vmax.f32 %v3254_v26, %v3354_v34 }
 0x255   : > { %v3498_v46 = vsel %vm3479_vm1, %v7281_v1, %v7280_v0  ;;  %v3435_v57 = vrot.slane %v3261_v30, 1  ;;  %v3259_v38 = vmax.f32 %v3223_v4, 0.0  ;;  %v3429_v27 = vmax.f32 %v3257_v21, %v3360_v35 }
 0x256   : > { %v3181_v37 = vmul.f32 %v6368_v32, %v3138_v3  ;;  %v3226_v1 = vadd.f32 %v6375_v13, %v3183_v19  ;;  %v3358_v42 = vsel %vm3297_vm0, %v3355_v54, %v3357_v6  ;;  %v3356_v39 = vsel %vm3297_vm0, %v3353_v36, %v3355_v54 }
 0x257   : > { %v3529_v0 = vrot.slane %v3426_v20, 2  ;;  %v3361_v16 = vrot.slane %v3259_v38, 1  ;;  %v3535_v47 = vrot.slane %v3429_v27, 2  ;;  %v3428_v55 = vmax.f32 %v3256_v15, %v3358_v42 }
 0x258   : > { %v3224_v63 = vadd.f32 %v6375_v13, %v3181_v37  ;;  %v3262_v26 = vmax.f32 %v3226_v1, 0.0  ;;  %v3427_v34 = vmax.f32 %v3255_v43, %v3356_v39  ;;  %v6791_v4 = vmax.f32 %v6591_v5, %v3498_v46 }
 0x259   : > { %v3530_v23 = vsel %vm3479_vm1, %v3527_v9, %v3529_v0  ;;  %v3362_v21 = vsel %vm3297_vm0, %v3359_v45, %v3361_v16  ;;  %v3533_v3 = vrot.slane %v3428_v55, 2  ;;  %v3346_v13 = vsel %vm3297_vm0, %v6670_v18, %v6712_v44 }
 0x25a   : > { %v3260_v32 = vmax.f32 %v3224_v63, 0.0  ;;  %v6795_v6 = vmax.f32 %v6772_v60, %v3530_v23  ;;  %v3437_v36 = vrot.slane %v3262_v26, 1  ;;  %v3430_v54 = vmax.f32 %v3258_v50, %v3362_v21 }
 0x25b   : > { %v3531_v19 = vrot.slane %v3427_v34, 2  ;;  %v3536_v15 = vsel %vm3479_vm1, %v3533_v3, %v3535_v47  ;;  %v7282_v46 = vmax.f32 %v6645_v24, 0.0  ;;  %v7283_v37 = vrot.slane %v6755_v48, 2 }
 0x25c   : > { %v3363_v43 = vrot.slane %v3260_v32, 1  ;;  %v6806_v1 = vmax.f32 %v3262_v26, %v3437_v36  ;;  %v3438_v23 = vsel %vm3297_vm0, %v3435_v57, %v3437_v36  ;;  %v3537_v50 = vrot.slane %v3430_v54, 2 }
 0x25d   : > { %v3422_v35 = vmax.f32 %v7282_v46, %v3346_v13  ;;  %v3528_v45 = vsel %vm3479_vm1, %v7283_v37, %v3527_v9  ;;  %v6809_v42 = vmax.f32 %v3426_v20, %v3536_v15  ;;  %v6812_v63 = vmax.f32 %v3261_v30, %v3438_v23 }
 0x25e   : > { %v3432_v39 = vmax.f32 %v3260_v32, %v3363_v43  ;;  %v3436_v44 = vsel %vm3297_vm0, %v3363_v43, %v3435_v57  ;;  %v3364_v21 = vsel %vm3297_vm0, %v3361_v16, %v3363_v43  ;;  %v3545_v24 = vrot.slane %v6806_v1, 2  ;;  %v3615_v1 = vld [vmem:[%s7224_s4] sm:$0xff] }
 0x25f   : > { %v3442_v13 = vmax.f32 %v3260_v32, %v3436_v44  ;;  %v6816_v46 = vmax.f32 %v3259_v38, %v3364_v21  ;;  %v3538_v9 = vsel %vm3479_vm1, %v3535_v47, %v3537_v50  ;;  %v3543_v26 = vrot.slane %v6812_v63, 2 }
 0x260   : > { %v3609_v36 = vmax.f32 %v3427_v34, %v3538_v9  ;;  %v3534_v20 = vsel %vm3479_vm1, %v3531_v19, %v3533_v3  ;;  %v3532_v15 = vsel %vm3479_vm1, %v3529_v0, %v3531_v19  ;;  %v6824_v30 = vmax.f32 %v3432_v39, %v3545_v24 }
 0x261   : > { %v3541_v57 = vrot.slane %v3442_v13, 2  ;;  %v3539_v16 = vrot.slane %v6816_v46, 2  ;;  %v6828_v32 = vmax.f32 %v6745_v17, %v3534_v20  ;;  %v6831_v38 = vmax.f32 %v6755_v48, %v3532_v15 }
 0x262   : > { %v3521_v47 = vrot.slane %v3422_v35, 2  ;;  %v6833_v43 = vmax.f32 %v3422_v35, %v3528_v45  ;;  %v7284_v34 = vrot.slane %v6578_v12, 2  ;;  %v7285_v0 = vrot.slane %v6575_v51, 2 }
 0x263   : > { %v3544_v19 = vsel %vm3479_vm1, %v3541_v57, %v3543_v26  ;;  %v3542_v37 = vsel %vm3479_vm1, %v3539_v16, %v3541_v57  ;;  %v3540_v17 = vsel %vm3479_vm1, %v3537_v50, %v3539_v16  ;;  %v3344_v12 = vsel %vm3297_vm0, %v6653_v52, %v6670_v18 }
 0x264   : > { %v3496_v3 = vsel %vm3479_vm1, %v7285_v0, %v7284_v34  ;;  %v3612_v39 = vmax.f32 %v3430_v54, %v3544_v19  ;;  %v3611_v35 = vmax.f32 %v3429_v27, %v3542_v37  ;;  %v3610_v45 = vmax.f32 %v3428_v55, %v3540_v17 }
 0x265   : > { %v6846_v23 = vmax.f32 %v6566_v10, %v3496_v3  ;;  %v7286_v44 = vmax.f32 %v6625_v11, 0.0  ;;  %v7287_v13 = vrot.slane %v6755_v48, 2  ;;  %v7288_v9 = vrot.slane %v6772_v60, 2 }
 0x266   : > { %v7289_v50 = vmov %v7285_v0  ;;  %v7290_v15 = vrot.slane %v6591_v5, 2  ;;  %v3342_v55 = vsel %vm3297_vm0, %v6689_v59, %v6653_v52  ;;  %4521 = vmatprep.subr.mxu0 %v3612_v39  ;;  %5132 = vmatprep.subr.mxu1 %v3612_v39  ;;  %v7291_v18 = vmax.f32 %v6665_v2, 0.0 }
 0x267   : > { %v3421_v21 = vmax.f32 %v7286_v44, %v3344_v12  ;;  %v3526_v20 = vsel %vm3479_vm1, %v7288_v9, %v7287_v13  ;;  %v7292_v54 = vmov %v7288_v9  ;;  %v3483_v57 = vrot.slane %v6556_v28, 2  ;;  %4522 = vmatpush3.msra.mxu0 %v6691_v25  ;;  %5148 = vmatpush3.msra.mxu1 %v6691_v25 }
 0x268   : > { %v3494_v27 = vsel %vm3479_vm1, %v7290_v15, %v7289_v50  ;;  %v3420_v48 = vmax.f32 %v7291_v18, %v3342_v55  ;;  %v3524_v51 = vsel %vm3479_vm1, %v3521_v47, %v7292_v54  ;;  %v7293_v34 = vmov %v7290_v15  ;;  %4523 = vmatprep.subr.mxu0 %v3611_v35  ;;  %v7303_v18 = vld [vmem:[#allocation12_spill] sm:$0xff] }
 0x269   : > { %v6867_v11 = vmax.f32 %v6539_v49, %v3494_v27  ;;  %v3519_v16 = vrot.slane %v3421_v21, 2  ;;  %v6877_v52 = vmax.f32 %v3421_v21, %v3526_v20  ;;  %v7294_v0 = vrot.slane %v6566_v10, 2  ;;  %5133 = vmatprep.subr.mxu1 %v3611_v35  ;;  %4524 = vmatpush3.msra.mxu0 %v6702_v62 }
 0x26a   : > { %v3340_v60 = vsel %vm3297_vm0, %v6658_v41, %v6689_v59  ;;  %v3517_v3 = vrot.slane %v3420_v48, 2  ;;  %v6887_v19 = vmax.f32 %v3420_v48, %v3524_v51  ;;  %v7295_v37 = vmax.f32 %v6634_v8, 0.0  ;;  %5149 = vmatpush3.msra.mxu1 %v6702_v62  ;;  %4525 = vmatprep.subr.mxu0 %v3610_v45  ;;  %v7305_v51 = vld [vmem:[#allocation13_spill] sm:$0xff] }
 0x26b   : > { %v3492_v2 = vsel %vm3479_vm1, %v7294_v0, %v7293_v34  ;;  %v3522_v5 = vsel %vm3479_vm1, %v3519_v16, %v3521_v47  ;;  %v7296_v39 = vmov %v7294_v0  ;;  %v7297_v59 = vrot.slane %v6539_v49, 2  ;;  %5134 = vmatprep.subr.mxu1 %v3610_v45  ;;  %4526 = vmatpush3.msra.mxu0 %v6705_v22  ;;  %v3628_v34 = vld [vmem:[%s7224_s4 + $0x68] sm:$0xff]  ;;  %v3645_v0 = vld [vmem:[%s7224_s4 + $0xf0] sm:$0xff] }
 0x26c   : > { %v6890_v25 = vmax.f32 %v6536_v58, %v3492_v2  ;;  %v3419_v17 = vmax.f32 %v7295_v37, %v3340_v60  ;;  %v3338_v12 = vsel %vm3297_vm0, %v6620_v14, %v6658_v41  ;;  %v7298_v62 = vmax.f32 %v6603_v56, 0.0  ;;  %5150 = vmatpush3.msra.mxu1 %v6705_v22  ;;  %4527 = vmatprep.subr.mxu0 %v3609_v36  ;;  %v3649_v2 = vld [vmem:[%s7224_s4 + $0x110] sm:$0xff]  ;;  %v3627_v60 = vld [vmem:[%s7224_s4 + $0x60] sm:$0xff]  ;;  %v3630_v37 = vld [vmem:[%s7224_s4 + $0x78] sm:$0xff] }
 0x26d   : > { %v3490_v35 = vsel %vm3479_vm1, %v7297_v59, %v7296_v39  ;;  %v3520_v10 = vsel %vm3479_vm1, %v3517_v3, %v3519_v16  ;;  %v3481_v47 = vrot.slane %v6525_v29, 2  ;;  %v7299_v9 = vmov %v7297_v59  ;;  %5135 = vmatprep.subr.mxu1 %v3609_v36  ;;  %4528 = vmatpush3.msra.mxu0 %v6719_v53  ;;  %v3646_v16 = vld [vmem:[%s7224_s4 + $0xf8] sm:$0xff] }
 0x26e   : > { %v3515_v8 = vrot.slane %v3419_v17, 2  ;;  %v3601_v44 = vmax.f32 %v3419_v17, %v3522_v5  ;;  %v3585_v21 = vmax.f32 %v6556_v28, %v3490_v35  ;;  %v3418_v13 = vmax.f32 %v7298_v62, %v3338_v12  ;;  %5151 = vmatpush3.msra.mxu1 %v6719_v53  ;;  %4529 = vmatprep.subr.mxu0 %v6809_v42  ;;  %v3651_v17 = vld [vmem:[%s7224_s4 + $0x120] sm:$0xff]  ;;  %v3654_v39 = vld [vmem:[%s7224_s4 + $0x138] sm:$0xff]  ;;  %v3657_v35 = vld [vmem:[%s7224_s4 + $0x150] sm:$0xff] }
 0x26f   : > { %v7300_v14 = vrot.slane %v6536_v58, 2  ;;  %v3480_v15 = vrot.slane %v6491_v61, 2  ;;  %v3484_v27 = vsel %vm3479_vm1, %v3481_v47, %v3483_v57  ;;  %5136 = vmatprep.subr.mxu1 %v6809_v42  ;;  %v7302_v55 = vrot.slane %v6637_v33, 2  ;;  %4530 = vmatpush3.msra.mxu0 %v6728_v31  ;;  %v7304_v42 = vld [vmem:[#allocation3_spill] sm:$0xff]  ;;  %v3655_v5 = vld [vmem:[%s7224_s4 + $0x140] sm:$0xff]  ;;  %v3658_v59 = vld [vmem:[%s7224_s4 + $0x158] sm:$0xff] }
 0x270   : > { %v3513_v56 = vrot.slane %v3418_v13, 2  ;;  %v3600_v20 = vmax.f32 %v3418_v13, %v3520_v10  ;;  %v3518_v50 = vsel %vm3479_vm1, %v3515_v8, %v3517_v3  ;;  %v3582_v36 = vmax.f32 %v6488_v7, %v3484_v27  ;;  %5152 = vmatpush3.msra.mxu1 %v6728_v31  ;;  %4531 = vmatprep.subr.mxu0 %v6828_v32  ;;  %v7306_v31 = vld [vmem:[#allocation11_spill] sm:$0xff]  ;;  %v3631_v3 = vld [vmem:[%s7224_s4 + $0x80] sm:$0xff]  ;;  %v3617_v12 = vld [vmem:[%s7224_s4 + $0x10] sm:$0xff] }
 0x271   : > { %v3488_v41 = vsel %vm3479_vm1, %v7300_v14, %v7299_v9  ;;  %v7301_v45 = vmov %v7300_v14  ;;  %v3599_v49 = vmax.f32 %v6637_v33, %v3518_v50  ;;  %v3482_v54 = vsel %vm3479_vm1, %v3480_v15, %v3481_v47  ;;  %5137 = vmatprep.subr.mxu1 %v6828_v32  ;;  %4532 = vmatpush3.msra.mxu0 %v7305_v51  ;;  %v3618_v32 = vld [vmem:[%s7224_s4 + $0x18] sm:$0xff]  ;;  %v3629_v62 = vld [vmem:[%s7224_s4 + $0x70] sm:$0xff]  ;;  %v3632_v13 = vld [vmem:[%s7224_s4 + $0x88] sm:$0xff] }
 0x272   : > { %v3486_v28 = vsel %vm3479_vm1, %v3483_v57, %v7301_v45  ;;  %v3584_v22 = vmax.f32 %v6525_v29, %v3488_v41  ;;  %v3516_v29 = vsel %vm3479_vm1, %v3513_v56, %v3515_v8  ;;  %v3514_v53 = vsel %vm3479_vm1, %v7302_v55, %v3513_v56  ;;  %5153 = vmatpush3.msra.mxu1 %v7305_v51  ;;  %v3642_v57 = vld [vmem:[%s7224_s4 + $0xd8] sm:$0xff]  ;;  %v3620_v8 = vld [vmem:[%s7224_s4 + $0x28] sm:$0xff]  ;;  %v3635_v10 = vld [vmem:[%s7224_s4 + $0xa0] sm:$0xff] }
 0x273   : > { %v3583_v58 = vmax.f32 %v6491_v61, %v3486_v28  ;;  %v3598_v61 = vmax.f32 %v6649_v40, %v3516_v29  ;;  %v3597_v48 = vmax.f32 %v7303_v18, %v3514_v53  ;;  %v3581_v7 = vmax.f32 %v7304_v42, %v3482_v54  ;;  %4533 = vmatprep.subr.mxu0 %v6831_v38  ;;  %v3638_v47 = vld [vmem:[%s7224_s4 + $0xb8] sm:$0xff]  ;;  %v3641_v9 = vld [vmem:[%s7224_s4 + $0xd0] sm:$0xff]  ;;  %v3644_v14 = vld [vmem:[%s7224_s4 + $0xe8] sm:$0xff] }
 0x274   : > { %v3546_v33 = vsel %vm3479_vm1, %v3543_v26, %v3545_v24  ;;  %5138 = vmatprep.subr.mxu1 %v6831_v38  ;;  %4534 = vmatpush3.msra.mxu0 %v7306_v31  ;;  %v5256_v63 = vmov 0.0   ;;  %v3619_v24 = vld [vmem:[%s7224_s4 + $0x20] sm:$0xff]  ;;  %v3640_v26 = vld [vmem:[%s7224_s4 + $0xc8] sm:$0xff]  ;;  %v3650_v45 = vld [vmem:[%s7224_s4 + $0x118] sm:$0xff] }
 0x275   : > { %v3613_v40 = vmax.f32 %v6816_v46, %v3546_v33  ;;  %5154 = vmatpush3.msra.mxu1 %v7306_v31  ;;  %4535 = vmatprep.subr.mxu0 %v6795_v6  ;;  %v3636_v46 = vld [vmem:[%s7224_s4 + $0xa8] sm:$0xff]  ;;  %v3639_v38 = vld [vmem:[%s7224_s4 + $0xc0] sm:$0xff]  ;;  %v3653_v28 = vld [vmem:[%s7224_s4 + $0x130] sm:$0xff] }
 0x276   : > { %5139 = vmatprep.subr.mxu1 %v6795_v6  ;;  %4536 = vmatpush3.msra.mxu0 %v6791_v4  ;;  %v3637_v6 = vld [vmem:[%s7224_s4 + $0xb0] sm:$0xff]  ;;  %v3647_v41 = vld [vmem:[%s7224_s4 + $0x100] sm:$0xff]  ;;  %v3656_v56 = vld [vmem:[%s7224_s4 + $0x148] sm:$0xff] }
 0x277   : > { %5155 = vmatpush3.msra.mxu1 %v6791_v4  ;;  %4537 = vmatprep.subr.mxu0 %v6833_v43  ;;  %v3633_v4 = vld [vmem:[%s7224_s4 + $0x90] sm:$0xff] }
 0x278   : > { %5140 = vmatprep.subr.mxu1 %v6833_v43  ;;  %4538 = vmatpush3.msra.mxu0 %v6846_v23  ;;  %v3643_v43 = vld [vmem:[%s7224_s4 + $0xe0] sm:$0xff] }
 0x279   : > { %5156 = vmatpush3.msra.mxu1 %v6846_v23  ;;  %4539 = vmatprep.subr.mxu0 %v6877_v52  ;;  %v3621_v23 = vld [vmem:[%s7224_s4 + $0x30] sm:$0xff] }
 0x27a   : > { %5141 = vmatprep.subr.mxu1 %v6877_v52  ;;  %4540 = vmatpush3.msra.mxu0 %v6867_v11  ;;  %v3624_v52 = vld [vmem:[%s7224_s4 + $0x48] sm:$0xff] }
 0x27b   : > { %5157 = vmatpush3.msra.mxu1 %v6867_v11  ;;  %4541 = vmatprep.subr.mxu0 %v6887_v19  ;;  %v3625_v11 = vld [vmem:[%s7224_s4 + $0x50] sm:$0xff] }
 0x27c   : > { %5142 = vmatprep.subr.mxu1 %v6887_v19  ;;  %4542 = vmatpush3.msra.mxu0 %v6890_v25  ;;  %v3648_v19 = vld [vmem:[%s7224_s4 + $0x108] sm:$0xff] }
 0x27d   : > { %5158 = vmatpush3.msra.mxu1 %v6890_v25  ;;  %4543 = vmatprep.subr.mxu0 %v3601_v44  ;;  %v3652_v25 = vld [vmem:[%s7224_s4 + $0x128] sm:$0xff] }
 0x27e   : > { %5143 = vmatprep.subr.mxu1 %v3601_v44  ;;  %4544 = vmatpush3.msra.mxu0 %v3585_v21  ;;  %v3623_v44 = vld [vmem:[%s7224_s4 + $0x40] sm:$0xff] }
 0x27f   : > { %5159 = vmatpush3.msra.mxu1 %v3585_v21  ;;  %4545 = vmatprep.subr.mxu0 %v3600_v20  ;;  %v3626_v21 = vld [vmem:[%s7224_s4 + $0x58] sm:$0xff] }
 0x280   : > { %5144 = vmatprep.subr.mxu1 %v3600_v20  ;;  %4546 = vmatpush3.msra.mxu0 %v3584_v22  ;;  %v3659_v20 = vld [vmem:[%s7224_s4 + $0x160] sm:$0xff] }
 0x281   : > { %5160 = vmatpush3.msra.mxu1 %v3584_v22  ;;  %4547 = vmatprep.subr.mxu0 %v3599_v49 }
 0x282   : > { %5145 = vmatprep.subr.mxu1 %v3599_v49  ;;  %4548 = vmatpush3.msra.mxu0 %v3583_v58 }
 0x283   : > { %5161 = vmatpush3.msra.mxu1 %v3583_v58  ;;  %4549 = vmatprep.subr.mxu0 %v3598_v61 }
 0x284   : > { %5146 = vmatprep.subr.mxu1 %v3598_v61  ;;  %4550 = vmatpush3.msra.mxu0 %v3582_v36 }
 0x285   : > { %5162 = vmatpush3.msra.mxu1 %v3582_v36  ;;  %4551 = vmatprep.subr.mxu0 %v3597_v48 }
 0x286   : > { %5147 = vmatprep.subr.mxu1 %v3597_v48  ;;  %4552 = vmatpush3.msra.mxu0 %v3581_v7 }
 0x287   : > { %5163 = vmatpush3.msra.mxu1 %v3581_v7  ;;  %3775 = vmatmul.mubr.f32.vlgmr.msra.gmra.mxu0 %v3615_v1 }
 0x288   : > { %3805 = vmatmul.mubr.f32.vlgmr.msra.gmra.mxu1 %v3633_v4  ;;  %5083 = vmatprep.subr.mxu1 %v5256_v63 }
 0x289   : > { %5084 = vmatpush3.msk.msra.mxu1 %vm3706_vm2, %v6824_v30  ;;  %3809 = vmatprep.mubr.f32.mxu1 %v3637_v6  ;;  %v3622_v30 = vld [vmem:[%s7224_s4 + $0x38] sm:$0xff] }
 0x28a   : > { %5085 = vmatprep.subr.mxu1 %v5256_v63  ;;  %3779 = vmatprep.mubr.f32.mxu0 %v3619_v24 }
 0x28b   : > { %5086 = vmatpush3.msra.mxu1 %v3613_v40  ;;  %3780 = vmatmul.mubr.f32.gmra.mxu0 %v3618_v32 }
 0x28c   : > { %3810 = vmatmul.mubr.f32.gmra.mxu1 %v3636_v46  ;;  %3784 = vmatprep.mubr.f32.mxu0 %v3622_v30 }
 0x28d   : > { %3814 = vmatprep.mubr.f32.mxu1 %v3640_v26 }
 0x28f   : > { %3785 = vmatmul.mubr.f32.gmra.mxu0 %v3621_v23 }
 0x290   : > { %3815 = vmatmul.mubr.f32.gmra.mxu1 %v3639_v38  ;;  %3789 = vmatprep.mubr.f32.mxu0 %v3625_v11 }
 0x291   : > { %3819 = vmatprep.mubr.f32.mxu1 %v3643_v43 }
 0x293   : > { %3790 = vmatmul.mubr.f32.gmra.mxu0 %v3624_v52 }
 0x294   : > { %3820 = vmatmul.mubr.f32.gmra.mxu1 %v3642_v57  ;;  %3794 = vmatprep.mubr.f32.mxu0 %v3628_v34 }
 0x295   : > { %3824 = vmatprep.mubr.f32.mxu1 %v3646_v16 }
 0x297   : > { %3795 = vmatmul.mubr.f32.gmra.mxu0 %v3627_v60 }
 0x298   : > { %3825 = vmatmul.mubr.f32.gmra.mxu1 %v3645_v0  ;;  %3799 = vmatprep.mubr.f32.mxu0 %v3631_v3 }
 0x299   : > { %3829 = vmatprep.mubr.f32.mxu1 %v3649_v2 }
 0x29b   : > { %3800 = vmatmul.mubr.f32.gmra.mxu0 %v3630_v37 }
 0x29c   : > { %3830 = vmatmul.mubr.f32.gmra.mxu1 %v3648_v19 }
 0x29d   : > { %3834 = vmatprep.mubr.f32.mxu1 %v3652_v25 }
 0x2a0   : > { %3835 = vmatmul.mubr.f32.gmra.mxu1 %v3651_v17 }
 0x2a1   : > { %3839 = vmatprep.mubr.f32.mxu1 %v3655_v5 }
 0x2a4   : > { %3840 = vmatmul.mubr.f32.gmra.mxu1 %v3654_v39 }
 0x2a5   : > { %3844 = vmatprep.mubr.f32.mxu1 %v3658_v59 }
 0x2a8   : > { %3845 = vmatmul.mubr.f32.gmra.mxu1 %v3657_v35 }
 0x2a9   : > { %5087 = vmatprep.mubr.msk.f32.mxu1 %vm5257_vm3, %v5256_v63 }
 0x2ac   : > { %5088 = vmatmul.mubr.msk.f32.vlgmr.msra.gmra.mxu1 %vm3660_vm4, %v3617_v12 }
 0x2ad   : > { %5090 = vmatprep.mubr.msk.f32.mxu1 %vm5257_vm3, %v5256_v63 }
 0x2b0   : > { %5091 = vmatmul.mubr.msk.f32.gmra.mxu1 %vm3660_vm4, %v3620_v8 }
 0x2b1   : > { %5093 = vmatprep.mubr.msk.f32.mxu1 %vm5257_vm3, %v5256_v63 }
 0x2b4   : > { %5094 = vmatmul.mubr.msk.f32.gmra.mxu1 %vm3660_vm4, %v3623_v44 }
 0x2b5   : > { %5096 = vmatprep.mubr.msk.f32.mxu1 %vm5257_vm3, %v5256_v63 }
 0x2b8   : > { %5097 = vmatmul.mubr.msk.f32.gmra.mxu1 %vm3660_vm4, %v3626_v21 }
 0x2b9   : > { %5099 = vmatprep.mubr.msk.f32.mxu1 %vm5257_vm3, %v5256_v63 }
 0x2bc   : > { %5100 = vmatmul.mubr.msk.f32.gmra.mxu1 %vm3660_vm4, %v3629_v62 }
 0x2bd   : > { %5102 = vmatprep.mubr.msk.f32.mxu1 %vm5257_vm3, %v5256_v63 }
 0x2c0   : > { %5103 = vmatmul.mubr.msk.f32.gmra.mxu1 %vm3660_vm4, %v3632_v13 }
 0x2c1   : > { %5105 = vmatprep.mubr.msk.f32.mxu1 %vm5257_vm3, %v5256_v63 }
 0x2c4   : > { %5106 = vmatmul.mubr.msk.f32.gmra.mxu1 %vm3660_vm4, %v3635_v10 }
 0x2c5   : > { %5108 = vmatprep.mubr.msk.f32.mxu1 %vm5257_vm3, %v5256_v63 }
 0x2c8   : > { %5109 = vmatmul.mubr.msk.f32.gmra.mxu1 %vm3660_vm4, %v3638_v47 }
 0x2c9   : > { %5111 = vmatprep.mubr.msk.f32.mxu1 %vm5257_vm3, %v5256_v63 }
 0x2cc   : > { %5112 = vmatmul.mubr.msk.f32.gmra.mxu1 %vm3660_vm4, %v3641_v9 }
 0x2cd   : > { %5114 = vmatprep.mubr.msk.f32.mxu1 %vm5257_vm3, %v5256_v63 }
 0x2d0   : > { %5115 = vmatmul.mubr.msk.f32.gmra.mxu1 %vm3660_vm4, %v3644_v14 }
 0x2d1   : > { %5117 = vmatprep.mubr.msk.f32.mxu1 %vm5257_vm3, %v5256_v63 }
 0x2d4   : > { %5118 = vmatmul.mubr.msk.f32.gmra.mxu1 %vm3660_vm4, %v3647_v41 }
 0x2d5   : > { %5120 = vmatprep.mubr.msk.f32.mxu1 %vm5257_vm3, %v5256_v63 }
 0x2d8   : > { %5121 = vmatmul.mubr.msk.f32.gmra.mxu1 %vm3660_vm4, %v3650_v45 }
 0x2d9   : > { %5123 = vmatprep.mubr.msk.f32.mxu1 %vm5257_vm3, %v5256_v63 }
 0x2dc   : > { %5124 = vmatmul.mubr.msk.f32.gmra.mxu1 %vm3660_vm4, %v3653_v28 }
 0x2dd   : > { %5126 = vmatprep.mubr.msk.f32.mxu1 %vm5257_vm3, %v5256_v63 }
 0x2e0   : > { %5127 = vmatmul.mubr.msk.f32.gmra.mxu1 %vm3660_vm4, %v3656_v56 }
 0x2e1   : > { %5129 = vmatprep.mubr.msk.f32.mxu1 %vm5257_vm3, %v5256_v63 }
 0x2e4   : > { %5130 = vmatmul.mubr.msk.f32.gmra.mxu1 %vm3660_vm4, %v3659_v20 }
 0x347   : > { %v4553_v58 = vpop.f32.mrf.mxu0 }
 0x348   : > { %v4571_v22 = vpop.f32.mrf.mxu1 }
 0x349   : > { %v4554_v36 = vpop.f32.mrf.mxu0 }
 0x34a   : > { %v4572_v50 = vpop.f32.mrf.mxu1  ;;  %v4555_v24 = vadd.f32 %v4554_v36, %v4553_v58 }
 0x34b   : > { %v4556_v61 = vpop.f32.mrf.mxu0  ;;  %v4573_v13 = vadd.f32 %v4572_v50, %v4571_v22 }
 0x34c   : > { %v7148_v49 = vpop.f32.mrf.mxu1 }
 0x34d   : > { %v4557_v54 = vpop.f32.mrf.mxu0 }
 0x34e   : > { %v7150_v15 = vpop.f32.mrf.mxu1  ;;  %v4558_v38 = vadd.f32 %v4557_v54, %v4556_v61 }
 0x34f   : > { %v4559_v33 = vpop.f32.mrf.mxu0  ;;  %v4576_v14 = vadd.f32 %v7150_v15, %v7148_v49 }
 0x350   : > { %v7152_v27 = vpop.f32.mrf.mxu1 }
 0x351   : > { %v4560_v31 = vpop.f32.mrf.mxu0 }
 0x352   : > { %v7154_v29 = vpop.f32.mrf.mxu1  ;;  %v4561_v16 = vadd.f32 %v4560_v31, %v4559_v33 }
 0x353   : > { %v4562_v1 = vpop.f32.mrf.mxu0  ;;  %v4579_v56 = vadd.f32 %v7154_v29, %v7152_v27 }
 0x354   : > { %v7156_v55 = vpop.f32.mrf.mxu1 }
 0x355   : > { %v4563_v26 = vpop.f32.mrf.mxu0 }
 0x356   : > { %v7158_v53 = vpop.f32.mrf.mxu1  ;;  %v4564_v60 = vadd.f32 %v4563_v26, %v4562_v1 }
 0x357   : > { %v4565_v23 = vpop.f32.mrf.mxu0  ;;  %v4582_v58 = vadd.f32 %v7158_v53, %v7156_v55 }
 0x358   : > { %v7160_v18 = vpop.f32.mrf.mxu1 }
 0x359   : > { %v4566_v34 = vpop.f32.mrf.mxu0 }
 0x35a   : > { %v7162_v48 = vpop.f32.mrf.mxu1  ;;  %v4567_v17 = vadd.f32 %v4566_v34, %v4565_v23 }
 0x35b   : > { %v4568_v19 = vpop.f32.mrf.mxu0  ;;  %v4585_v61 = vadd.f32 %v7162_v48, %v7160_v18 }
 0x35c   : > { %v7164_v42 = vpop.f32.mrf.mxu1 }
 0x35d   : > { %v4569_v39 = vpop.f32.mrf.mxu0 }
 0x35e   : > { %v7166_v7 = vpop.f32.mrf.mxu1  ;;  %v4570_v12 = vadd.f32 %v4569_v39, %v4568_v19 }
 0x35f   : > { %v4588_v33 = vadd.f32 %v7166_v7, %v7164_v42 }
 0x360   : > { %v7168_v51 = vpop.f32.mrf.mxu1 }
 0x362   : > { %v7170_v40 = vpop.f32.mrf.mxu1 }
 0x363   : > { %v4591_v1 = vadd.f32 %v7170_v40, %v7168_v51 }
 0x364   : > { %v7172_v4 = vpop.f32.mrf.mxu1 }
 0x366   : > { %v7174_v6 = vpop.f32.mrf.mxu1 }
 0x367   : > { %v4594_v26 = vadd.f32 %v7174_v6, %v7172_v4 }
 0x368   : > { %v7176_v63 = vpop.f32.mrf.mxu1 }
 0x36a   : > { %v7179_v46 = vpop.f32.mrf.mxu1 }
 0x36b   : > { %v4597_v7 = vadd.f32 %v7179_v46, %v7176_v63 }
 0x36c   : > { %v3916_v32 = vpop.f32.mrf.mxu1 }
 0x36d   : > { %v3917_v30 = vadd.f32 %v4555_v24, %v3916_v32 }
 0x36e   : > { %v5089_v43 = vpop.f32.mrf.mxu1 }
 0x36f   : > { %3990 = vst [vmem:[%s7184_s14] sm:$0xff] %v3917_v30 }
 0x370   : > { %v3921_v11 = vpop.f32.mrf.mxu1 }
 0x371   : > { %v3922_v57 = vadd.f32 %v4558_v38, %v3921_v11 }
 0x372   : > { %v5092_v52 = vpop.f32.mrf.mxu1 }
 0x373   : > { %3991 = vst [vmem:[%s7184_s14 + $0x8] sm:$0xff] %v3922_v57 }
 0x374   : > { %v3926_v0 = vpop.f32.mrf.mxu1 }
 0x375   : > { %v3927_v2 = vadd.f32 %v4561_v16, %v3926_v0 }
 0x376   : > { %v5095_v3 = vpop.f32.mrf.mxu1 }
 0x377   : > { %3992 = vst [vmem:[%s7184_s14 + $0x10] sm:$0xff] %v3927_v2 }
 0x378   : > { %v3931_v25 = vpop.f32.mrf.mxu1 }
 0x379   : > { %v3932_v37 = vadd.f32 %v4564_v60, %v3931_v25 }
 0x37a   : > { %v5098_v5 = vpop.f32.mrf.mxu1 }
 0x37b   : > { %3993 = vst [vmem:[%s7184_s14 + $0x18] sm:$0xff] %v3932_v37 }
 0x37c   : > { %v3936_v59 = vpop.f32.mrf.mxu1 }
 0x37d   : > { %v3937_v35 = vadd.f32 %v4567_v17, %v3936_v59 }
 0x37e   : > { %v5101_v8 = vpop.f32.mrf.mxu1 }
 0x37f   : > { %3994 = vst [vmem:[%s7184_s14 + $0x20] sm:$0xff] %v3937_v35 }
 0x380   : > { %v3941_v44 = vpop.f32.mrf.mxu1 }
 0x381   : > { %v3942_v21 = vadd.f32 %v4570_v12, %v3941_v44 }
 0x382   : > { %v5104_v62 = vpop.f32.mrf.mxu1 }
 0x383   : > { %3995 = vst [vmem:[%s7184_s14 + $0x28] sm:$0xff] %v3942_v21 }
 0x384   : > { %v3946_v10 = vpop.f32.mrf.mxu1 }
 0x385   : > { %v3947_v47 = vadd.f32 %v4573_v13, %v3946_v10 }
 0x386   : > { %v5107_v9 = vpop.f32.mrf.mxu1 }
 0x387   : > { %3996 = vst [vmem:[%s7184_s14 + $0x30] sm:$0xff] %v3947_v47 }
 0x388   : > { %v3951_v41 = vpop.f32.mrf.mxu1 }
 0x389   : > { %v3952_v45 = vadd.f32 %v4576_v14, %v3951_v41 }
 0x38a   : > { %v5110_v28 = vpop.f32.mrf.mxu1 }
 0x38b   : > { %3997 = vst [vmem:[%s7184_s14 + $0x38] sm:$0xff] %v3952_v45 }
 0x38c   : > { %v3956_v20 = vpop.f32.mrf.mxu1 }
 0x38d   : > { %v3957_v22 = vadd.f32 %v4579_v56, %v3956_v20 }
 0x38e   : > { %v5113_v50 = vpop.f32.mrf.mxu1 }
 0x38f   : > { %3998 = vst [vmem:[%s7184_s14 + $0x40] sm:$0xff] %v3957_v22 }
 0x390   : > { %v3961_v36 = vpop.f32.mrf.mxu1 }
 0x391   : > { %v3962_v49 = vadd.f32 %v4582_v58, %v3961_v36 }
 0x392   : > { %v5116_v15 = vpop.f32.mrf.mxu1 }
 0x393   : > { %3999 = vst [vmem:[%s7184_s14 + $0x48] sm:$0xff] %v3962_v49 }
 0x394   : > { %v3966_v54 = vpop.f32.mrf.mxu1 }
 0x395   : > { %v3967_v27 = vadd.f32 %v4585_v61, %v3966_v54 }
 0x396   : > { %v5119_v29 = vpop.f32.mrf.mxu1 }
 0x397   : > { %4000 = vst [vmem:[%s7184_s14 + $0x50] sm:$0xff] %v3967_v27 }
 0x398   : > { %v3971_v31 = vpop.f32.mrf.mxu1 }
 0x399   : > { %v3972_v55 = vadd.f32 %v4588_v33, %v3971_v31 }
 0x39a   : > { %v5122_v53 = vpop.f32.mrf.mxu1 }
 0x39b   : > { %4001 = vst [vmem:[%s7184_s14 + $0x58] sm:$0xff] %v3972_v55 }
 0x39c   : > { %v3976_v24 = vpop.f32.mrf.mxu1 }
 0x39d   : > { %v3977_v18 = vadd.f32 %v4591_v1, %v3976_v24 }
 0x39e   : > { %v5125_v48 = vpop.f32.mrf.mxu1 }
 0x39f   : > { %4002 = vst [vmem:[%s7184_s14 + $0x60] sm:$0xff] %v3977_v18 }
 0x3a0   : > { %v3981_v32 = vpop.f32.mrf.mxu1 }
 0x3a1   : > { %v3982_v30 = vadd.f32 %v4594_v26, %v3981_v32 }
 0x3a2   : > { %v5128_v42 = vpop.f32.mrf.mxu1 }
 0x3a3   : > { %4003 = vst [vmem:[%s7184_s14 + $0x68] sm:$0xff] %v3982_v30 }
 0x3a4   : > { %v3986_v38 = vpop.f32.mrf.mxu1 }
 0x3a5   : > { %v3987_v43 = vadd.f32 %v4597_v7, %v3986_v38 }
 0x3a6   : > { %v5131_v23 = vpop.f32.mrf.mxu1 }
 0x3a7   : > { %4004 = vst [vmem:[%s7184_s14 + $0x70] sm:$0xff] %v3987_v43 }
 0x3a8 PF: > { %s15_s18 = sadd.s32 1, %s5254_s18  }
 0x3a9   : > { %p12_p4 = scmp.ge.s32.totalorder %s15_s18, 4  }
 0x3ab   :  { %14 = sbr.rel (!%p12_p4) target bundleno = 1 (0x1), region = 78 }

// kernel: _lambda_.6
= control target key start
LH: loop header
LB: loop body
LE: loop exit
PB: predicated region body
PF: predicated region fallthrough
CT: control target
= control target key end

     0   :  { %s2146_s18 = smov 0   ;;  %s2453_s0 = inlined_call_operand.vmem [shape: f32[2,48,128], index: 0, kind: input, shape index: {}]   ;;  %s2454_s1 = inlined_call_operand.vmem [shape: bf16[9,128,128], index: 1, kind: input, shape index: {}]   ;;  %s2455_s2 = inlined_call_operand.vmem [shape: f32[1,128], index: 2, kind: input, shape index: {}]   ;;  %s2456_s3 = inlined_call_operand.vmem [shape: f32[1,128], index: 3, kind: input, shape index: {}]   ;;  %s2457_s4 = inlined_call_operand.vmem [shape: f32[24,17], index: 4, kind: input, shape index: {}]   ;;  %s2458_s5 = inlined_call_operand.vmem [shape: f32[2,24,128], index: 5, kind: output, shape index: {}]  }
   0x1 LB: > { %s1516_s19 = sadd.s32 4294967295, %s2112_s18   ;;  %p1520_p0 = scmp.ge.s32.totalorder %s2112_s18, 1  ;;  %s2112_s18 = sphi %s2146_s18, %s15_s18  }
   0x2   : > { %p187_p1 = scmp.lt.s32.totalorder %s2112_s18, 3 }
   0x4   : > { %p188_p2 = pnand %p1520_p0, %p187_p1 }
   0x5   : > { %p215_p3 = scmp.lt.s32.totalorder (!%p188_p2), %s1516_s19, 1 }
   0x6   : > { %191 = sbr.rel (%p188_p2) target bundleno = 595 (0x253), region = 40 }
   0xb   : > { %v2034_v0 = vld [vmem:[%s2454_s1 + $0x78] sm:$0xff]   ;;  %v2036_v2 = vld [vmem:[%s2454_s1 + $0x70] sm:$0xff]   ;;  %v2038_v4 = vld [vmem:[%s2454_s1 + $0x68] sm:$0xff]   ;;  %s2460_s19 = smov (!%p215_p3, %s1516_s19), 1  ;;  %vm2115_vm0 = vmmov 0   ;;  %vm1334_vm1 = vcmask 1046528  }
   0xc   : > { %v2035_v1 = vld [vmem:[%s2454_s1 + $0x38] sm:$0xff]   ;;  %1827 = vmatprep.subr.bf16.mxu0 %v2034_v0  ;;  %v2037_v3 = vld [vmem:[%s2454_s1 + $0x30] sm:$0xff]   ;;  %v2039_v5 = vld [vmem:[%s2454_s1 + $0x28] sm:$0xff]   ;;  %s2022_s11 = smul.u32 48, %s2460_s19  ;;  %vm1374_vm2 = vcmask 1040384   ;;  %vm1349_vm3 = vcmask 1041408  }
   0xd   : > { %1847 = vmatprep.subr.bf16.mxu1 %v2035_v1  ;;  %1828 = vmatpush3.bf16.msra.mxu0 %v2034_v0  ;;  %v2040_v6 = vld [vmem:[%s2454_s1 + $0x60] sm:$0xff]   ;;  %v2042_v8 = vld [vmem:[%s2454_s1 + $0x58] sm:$0xff]   ;;  %v2044_v10 = vld [vmem:[%s2454_s1 + $0x50] sm:$0xff]   ;;  %vm1364_vm4 = vcmask 138240   ;;  %s2023_s22 = smul.u32 24, %s2460_s19 }
   0xe   : > { %1848 = vmatpush3.bf16.msra.mxu1 %v2035_v1  ;;  %1829 = vmatprep.subr.bf16.mxu0 %v2036_v2  ;;  %v2041_v7 = vld [vmem:[%s2454_s1 + $0x20] sm:$0xff]   ;;  %v2043_v9 = vld [vmem:[%s2454_s1 + $0x18] sm:$0xff]   ;;  %s2190_s20 = scalar_lea.vmem %s2453_s0, %s2022_s11  ;;  %v2045_v14 = vld [vmem:[%s2454_s1 + $0x10] sm:$0xff]  }
   0xf   : > { %1849 = vmatprep.subr.bf16.mxu1 %v2037_v3  ;;  %v247_v11 = vld [vmem:[%s2190_s20 + $0x6] sm:$0xff]  ;;  %v248_v12 = vld [vmem:[%s2190_s20 + $0xe] sm:$0xff]  ;;  %v249_v22 = vld [vmem:[%s2190_s20 + $0x16] sm:$0xff]  ;;  %s224_s25 = scalar_lea.vmem %s2458_s5, %s2023_s22 }
  0x10   : > { %v226_v13 = vld [vmem:[%s2190_s20 + $0x5] sm:$0xff]  ;;  %v250_v15 = vpack.c.bf16 %v248_v12, %v247_v11  ;;  %v2202_v16 = vld [vmem:[%s2190_s20 + $0xd] sm:$0xff]  ;;  %v2219_v23 = vld [vmem:[%s2190_s20 + $0x15] sm:$0xff]  ;;  %v251_v26 = vpack.c.bf16 %v249_v22, %v249_v22 }
  0x11   : > { %1830 = vmatpush3.bf16.msra.mxu0 %v2036_v2  ;;  %v229_v17 = vpack.c.bf16 %v2202_v16, %v226_v13  ;;  %v2046_v18 = vld [vmem:[%s2454_s1 + $0x48] sm:$0xff]   ;;  %v2048_v20 = vld [vmem:[%s2454_s1 + $0x40] sm:$0xff]   ;;  %v2050_v24 = vld [vmem:[%s2454_s1 + $0xb8] sm:$0xff]   ;;  %v230_v27 = vpack.c.bf16 %v2219_v23, %v2219_v23  ;;  %v827_v60 = vpack.c.bf16 %v2219_v23, %v2202_v16 }
  0x12   : > { %1850 = vmatpush3.bf16.msra.mxu1 %v2037_v3  ;;  %1831 = vmatprep.subr.bf16.mxu0 %v2038_v4  ;;  %v2047_v19 = vld [vmem:[%s2454_s1 + $0x8] sm:$0xff]   ;;  %v2049_v21 = vld [vmem:[%s2454_s1] sm:$0xff]   ;;  %v2051_v25 = vld [vmem:[%s2454_s1 + $0xf8] sm:$0xff]  }
  0x13   : > { %1851 = vmatprep.subr.bf16.mxu1 %v2039_v5  ;;  %1843 = vmatprep.mubr.bf16.mxu0 %v250_v15  ;;  %v2052_v28 = vld [vmem:[%s2454_s1 + $0xb0] sm:$0xff]   ;;  %v461_v30 = vld [vmem:[%s2190_s20 + $0x7] sm:$0xff]  ;;  %v2245_v36 = vld [vmem:[%s2190_s20 + $0x1b] sm:$0xff] }
  0x14   : > { %1863 = vmatprep.mubr.bf16.mxu1 %v229_v17  ;;  %v2053_v29 = vld [vmem:[%s2454_s1 + $0xf0] sm:$0xff]   ;;  %v2054_v32 = vld [vmem:[%s2454_s1 + $0xa8] sm:$0xff]   ;;  %v2056_v40 = vld [vmem:[%s2454_s1 + $0xa0] sm:$0xff]   ;;  %v586_v56 = vpack.c.bf16 %v2245_v36, %v2245_v36 }
  0x15   : > { %1832 = vmatpush3.bf16.msra.mxu0 %v2038_v4  ;;  %v462_v31 = vld [vmem:[%s2190_s20 + $0xf] sm:$0xff]  ;;  %v2057_v41 = vld [vmem:[%s2454_s1 + $0xe0] sm:$0xff]   ;;  %v2058_v42 = vld [vmem:[%s2454_s1 + $0x98] sm:$0xff]  }
  0x16   : > { %1852 = vmatpush3.bf16.msra.mxu1 %v2039_v5  ;;  %1833 = vmatprep.subr.bf16.mxu0 %v2040_v6  ;;  %v464_v33 = vpack.c.bf16 %v462_v31, %v461_v30  ;;  %v582_v34 = vld [vmem:[%s2190_s20 + $0xb] sm:$0xff]  ;;  %v2242_v35 = vld [vmem:[%s2190_s20 + $0x13] sm:$0xff]  ;;  %v2064_v48 = vld [vmem:[%s2454_s1 + $0x80] sm:$0xff]  }
  0x17   : > { %1853 = vmatprep.subr.bf16.mxu1 %v2041_v7  ;;  %v2055_v37 = vld [vmem:[%s2454_s1 + $0xe8] sm:$0xff]   ;;  %v585_v38 = vpack.c.bf16 %v2242_v35, %v582_v34  ;;  %v1190_v39 = vpack.c.bf16 %v2245_v36, %v2242_v35  ;;  %v2059_v43 = vld [vmem:[%s2454_s1 + $0xd8] sm:$0xff]   ;;  %v2060_v44 = vld [vmem:[%s2454_s1 + $0x90] sm:$0xff]  }
  0x18   : > { %v2061_v45 = vld [vmem:[%s2454_s1 + $0xd0] sm:$0xff]   ;;  %v2062_v46 = vld [vmem:[%s2454_s1 + $0x88] sm:$0xff]   ;;  %v2065_v49 = vld [vmem:[%s2454_s1 + $0xc0] sm:$0xff]  }
  0x19   : > { %1834 = vmatpush3.bf16.msra.mxu0 %v2040_v6  ;;  %v2063_v47 = vld [vmem:[%s2454_s1 + $0xc8] sm:$0xff]   ;;  %v463_v50 = vld [vmem:[%s2190_s20 + $0x17] sm:$0xff]  ;;  %v2072_v63 = vld [vmem:[%s2454_s1 + $0x120] sm:$0xff]  }
  0x1a   : > { %1854 = vmatpush3.bf16.msra.mxu1 %v2041_v7  ;;  %1835 = vmatprep.subr.bf16.mxu0 %v2042_v8  ;;  %v2066_v51 = vld [vmem:[%s2454_s1 + $0x138] sm:$0xff]   ;;  %v703_v53 = vld [vmem:[%s2190_s20 + $0xc] sm:$0xff]  ;;  %v465_v54 = vpack.c.bf16 %v463_v50, %v463_v50  ;;  %v2073_v0 = vld [vmem:[%s2454_s1 + $0x160] sm:$0xff]  }
  0x1b   : > { %1855 = vmatprep.subr.bf16.mxu1 %v2043_v9  ;;  %v2067_v52 = vld [vmem:[%s2454_s1 + $0x178] sm:$0xff]   ;;  %v2068_v57 = vld [vmem:[%s2454_s1 + $0x130] sm:$0xff]   ;;  %v2070_v61 = vld [vmem:[%s2454_s1 + $0x128] sm:$0xff]  }
  0x1c   : > { %v704_v55 = vld [vmem:[%s2190_s20 + $0x14] sm:$0xff]  ;;  %v2071_v62 = vld [vmem:[%s2454_s1 + $0x168] sm:$0xff]   ;;  %v2080_v7 = vld [vmem:[%s2454_s1 + $0x100] sm:$0xff]  }
  0x1d   : > { %1836 = vmatpush3.bf16.msra.mxu0 %v2042_v8  ;;  %v2069_v58 = vld [vmem:[%s2454_s1 + $0x170] sm:$0xff]   ;;  %v706_v59 = vpack.c.bf16 %v704_v55, %v703_v53  ;;  %v2074_v1 = vld [vmem:[%s2454_s1 + $0x118] sm:$0xff]   ;;  %v2078_v5 = vld [vmem:[%s2454_s1 + $0x108] sm:$0xff]  }
  0x1e   : > { %1856 = vmatpush3.bf16.msra.mxu1 %v2043_v9  ;;  %1837 = vmatprep.subr.bf16.mxu0 %v2044_v10  ;;  %v2075_v2 = vld [vmem:[%s2454_s1 + $0x158] sm:$0xff]   ;;  %v2076_v3 = vld [vmem:[%s2454_s1 + $0x110] sm:$0xff]   ;;  %v2079_v6 = vld [vmem:[%s2454_s1 + $0x148] sm:$0xff]  }
  0x1f   : > { %1857 = vmatprep.subr.bf16.mxu1 %v2045_v14  ;;  %v2077_v4 = vld [vmem:[%s2454_s1 + $0x150] sm:$0xff]   ;;  %v2081_v8 = vld [vmem:[%s2454_s1 + $0x140] sm:$0xff]   ;;  %v2083_v12 = vld [vmem:[%s2454_s1 + $0x1f8] sm:$0xff]  }
  0x20   : > { %v705_v9 = vld [vmem:[%s2190_s20 + $0x1c] sm:$0xff]  ;;  %v1066_v17 = vld [vmem:[%s2190_s20 + $0x12] sm:$0xff]  ;;  %v2086_v23 = vld [vmem:[%s2454_s1 + $0x1a8] sm:$0xff]  }
  0x21   : > { %1838 = vmatpush3.bf16.msra.mxu0 %v2044_v10  ;;  %v2082_v10 = vld [vmem:[%s2454_s1 + $0x1b8] sm:$0xff]   ;;  %v707_v13 = vpack.c.bf16 %v705_v9, %v705_v9  ;;  %v2093_v30 = vld [vmem:[%s2454_s1 + $0x1d0] sm:$0xff]   ;;  %v2094_v31 = vld [vmem:[%s2454_s1 + $0x188] sm:$0xff]  }
  0x22   : > { %1858 = vmatpush3.bf16.msra.mxu1 %v2045_v14  ;;  %1839 = vmatprep.subr.bf16.mxu0 %v2046_v18  ;;  %v826_v11 = vld [vmem:[%s2190_s20 + $0x1d] sm:$0xff]  ;;  %v945_v14 = vld [vmem:[%s2190_s20 + $0x11] sm:$0xff]  ;;  %v2104_v36 = vld [vmem:[%s2454_s1 + $0x208] sm:$0xff]  }
  0x23   : > { %1859 = vmatprep.subr.bf16.mxu1 %v2047_v19  ;;  %v946_v15 = vld [vmem:[%s2190_s20 + $0x19] sm:$0xff]  ;;  %v828_v16 = vpack.c.bf16 %v826_v11, %v826_v11  ;;  %v2103_v35 = vld [vmem:[%s2454_s1 + $0x210] sm:$0xff]  }
  0x24   : > { %v2097_v34 = vld [vmem:[%s2454_s1 + $0x1c0] sm:$0xff]  }
  0x25   : > { %1840 = vmatpush3.bf16.msra.mxu0 %v2046_v18  ;;  %v1067_v18 = vld [vmem:[%s2190_s20 + $0x1a] sm:$0xff] }
  0x26   : > { %1860 = vmatpush3.bf16.msra.mxu1 %v2047_v19  ;;  %1841 = vmatprep.subr.bf16.mxu0 %v2048_v20  ;;  %v2084_v19 = vld [vmem:[%s2454_s1 + $0x1b0] sm:$0xff]   ;;  %v1069_v22 = vpack.c.bf16 %v1067_v18, %v1066_v17 }
  0x27   : > { %1861 = vmatprep.subr.bf16.mxu1 %v2049_v21 }
  0x29   : > { %1842 = vmatpush3.bf16.msra.mxu0 %v2048_v20  ;;  %v2085_v20 = vld [vmem:[%s2454_s1 + $0x1f0] sm:$0xff]  }
  0x2a   : > { %1862 = vmatpush3.bf16.msra.mxu1 %v2049_v21  ;;  %1867 = vmatprep.subr.bf16.mxu0 %v2050_v24  ;;  %v948_v21 = vpack.c.bf16 %v946_v15, %v945_v14 }
  0x2b   : > { %1887 = vmatprep.subr.bf16.mxu1 %v2051_v25 }
  0x2c   : > { %1844 = vmatmul.mubr.bf16.vlgmr.msra.gmra.mxu0 %v251_v26  ;;  %v2089_v26 = vld [vmem:[%s2454_s1 + $0x1e0] sm:$0xff]  }
  0x2d   : > { %1864 = vmatmul.mubr.bf16.vlgmr.msra.gmra.mxu1 %v230_v27  ;;  %1868 = vmatpush3.bf16.msra.mxu0 %v2050_v24  ;;  %v2087_v24 = vld [vmem:[%s2454_s1 + $0x1e8] sm:$0xff]   ;;  %v2090_v27 = vld [vmem:[%s2454_s1 + $0x198] sm:$0xff]  }
  0x2e   : > { %1888 = vmatpush3.bf16.msra.mxu1 %v2051_v25  ;;  %1869 = vmatprep.subr.bf16.mxu0 %v2052_v28  ;;  %v2088_v25 = vld [vmem:[%s2454_s1 + $0x1a0] sm:$0xff]  }
  0x2f   : > { %1889 = vmatprep.subr.bf16.mxu1 %v2053_v29  ;;  %1883 = vmatprep.mubr.bf16.mxu0 %v464_v33  ;;  %v2096_v33 = vld [vmem:[%s2454_s1 + $0x180] sm:$0xff]  }
  0x30   : > { %1903 = vmatprep.mubr.bf16.mxu1 %v585_v38  ;;  %v2098_v38 = vld [vmem:[%s2454_s1 + $0x238] sm:$0xff]  }
  0x31   : > { %1870 = vmatpush3.bf16.msra.mxu0 %v2052_v28  ;;  %v2091_v28 = vld [vmem:[%s2454_s1 + $0x1d8] sm:$0xff]  }
  0x32   : > { %1890 = vmatpush3.bf16.msra.mxu1 %v2053_v29  ;;  %1871 = vmatprep.subr.bf16.mxu0 %v2054_v32  ;;  %v2092_v29 = vld [vmem:[%s2454_s1 + $0x190] sm:$0xff]  }
  0x33   : > { %1891 = vmatprep.subr.bf16.mxu1 %v2055_v37 }
  0x35   : > { %1872 = vmatpush3.bf16.msra.mxu0 %v2054_v32  ;;  %v2095_v32 = vld [vmem:[%s2454_s1 + $0x1c8] sm:$0xff]  }
  0x36   : > { %1892 = vmatpush3.bf16.msra.mxu1 %v2055_v37  ;;  %1873 = vmatprep.subr.bf16.mxu0 %v2056_v40  ;;  %v947_v37 = vld [vmem:[%s2190_s20 + $0x21] sm:$0xff] }
  0x37   : > { %1893 = vmatprep.subr.bf16.mxu1 %v2057_v41 }
  0x39   : > { %1874 = vmatpush3.bf16.msra.mxu0 %v2056_v40  ;;  %v1068_v40 = vld [vmem:[%s2190_s20 + $0x22] sm:$0xff] }
  0x3a   : > { %1894 = vmatpush3.bf16.msra.mxu1 %v2057_v41  ;;  %1875 = vmatprep.subr.bf16.mxu0 %v2058_v42  ;;  %v949_v41 = vpack.c.bf16 %v947_v37, %v947_v37 }
  0x3b   : > { %1895 = vmatprep.subr.bf16.mxu1 %v2059_v43 }
  0x3d   : > { %1876 = vmatpush3.bf16.msra.mxu0 %v2058_v42  ;;  %v1070_v42 = vpack.c.bf16 %v1068_v40, %v1068_v40 }
  0x3e   : > { %1896 = vmatpush3.bf16.msra.mxu1 %v2059_v43  ;;  %1877 = vmatprep.subr.bf16.mxu0 %v2060_v44  ;;  %v2099_v43 = vld [vmem:[%s2454_s1 + $0x230] sm:$0xff]  }
  0x3f   : > { %1897 = vmatprep.subr.bf16.mxu1 %v2061_v45 }
  0x41   : > { %1878 = vmatpush3.bf16.msra.mxu0 %v2060_v44  ;;  %v2100_v44 = vld [vmem:[%s2454_s1 + $0x228] sm:$0xff]  }
  0x42   : > { %1898 = vmatpush3.bf16.msra.mxu1 %v2061_v45  ;;  %1879 = vmatprep.subr.bf16.mxu0 %v2062_v46  ;;  %v2101_v45 = vld [vmem:[%s2454_s1 + $0x220] sm:$0xff]  }
  0x43   : > { %1899 = vmatprep.subr.bf16.mxu1 %v2063_v47 }
  0x45   : > { %1880 = vmatpush3.bf16.msra.mxu0 %v2062_v46  ;;  %v2102_v46 = vld [vmem:[%s2454_s1 + $0x218] sm:$0xff]  }
  0x46   : > { %1900 = vmatpush3.bf16.msra.mxu1 %v2063_v47  ;;  %1881 = vmatprep.subr.bf16.mxu0 %v2064_v48  ;;  %v1189_v47 = vld [vmem:[%s2190_s20 + $0x23] sm:$0xff] }
  0x47   : > { %1901 = vmatprep.subr.bf16.mxu1 %v2065_v49 }
  0x49   : > { %1882 = vmatpush3.bf16.msra.mxu0 %v2064_v48  ;;  %v1191_v48 = vpack.c.bf16 %v1189_v47, %v1189_v47 }
  0x4a   : > { %1902 = vmatpush3.bf16.msra.mxu1 %v2065_v49  ;;  %1907 = vmatprep.subr.bf16.mxu0 %v2066_v51 }
  0x4b   : > { %1927 = vmatprep.subr.bf16.mxu1 %v2067_v52 }
  0x4c   : > { %1884 = vmatmul.mubr.bf16.vlgmr.msra.gmra.mxu0 %v465_v54 }
  0x4d   : > { %1908 = vmatpush3.bf16.msra.mxu0 %v2066_v51  ;;  %1904 = vmatmul.mubr.bf16.vlgmr.msra.gmra.mxu1 %v586_v56 }
  0x4e   : > { %1928 = vmatpush3.bf16.msra.mxu1 %v2067_v52  ;;  %1909 = vmatprep.subr.bf16.mxu0 %v2068_v57 }
  0x4f   : > { %1929 = vmatprep.subr.bf16.mxu1 %v2069_v58  ;;  %1923 = vmatprep.mubr.bf16.mxu0 %v706_v59 }
  0x50   : > { %1943 = vmatprep.mubr.bf16.mxu1 %v827_v60  ;;  %v2114_v60 = vmov 0.0  }
  0x51   : > { %1910 = vmatpush3.bf16.msra.mxu0 %v2068_v57 }
  0x52   : > { %1930 = vmatpush3.bf16.msra.mxu1 %v2069_v58  ;;  %1911 = vmatprep.subr.bf16.mxu0 %v2070_v61 }
  0x53   : > { %1931 = vmatprep.subr.bf16.mxu1 %v2071_v62 }
  0x55   : > { %1912 = vmatpush3.bf16.msra.mxu0 %v2070_v61 }
  0x56   : > { %1932 = vmatpush3.bf16.msra.mxu1 %v2071_v62  ;;  %1913 = vmatprep.subr.bf16.mxu0 %v2072_v63 }
  0x57   : > { %1933 = vmatprep.subr.bf16.mxu1 %v2073_v0 }
  0x59   : > { %1914 = vmatpush3.bf16.msra.mxu0 %v2072_v63 }
  0x5a   : > { %1934 = vmatpush3.bf16.msra.mxu1 %v2073_v0  ;;  %1915 = vmatprep.subr.bf16.mxu0 %v2074_v1 }
  0x5b   : > { %1935 = vmatprep.subr.bf16.mxu1 %v2075_v2 }
  0x5d   : > { %1916 = vmatpush3.bf16.msra.mxu0 %v2074_v1 }
  0x5e   : > { %1936 = vmatpush3.bf16.msra.mxu1 %v2075_v2  ;;  %1917 = vmatprep.subr.bf16.mxu0 %v2076_v3 }
  0x5f   : > { %1937 = vmatprep.subr.bf16.mxu1 %v2077_v4 }
  0x61   : > { %1918 = vmatpush3.bf16.msra.mxu0 %v2076_v3 }
  0x62   : > { %1938 = vmatpush3.bf16.msra.mxu1 %v2077_v4  ;;  %1919 = vmatprep.subr.bf16.mxu0 %v2078_v5 }
  0x63   : > { %1939 = vmatprep.subr.bf16.mxu1 %v2079_v6 }
  0x65   : > { %1920 = vmatpush3.bf16.msra.mxu0 %v2078_v5 }
  0x66   : > { %1940 = vmatpush3.bf16.msra.mxu1 %v2079_v6  ;;  %1921 = vmatprep.subr.bf16.mxu0 %v2080_v7 }
  0x67   : > { %1941 = vmatprep.subr.bf16.mxu1 %v2081_v8 }
  0x69   : > { %1922 = vmatpush3.bf16.msra.mxu0 %v2080_v7 }
  0x6a   : > { %1942 = vmatpush3.bf16.msra.mxu1 %v2081_v8  ;;  %1947 = vmatprep.subr.bf16.mxu0 %v2082_v10 }
  0x6b   : > { %1967 = vmatprep.subr.bf16.mxu1 %v2083_v12 }
  0x6c   : > { %1924 = vmatmul.mubr.bf16.vlgmr.msra.gmra.mxu0 %v707_v13 }
  0x6d   : > { %1948 = vmatpush3.bf16.msra.mxu0 %v2082_v10  ;;  %1944 = vmatmul.mubr.bf16.vlgmr.msra.gmra.mxu1 %v828_v16 }
  0x6e   : > { %1968 = vmatpush3.bf16.msra.mxu1 %v2083_v12  ;;  %1949 = vmatprep.subr.bf16.mxu0 %v2084_v19 }
  0x6f   : > { %1969 = vmatprep.subr.bf16.mxu1 %v2085_v20  ;;  %1963 = vmatprep.mubr.bf16.mxu0 %v948_v21 }
  0x70   : > { %1983 = vmatprep.mubr.bf16.mxu1 %v1069_v22 }
  0x71   : > { %1950 = vmatpush3.bf16.msra.mxu0 %v2084_v19 }
  0x72   : > { %1970 = vmatpush3.bf16.msra.mxu1 %v2085_v20  ;;  %1951 = vmatprep.subr.bf16.mxu0 %v2086_v23 }
  0x73   : > { %1971 = vmatprep.subr.bf16.mxu1 %v2087_v24 }
  0x75   : > { %1952 = vmatpush3.bf16.msra.mxu0 %v2086_v23 }
  0x76   : > { %1972 = vmatpush3.bf16.msra.mxu1 %v2087_v24  ;;  %1953 = vmatprep.subr.bf16.mxu0 %v2088_v25 }
  0x77   : > { %1973 = vmatprep.subr.bf16.mxu1 %v2089_v26 }
  0x79   : > { %1954 = vmatpush3.bf16.msra.mxu0 %v2088_v25 }
  0x7a   : > { %1974 = vmatpush3.bf16.msra.mxu1 %v2089_v26  ;;  %1955 = vmatprep.subr.bf16.mxu0 %v2090_v27 }
  0x7b   : > { %1975 = vmatprep.subr.bf16.mxu1 %v2091_v28 }
  0x7d   : > { %1956 = vmatpush3.bf16.msra.mxu0 %v2090_v27 }
  0x7e   : > { %1976 = vmatpush3.bf16.msra.mxu1 %v2091_v28  ;;  %1957 = vmatprep.subr.bf16.mxu0 %v2092_v29 }
  0x7f   : > { %1977 = vmatprep.subr.bf16.mxu1 %v2093_v30 }
  0x81   : > { %1958 = vmatpush3.bf16.msra.mxu0 %v2092_v29 }
  0x82   : > { %1978 = vmatpush3.bf16.msra.mxu1 %v2093_v30  ;;  %1959 = vmatprep.subr.bf16.mxu0 %v2094_v31 }
  0x83   : > { %1979 = vmatprep.subr.bf16.mxu1 %v2095_v32 }
  0x85   : > { %1960 = vmatpush3.bf16.msra.mxu0 %v2094_v31 }
  0x86   : > { %1980 = vmatpush3.bf16.msra.mxu1 %v2095_v32  ;;  %1961 = vmatprep.subr.bf16.mxu0 %v2096_v33 }
  0x87   : > { %1981 = vmatprep.subr.bf16.mxu1 %v2097_v34 }
  0x89   : > { %1962 = vmatpush3.bf16.msra.mxu0 %v2096_v33 }
  0x8a   : > { %1982 = vmatpush3.bf16.msra.mxu1 %v2097_v34  ;;  %1987 = vmatprep.subr.bf16.mxu0 %v2098_v38 }
  0x8b   : > { %2007 = vmatprep.subr.mxu1 %v2114_v60 }
  0x8c   : > { %1964 = vmatmul.mubr.bf16.vlgmr.msra.gmra.mxu0 %v949_v41 }
  0x8d   : > { %1988 = vmatpush3.bf16.msra.mxu0 %v2098_v38  ;;  %1984 = vmatmul.mubr.bf16.vlgmr.msra.gmra.mxu1 %v1070_v42  ;;  %v1723_v38 = vld [vmem:[%s2455_s2] ss:$0 sm:$0xff] }
  0x8e   : > { %1989 = vmatprep.subr.bf16.mxu0 %v2099_v43  ;;  %2003 = vmatprep.mubr.bf16.mxu0 %v1190_v39  ;;  %v2105_v39 = vld [vmem:[%s2454_s1 + $0x200] sm:$0xff]  }
  0x8f   : > { %2013 = vmatprep.mubr.msk.f32.mxu1 %vm2115_vm0, %v2114_v60 }
  0x91   : > { %1990 = vmatpush3.bf16.msra.mxu0 %v2099_v43 }
  0x92   : > { %1991 = vmatprep.subr.bf16.mxu0 %v2100_v44 }
  0x95   : > { %1992 = vmatpush3.bf16.msra.mxu0 %v2100_v44  ;;  %v1724_v44 = vld [vmem:[%s2456_s3] ss:$0 sm:$0xff] }
  0x96   : > { %1993 = vmatprep.subr.bf16.mxu0 %v2101_v45 }
  0x99   : > { %1994 = vmatpush3.bf16.msra.mxu0 %v2101_v45 }
  0x9a   : > { %1995 = vmatprep.subr.bf16.mxu0 %v2102_v46 }
  0x9d   : > { %1996 = vmatpush3.bf16.msra.mxu0 %v2102_v46 }
  0x9e   : > { %1997 = vmatprep.subr.bf16.mxu0 %v2103_v35 }
  0xa1   : > { %1998 = vmatpush3.bf16.msra.mxu0 %v2103_v35 }
  0xa2   : > { %1999 = vmatprep.subr.bf16.mxu0 %v2104_v36 }
  0xa5   : > { %2000 = vmatpush3.bf16.msra.mxu0 %v2104_v36 }
  0xa6   : > { %2001 = vmatprep.subr.bf16.mxu0 %v2105_v39 }
  0xa9   : > { %2002 = vmatpush3.bf16.msra.mxu0 %v2105_v39 }
  0xac   : > { %2004 = vmatmul.mubr.bf16.vlgmr.msra.gmra.mxu0 %v1191_v48 }
  0xec   : > { %v1845_v49 = vpop.f32.mrf.mxu0 }
  0xed   : > { %v1865_v50 = vpop.f32.mrf.mxu1 }
  0xee   : > { %v456_v51 = vadd.f32 %v1865_v50, %v1845_v49  ;;  %v351_v52 = vpop.f32.mrf.mxu0 }
  0xef   : > { %v447_v53 = vpop.f32.mrf.mxu1 }
  0xf0   : > { %v448_v54 = vadd.f32 %v447_v53, %v351_v52  ;;  %v1846_v55 = vpop.f32.mrf.mxu0 }
  0xf1   : > { %v1866_v56 = vpop.f32.mrf.mxu1 }
  0xf2   : > { %v354_v57 = vpop.f32.mrf.mxu0 }
  0xf3   : > { %v450_v58 = vpop.f32.mrf.mxu1 }
  0xf4   : > { %v451_v59 = vadd.f32 %v450_v58, %v354_v57 }
 0x10c   : > { %v1885_v61 = vpop.f32.mrf.mxu0 }
 0x10d   : > { %v581_v62 = vadd.f32 %v1885_v61, %v456_v51  ;;  %v1905_v63 = vpop.f32.mrf.mxu1 }
 0x10e   : > { %v565_v0 = vpop.f32.mrf.mxu0 }
 0x10f   : > { %v579_v1 = vadd.f32 %v565_v0, %v448_v54  ;;  %v702_v2 = vadd.f32 %v1905_v63, %v581_v62  ;;  %v686_v3 = vpop.f32.mrf.mxu1 }
 0x110   : > { %v1886_v4 = vpop.f32.mrf.mxu0 }
 0x111   : > { %v700_v5 = vadd.f32 %v686_v3, %v579_v1  ;;  %v1906_v6 = vpop.f32.mrf.mxu1 }
 0x112   : > { %v568_v7 = vpop.f32.mrf.mxu0 }
 0x113   : > { %v689_v8 = vpop.f32.mrf.mxu1  ;;  %v580_v23 = vadd.f32 %v568_v7, %v451_v59 }
 0x115   : > { %v701_v26 = vadd.f32 %v689_v8, %v580_v23 }
 0x12c   : > { %v1925_v9 = vpop.f32.mrf.mxu0 }
 0x12d   : > { %v1945_v10 = vpop.f32.mrf.mxu1  ;;  %v823_v24 = vadd.f32 %v1925_v9, %v702_v2 }
 0x12e   : > { %v807_v11 = vpop.f32.mrf.mxu0 }
 0x12f   : > { %v928_v12 = vpop.f32.mrf.mxu1  ;;  %v821_v25 = vadd.f32 %v807_v11, %v700_v5  ;;  %v944_v27 = vadd.f32 %v1945_v10, %v823_v24  ;;  %v1361_v10 = vld [vmem:[%s2457_s4] sm:$0xff]  ;;  %v1362_v11 = vld [vmem:[%s2457_s4 + $0x8] sm:$0xff] }
 0x130   : > { %v1926_v13 = vpop.f32.mrf.mxu0 }
 0x131   : > { %v1946_v14 = vpop.f32.mrf.mxu1  ;;  %v942_v28 = vadd.f32 %v928_v12, %v821_v25  ;;  %v1363_v12 = vld [vmem:[%s2457_s4 + $0x10] sm:$0xff] }
 0x132   : > { %v810_v15 = vpop.f32.mrf.mxu0 }
 0x133   : > { %v931_v16 = vpop.f32.mrf.mxu1  ;;  %v822_v29 = vadd.f32 %v810_v15, %v701_v26 }
 0x135   : > { %v943_v33 = vadd.f32 %v931_v16, %v822_v29 }
 0x14c   : > { %v1965_v17 = vpop.f32.mrf.mxu0 }
 0x14d   : > { %v1985_v18 = vpop.f32.mrf.mxu1  ;;  %v1065_v30 = vadd.f32 %v1965_v17, %v944_v27 }
 0x14e   : > { %v1049_v19 = vpop.f32.mrf.mxu0 }
 0x14f   : > { %v1170_v20 = vpop.f32.mrf.mxu1  ;;  %v1063_v31 = vadd.f32 %v1049_v19, %v942_v28  ;;  %v1186_v34 = vadd.f32 %v1985_v18, %v1065_v30 }
 0x150   : > { %v1966_v21 = vpop.f32.mrf.mxu0 }
 0x151   : > { %v1986_v22 = vpop.f32.mrf.mxu1  ;;  %v1184_v40 = vadd.f32 %v1170_v20, %v1063_v31 }
 0x152   : > { %v1052_v32 = vpop.f32.mrf.mxu0 }
 0x153   : > { %v1064_v41 = vadd.f32 %v1052_v32, %v943_v33  ;;  %v1173_v43 = vpop.f32.mrf.mxu1 }
 0x155   : > { %v1185_v39 = vadd.f32 %v1173_v43, %v1064_v41 }
 0x16c   : > { %v2005_v37 = vpop.f32.mrf.mxu0 }
 0x16d   : > { %v1307_v42 = vadd.f32 %v2005_v37, %v1186_v34 }
 0x16e   : > { %v1291_v45 = vpop.f32.mrf.mxu0 }
 0x16f   : > { %v1317_v46 = vmul.f32 %v1723_v38, %v1307_v42  ;;  %v1305_v35 = vadd.f32 %v1291_v45, %v1184_v40 }
 0x170   : > { %v2006_v36 = vpop.f32.mrf.mxu0 }
 0x171   : > { %v1327_v47 = vadd.f32 %v1724_v44, %v1317_v46  ;;  %v1315_v48 = vmul.f32 %v1723_v38, %v1305_v35 }
 0x172   : > { %v1294_v49 = vpop.f32.mrf.mxu0 }
 0x173   : > { %v1330_v50 = vmax.f32 %v1327_v47, 0.0  ;;  %v1325_v51 = vadd.f32 %v1724_v44, %v1315_v48  ;;  %v1306_v52 = vadd.f32 %v1294_v49, %v1185_v39 }
 0x175   : > { %v1338_v53 = vrot.slane %v1330_v50, 1  ;;  %v1316_v54 = vmul.f32 %v1723_v38, %v1306_v52  ;;  %v1328_v56 = vmax.f32 %v1325_v51, 0.0 }
 0x177   : > { %v1345_v55 = vmax.f32 %v1330_v50, %v1338_v53  ;;  %v1326_v57 = vadd.f32 %v1724_v44, %v1316_v54  ;;  %v1335_v62 = vrot.slane %v1328_v56, 1 }
 0x179   : > { %v1353_v58 = vrot.slane %v1345_v55, 6  ;;  %v1329_v59 = vmax.f32 %v1326_v57, 0.0 }
 0x17b   : > { %v1360_v61 = vmax.f32 %v1345_v55, %v1353_v58  ;;  %v1336_v63 = vrot.slane %v1329_v59, 1 }
 0x17d   : > { %v1339_v0 = vsel %vm1334_vm1, %v1336_v63, %v1338_v53  ;;  %2008 = vmatpush3.msk.msra.mxu1 %vm1374_vm2, %v1360_v61  ;;  %v1337_v1 = vsel %vm1334_vm1, %v1335_v62, %v1336_v63 }
 0x17e   : > { %v1344_v2 = vmax.f32 %v1329_v59, %v1339_v0  ;;  %2009 = vmatprep.subr.mxu1 %v2114_v60  ;;  %v1343_v3 = vmax.f32 %v1328_v56, %v1337_v1 }
 0x180   : > { %v1351_v4 = vrot.slane %v1344_v2, 6  ;;  %v1350_v5 = vrot.slane %v1343_v3, 6 }
 0x182   : > { %v1354_v6 = vsel %vm1349_vm3, %v1351_v4, %v1353_v58  ;;  %v1352_v7 = vsel %vm1349_vm3, %v1350_v5, %v1351_v4 }
 0x183   : > { %v1359_v8 = vmax.f32 %v1344_v2, %v1354_v6  ;;  %v1358_v9 = vmax.f32 %v1343_v3, %v1352_v7 }
 0x185   : > { %2010 = vmatpush3.msra.mxu1 %v1359_v8 }
 0x186   : > { %2011 = vmatprep.subr.mxu1 %v2114_v60 }
 0x187   : > { %2012 = vmatpush3.msra.mxu1 %v1358_v9 }
 0x188   : > { %2014 = vmatmul.mubr.msk.f32.vlgmr.msra.gmra.mxu1 %vm1364_vm4, %v1361_v10 }
 0x189   : > { %2016 = vmatprep.mubr.msk.f32.mxu1 %vm2115_vm0, %v2114_v60 }
 0x18c   : > { %2017 = vmatmul.mubr.msk.f32.gmra.mxu1 %vm1364_vm4, %v1362_v11 }
 0x18d   : > { %2019 = vmatprep.mubr.msk.f32.mxu1 %vm2115_vm0, %v2114_v60 }
 0x190   : > { %2020 = vmatmul.mubr.msk.f32.gmra.mxu1 %vm1364_vm4, %v1363_v12 }
 0x248   : > { %v1444_v13 = vpop.f32.mrf.mxu1 }
 0x249   : > { %1458 = vst [vmem:[%s224_s25] sm:$0xff] %v1444_v13 }
 0x24a   : > { %v2015_v14 = vpop.f32.mrf.mxu1 }
 0x24c   : > { %v1449_v15 = vpop.f32.mrf.mxu1 }
 0x24d   : > { %1459 = vst [vmem:[%s224_s25 + $0x8] sm:$0xff] %v1449_v15 }
 0x24e   : > { %v2018_v16 = vpop.f32.mrf.mxu1 }
 0x250   : > { %v1454_v17 = vpop.f32.mrf.mxu1 }
 0x251   : > { %1460 = vst [vmem:[%s224_s25 + $0x10] sm:$0xff] %v1454_v17 }
 0x252   : > { %v2021_v18 = vpop.f32.mrf.mxu1 }
 0x253 PF: > { %s15_s18 = sadd.s32 1, %s2112_s18  }
 0x254   : > { %p12_p4 = scmp.ge.s32.totalorder %s15_s18, 4  }
 0x256   :  { %14 = sbr.rel (!%p12_p4) target bundleno = 1 (0x1), region = 78 }

// kernel: _lambda_.7
= control target key start
LH: loop header
LB: loop body
LE: loop exit
PB: predicated region body
PF: predicated region fallthrough
CT: control target
= control target key end

     0   :  { %s4123_s18 = smov 0   ;;  %s5083_s0 = inlined_call_operand.vmem [shape: f32[2,24,128], index: 0, kind: input, shape index: {}]   ;;  %s5084_s1 = inlined_call_operand.vmem [shape: bf16[9,128,512], index: 1, kind: input, shape index: {}]   ;;  %s5085_s2 = inlined_call_operand.vmem [shape: f32[1,512], index: 2, kind: input, shape index: {}]   ;;  %s5086_s3 = inlined_call_operand.vmem [shape: f32[1,512], index: 3, kind: input, shape index: {}]   ;;  %s5087_s4 = inlined_call_operand.vmem [shape: f32[1,3], index: 4, kind: input, shape index: {}]   ;;  %s5088_s5 = inlined_call_operand.vmem [shape: f32[2,1,512], index: 5, kind: output, shape index: {}]  }
   0x1 LB: > { %s3079_s19 = sadd.s32 4294967295, %s4088_s18   ;;  %p3083_p0 = scmp.ge.s32.totalorder %s4088_s18, 1  ;;  %s4088_s18 = sphi %s4123_s18, %s15_s18  }
   0x2   : > { %p187_p1 = scmp.lt.s32.totalorder %s4088_s18, 3 }
   0x4   : > { %p188_p2 = pnand %p3083_p0, %p187_p1 }
   0x5   : > { %p214_p3 = scmp.lt.s32.totalorder (!%p188_p2), %s3079_s19, 1 }
   0x6   : > { %191 = sbr.rel (%p188_p2) target bundleno = 718 (0x2ce), region = 40 }
   0xb   : > { %v3650_v0 = vld [vmem:[%s5084_s1 + $0x1e4] ss:$16 sps:$4 sm:$0xff]   ;;  %v3652_v1 = vld [vmem:[%s5084_s1 + $0x1ec] ss:$16 sps:$4 sm:$0xff]   ;;  %v4090_v2 = vmov 0   ;;  %s5090_s19 = smov (!%p214_p3, %s3079_s19), 1 }
   0xc   : > { %485 = vmatprep.mubr.bf16.mxu0 %v4090_v2  ;;  %526 = vmatprep.mubr.bf16.mxu1 %v4090_v2  ;;  %v3654_v3 = vld [vmem:[%s5084_s1 + $0x1e0] ss:$16 sps:$4 sm:$0xff]   ;;  %v3655_v4 = vld [vmem:[%s5084_s1 + $0x1e8] ss:$16 sps:$4 sm:$0xff]   ;;  %v3656_v5 = vld [vmem:[%s5084_s1 + $0x1c4] ss:$16 sps:$4 sm:$0xff]  }
   0xd   : > { %453 = vmatprep.subr.bf16.mxu0 %v3650_v0  ;;  %494 = vmatprep.subr.bf16.mxu1 %v3652_v1  ;;  %v3658_v6 = vld [vmem:[%s5084_s1 + $0x1cc] ss:$16 sps:$4 sm:$0xff]   ;;  %v3660_v7 = vld [vmem:[%s5084_s1 + $0x1c0] ss:$16 sps:$4 sm:$0xff]   ;;  %v3661_v8 = vld [vmem:[%s5084_s1 + $0x1c8] ss:$16 sps:$4 sm:$0xff]  }
   0xe   : > { %454 = vmatpush1.bf16.msra.mxu0 %v3654_v3  ;;  %495 = vmatpush1.bf16.msra.mxu1 %v3655_v4  ;;  %v3662_v9 = vld [vmem:[%s5084_s1 + $0x1a4] ss:$16 sps:$4 sm:$0xff]   ;;  %v3664_v10 = vld [vmem:[%s5084_s1 + $0x1ac] ss:$16 sps:$4 sm:$0xff]   ;;  %v3666_v11 = vld [vmem:[%s5084_s1 + $0x1a0] ss:$16 sps:$4 sm:$0xff]  }
   0xf   : > { %455 = vmatprep.subr.bf16.mxu0 %v3656_v5  ;;  %496 = vmatprep.subr.bf16.mxu1 %v3658_v6  ;;  %v3667_v12 = vld [vmem:[%s5084_s1 + $0x1a8] ss:$16 sps:$4 sm:$0xff]   ;;  %v3668_v13 = vld [vmem:[%s5084_s1 + $0x184] ss:$16 sps:$4 sm:$0xff]   ;;  %v3670_v14 = vld [vmem:[%s5084_s1 + $0x18c] ss:$16 sps:$4 sm:$0xff]  }
  0x10   : > { %v3672_v15 = vld [vmem:[%s5084_s1 + $0x180] ss:$16 sps:$4 sm:$0xff]   ;;  %v3673_v16 = vld [vmem:[%s5084_s1 + $0x188] ss:$16 sps:$4 sm:$0xff]   ;;  %v3674_v17 = vld [vmem:[%s5084_s1 + $0x164] ss:$16 sps:$4 sm:$0xff]  }
  0x11   : > { %v3676_v18 = vld [vmem:[%s5084_s1 + $0x16c] ss:$16 sps:$4 sm:$0xff]   ;;  %v3678_v19 = vld [vmem:[%s5084_s1 + $0x160] ss:$16 sps:$4 sm:$0xff]   ;;  %v3679_v20 = vld [vmem:[%s5084_s1 + $0x168] ss:$16 sps:$4 sm:$0xff]  }
  0x12   : > { %456 = vmatpush1.bf16.msra.mxu0 %v3660_v7  ;;  %497 = vmatpush1.bf16.msra.mxu1 %v3661_v8  ;;  %v3680_v21 = vld [vmem:[%s5084_s1 + $0x144] ss:$16 sps:$4 sm:$0xff]   ;;  %v3682_v22 = vld [vmem:[%s5084_s1 + $0x14c] ss:$16 sps:$4 sm:$0xff]   ;;  %v3684_v23 = vld [vmem:[%s5084_s1 + $0x140] ss:$16 sps:$4 sm:$0xff]  }
  0x13   : > { %457 = vmatprep.subr.bf16.mxu0 %v3662_v9  ;;  %498 = vmatprep.subr.bf16.mxu1 %v3664_v10  ;;  %v3685_v24 = vld [vmem:[%s5084_s1 + $0x148] ss:$16 sps:$4 sm:$0xff]   ;;  %v3686_v25 = vld [vmem:[%s5084_s1 + $0x124] ss:$16 sps:$4 sm:$0xff]   ;;  %v3688_v26 = vld [vmem:[%s5084_s1 + $0x12c] ss:$16 sps:$4 sm:$0xff]  }
  0x14   : > { %s3638_s26 = smul.u32 24, %s5090_s19  ;;  %v3690_v27 = vld [vmem:[%s5084_s1 + $0x120] ss:$16 sps:$4 sm:$0xff]   ;;  %v3691_v28 = vld [vmem:[%s5084_s1 + $0x128] ss:$16 sps:$4 sm:$0xff]   ;;  %vm2837_vm0 = vcmask 1042432  }
  0x15   : > { %v3692_v29 = vld [vmem:[%s5084_s1 + $0x104] ss:$16 sps:$4 sm:$0xff]   ;;  %v3694_v30 = vld [vmem:[%s5084_s1 + $0x10c] ss:$16 sps:$4 sm:$0xff]   ;;  %v3696_v31 = vld [vmem:[%s5084_s1 + $0x100] ss:$16 sps:$4 sm:$0xff]  }
  0x16   : > { %458 = vmatpush1.bf16.msra.mxu0 %v3666_v11  ;;  %499 = vmatpush1.bf16.msra.mxu1 %v3667_v12  ;;  %s4233_s12 = scalar_lea.vmem %s5083_s0, %s3638_s26  ;;  %v3697_v32 = vld [vmem:[%s5084_s1 + $0x108] ss:$16 sps:$4 sm:$0xff]   ;;  %v3700_v34 = vld [vmem:[%s5084_s1 + $0xe4] ss:$16 sps:$4 sm:$0xff]   ;;  %v3703_v35 = vld [vmem:[%s5084_s1 + $0xec] ss:$16 sps:$4 sm:$0xff]  }
  0x17   : > { %459 = vmatprep.subr.bf16.mxu0 %v3668_v13  ;;  %500 = vmatprep.subr.bf16.mxu1 %v3670_v14  ;;  %v258_v33 = vld [vmem:[%s4233_s12 + $0x4] sm:$0xff]  ;;  %v3698_v37 = vld [vmem:[%s5084_s1 + $0xe0] ss:$16 sps:$4 sm:$0xff]   ;;  %v3709_v40 = vld [vmem:[%s5084_s1 + $0xcc] ss:$16 sps:$4 sm:$0xff]   ;;  %vm2833_vm1 = vcmask 23552  }
  0x18   : > { %v259_v36 = vpack.c.bf16 %v258_v33, %v258_v33  ;;  %v3701_v38 = vld [vmem:[%s5084_s1 + $0xe8] ss:$16 sps:$4 sm:$0xff]   ;;  %v3706_v39 = vld [vmem:[%s5084_s1 + $0xc4] ss:$16 sps:$4 sm:$0xff]   ;;  %v3704_v41 = vld [vmem:[%s5084_s1 + $0xc0] ss:$16 sps:$4 sm:$0xff]  }
  0x19   : > { %v3707_v42 = vld [vmem:[%s5084_s1 + $0xc8] ss:$16 sps:$4 sm:$0xff]   ;;  %v3712_v43 = vld [vmem:[%s5084_s1 + $0xa4] ss:$16 sps:$4 sm:$0xff]   ;;  %v3715_v44 = vld [vmem:[%s5084_s1 + $0xac] ss:$16 sps:$4 sm:$0xff]  }
  0x1a   : > { %460 = vmatpush1.bf16.msra.mxu0 %v3672_v15  ;;  %501 = vmatpush1.bf16.msra.mxu1 %v3673_v16  ;;  %v3710_v45 = vld [vmem:[%s5084_s1 + $0xa0] ss:$16 sps:$4 sm:$0xff]   ;;  %v3713_v46 = vld [vmem:[%s5084_s1 + $0xa8] ss:$16 sps:$4 sm:$0xff]   ;;  %v3718_v47 = vld [vmem:[%s5084_s1 + $0x84] ss:$16 sps:$4 sm:$0xff]  }
  0x1b   : > { %461 = vmatprep.subr.bf16.mxu0 %v3674_v17  ;;  %502 = vmatprep.subr.bf16.mxu1 %v3676_v18  ;;  %v3721_v48 = vld [vmem:[%s5084_s1 + $0x8c] ss:$16 sps:$4 sm:$0xff]   ;;  %v3716_v49 = vld [vmem:[%s5084_s1 + $0x80] ss:$16 sps:$4 sm:$0xff]   ;;  %v3719_v50 = vld [vmem:[%s5084_s1 + $0x88] ss:$16 sps:$4 sm:$0xff]  }
  0x1c   : > { %v3724_v51 = vld [vmem:[%s5084_s1 + $0x64] ss:$16 sps:$4 sm:$0xff]   ;;  %v3727_v52 = vld [vmem:[%s5084_s1 + $0x6c] ss:$16 sps:$4 sm:$0xff]   ;;  %v3722_v53 = vld [vmem:[%s5084_s1 + $0x60] ss:$16 sps:$4 sm:$0xff]  }
  0x1d   : > { %v3725_v54 = vld [vmem:[%s5084_s1 + $0x68] ss:$16 sps:$4 sm:$0xff]   ;;  %v3730_v55 = vld [vmem:[%s5084_s1 + $0x44] ss:$16 sps:$4 sm:$0xff]   ;;  %v3733_v56 = vld [vmem:[%s5084_s1 + $0x4c] ss:$16 sps:$4 sm:$0xff]  }
  0x1e   : > { %462 = vmatpush1.bf16.msra.mxu0 %v3678_v19  ;;  %503 = vmatpush1.bf16.msra.mxu1 %v3679_v20  ;;  %v3728_v57 = vld [vmem:[%s5084_s1 + $0x40] ss:$16 sps:$4 sm:$0xff]   ;;  %v3731_v58 = vld [vmem:[%s5084_s1 + $0x48] ss:$16 sps:$4 sm:$0xff]   ;;  %v3736_v59 = vld [vmem:[%s5084_s1 + $0x24] ss:$16 sps:$4 sm:$0xff]  }
  0x1f   : > { %463 = vmatprep.subr.bf16.mxu0 %v3680_v21  ;;  %504 = vmatprep.subr.bf16.mxu1 %v3682_v22  ;;  %v3739_v60 = vld [vmem:[%s5084_s1 + $0x2c] ss:$16 sps:$4 sm:$0xff]   ;;  %v3734_v61 = vld [vmem:[%s5084_s1 + $0x20] ss:$16 sps:$4 sm:$0xff]   ;;  %v3737_v62 = vld [vmem:[%s5084_s1 + $0x28] ss:$16 sps:$4 sm:$0xff]  }
  0x20   : > { %v3742_v63 = vld [vmem:[%s5084_s1 + $0x4] ss:$16 sps:$4 sm:$0xff]   ;;  %v3745_v0 = vld [vmem:[%s5084_s1 + $0xc] ss:$16 sps:$4 sm:$0xff]   ;;  %v3740_v1 = vld [vmem:[%s5084_s1] ss:$16 sps:$4 sm:$0xff]  }
  0x21   : > { %v3743_v3 = vld [vmem:[%s5084_s1 + $0x8] ss:$16 sps:$4 sm:$0xff]   ;;  %v3748_v5 = vld [vmem:[%s5084_s1 + $0x2e4] ss:$16 sps:$4 sm:$0xff]   ;;  %v3751_v6 = vld [vmem:[%s5084_s1 + $0x2ec] ss:$16 sps:$4 sm:$0xff]  }
  0x22   : > { %464 = vmatpush1.bf16.msra.mxu0 %v3684_v23  ;;  %505 = vmatpush1.bf16.msra.mxu1 %v3685_v24  ;;  %v224_v4 = vld [vmem:[%s4233_s12 + $0x3] sm:$0xff]  ;;  %v3757_v11 = vld [vmem:[%s5084_s1 + $0x2cc] ss:$16 sps:$4 sm:$0xff]   ;;  %s3085_s30 = sshll.u32 %s5090_s19, 2 }
  0x23   : > { %465 = vmatprep.subr.bf16.mxu0 %v3686_v25  ;;  %506 = vmatprep.subr.bf16.mxu1 %v3688_v26  ;;  %v225_v7 = vpack.c.bf16 %v224_v4, %v224_v4  ;;  %v3746_v8 = vld [vmem:[%s5084_s1 + $0x2e0] ss:$16 sps:$4 sm:$0xff]   ;;  %v3749_v9 = vld [vmem:[%s5084_s1 + $0x2e8] ss:$16 sps:$4 sm:$0xff]   ;;  %v3754_v10 = vld [vmem:[%s5084_s1 + $0x2c4] ss:$16 sps:$4 sm:$0xff]   ;;  %s222_s8 = scalar_lea.vmem %s5088_s5, %s3085_s30 }
  0x24   : > { %v3752_v12 = vld [vmem:[%s5084_s1 + $0x2c0] ss:$16 sps:$4 sm:$0xff]   ;;  %v3755_v13 = vld [vmem:[%s5084_s1 + $0x2c8] ss:$16 sps:$4 sm:$0xff]   ;;  %v3760_v14 = vld [vmem:[%s5084_s1 + $0x2a4] ss:$16 sps:$4 sm:$0xff]  }
  0x25   : > { %v3763_v15 = vld [vmem:[%s5084_s1 + $0x2ac] ss:$16 sps:$4 sm:$0xff]   ;;  %v3758_v16 = vld [vmem:[%s5084_s1 + $0x2a0] ss:$16 sps:$4 sm:$0xff]   ;;  %v3761_v17 = vld [vmem:[%s5084_s1 + $0x2a8] ss:$16 sps:$4 sm:$0xff]  }
  0x26   : > { %466 = vmatpush1.bf16.msra.mxu0 %v3690_v27  ;;  %507 = vmatpush1.bf16.msra.mxu1 %v3691_v28  ;;  %v3766_v18 = vld [vmem:[%s5084_s1 + $0x284] ss:$16 sps:$4 sm:$0xff]   ;;  %v3769_v19 = vld [vmem:[%s5084_s1 + $0x28c] ss:$16 sps:$4 sm:$0xff]   ;;  %v3764_v20 = vld [vmem:[%s5084_s1 + $0x280] ss:$16 sps:$4 sm:$0xff]  }
  0x27   : > { %467 = vmatprep.subr.bf16.mxu0 %v3692_v29  ;;  %508 = vmatprep.subr.bf16.mxu1 %v3694_v30  ;;  %v3767_v21 = vld [vmem:[%s5084_s1 + $0x288] ss:$16 sps:$4 sm:$0xff]   ;;  %v3772_v22 = vld [vmem:[%s5084_s1 + $0x264] ss:$16 sps:$4 sm:$0xff]   ;;  %v3775_v23 = vld [vmem:[%s5084_s1 + $0x26c] ss:$16 sps:$4 sm:$0xff]  }
  0x28   : > { %v3770_v24 = vld [vmem:[%s5084_s1 + $0x260] ss:$16 sps:$4 sm:$0xff]   ;;  %v3773_v25 = vld [vmem:[%s5084_s1 + $0x268] ss:$16 sps:$4 sm:$0xff]   ;;  %v3778_v26 = vld [vmem:[%s5084_s1 + $0x244] ss:$16 sps:$4 sm:$0xff]  }
  0x29   : > { %v3781_v27 = vld [vmem:[%s5084_s1 + $0x24c] ss:$16 sps:$4 sm:$0xff]   ;;  %v3776_v28 = vld [vmem:[%s5084_s1 + $0x240] ss:$16 sps:$4 sm:$0xff]   ;;  %v3779_v29 = vld [vmem:[%s5084_s1 + $0x248] ss:$16 sps:$4 sm:$0xff]  }
  0x2a   : > { %468 = vmatpush1.bf16.msra.mxu0 %v3696_v31  ;;  %509 = vmatpush1.bf16.msra.mxu1 %v3697_v32  ;;  %v3784_v30 = vld [vmem:[%s5084_s1 + $0x224] ss:$16 sps:$4 sm:$0xff]   ;;  %v3787_v31 = vld [vmem:[%s5084_s1 + $0x22c] ss:$16 sps:$4 sm:$0xff]   ;;  %v3782_v32 = vld [vmem:[%s5084_s1 + $0x220] ss:$16 sps:$4 sm:$0xff]  }
  0x2b   : > { %695 = vmatprep.subr.bf16.mxu0 %v3700_v34  ;;  %736 = vmatprep.subr.bf16.mxu1 %v3703_v35  ;;  %v3785_v33 = vld [vmem:[%s5084_s1 + $0x228] ss:$16 sps:$4 sm:$0xff]   ;;  %v3790_v34 = vld [vmem:[%s5084_s1 + $0x204] ss:$16 sps:$4 sm:$0xff]   ;;  %v3793_v35 = vld [vmem:[%s5084_s1 + $0x20c] ss:$16 sps:$4 sm:$0xff]  }
  0x2c   : > { %v3833_v4 = vld [vmem:[%s5084_s1 + $0x328] ss:$16 sps:$4 sm:$0xff]  }
  0x2d   : > { %486 = vmatmul.mubr.bf16.vlgmr.msra.gmra.mxu0 %v259_v36  ;;  %527 = vmatmul.mubr.bf16.vlgmr.msra.gmra.mxu1 %v259_v36  ;;  %v3788_v36 = vld [vmem:[%s5084_s1 + $0x200] ss:$16 sps:$4 sm:$0xff]  }
  0x2e   : > { %696 = vmatpush1.bf16.msra.mxu0 %v3698_v37  ;;  %737 = vmatpush1.bf16.msra.mxu1 %v3701_v38  ;;  %v3791_v37 = vld [vmem:[%s5084_s1 + $0x208] ss:$16 sps:$4 sm:$0xff]  }
  0x2f   : > { %697 = vmatprep.subr.bf16.mxu0 %v3706_v39  ;;  %738 = vmatprep.subr.bf16.mxu1 %v3709_v40  ;;  %v777_v38 = vld [vmem:[%s4233_s12 + $0x5] sm:$0xff] }
  0x30   : > { %727 = vmatprep.mubr.bf16.mxu0 %v4090_v2  ;;  %768 = vmatprep.mubr.bf16.mxu1 %v4090_v2  ;;  %v3796_v39 = vld [vmem:[%s5084_s1 + $0x3e4] ss:$16 sps:$4 sm:$0xff]   ;;  %v3799_v40 = vld [vmem:[%s5084_s1 + $0x3ec] ss:$16 sps:$4 sm:$0xff]  }
  0x32   : > { %698 = vmatpush1.bf16.msra.mxu0 %v3704_v41  ;;  %739 = vmatpush1.bf16.msra.mxu1 %v3707_v42  ;;  %v778_v41 = vpack.c.bf16 %v777_v38, %v777_v38  ;;  %v3794_v42 = vld [vmem:[%s5084_s1 + $0x3e0] ss:$16 sps:$4 sm:$0xff]   ;;  %v3881_v38 = vld [vmem:[%s5084_s1 + $0x428] ss:$16 sps:$4 sm:$0xff]  }
  0x33   : > { %699 = vmatprep.subr.bf16.mxu0 %v3712_v43  ;;  %740 = vmatprep.subr.bf16.mxu1 %v3715_v44  ;;  %v3797_v43 = vld [vmem:[%s5084_s1 + $0x3e8] ss:$16 sps:$4 sm:$0xff]   ;;  %v3802_v44 = vld [vmem:[%s5084_s1 + $0x3c4] ss:$16 sps:$4 sm:$0xff]  }
  0x36   : > { %700 = vmatpush1.bf16.msra.mxu0 %v3710_v45  ;;  %741 = vmatpush1.bf16.msra.mxu1 %v3713_v46  ;;  %v3805_v45 = vld [vmem:[%s5084_s1 + $0x3cc] ss:$16 sps:$4 sm:$0xff]   ;;  %v3800_v46 = vld [vmem:[%s5084_s1 + $0x3c0] ss:$16 sps:$4 sm:$0xff]  }
  0x37   : > { %701 = vmatprep.subr.bf16.mxu0 %v3718_v47  ;;  %742 = vmatprep.subr.bf16.mxu1 %v3721_v48  ;;  %v3803_v47 = vld [vmem:[%s5084_s1 + $0x3c8] ss:$16 sps:$4 sm:$0xff]   ;;  %v3808_v48 = vld [vmem:[%s5084_s1 + $0x3a4] ss:$16 sps:$4 sm:$0xff]  }
  0x3a   : > { %702 = vmatpush1.bf16.msra.mxu0 %v3716_v49  ;;  %743 = vmatpush1.bf16.msra.mxu1 %v3719_v50  ;;  %v3811_v49 = vld [vmem:[%s5084_s1 + $0x3ac] ss:$16 sps:$4 sm:$0xff]   ;;  %v3806_v50 = vld [vmem:[%s5084_s1 + $0x3a0] ss:$16 sps:$4 sm:$0xff]  }
  0x3b   : > { %703 = vmatprep.subr.bf16.mxu0 %v3724_v51  ;;  %744 = vmatprep.subr.bf16.mxu1 %v3727_v52  ;;  %v3809_v51 = vld [vmem:[%s5084_s1 + $0x3a8] ss:$16 sps:$4 sm:$0xff]   ;;  %v3814_v52 = vld [vmem:[%s5084_s1 + $0x384] ss:$16 sps:$4 sm:$0xff]  }
  0x3e   : > { %704 = vmatpush1.bf16.msra.mxu0 %v3722_v53  ;;  %745 = vmatpush1.bf16.msra.mxu1 %v3725_v54  ;;  %v3817_v53 = vld [vmem:[%s5084_s1 + $0x38c] ss:$16 sps:$4 sm:$0xff]   ;;  %v3812_v54 = vld [vmem:[%s5084_s1 + $0x380] ss:$16 sps:$4 sm:$0xff]  }
  0x3f   : > { %705 = vmatprep.subr.bf16.mxu0 %v3730_v55  ;;  %746 = vmatprep.subr.bf16.mxu1 %v3733_v56  ;;  %v3815_v55 = vld [vmem:[%s5084_s1 + $0x388] ss:$16 sps:$4 sm:$0xff]   ;;  %v3820_v56 = vld [vmem:[%s5084_s1 + $0x364] ss:$16 sps:$4 sm:$0xff]  }
  0x42   : > { %706 = vmatpush1.bf16.msra.mxu0 %v3728_v57  ;;  %747 = vmatpush1.bf16.msra.mxu1 %v3731_v58  ;;  %v3823_v57 = vld [vmem:[%s5084_s1 + $0x36c] ss:$16 sps:$4 sm:$0xff]   ;;  %v3818_v58 = vld [vmem:[%s5084_s1 + $0x360] ss:$16 sps:$4 sm:$0xff]  }
  0x43   : > { %707 = vmatprep.subr.bf16.mxu0 %v3736_v59  ;;  %748 = vmatprep.subr.bf16.mxu1 %v3739_v60  ;;  %v3821_v59 = vld [vmem:[%s5084_s1 + $0x368] ss:$16 sps:$4 sm:$0xff]   ;;  %v3826_v60 = vld [vmem:[%s5084_s1 + $0x344] ss:$16 sps:$4 sm:$0xff]  }
  0x46   : > { %708 = vmatpush1.bf16.msra.mxu0 %v3734_v61  ;;  %749 = vmatpush1.bf16.msra.mxu1 %v3737_v62  ;;  %v3829_v61 = vld [vmem:[%s5084_s1 + $0x34c] ss:$16 sps:$4 sm:$0xff]   ;;  %v3824_v62 = vld [vmem:[%s5084_s1 + $0x340] ss:$16 sps:$4 sm:$0xff]  }
  0x47   : > { %709 = vmatprep.subr.bf16.mxu0 %v3742_v63  ;;  %750 = vmatprep.subr.bf16.mxu1 %v3745_v0  ;;  %v3827_v63 = vld [vmem:[%s5084_s1 + $0x348] ss:$16 sps:$4 sm:$0xff]   ;;  %v3832_v0 = vld [vmem:[%s5084_s1 + $0x324] ss:$16 sps:$4 sm:$0xff]  }
  0x4a   : > { %710 = vmatpush1.bf16.msra.mxu0 %v3740_v1  ;;  %751 = vmatpush1.bf16.msra.mxu1 %v3743_v3  ;;  %v3835_v1 = vld [vmem:[%s5084_s1 + $0x32c] ss:$16 sps:$4 sm:$0xff]   ;;  %v3830_v3 = vld [vmem:[%s5084_s1 + $0x320] ss:$16 sps:$4 sm:$0xff]  }
  0x4b   : > { %972 = vmatprep.subr.bf16.mxu0 %v3748_v5  ;;  %1013 = vmatprep.subr.bf16.mxu1 %v3751_v6  ;;  %v3838_v5 = vld [vmem:[%s5084_s1 + $0x304] ss:$16 sps:$4 sm:$0xff]   ;;  %v3841_v6 = vld [vmem:[%s5084_s1 + $0x30c] ss:$16 sps:$4 sm:$0xff]  }
  0x4d   : > { %728 = vmatmul.mubr.bf16.vlgmr.msra.gmra.mxu0 %v225_v7  ;;  %769 = vmatmul.mubr.bf16.vlgmr.msra.gmra.mxu1 %v225_v7  ;;  %v3836_v7 = vld [vmem:[%s5084_s1 + $0x300] ss:$16 sps:$4 sm:$0xff]  }
  0x4e   : > { %973 = vmatpush1.bf16.msra.mxu0 %v3746_v8  ;;  %1014 = vmatpush1.bf16.msra.mxu1 %v3749_v9  ;;  %v3839_v8 = vld [vmem:[%s5084_s1 + $0x308] ss:$16 sps:$4 sm:$0xff]  }
  0x4f   : > { %974 = vmatprep.subr.bf16.mxu0 %v3754_v10  ;;  %1015 = vmatprep.subr.bf16.mxu1 %v3757_v11  ;;  %v1058_v9 = vld [vmem:[%s4233_s12 + $0x7] sm:$0xff] }
  0x50   : > { %1004 = vmatprep.mubr.bf16.mxu0 %v4090_v2  ;;  %1045 = vmatprep.mubr.bf16.mxu1 %v4090_v2  ;;  %v3844_v10 = vld [vmem:[%s5084_s1 + $0x4e4] ss:$16 sps:$4 sm:$0xff]   ;;  %v3847_v11 = vld [vmem:[%s5084_s1 + $0x4ec] ss:$16 sps:$4 sm:$0xff]  }
  0x52   : > { %975 = vmatpush1.bf16.msra.mxu0 %v3752_v12  ;;  %1016 = vmatpush1.bf16.msra.mxu1 %v3755_v13  ;;  %v1059_v12 = vpack.c.bf16 %v1058_v9, %v1058_v9  ;;  %v3842_v13 = vld [vmem:[%s5084_s1 + $0x4e0] ss:$16 sps:$4 sm:$0xff]   ;;  %v3929_v9 = vld [vmem:[%s5084_s1 + $0x528] ss:$16 sps:$4 sm:$0xff]  }
  0x53   : > { %976 = vmatprep.subr.bf16.mxu0 %v3760_v14  ;;  %1017 = vmatprep.subr.bf16.mxu1 %v3763_v15  ;;  %v3845_v14 = vld [vmem:[%s5084_s1 + $0x4e8] ss:$16 sps:$4 sm:$0xff]   ;;  %v3850_v15 = vld [vmem:[%s5084_s1 + $0x4c4] ss:$16 sps:$4 sm:$0xff]  }
  0x56   : > { %977 = vmatpush1.bf16.msra.mxu0 %v3758_v16  ;;  %1018 = vmatpush1.bf16.msra.mxu1 %v3761_v17  ;;  %v3853_v16 = vld [vmem:[%s5084_s1 + $0x4cc] ss:$16 sps:$4 sm:$0xff]   ;;  %v3848_v17 = vld [vmem:[%s5084_s1 + $0x4c0] ss:$16 sps:$4 sm:$0xff]  }
  0x57   : > { %978 = vmatprep.subr.bf16.mxu0 %v3766_v18  ;;  %1019 = vmatprep.subr.bf16.mxu1 %v3769_v19  ;;  %v3851_v18 = vld [vmem:[%s5084_s1 + $0x4c8] ss:$16 sps:$4 sm:$0xff]   ;;  %v3856_v19 = vld [vmem:[%s5084_s1 + $0x4a4] ss:$16 sps:$4 sm:$0xff]  }
  0x5a   : > { %979 = vmatpush1.bf16.msra.mxu0 %v3764_v20  ;;  %1020 = vmatpush1.bf16.msra.mxu1 %v3767_v21  ;;  %v3859_v20 = vld [vmem:[%s5084_s1 + $0x4ac] ss:$16 sps:$4 sm:$0xff]   ;;  %v3854_v21 = vld [vmem:[%s5084_s1 + $0x4a0] ss:$16 sps:$4 sm:$0xff]  }
  0x5b   : > { %980 = vmatprep.subr.bf16.mxu0 %v3772_v22  ;;  %1021 = vmatprep.subr.bf16.mxu1 %v3775_v23  ;;  %v3857_v22 = vld [vmem:[%s5084_s1 + $0x4a8] ss:$16 sps:$4 sm:$0xff]   ;;  %v3862_v23 = vld [vmem:[%s5084_s1 + $0x484] ss:$16 sps:$4 sm:$0xff]  }
  0x5e   : > { %981 = vmatpush1.bf16.msra.mxu0 %v3770_v24  ;;  %1022 = vmatpush1.bf16.msra.mxu1 %v3773_v25  ;;  %v3865_v24 = vld [vmem:[%s5084_s1 + $0x48c] ss:$16 sps:$4 sm:$0xff]   ;;  %v3860_v25 = vld [vmem:[%s5084_s1 + $0x480] ss:$16 sps:$4 sm:$0xff]  }
  0x5f   : > { %982 = vmatprep.subr.bf16.mxu0 %v3778_v26  ;;  %1023 = vmatprep.subr.bf16.mxu1 %v3781_v27  ;;  %v3863_v26 = vld [vmem:[%s5084_s1 + $0x488] ss:$16 sps:$4 sm:$0xff]   ;;  %v3868_v27 = vld [vmem:[%s5084_s1 + $0x464] ss:$16 sps:$4 sm:$0xff]  }
  0x62   : > { %983 = vmatpush1.bf16.msra.mxu0 %v3776_v28  ;;  %1024 = vmatpush1.bf16.msra.mxu1 %v3779_v29  ;;  %v3871_v28 = vld [vmem:[%s5084_s1 + $0x46c] ss:$16 sps:$4 sm:$0xff]   ;;  %v3866_v29 = vld [vmem:[%s5084_s1 + $0x460] ss:$16 sps:$4 sm:$0xff]  }
  0x63   : > { %984 = vmatprep.subr.bf16.mxu0 %v3784_v30  ;;  %1025 = vmatprep.subr.bf16.mxu1 %v3787_v31  ;;  %v3869_v30 = vld [vmem:[%s5084_s1 + $0x468] ss:$16 sps:$4 sm:$0xff]   ;;  %v3874_v31 = vld [vmem:[%s5084_s1 + $0x444] ss:$16 sps:$4 sm:$0xff]  }
  0x66   : > { %985 = vmatpush1.bf16.msra.mxu0 %v3782_v32  ;;  %1026 = vmatpush1.bf16.msra.mxu1 %v3785_v33  ;;  %v3877_v32 = vld [vmem:[%s5084_s1 + $0x44c] ss:$16 sps:$4 sm:$0xff]   ;;  %v3872_v33 = vld [vmem:[%s5084_s1 + $0x440] ss:$16 sps:$4 sm:$0xff]  }
  0x67   : > { %986 = vmatprep.subr.bf16.mxu0 %v3790_v34  ;;  %1027 = vmatprep.subr.bf16.mxu1 %v3793_v35  ;;  %v3875_v34 = vld [vmem:[%s5084_s1 + $0x448] ss:$16 sps:$4 sm:$0xff]   ;;  %v3880_v35 = vld [vmem:[%s5084_s1 + $0x424] ss:$16 sps:$4 sm:$0xff]  }
  0x6a   : > { %987 = vmatpush1.bf16.msra.mxu0 %v3788_v36  ;;  %1028 = vmatpush1.bf16.msra.mxu1 %v3791_v37  ;;  %v3883_v36 = vld [vmem:[%s5084_s1 + $0x42c] ss:$16 sps:$4 sm:$0xff]   ;;  %v3878_v37 = vld [vmem:[%s5084_s1 + $0x420] ss:$16 sps:$4 sm:$0xff]  }
  0x6b   : > { %1253 = vmatprep.subr.bf16.mxu0 %v3796_v39  ;;  %1294 = vmatprep.subr.bf16.mxu1 %v3799_v40  ;;  %v3886_v39 = vld [vmem:[%s5084_s1 + $0x404] ss:$16 sps:$4 sm:$0xff]   ;;  %v3889_v40 = vld [vmem:[%s5084_s1 + $0x40c] ss:$16 sps:$4 sm:$0xff]  }
  0x6d   : > { %1005 = vmatmul.mubr.bf16.vlgmr.msra.gmra.mxu0 %v778_v41  ;;  %1046 = vmatmul.mubr.bf16.vlgmr.msra.gmra.mxu1 %v778_v41  ;;  %v3884_v41 = vld [vmem:[%s5084_s1 + $0x400] ss:$16 sps:$4 sm:$0xff]  }
  0x6e   : > { %1254 = vmatpush1.bf16.msra.mxu0 %v3794_v42  ;;  %1295 = vmatpush1.bf16.msra.mxu1 %v3797_v43  ;;  %v3887_v42 = vld [vmem:[%s5084_s1 + $0x408] ss:$16 sps:$4 sm:$0xff]  }
  0x6f   : > { %1255 = vmatprep.subr.bf16.mxu0 %v3802_v44  ;;  %1296 = vmatprep.subr.bf16.mxu1 %v3805_v45  ;;  %v1339_v43 = vld [vmem:[%s4233_s12 + $0x8] sm:$0xff]  ;;  %v3892_v44 = vld [vmem:[%s5084_s1 + $0x5e4] ss:$16 sps:$4 sm:$0xff]  }
  0x70   : > { %1285 = vmatprep.mubr.bf16.mxu0 %v4090_v2  ;;  %1326 = vmatprep.mubr.bf16.mxu1 %v4090_v2  ;;  %v3895_v45 = vld [vmem:[%s5084_s1 + $0x5ec] ss:$16 sps:$4 sm:$0xff]  }
  0x72   : > { %1256 = vmatpush1.bf16.msra.mxu0 %v3800_v46  ;;  %1297 = vmatpush1.bf16.msra.mxu1 %v3803_v47  ;;  %v1340_v46 = vpack.c.bf16 %v1339_v43, %v1339_v43  ;;  %v3890_v47 = vld [vmem:[%s5084_s1 + $0x5e0] ss:$16 sps:$4 sm:$0xff]   ;;  %v3977_v43 = vld [vmem:[%s5084_s1 + $0x628] ss:$16 sps:$4 sm:$0xff]  }
  0x73   : > { %1257 = vmatprep.subr.bf16.mxu0 %v3808_v48  ;;  %1298 = vmatprep.subr.bf16.mxu1 %v3811_v49  ;;  %v3893_v48 = vld [vmem:[%s5084_s1 + $0x5e8] ss:$16 sps:$4 sm:$0xff]   ;;  %v3898_v49 = vld [vmem:[%s5084_s1 + $0x5c4] ss:$16 sps:$4 sm:$0xff]  }
  0x76   : > { %1258 = vmatpush1.bf16.msra.mxu0 %v3806_v50  ;;  %1299 = vmatpush1.bf16.msra.mxu1 %v3809_v51  ;;  %v3901_v50 = vld [vmem:[%s5084_s1 + $0x5cc] ss:$16 sps:$4 sm:$0xff]   ;;  %v3896_v51 = vld [vmem:[%s5084_s1 + $0x5c0] ss:$16 sps:$4 sm:$0xff]  }
  0x77   : > { %1259 = vmatprep.subr.bf16.mxu0 %v3814_v52  ;;  %1300 = vmatprep.subr.bf16.mxu1 %v3817_v53  ;;  %v3899_v52 = vld [vmem:[%s5084_s1 + $0x5c8] ss:$16 sps:$4 sm:$0xff]   ;;  %v3904_v53 = vld [vmem:[%s5084_s1 + $0x5a4] ss:$16 sps:$4 sm:$0xff]  }
  0x7a   : > { %1260 = vmatpush1.bf16.msra.mxu0 %v3812_v54  ;;  %1301 = vmatpush1.bf16.msra.mxu1 %v3815_v55  ;;  %v3907_v54 = vld [vmem:[%s5084_s1 + $0x5ac] ss:$16 sps:$4 sm:$0xff]   ;;  %v3902_v55 = vld [vmem:[%s5084_s1 + $0x5a0] ss:$16 sps:$4 sm:$0xff]  }
  0x7b   : > { %1261 = vmatprep.subr.bf16.mxu0 %v3820_v56  ;;  %1302 = vmatprep.subr.bf16.mxu1 %v3823_v57  ;;  %v3905_v56 = vld [vmem:[%s5084_s1 + $0x5a8] ss:$16 sps:$4 sm:$0xff]   ;;  %v3910_v57 = vld [vmem:[%s5084_s1 + $0x584] ss:$16 sps:$4 sm:$0xff]  }
  0x7e   : > { %1262 = vmatpush1.bf16.msra.mxu0 %v3818_v58  ;;  %1303 = vmatpush1.bf16.msra.mxu1 %v3821_v59  ;;  %v3913_v58 = vld [vmem:[%s5084_s1 + $0x58c] ss:$16 sps:$4 sm:$0xff]   ;;  %v3908_v59 = vld [vmem:[%s5084_s1 + $0x580] ss:$16 sps:$4 sm:$0xff]  }
  0x7f   : > { %1263 = vmatprep.subr.bf16.mxu0 %v3826_v60  ;;  %1304 = vmatprep.subr.bf16.mxu1 %v3829_v61  ;;  %v3911_v60 = vld [vmem:[%s5084_s1 + $0x588] ss:$16 sps:$4 sm:$0xff]   ;;  %v3916_v61 = vld [vmem:[%s5084_s1 + $0x564] ss:$16 sps:$4 sm:$0xff]  }
  0x82   : > { %1264 = vmatpush1.bf16.msra.mxu0 %v3824_v62  ;;  %1305 = vmatpush1.bf16.msra.mxu1 %v3827_v63  ;;  %v3919_v62 = vld [vmem:[%s5084_s1 + $0x56c] ss:$16 sps:$4 sm:$0xff]   ;;  %v3914_v63 = vld [vmem:[%s5084_s1 + $0x560] ss:$16 sps:$4 sm:$0xff]  }
  0x83   : > { %1265 = vmatprep.subr.bf16.mxu0 %v3832_v0  ;;  %1306 = vmatprep.subr.bf16.mxu1 %v3835_v1  ;;  %v3917_v0 = vld [vmem:[%s5084_s1 + $0x568] ss:$16 sps:$4 sm:$0xff]   ;;  %v3922_v1 = vld [vmem:[%s5084_s1 + $0x544] ss:$16 sps:$4 sm:$0xff]  }
  0x86   : > { %1266 = vmatpush1.bf16.msra.mxu0 %v3830_v3  ;;  %1307 = vmatpush1.bf16.msra.mxu1 %v3833_v4  ;;  %v3925_v3 = vld [vmem:[%s5084_s1 + $0x54c] ss:$16 sps:$4 sm:$0xff]   ;;  %v3920_v4 = vld [vmem:[%s5084_s1 + $0x540] ss:$16 sps:$4 sm:$0xff]  }
  0x87   : > { %1267 = vmatprep.subr.bf16.mxu0 %v3838_v5  ;;  %1308 = vmatprep.subr.bf16.mxu1 %v3841_v6  ;;  %v3923_v5 = vld [vmem:[%s5084_s1 + $0x548] ss:$16 sps:$4 sm:$0xff]   ;;  %v3928_v6 = vld [vmem:[%s5084_s1 + $0x524] ss:$16 sps:$4 sm:$0xff]  }
  0x8a   : > { %1268 = vmatpush1.bf16.msra.mxu0 %v3836_v7  ;;  %1309 = vmatpush1.bf16.msra.mxu1 %v3839_v8  ;;  %v3931_v7 = vld [vmem:[%s5084_s1 + $0x52c] ss:$16 sps:$4 sm:$0xff]   ;;  %v3926_v8 = vld [vmem:[%s5084_s1 + $0x520] ss:$16 sps:$4 sm:$0xff]  }
  0x8b   : > { %1534 = vmatprep.subr.bf16.mxu0 %v3844_v10  ;;  %1575 = vmatprep.subr.bf16.mxu1 %v3847_v11  ;;  %v3934_v10 = vld [vmem:[%s5084_s1 + $0x504] ss:$16 sps:$4 sm:$0xff]   ;;  %v3937_v11 = vld [vmem:[%s5084_s1 + $0x50c] ss:$16 sps:$4 sm:$0xff]  }
  0x8d   : > { %1286 = vmatmul.mubr.bf16.vlgmr.msra.gmra.mxu0 %v1059_v12  ;;  %1327 = vmatmul.mubr.bf16.vlgmr.msra.gmra.mxu1 %v1059_v12  ;;  %v3932_v12 = vld [vmem:[%s5084_s1 + $0x500] ss:$16 sps:$4 sm:$0xff]  }
  0x8e   : > { %1535 = vmatpush1.bf16.msra.mxu0 %v3842_v13  ;;  %1576 = vmatpush1.bf16.msra.mxu1 %v3845_v14  ;;  %v3935_v13 = vld [vmem:[%s5084_s1 + $0x508] ss:$16 sps:$4 sm:$0xff]  }
  0x8f   : > { %1536 = vmatprep.subr.bf16.mxu0 %v3850_v15  ;;  %1577 = vmatprep.subr.bf16.mxu1 %v3853_v16  ;;  %v1620_v14 = vld [vmem:[%s4233_s12 + $0x9] sm:$0xff]  ;;  %v3940_v15 = vld [vmem:[%s5084_s1 + $0x6e4] ss:$16 sps:$4 sm:$0xff]  }
  0x90   : > { %1566 = vmatprep.mubr.bf16.mxu0 %v4090_v2  ;;  %1607 = vmatprep.mubr.bf16.mxu1 %v4090_v2  ;;  %v3943_v16 = vld [vmem:[%s5084_s1 + $0x6ec] ss:$16 sps:$4 sm:$0xff]  }
  0x92   : > { %1537 = vmatpush1.bf16.msra.mxu0 %v3848_v17  ;;  %1578 = vmatpush1.bf16.msra.mxu1 %v3851_v18  ;;  %v1621_v17 = vpack.c.bf16 %v1620_v14, %v1620_v14  ;;  %v3938_v18 = vld [vmem:[%s5084_s1 + $0x6e0] ss:$16 sps:$4 sm:$0xff]   ;;  %v4013_v14 = vld [vmem:[%s5084_s1 + $0x768] ss:$16 sps:$4 sm:$0xff]  }
  0x93   : > { %1538 = vmatprep.subr.bf16.mxu0 %v3856_v19  ;;  %1579 = vmatprep.subr.bf16.mxu1 %v3859_v20  ;;  %v3941_v19 = vld [vmem:[%s5084_s1 + $0x6e8] ss:$16 sps:$4 sm:$0xff]   ;;  %v3946_v20 = vld [vmem:[%s5084_s1 + $0x6c4] ss:$16 sps:$4 sm:$0xff]  }
  0x96   : > { %1539 = vmatpush1.bf16.msra.mxu0 %v3854_v21  ;;  %1580 = vmatpush1.bf16.msra.mxu1 %v3857_v22  ;;  %v3949_v21 = vld [vmem:[%s5084_s1 + $0x6cc] ss:$16 sps:$4 sm:$0xff]   ;;  %v3944_v22 = vld [vmem:[%s5084_s1 + $0x6c0] ss:$16 sps:$4 sm:$0xff]  }
  0x97   : > { %1540 = vmatprep.subr.bf16.mxu0 %v3862_v23  ;;  %1581 = vmatprep.subr.bf16.mxu1 %v3865_v24  ;;  %v3947_v23 = vld [vmem:[%s5084_s1 + $0x6c8] ss:$16 sps:$4 sm:$0xff]   ;;  %v3952_v24 = vld [vmem:[%s5084_s1 + $0x6a4] ss:$16 sps:$4 sm:$0xff]  }
  0x9a   : > { %1541 = vmatpush1.bf16.msra.mxu0 %v3860_v25  ;;  %1582 = vmatpush1.bf16.msra.mxu1 %v3863_v26  ;;  %v3955_v25 = vld [vmem:[%s5084_s1 + $0x6ac] ss:$16 sps:$4 sm:$0xff]   ;;  %v3950_v26 = vld [vmem:[%s5084_s1 + $0x6a0] ss:$16 sps:$4 sm:$0xff]  }
  0x9b   : > { %1542 = vmatprep.subr.bf16.mxu0 %v3868_v27  ;;  %1583 = vmatprep.subr.bf16.mxu1 %v3871_v28  ;;  %v3953_v27 = vld [vmem:[%s5084_s1 + $0x6a8] ss:$16 sps:$4 sm:$0xff]   ;;  %v3958_v28 = vld [vmem:[%s5084_s1 + $0x684] ss:$16 sps:$4 sm:$0xff]  }
  0x9e   : > { %1543 = vmatpush1.bf16.msra.mxu0 %v3866_v29  ;;  %1584 = vmatpush1.bf16.msra.mxu1 %v3869_v30  ;;  %v3961_v29 = vld [vmem:[%s5084_s1 + $0x68c] ss:$16 sps:$4 sm:$0xff]   ;;  %v3956_v30 = vld [vmem:[%s5084_s1 + $0x680] ss:$16 sps:$4 sm:$0xff]  }
  0x9f   : > { %1544 = vmatprep.subr.bf16.mxu0 %v3874_v31  ;;  %1585 = vmatprep.subr.bf16.mxu1 %v3877_v32  ;;  %v3959_v31 = vld [vmem:[%s5084_s1 + $0x688] ss:$16 sps:$4 sm:$0xff]   ;;  %v3964_v32 = vld [vmem:[%s5084_s1 + $0x664] ss:$16 sps:$4 sm:$0xff]  }
  0xa2   : > { %1545 = vmatpush1.bf16.msra.mxu0 %v3872_v33  ;;  %1586 = vmatpush1.bf16.msra.mxu1 %v3875_v34  ;;  %v3967_v33 = vld [vmem:[%s5084_s1 + $0x66c] ss:$16 sps:$4 sm:$0xff]   ;;  %v3962_v34 = vld [vmem:[%s5084_s1 + $0x660] ss:$16 sps:$4 sm:$0xff]  }
  0xa3   : > { %1546 = vmatprep.subr.bf16.mxu0 %v3880_v35  ;;  %1587 = vmatprep.subr.bf16.mxu1 %v3883_v36  ;;  %v3965_v35 = vld [vmem:[%s5084_s1 + $0x668] ss:$16 sps:$4 sm:$0xff]   ;;  %v3970_v36 = vld [vmem:[%s5084_s1 + $0x644] ss:$16 sps:$4 sm:$0xff]  }
  0xa6   : > { %1547 = vmatpush1.bf16.msra.mxu0 %v3878_v37  ;;  %1588 = vmatpush1.bf16.msra.mxu1 %v3881_v38  ;;  %v3973_v37 = vld [vmem:[%s5084_s1 + $0x64c] ss:$16 sps:$4 sm:$0xff]   ;;  %v3968_v38 = vld [vmem:[%s5084_s1 + $0x640] ss:$16 sps:$4 sm:$0xff]  }
  0xa7   : > { %1548 = vmatprep.subr.bf16.mxu0 %v3886_v39  ;;  %1589 = vmatprep.subr.bf16.mxu1 %v3889_v40  ;;  %v3971_v39 = vld [vmem:[%s5084_s1 + $0x648] ss:$16 sps:$4 sm:$0xff]   ;;  %v3976_v40 = vld [vmem:[%s5084_s1 + $0x624] ss:$16 sps:$4 sm:$0xff]  }
  0xaa   : > { %1549 = vmatpush1.bf16.msra.mxu0 %v3884_v41  ;;  %1590 = vmatpush1.bf16.msra.mxu1 %v3887_v42  ;;  %v3979_v41 = vld [vmem:[%s5084_s1 + $0x62c] ss:$16 sps:$4 sm:$0xff]   ;;  %v3974_v42 = vld [vmem:[%s5084_s1 + $0x620] ss:$16 sps:$4 sm:$0xff]  }
  0xab   : > { %1815 = vmatprep.subr.bf16.mxu0 %v3892_v44  ;;  %1856 = vmatprep.subr.bf16.mxu1 %v3895_v45  ;;  %v3982_v44 = vld [vmem:[%s5084_s1 + $0x604] ss:$16 sps:$4 sm:$0xff]   ;;  %v3985_v45 = vld [vmem:[%s5084_s1 + $0x60c] ss:$16 sps:$4 sm:$0xff]  }
  0xad   : > { %1567 = vmatmul.mubr.bf16.vlgmr.msra.gmra.mxu0 %v1340_v46  ;;  %1608 = vmatmul.mubr.bf16.vlgmr.msra.gmra.mxu1 %v1340_v46  ;;  %v3980_v46 = vld [vmem:[%s5084_s1 + $0x600] ss:$16 sps:$4 sm:$0xff]  }
  0xae   : > { %1816 = vmatpush1.bf16.msra.mxu0 %v3890_v47  ;;  %1857 = vmatpush1.bf16.msra.mxu1 %v3893_v48  ;;  %v3983_v47 = vld [vmem:[%s5084_s1 + $0x608] ss:$16 sps:$4 sm:$0xff]  }
  0xaf   : > { %1817 = vmatprep.subr.bf16.mxu0 %v3898_v49  ;;  %1858 = vmatprep.subr.bf16.mxu1 %v3901_v50  ;;  %v1901_v48 = vld [vmem:[%s4233_s12 + $0xb] sm:$0xff]  ;;  %v3988_v49 = vld [vmem:[%s5084_s1 + $0x7e4] ss:$16 sps:$4 sm:$0xff]  }
  0xb0   : > { %1847 = vmatprep.mubr.bf16.mxu0 %v4090_v2  ;;  %1888 = vmatprep.mubr.bf16.mxu1 %v4090_v2  ;;  %v3991_v50 = vld [vmem:[%s5084_s1 + $0x7ec] ss:$16 sps:$4 sm:$0xff]  }
  0xb2   : > { %1818 = vmatpush1.bf16.msra.mxu0 %v3896_v51  ;;  %1859 = vmatpush1.bf16.msra.mxu1 %v3899_v52  ;;  %v1902_v51 = vpack.c.bf16 %v1901_v48, %v1901_v48  ;;  %v3986_v52 = vld [vmem:[%s5084_s1 + $0x7e0] ss:$16 sps:$4 sm:$0xff]  }
  0xb3   : > { %1819 = vmatprep.subr.bf16.mxu0 %v3904_v53  ;;  %1860 = vmatprep.subr.bf16.mxu1 %v3907_v54  ;;  %v3989_v53 = vld [vmem:[%s5084_s1 + $0x7e8] ss:$16 sps:$4 sm:$0xff]   ;;  %v3994_v54 = vld [vmem:[%s5084_s1 + $0x7c4] ss:$16 sps:$4 sm:$0xff]  }
  0xb6   : > { %1820 = vmatpush1.bf16.msra.mxu0 %v3902_v55  ;;  %1861 = vmatpush1.bf16.msra.mxu1 %v3905_v56  ;;  %v3997_v55 = vld [vmem:[%s5084_s1 + $0x7cc] ss:$16 sps:$4 sm:$0xff]  }
  0xb7   : > { %1821 = vmatprep.subr.bf16.mxu0 %v3910_v57  ;;  %1862 = vmatprep.subr.bf16.mxu1 %v3913_v58  ;;  %v3992_v58 = vld [vmem:[%s5084_s1 + $0x7c0] ss:$16 sps:$4 sm:$0xff]  }
  0xba   : > { %1822 = vmatpush1.bf16.msra.mxu0 %v3908_v59  ;;  %1863 = vmatpush1.bf16.msra.mxu1 %v3911_v60  ;;  %v3995_v59 = vld [vmem:[%s5084_s1 + $0x7c8] ss:$16 sps:$4 sm:$0xff]  }
  0xbb   : > { %1823 = vmatprep.subr.bf16.mxu0 %v3916_v61  ;;  %1864 = vmatprep.subr.bf16.mxu1 %v3919_v62  ;;  %v4000_v62 = vld [vmem:[%s5084_s1 + $0x7a4] ss:$16 sps:$4 sm:$0xff]  }
  0xbe   : > { %1824 = vmatpush1.bf16.msra.mxu0 %v3914_v63  ;;  %1865 = vmatpush1.bf16.msra.mxu1 %v3917_v0  ;;  %v4003_v63 = vld [vmem:[%s5084_s1 + $0x7ac] ss:$16 sps:$4 sm:$0xff]  }
  0xbf   : > { %1825 = vmatprep.subr.bf16.mxu0 %v3922_v1  ;;  %1866 = vmatprep.subr.bf16.mxu1 %v3925_v3  ;;  %v3998_v3 = vld [vmem:[%s5084_s1 + $0x7a0] ss:$16 sps:$4 sm:$0xff]  }
  0xc2   : > { %1826 = vmatpush1.bf16.msra.mxu0 %v3920_v4  ;;  %1867 = vmatpush1.bf16.msra.mxu1 %v3923_v5  ;;  %v4001_v4 = vld [vmem:[%s5084_s1 + $0x7a8] ss:$16 sps:$4 sm:$0xff]  }
  0xc3   : > { %1827 = vmatprep.subr.bf16.mxu0 %v3928_v6  ;;  %1868 = vmatprep.subr.bf16.mxu1 %v3931_v7  ;;  %v4006_v7 = vld [vmem:[%s5084_s1 + $0x784] ss:$16 sps:$4 sm:$0xff]  }
  0xc6   : > { %1828 = vmatpush1.bf16.msra.mxu0 %v3926_v8  ;;  %1869 = vmatpush1.bf16.msra.mxu1 %v3929_v9  ;;  %v4009_v8 = vld [vmem:[%s5084_s1 + $0x78c] ss:$16 sps:$4 sm:$0xff]   ;;  %v4004_v9 = vld [vmem:[%s5084_s1 + $0x780] ss:$16 sps:$4 sm:$0xff]  }
  0xc7   : > { %1829 = vmatprep.subr.bf16.mxu0 %v3934_v10  ;;  %1870 = vmatprep.subr.bf16.mxu1 %v3937_v11  ;;  %v4007_v10 = vld [vmem:[%s5084_s1 + $0x788] ss:$16 sps:$4 sm:$0xff]   ;;  %v4012_v11 = vld [vmem:[%s5084_s1 + $0x764] ss:$16 sps:$4 sm:$0xff]  }
  0xca   : > { %1830 = vmatpush1.bf16.msra.mxu0 %v3932_v12  ;;  %1871 = vmatpush1.bf16.msra.mxu1 %v3935_v13  ;;  %v4015_v12 = vld [vmem:[%s5084_s1 + $0x76c] ss:$16 sps:$4 sm:$0xff]   ;;  %v4010_v13 = vld [vmem:[%s5084_s1 + $0x760] ss:$16 sps:$4 sm:$0xff]  }
  0xcb   : > { %2096 = vmatprep.subr.bf16.mxu0 %v3940_v15  ;;  %2137 = vmatprep.subr.bf16.mxu1 %v3943_v16  ;;  %v4018_v15 = vld [vmem:[%s5084_s1 + $0x744] ss:$16 sps:$4 sm:$0xff]   ;;  %v4021_v16 = vld [vmem:[%s5084_s1 + $0x74c] ss:$16 sps:$4 sm:$0xff]  }
  0xcd   : > { %1848 = vmatmul.mubr.bf16.vlgmr.msra.gmra.mxu0 %v1621_v17  ;;  %1889 = vmatmul.mubr.bf16.vlgmr.msra.gmra.mxu1 %v1621_v17  ;;  %v4016_v17 = vld [vmem:[%s5084_s1 + $0x740] ss:$16 sps:$4 sm:$0xff]  }
  0xce   : > { %2097 = vmatpush1.bf16.msra.mxu0 %v3938_v18  ;;  %2138 = vmatpush1.bf16.msra.mxu1 %v3941_v19  ;;  %v4019_v18 = vld [vmem:[%s5084_s1 + $0x748] ss:$16 sps:$4 sm:$0xff]   ;;  %v4024_v19 = vld [vmem:[%s5084_s1 + $0x724] ss:$16 sps:$4 sm:$0xff]  }
  0xcf   : > { %2098 = vmatprep.subr.bf16.mxu0 %v3946_v20  ;;  %2139 = vmatprep.subr.bf16.mxu1 %v3949_v21  ;;  %v4027_v20 = vld [vmem:[%s5084_s1 + $0x72c] ss:$16 sps:$4 sm:$0xff]   ;;  %v4022_v21 = vld [vmem:[%s5084_s1 + $0x720] ss:$16 sps:$4 sm:$0xff]  }
  0xd0   : > { %2128 = vmatprep.mubr.bf16.mxu0 %v4090_v2  ;;  %2169 = vmatprep.mubr.bf16.mxu1 %v4090_v2 }
  0xd2   : > { %2099 = vmatpush1.bf16.msra.mxu0 %v3944_v22  ;;  %2140 = vmatpush1.bf16.msra.mxu1 %v3947_v23  ;;  %v4025_v22 = vld [vmem:[%s5084_s1 + $0x728] ss:$16 sps:$4 sm:$0xff]   ;;  %v4030_v23 = vld [vmem:[%s5084_s1 + $0x704] ss:$16 sps:$4 sm:$0xff]  }
  0xd3   : > { %2100 = vmatprep.subr.bf16.mxu0 %v3952_v24  ;;  %2141 = vmatprep.subr.bf16.mxu1 %v3955_v25  ;;  %v4033_v24 = vld [vmem:[%s5084_s1 + $0x70c] ss:$16 sps:$4 sm:$0xff]   ;;  %v4028_v25 = vld [vmem:[%s5084_s1 + $0x700] ss:$16 sps:$4 sm:$0xff]  }
  0xd6   : > { %2101 = vmatpush1.bf16.msra.mxu0 %v3950_v26  ;;  %2142 = vmatpush1.bf16.msra.mxu1 %v3953_v27  ;;  %v4031_v26 = vld [vmem:[%s5084_s1 + $0x708] ss:$16 sps:$4 sm:$0xff]   ;;  %v2182_v27 = vld [vmem:[%s4233_s12 + $0xc] sm:$0xff] }
  0xd7   : > { %2102 = vmatprep.subr.bf16.mxu0 %v3958_v28  ;;  %2143 = vmatprep.subr.bf16.mxu1 %v3961_v29  ;;  %v4036_v28 = vld [vmem:[%s5084_s1 + $0x8e4] ss:$16 sps:$4 sm:$0xff]   ;;  %v4039_v29 = vld [vmem:[%s5084_s1 + $0x8ec] ss:$16 sps:$4 sm:$0xff]  }
  0xda   : > { %2103 = vmatpush1.bf16.msra.mxu0 %v3956_v30  ;;  %2144 = vmatpush1.bf16.msra.mxu1 %v3959_v31  ;;  %v2183_v30 = vpack.c.bf16 %v2182_v27, %v2182_v27  ;;  %v4034_v31 = vld [vmem:[%s5084_s1 + $0x8e0] ss:$16 sps:$4 sm:$0xff]  }
  0xdb   : > { %2104 = vmatprep.subr.bf16.mxu0 %v3964_v32  ;;  %2145 = vmatprep.subr.bf16.mxu1 %v3967_v33  ;;  %v4037_v32 = vld [vmem:[%s5084_s1 + $0x8e8] ss:$16 sps:$4 sm:$0xff]   ;;  %v4042_v33 = vld [vmem:[%s5084_s1 + $0x8c4] ss:$16 sps:$4 sm:$0xff]  }
  0xde   : > { %2105 = vmatpush1.bf16.msra.mxu0 %v3962_v34  ;;  %2146 = vmatpush1.bf16.msra.mxu1 %v3965_v35  ;;  %v4045_v34 = vld [vmem:[%s5084_s1 + $0x8cc] ss:$16 sps:$4 sm:$0xff]  }
  0xdf   : > { %2106 = vmatprep.subr.bf16.mxu0 %v3970_v36  ;;  %2147 = vmatprep.subr.bf16.mxu1 %v3973_v37 }
  0xe2   : > { %2107 = vmatpush1.bf16.msra.mxu0 %v3968_v38  ;;  %2148 = vmatpush1.bf16.msra.mxu1 %v3971_v39  ;;  %v4040_v39 = vld [vmem:[%s5084_s1 + $0x8c0] ss:$16 sps:$4 sm:$0xff]  }
  0xe3   : > { %2108 = vmatprep.subr.bf16.mxu0 %v3976_v40  ;;  %2149 = vmatprep.subr.bf16.mxu1 %v3979_v41  ;;  %v4043_v40 = vld [vmem:[%s5084_s1 + $0x8c8] ss:$16 sps:$4 sm:$0xff]  }
  0xe6   : > { %2109 = vmatpush1.bf16.msra.mxu0 %v3974_v42  ;;  %2150 = vmatpush1.bf16.msra.mxu1 %v3977_v43  ;;  %v4048_v43 = vld [vmem:[%s5084_s1 + $0x8a4] ss:$16 sps:$4 sm:$0xff]  }
  0xe7   : > { %2110 = vmatprep.subr.bf16.mxu0 %v3982_v44  ;;  %2151 = vmatprep.subr.bf16.mxu1 %v3985_v45  ;;  %v4051_v44 = vld [vmem:[%s5084_s1 + $0x8ac] ss:$16 sps:$4 sm:$0xff]  }
  0xea   : > { %2111 = vmatpush1.bf16.msra.mxu0 %v3980_v46  ;;  %2152 = vmatpush1.bf16.msra.mxu1 %v3983_v47 }
  0xeb   : > { %2377 = vmatprep.subr.bf16.mxu0 %v3988_v49  ;;  %2418 = vmatprep.subr.bf16.mxu1 %v3991_v50  ;;  %v4046_v49 = vld [vmem:[%s5084_s1 + $0x8a0] ss:$16 sps:$4 sm:$0xff]   ;;  %v4049_v50 = vld [vmem:[%s5084_s1 + $0x8a8] ss:$16 sps:$4 sm:$0xff]  }
  0xed   : > { %v4854_v56 = vpop.f32.mrf.mxu0  ;;  %v4856_v57 = vpop.f32.mrf.mxu1  ;;  %2129 = vmatmul.mubr.bf16.vlgmr.msra.gmra.mxu0 %v1902_v51  ;;  %2170 = vmatmul.mubr.bf16.vlgmr.msra.gmra.mxu1 %v1902_v51 }
  0xee   : > { %2378 = vmatpush1.bf16.msra.mxu0 %v3986_v52  ;;  %2419 = vmatpush1.bf16.msra.mxu1 %v3989_v53  ;;  %v4057_v53 = vld [vmem:[%s5084_s1 + $0x88c] ss:$16 sps:$4 sm:$0xff]  }
  0xef   : > { %v4864_v60 = vpop.f32.mrf.mxu0  ;;  %v4866_v61 = vpop.f32.mrf.mxu1  ;;  %2379 = vmatprep.subr.bf16.mxu0 %v3994_v54  ;;  %2420 = vmatprep.subr.bf16.mxu1 %v3997_v55  ;;  %v4052_v54 = vld [vmem:[%s5084_s1 + $0x880] ss:$16 sps:$4 sm:$0xff]   ;;  %v4055_v55 = vld [vmem:[%s5084_s1 + $0x888] ss:$16 sps:$4 sm:$0xff]  }
  0xf0   : > { %2409 = vmatprep.mubr.bf16.mxu0 %v4090_v2  ;;  %2450 = vmatprep.mubr.bf16.mxu1 %v4090_v2 }
  0xf1   : > { %v491_v0 = vpop.f32.mrf.mxu0  ;;  %v532_v1 = vpop.f32.mrf.mxu1 }
  0xf2   : > { %2380 = vmatpush1.bf16.msra.mxu0 %v3992_v58  ;;  %2421 = vmatpush1.bf16.msra.mxu1 %v3995_v59  ;;  %v4058_v58 = vld [vmem:[%s5084_s1 + $0x860] ss:$16 sps:$4 sm:$0xff]   ;;  %v4061_v59 = vld [vmem:[%s5084_s1 + $0x868] ss:$16 sps:$4 sm:$0xff]   ;;  %v4072_v0 = vld [vmem:[%s5084_s1 + $0x824] ss:$16 sps:$4 sm:$0xff]  }
  0xf3   : > { %v492_v5 = vpop.f32.mrf.mxu0  ;;  %v533_v6 = vpop.f32.mrf.mxu1  ;;  %2381 = vmatprep.subr.bf16.mxu0 %v4000_v62  ;;  %2422 = vmatprep.subr.bf16.mxu1 %v4003_v63  ;;  %v4064_v62 = vld [vmem:[%s5084_s1 + $0x840] ss:$16 sps:$4 sm:$0xff]   ;;  %v4067_v63 = vld [vmem:[%s5084_s1 + $0x848] ss:$16 sps:$4 sm:$0xff]   ;;  %v4075_v1 = vld [vmem:[%s5084_s1 + $0x82c] ss:$16 sps:$4 sm:$0xff]  }
  0xf4   : > { %v4078_v5 = vld [vmem:[%s5084_s1 + $0x804] ss:$16 sps:$4 sm:$0xff]   ;;  %v4081_v6 = vld [vmem:[%s5084_s1 + $0x80c] ss:$16 sps:$4 sm:$0xff]  }
  0xf6   : > { %2382 = vmatpush1.bf16.msra.mxu0 %v3998_v3  ;;  %2423 = vmatpush1.bf16.msra.mxu1 %v4001_v4  ;;  %v4070_v3 = vld [vmem:[%s5084_s1 + $0x820] ss:$16 sps:$4 sm:$0xff]   ;;  %v4073_v4 = vld [vmem:[%s5084_s1 + $0x828] ss:$16 sps:$4 sm:$0xff]  }
  0xf7   : > { %2383 = vmatprep.subr.bf16.mxu0 %v4006_v7  ;;  %2424 = vmatprep.subr.bf16.mxu1 %v4009_v8  ;;  %v4076_v7 = vld [vmem:[%s5084_s1 + $0x800] ss:$16 sps:$4 sm:$0xff]   ;;  %v4079_v8 = vld [vmem:[%s5084_s1 + $0x808] ss:$16 sps:$4 sm:$0xff]  }
  0xfa   : > { %2384 = vmatpush1.bf16.msra.mxu0 %v4004_v9  ;;  %2425 = vmatpush1.bf16.msra.mxu1 %v4007_v10  ;;  %v2463_v9 = vld [vmem:[%s4233_s12 + $0xd] sm:$0xff] }
  0xfb   : > { %2385 = vmatprep.subr.bf16.mxu0 %v4012_v11  ;;  %2426 = vmatprep.subr.bf16.mxu1 %v4015_v12  ;;  %v2464_v10 = vpack.c.bf16 %v2463_v9, %v2463_v9 }
  0xfe   : > { %2386 = vmatpush1.bf16.msra.mxu0 %v4010_v13  ;;  %2427 = vmatpush1.bf16.msra.mxu1 %v4013_v14 }
  0xff   : > { %2387 = vmatprep.subr.bf16.mxu0 %v4018_v15  ;;  %2428 = vmatprep.subr.bf16.mxu1 %v4021_v16 }
 0x102   : > { %2388 = vmatpush1.bf16.msra.mxu0 %v4016_v17  ;;  %2429 = vmatpush1.bf16.msra.mxu1 %v4019_v18 }
 0x103   : > { %2389 = vmatprep.subr.bf16.mxu0 %v4024_v19  ;;  %2430 = vmatprep.subr.bf16.mxu1 %v4027_v20 }
 0x106   : > { %2390 = vmatpush1.bf16.msra.mxu0 %v4022_v21  ;;  %2431 = vmatpush1.bf16.msra.mxu1 %v4025_v22 }
 0x107   : > { %2391 = vmatprep.subr.bf16.mxu0 %v4030_v23  ;;  %2432 = vmatprep.subr.bf16.mxu1 %v4033_v24 }
 0x10a   : > { %2392 = vmatpush1.bf16.msra.mxu0 %v4028_v25  ;;  %2433 = vmatpush1.bf16.msra.mxu1 %v4031_v26 }
 0x10b   : > { %2658 = vmatprep.subr.bf16.mxu0 %v4036_v28  ;;  %2699 = vmatprep.subr.bf16.mxu1 %v4039_v29 }
 0x10d   : > { %v729_v35 = vpop.f32.mrf.mxu0  ;;  %v770_v36 = vpop.f32.mrf.mxu1  ;;  %2410 = vmatmul.mubr.bf16.vlgmr.msra.gmra.mxu0 %v2183_v30  ;;  %2451 = vmatmul.mubr.bf16.vlgmr.msra.gmra.mxu1 %v2183_v30 }
 0x10e   : > { %v4962_v37 = vadd.f32 %v729_v35, %v4854_v56  ;;  %v4965_v38 = vadd.f32 %v770_v36, %v4856_v57  ;;  %2659 = vmatpush1.bf16.msra.mxu0 %v4034_v31  ;;  %2700 = vmatpush1.bf16.msra.mxu1 %v4037_v32  ;;  %v4060_v56 = vld [vmem:[%s5084_s1 + $0x864] ss:$16 sps:$4 sm:$0xff]   ;;  %v4063_v57 = vld [vmem:[%s5084_s1 + $0x86c] ss:$16 sps:$4 sm:$0xff]  }
 0x10f   : > { %v731_v41 = vpop.f32.mrf.mxu0  ;;  %v772_v42 = vpop.f32.mrf.mxu1  ;;  %2660 = vmatprep.subr.bf16.mxu0 %v4042_v33  ;;  %2701 = vmatprep.subr.bf16.mxu1 %v4045_v34 }
 0x110   : > { %v4980_v45 = vadd.f32 %v731_v41, %v4864_v60  ;;  %v4983_v46 = vadd.f32 %v772_v42, %v4866_v61  ;;  %2690 = vmatprep.mubr.bf16.mxu0 %v4090_v2  ;;  %2731 = vmatprep.mubr.bf16.mxu1 %v4090_v2  ;;  %v4054_v2 = vld [vmem:[%s5084_s1 + $0x884] ss:$16 sps:$4 sm:$0xff]   ;;  %v4069_v61 = vld [vmem:[%s5084_s1 + $0x84c] ss:$16 sps:$4 sm:$0xff]  }
 0x111   : > { %v733_v47 = vpop.f32.mrf.mxu0  ;;  %v774_v48 = vpop.f32.mrf.mxu1  ;;  %v4066_v60 = vld [vmem:[%s5084_s1 + $0x844] ss:$16 sps:$4 sm:$0xff]  }
 0x112   : > { %2661 = vmatpush1.bf16.msra.mxu0 %v4040_v39  ;;  %2702 = vmatpush1.bf16.msra.mxu1 %v4043_v40  ;;  %v4091_v47 = vmov 0.0  }
 0x113   : > { %v734_v51 = vpop.f32.mrf.mxu0  ;;  %v775_v52 = vpop.f32.mrf.mxu1  ;;  %2662 = vmatprep.subr.bf16.mxu0 %v4048_v43  ;;  %2703 = vmatprep.subr.bf16.mxu1 %v4051_v44 }
 0x116   : > { %2663 = vmatpush1.bf16.msra.mxu0 %v4046_v49  ;;  %2704 = vmatpush1.bf16.msra.mxu1 %v4049_v50 }
 0x117   : > { %2664 = vmatprep.subr.bf16.mxu0 %v4054_v2  ;;  %2705 = vmatprep.subr.bf16.mxu1 %v4057_v53 }
 0x11a   : > { %2665 = vmatpush1.bf16.msra.mxu0 %v4052_v54  ;;  %2706 = vmatpush1.bf16.msra.mxu1 %v4055_v55 }
 0x11b   : > { %2666 = vmatprep.subr.bf16.mxu0 %v4060_v56  ;;  %2707 = vmatprep.subr.bf16.mxu1 %v4063_v57 }
 0x11e   : > { %2667 = vmatpush1.bf16.msra.mxu0 %v4058_v58  ;;  %2708 = vmatpush1.bf16.msra.mxu1 %v4061_v59 }
 0x11f   : > { %2668 = vmatprep.subr.bf16.mxu0 %v4066_v60  ;;  %2709 = vmatprep.subr.bf16.mxu1 %v4069_v61 }
 0x122   : > { %2669 = vmatpush1.bf16.msra.mxu0 %v4064_v62  ;;  %2710 = vmatpush1.bf16.msra.mxu1 %v4067_v63 }
 0x123   : > { %2670 = vmatprep.subr.bf16.mxu0 %v4072_v0  ;;  %2711 = vmatprep.subr.bf16.mxu1 %v4075_v1 }
 0x126   : > { %2671 = vmatpush1.bf16.msra.mxu0 %v4070_v3  ;;  %2712 = vmatpush1.bf16.msra.mxu1 %v4073_v4 }
 0x127   : > { %2672 = vmatprep.subr.bf16.mxu0 %v4078_v5  ;;  %2713 = vmatprep.subr.bf16.mxu1 %v4081_v6 }
 0x12a   : > { %2673 = vmatpush1.bf16.msra.mxu0 %v4076_v7  ;;  %2714 = vmatpush1.bf16.msra.mxu1 %v4079_v8 }
 0x12d   : > { %v1006_v11 = vpop.f32.mrf.mxu0  ;;  %v1047_v12 = vpop.f32.mrf.mxu1  ;;  %2691 = vmatmul.mubr.bf16.vlgmr.msra.gmra.mxu0 %v2464_v10  ;;  %2732 = vmatmul.mubr.bf16.vlgmr.msra.gmra.mxu1 %v2464_v10 }
 0x12e   : > { %v1054_v13 = vadd.f32 %v1006_v11, %v4962_v37  ;;  %v1056_v14 = vadd.f32 %v1047_v12, %v4965_v38  ;;  %2914 = vmatprep.mubr.f32.mxu0 %v4091_v47  ;;  %2985 = vmatprep.mubr.f32.mxu1 %v4091_v47  ;;  %v2746_v12 = vlaneseq }
 0x12f   : > { %v1008_v15 = vpop.f32.mrf.mxu0  ;;  %v1049_v16 = vpop.f32.mrf.mxu1 }
 0x130   : > { %v1055_v17 = vadd.f32 %v1008_v15, %v4980_v45  ;;  %v1057_v18 = vadd.f32 %v1049_v16, %v4983_v46  ;;  %v2744_v16 = vld [vmem:[%s5085_s2] sm:$0xf]  ;;  %vm3023_vm2 = vcmp.lt.s32.totalorder %v2746_v12, 512 }
 0x131   : > { %v1010_v19 = vpop.f32.mrf.mxu0  ;;  %v1051_v20 = vpop.f32.mrf.mxu1 }
 0x133   : > { %v1011_v21 = vpop.f32.mrf.mxu0  ;;  %v1052_v22 = vpop.f32.mrf.mxu1 }
 0x134   : > { %v2770_v21 = vld [vmem:[%s5086_s3] sm:$0xf] }
 0x14d   : > { %v1287_v23 = vpop.f32.mrf.mxu0  ;;  %v1328_v24 = vpop.f32.mrf.mxu1 }
 0x14e   : > { %v1335_v25 = vadd.f32 %v1287_v23, %v1054_v13  ;;  %v1337_v26 = vadd.f32 %v1328_v24, %v1056_v14  ;;  %v5059_v13 = vshrl.u32 %v2746_v12, 7 }
 0x14f   : > { %v1289_v27 = vpop.f32.mrf.mxu0  ;;  %v1330_v28 = vpop.f32.mrf.mxu1 }
 0x150   : > { %v1336_v29 = vadd.f32 %v1289_v27, %v1055_v17  ;;  %v1338_v30 = vadd.f32 %v1330_v28, %v1057_v18  ;;  %v2748_v14 = vsub.s32 0, %v5059_v13  ;;  %v2756_v15 = vsub.s32 2, %v5059_v13 }
 0x151   : > { %v1291_v31 = vpop.f32.mrf.mxu0  ;;  %v1332_v32 = vpop.f32.mrf.mxu1  ;;  %v2752_v17 = vsub.s32 1, %v5059_v13  ;;  %v2760_v18 = vsub.s32 3, %v5059_v13 }
 0x152   : > { %v2749_v22 = vrot.slane %v2744_v16, %v2748_v14  ;;  %v2757_v23 = vrot.slane %v2744_v16, %v2756_v15  ;;  %v2783_v31 = vrot.slane %v2770_v21, %v2756_v15  ;;  %v4092_v15 = vmov 1966171168  }
 0x153   : > { %v1292_v33 = vpop.f32.mrf.mxu0  ;;  %v1333_v34 = vpop.f32.mrf.mxu1  ;;  %v2753_v32 = vrot.slane %v2744_v16, %v2752_v17 }
 0x154   : > { %v2761_v33 = vrot.slane %v2744_v16, %v2760_v18  ;;  %v2999_v16 = vunpack.c.l.s4 %v4092_v15 }
 0x16d   : > { %v1568_v35 = vpop.f32.mrf.mxu0  ;;  %v1609_v36 = vpop.f32.mrf.mxu1 }
 0x16e   : > { %v1616_v37 = vadd.f32 %v1568_v35, %v1335_v25  ;;  %v1618_v38 = vadd.f32 %v1609_v36, %v1337_v26 }
 0x16f   : > { %v1570_v39 = vpop.f32.mrf.mxu0  ;;  %v1611_v40 = vpop.f32.mrf.mxu1 }
 0x170   : > { %v1617_v41 = vadd.f32 %v1570_v39, %v1336_v29  ;;  %v1619_v42 = vadd.f32 %v1611_v40, %v1338_v30  ;;  %v2775_v29 = vrot.slane %v2770_v21, %v2748_v14  ;;  %v2779_v39 = vrot.slane %v2770_v21, %v2752_v17  ;;  %v2832_v14 = vld [vmem:[%s5087_s4] sm:$0x1] }
 0x171   : > { %v1572_v43 = vpop.f32.mrf.mxu0  ;;  %v1613_v44 = vpop.f32.mrf.mxu1  ;;  %v3000_v17 = vunpack.c.0.s8 %v2999_v16 }
 0x173   : > { %v1573_v45 = vpop.f32.mrf.mxu0  ;;  %v1614_v46 = vpop.f32.mrf.mxu1 }
 0x18d   : > { %v1849_v48 = vpop.f32.mrf.mxu0  ;;  %v1890_v49 = vpop.f32.mrf.mxu1 }
 0x18e   : > { %v1897_v50 = vadd.f32 %v1849_v48, %v1616_v37  ;;  %v1899_v51 = vadd.f32 %v1890_v49, %v1618_v38 }
 0x18f   : > { %v1851_v52 = vpop.f32.mrf.mxu0  ;;  %v1892_v2 = vpop.f32.mrf.mxu1 }
 0x190   : > { %v1898_v53 = vadd.f32 %v1851_v52, %v1617_v41  ;;  %v1900_v54 = vadd.f32 %v1892_v2, %v1619_v42  ;;  %v2787_v41 = vrot.slane %v2770_v21, %v2760_v18 }
 0x191   : > { %v1853_v55 = vpop.f32.mrf.mxu0  ;;  %v1894_v56 = vpop.f32.mrf.mxu1 }
 0x193   : > { %v1854_v57 = vpop.f32.mrf.mxu0  ;;  %v1895_v58 = vpop.f32.mrf.mxu1 }
 0x1ad   : > { %v2130_v59 = vpop.f32.mrf.mxu0  ;;  %v2171_v60 = vpop.f32.mrf.mxu1 }
 0x1ae   : > { %v2178_v19 = vadd.f32 %v2130_v59, %v1897_v50  ;;  %v2180_v20 = vadd.f32 %v2171_v60, %v1899_v51 }
 0x1af   : > { %v2132_v61 = vpop.f32.mrf.mxu0  ;;  %v2173_v62 = vpop.f32.mrf.mxu1 }
 0x1b0   : > { %v2179_v24 = vadd.f32 %v2132_v61, %v1898_v53  ;;  %v2181_v25 = vadd.f32 %v2173_v62, %v1900_v54 }
 0x1b1   : > { %v2134_v63 = vpop.f32.mrf.mxu0  ;;  %v2175_v0 = vpop.f32.mrf.mxu1 }
 0x1b3   : > { %v2135_v1 = vpop.f32.mrf.mxu0  ;;  %v2176_v3 = vpop.f32.mrf.mxu1 }
 0x1cd   : > { %v2411_v4 = vpop.f32.mrf.mxu0  ;;  %v2452_v5 = vpop.f32.mrf.mxu1 }
 0x1ce   : > { %v2459_v26 = vadd.f32 %v2411_v4, %v2178_v19  ;;  %v2461_v27 = vadd.f32 %v2452_v5, %v2180_v20  ;;  %v3003_v20 = vsub.s32 %v3000_v17, %v5059_v13 }
 0x1cf   : > { %v2413_v6 = vpop.f32.mrf.mxu0  ;;  %v2454_v7 = vpop.f32.mrf.mxu1 }
 0x1d0   : > { %v2460_v34 = vadd.f32 %v2413_v6, %v2179_v24  ;;  %v2462_v35 = vadd.f32 %v2454_v7, %v2181_v25 }
 0x1d1   : > { %v2415_v8 = vpop.f32.mrf.mxu0  ;;  %v2456_v9 = vpop.f32.mrf.mxu1 }
 0x1d3   : > { %v2416_v10 = vpop.f32.mrf.mxu0  ;;  %v2457_v11 = vpop.f32.mrf.mxu1 }
 0x1ed   : > { %v2692_v28 = vpop.f32.mrf.mxu0  ;;  %v2733_v30 = vpop.f32.mrf.mxu1 }
 0x1ee   : > { %v2740_v36 = vadd.f32 %v2692_v28, %v2459_v26  ;;  %v2742_v37 = vadd.f32 %v2733_v30, %v2461_v27 }
 0x1ef   : > { %v2694_v38 = vpop.f32.mrf.mxu0  ;;  %v2735_v40 = vpop.f32.mrf.mxu1 }
 0x1f0   : > { %v2766_v42 = vmul.f32 %v2749_v22, %v2740_v36  ;;  %v2768_v43 = vmul.f32 %v2757_v23, %v2742_v37  ;;  %v2741_v44 = vadd.f32 %v2694_v38, %v2460_v34  ;;  %v2743_v45 = vadd.f32 %v2735_v40, %v2462_v35 }
 0x1f1   : > { %v2696_v46 = vpop.f32.mrf.mxu0  ;;  %v2737_v47 = vpop.f32.mrf.mxu1 }
 0x1f2   : > { %v2792_v48 = vadd.f32 %v2775_v29, %v2766_v42  ;;  %v2794_v49 = vadd.f32 %v2783_v31, %v2768_v43  ;;  %v2767_v50 = vmul.f32 %v2753_v32, %v2741_v44  ;;  %v2769_v51 = vmul.f32 %v2761_v33, %v2743_v45 }
 0x1f3   : > { %v2697_v52 = vpop.f32.mrf.mxu0  ;;  %v2738_v2 = vpop.f32.mrf.mxu1 }
 0x1f4   : > { %v2796_v53 = vmax.f32 %v2792_v48, 0.0  ;;  %v2798_v54 = vmax.f32 %v2794_v49, 0.0  ;;  %v2793_v55 = vadd.f32 %v2779_v39, %v2767_v50  ;;  %v2795_v56 = vadd.f32 %v2787_v41, %v2769_v51 }
 0x1f6   : > { %v2804_v57 = vrot.slane %v2796_v53, 1  ;;  %v2806_v58 = vrot.slane %v2798_v54, 1  ;;  %v2797_v59 = vmax.f32 %v2793_v55, 0.0  ;;  %v2799_v60 = vmax.f32 %v2795_v56, 0.0 }
 0x1f8   : > { %v2812_v61 = vmax.f32 %v2796_v53, %v2804_v57  ;;  %v2814_v62 = vmax.f32 %v2798_v54, %v2806_v58  ;;  %v2805_v63 = vrot.slane %v2797_v59, 1  ;;  %v2807_v0 = vrot.slane %v2799_v60, 1 }
 0x1fa   : > { %v2813_v1 = vmax.f32 %v2797_v59, %v2805_v63  ;;  %v2815_v3 = vmax.f32 %v2799_v60, %v2807_v0  ;;  %v2820_v4 = vrot.slane %v2812_v61, 4  ;;  %v2822_v5 = vrot.slane %v2814_v62, 4 }
 0x1fc   : > { %v2821_v6 = vrot.slane %v2813_v1, 4  ;;  %v2823_v7 = vrot.slane %v2815_v3, 4  ;;  %v2828_v10 = vmax.f32 %v2812_v61, %v2820_v4  ;;  %v2830_v11 = vmax.f32 %v2814_v62, %v2822_v5 }
 0x1fe   : > { %v2829_v8 = vmax.f32 %v2813_v1, %v2821_v6  ;;  %v2831_v9 = vmax.f32 %v2815_v3, %v2823_v7 }
 0x200   : > { %3630 = vmatprep.subr.msk.mxu0 %vm2837_vm0, %v2829_v8  ;;  %3633 = vmatprep.subr.msk.mxu1 %vm2837_vm0, %v2831_v9 }
 0x201   : > { %3631 = vmatpush1.msk.msra.mxu0 %vm2837_vm0, %v2828_v10  ;;  %3634 = vmatpush1.msk.msra.mxu1 %vm2837_vm0, %v2830_v11 }
 0x202   : > { %3632 = vmatmul.mubr.msk.f32.vlgmr.msra.gmra.mxu0 %vm2833_vm1, %v2832_v14  ;;  %3635 = vmatmul.mubr.msk.f32.vlgmr.msra.gmra.mxu1 %vm2833_vm1, %v2832_v14 }
 0x2c2   : > { %v2916_v18 = vpop.f32.mrf.mxu0  ;;  %v2987_v19 = vpop.f32.mrf.mxu1 }
 0x2c4   : > { %v2918_v21 = vpop.f32.mrf.mxu0  ;;  %v2989_v22 = vpop.f32.mrf.mxu1 }
 0x2c5   : > { %v2996_v23 = vcombine.low %v2916_v18, %v2918_v21  ;;  %v2997_v24 = vcombine.low %v2987_v19, %v2989_v22 }
 0x2c7   : > { %v3004_v25 = vrot.slane %v2996_v23, %v3003_v20  ;;  %v3011_v26 = vrot.slane %v2997_v24, %v3003_v20 }
 0x2c9   : > { %v3012_v27 = vcombine.low %v3004_v25, %v3011_v26 }
 0x2cb   : > { %v3019_v28 = vrot.slane %v3012_v27, %v3003_v20 }
 0x2cd   : > { %3025 = vst.msk [vmem:[%s222_s8] sm:$0xf] %vm3023_vm2, %v3019_v28 }
 0x2ce PF: > { %s15_s18 = sadd.s32 1, %s4088_s18  }
 0x2cf   : > { %p12_p4 = scmp.ge.s32.totalorder %s15_s18, 4  }
 0x2d1   :  { %14 = sbr.rel (!%p12_p4) target bundleno = 1 (0x1), region = 78 }

</bundles_post_ra>
